<compile_context>
chip_gen: v7x
topology: tpu7x:2x2x1
jax: 0.10.0
libtpu: 0.0.40
codegen_flags: <defaults>
</compile_context>

<pallas_src>
import functools
import math

import jax
import jax.numpy as jnp
import numpy as np
from jax.experimental import pallas as pl
from jax.experimental.pallas import tpu as pltpu


# ----------------------------------------------------------------------------
# Kernel 1: Linear (+bias) fused with the first BatchNorm2d (batch statistics).
# Operates in the "wide" layout (B, s*s*128); the NCHW->NHWC permutation is
# baked into the weights at pack time, so lane index == spatial_p*128 + channel.
# ----------------------------------------------------------------------------

def _linear_bn_kernel(x_ref, w_ref, b_ref, g_ref, bt_ref, out_ref, *,
                      n_tiles, eps):
    C = 128
    x = x_ref[...].astype(jnp.bfloat16)
    lin = jnp.dot(x, w_ref[...], preferred_element_type=jnp.float32)
    lin = lin + b_ref[...]                                  # (B, n_tiles*128) f32
    n = lin.shape[0] * n_tiles

    # Per-channel mean: reduce over batch rows, then fold the lane tiles
    # (static 128-lane-aligned slices, cheap VPU adds).
    col = jnp.sum(lin, axis=0, keepdims=True)
    s1 = col[:, 0:C]
    for p in range(1, n_tiles):
        s1 = s1 + col[:, p * C:(p + 1) * C]
    mean_c = s1 * (1.0 / n)
    mean_w = jnp.concatenate([mean_c] * n_tiles, axis=1)

    # Two-pass (centered) variance, biased, matching torch train-mode BN.
    d = lin - mean_w
    dcol = jnp.sum(d * d, axis=0, keepdims=True)
    s2 = dcol[:, 0:C]
    for p in range(1, n_tiles):
        s2 = s2 + dcol[:, p * C:(p + 1) * C]
    var_c = s2 * (1.0 / n)

    scale_c = g_ref[...] * jax.lax.rsqrt(var_c + eps)
    shift_c = bt_ref[...] - mean_c * scale_c
    scale_w = jnp.concatenate([scale_c] * n_tiles, axis=1)
    shift_w = jnp.concatenate([shift_c] * n_tiles, axis=1)
    out_ref[...] = (lin * scale_w + shift_w).astype(out_ref.dtype)


# ----------------------------------------------------------------------------
# Kernel 2: the whole conv stack (both upsamples, all three convs, both BN +
# LeakyReLU blocks and the final tanh) fused in one VMEM-resident kernel.
# ----------------------------------------------------------------------------

def _conv_stack_kernel(x_ref, s1_ref, s2_ref, s3_ref,
                       wc1_ref, g1_ref, b1_ref,
                       wc2_ref, g2_ref, b2_ref,
                       wc3_ref, bc3_ref,
                       out_ref, *, eps, slope):

    def wsel(x, sel):
        # Fused (optional 2x nearest upsample) + zero halo along W expressed as
        # a batched 0/1 selection matmul:  y[n, q, c] = sum_j sel[q, j] x[n, j, c]
        # -> no sublane-interleave reshape is ever needed.
        B, h, w, C = x.shape
        Wp = sel.shape[0]
        xm = x.reshape(B * h, w, C)                      # merge leading dims (free)
        sb = jnp.broadcast_to(sel[None], (B * h, Wp, w))
        y = jnp.einsum('nqw,nwc->nqc', sb, xm,
                       preferred_element_type=jnp.float32)
        return y.astype(jnp.bfloat16).reshape(B, h, Wp, C)

    def up_pad_rows(x, upsample):
        # Row (H) duplication + zero halo: leading-dim slices/concat only.
        B, h, Wp, C = x.shape
        z = jnp.zeros((B, 1, Wp, C), x.dtype)
        if upsample:
            pieces = [z]
            for i in range(h):
                r = x[:, i:i + 1]
                pieces += [r, r]
            pieces.append(z)
        else:
            pieces = [z, x, z]
        return jnp.concatenate(pieces, axis=1)

    def conv3x3(xp, w_ref):
        # xp: (B, H+2, W+2, Cin) zero-padded bf16; w: (9*Cin, Cout), rows (kh,kw,c).
        # The im2col patch is built ONCE (kw shifts hoisted out of the kh loop),
        # then consumed by a single deep K = 9*Cin MXU matmul.
        B, Hp, Wp, Cin = xp.shape
        H, W = Hp - 2, Wp - 2
        xcat = jnp.concatenate([xp[:, :, kw:kw + W, :] for kw in range(3)],
                               axis=-1)                   # (B, H+2, W, 3Cin)
        patch = jnp.concatenate([xcat[:, kh:kh + H] for kh in range(3)],
                                axis=-1)                  # (B, H, W, 9Cin)
        patch = patch.reshape(B * H * W, 9 * Cin)         # W multiple of 8 -> free
        acc = jnp.dot(patch, w_ref[...], preferred_element_type=jnp.float32)
        return acc, (B, H, W)

    def bn_lrelu(acc, g, b):
        # Training-mode BatchNorm (batch stats, biased var, two-pass) + LeakyReLU.
        # The conv bias is omitted upstream: it cancels exactly under batch-stat BN.
        n = acc.shape[0]
        mean = jnp.sum(acc, axis=0, keepdims=True) * (1.0 / n)
        d = acc - mean
        var = jnp.sum(d * d, axis=0, keepdims=True) * (1.0 / n)
        y = d * jax.lax.rsqrt(var + eps) * g + b
        return jnp.maximum(y, slope * y)

    # --- Upsample 2x -> Conv3x3(128->128) -> BN(0.8) -> LeakyReLU(0.2)
    x = x_ref[...]                                        # (B, s, s, 128) bf16
    xp = up_pad_rows(wsel(x, s1_ref[...]), upsample=True)
    acc, (B, H, W) = conv3x3(xp, wc1_ref)
    x = bn_lrelu(acc, g1_ref[...], b1_ref[...])
    x = x.astype(jnp.bfloat16).reshape(B, H, W, 128)

    # --- Upsample 2x -> Conv3x3(128->64; Cout zero-padded to 128) -> BN -> LReLU
    xp = up_pad_rows(wsel(x, s2_ref[...]), upsample=True)
    acc, (B, H, W) = conv3x3(xp, wc2_ref)
    x = bn_lrelu(acc, g2_ref[...], b2_ref[...])
    x = x.astype(jnp.bfloat16).reshape(B, H, W, 128)

    # --- Conv3x3(64->C; Cin/Cout zero-padded to 128, lane-dense store) -> Tanh
    xp = up_pad_rows(wsel(x, s3_ref[...]), upsample=False)
    acc, (B, H, W) = conv3x3(xp, wc3_ref)
    y = jnp.tanh(acc + bc3_ref[...])
    out_ref[...] = y.reshape(B, H, W, 128).astype(out_ref.dtype)


# ----------------------------------------------------------------------------
# pallas_call wrappers (whole-array VMEM blocks; everything fits at these sizes)
# ----------------------------------------------------------------------------

def _vmem_spec():
    return pl.BlockSpec(memory_space=pltpu.MemorySpace.VMEM)


def _compiler_params(*arrays, extra_bytes=0):
    total = sum(int(a.size) * a.dtype.itemsize for a in arrays) + int(extra_bytes)
    # Cap well below v7x's 64 MiB per-TensorCore VMEM (headroom for Mosaic
    # scratch); v5e/v6e have 128 MiB so this is conservative everywhere.
    limit = min(48 * 1024 * 1024, max(32 * 1024 * 1024, 4 * total))
    return pltpu.CompilerParams(vmem_limit_bytes=int(limit))


# ----------------------------------------------------------------------------
# Parameter init (random stand-in for the torch module) and one-time packing
# ----------------------------------------------------------------------------

def init_params(key, latent_dim, n_classes, code_dim, img_size, num_channels):
    input_dim = latent_dim + n_classes + code_dim
    init_size = img_size // 4
    ks = jax.random.split(key, 12)

    def w_init(k, shape, fan_in):
        return jax.random.normal(k, shape, jnp.float32) / jnp.sqrt(fan_in)

    return {
        # Linear(input_dim, 128*s*s); stored as (Din, Dout) = l1.weight.T
        "w1": w_init(ks[0], (input_dim, 128 * init_size ** 2), input_dim),
        "b1": 0.01 * jax.random.normal(ks[1], (128 * init_size ** 2,), jnp.float32),
        # BatchNorm2d(128) (eps=1e-5)
        "bn0_g": 1.0 + 0.1 * jax.random.normal(ks[2], (128,), jnp.float32),
        "bn0_b": 0.1 * jax.random.normal(ks[3], (128,), jnp.float32),
        # Conv2d(128,128,3,p=1) HWIO.  bc1/bc2 exist for parameter parity but
        # are cancelled exactly by the batch-stat BatchNorm that follows.
        "wc1": w_init(ks[4], (3, 3, 128, 128), 9 * 128),
        "bc1": 0.01 * jax.random.normal(ks[5], (128,), jnp.float32),
        "bn1_g": 1.0 + 0.1 * jax.random.normal(ks[6], (128,), jnp.float32),
        "bn1_b": 0.1 * jax.random.normal(ks[7], (128,), jnp.float32),
        # Conv2d(128,64,3,p=1)
        "wc2": w_init(ks[8], (3, 3, 128, 64), 9 * 128),
        "bc2": 0.01 * jax.random.normal(ks[9], (64,), jnp.float32),
        "bn2_g": 1.0 + 0.1 * jax.random.normal(ks[10], (64,), jnp.float32),
        "bn2_b": 0.1 * jax.random.normal(ks[11], (64,), jnp.float32),
        # Conv2d(64,num_channels,3,p=1)
        "wc3": w_init(jax.random.fold_in(key, 99), (3, 3, 64, num_channels), 9 * 64),
        "bc3": jnp.zeros((num_channels,), jnp.float32),
    }


def _wsel_matrix(w_in, upsample):
    # 0/1 selection matrix fusing (optional 2x nearest upsample) + 1-px zero
    # halo along W:  out[q, j] = 1  iff  padded/upsampled column q reads x[:, j].
    w_out = 2 * w_in if upsample else w_in
    s = np.zeros((w_out + 2, w_in), np.float32)
    q = np.arange(1, w_out + 1)
    j = (q - 1) // 2 if upsample else (q - 1)
    s[q, j] = 1.0
    return jnp.asarray(s, jnp.bfloat16)


def pack_params(params, img_size, num_channels):
    """One-time weight preprocessing (hoisted out of the forward pass)."""
    s = img_size // 4
    w1 = params["w1"]
    din, dout = w1.shape

    # Bake the PyTorch view(B,128,s,s) NCHW -> NHWC conversion into the Linear.
    w1n = w1.reshape(din, 128, s, s).transpose(0, 2, 3, 1).reshape(din, dout)
    b1n = params["b1"].reshape(128, s, s).transpose(1, 2, 0).reshape(1, dout)
    kp = max(128, -(-din // 128) * 128)                 # pad K to a full lane tile
    w1p = jnp.pad(w1n, ((0, kp - din), (0, 0))).astype(jnp.bfloat16)

    def conv_w(w, cin_pad, cout_pad):
        _, _, cin, cout = w.shape
        w = jnp.pad(w, ((0, 0), (0, 0), (0, cin_pad - cin), (0, cout_pad - cout)))
        return w.reshape(9 * cin_pad, cout_pad).astype(jnp.bfloat16)

    return {
        "w1": w1p,
        "b1": b1n.astype(jnp.float32),
        "bn0_g": params["bn0_g"].reshape(1, 128).astype(jnp.float32),
        "bn0_b": params["bn0_b"].reshape(1, 128).astype(jnp.float32),
        "wc1": conv_w(params["wc1"], 128, 128),
        "bn1_g": params["bn1_g"].reshape(1, 128).astype(jnp.float32),
        "bn1_b": params["bn1_b"].reshape(1, 128).astype(jnp.float32),
        # conv2 Cout 64 -> 128 with zero filters; gamma pad=1, beta pad=0 so the
        # padded channels stay exactly 0 through BN + LeakyReLU.
        "wc2": conv_w(params["wc2"], 128, 128),
        "bn2_g": jnp.pad(params["bn2_g"], (0, 64), constant_values=1.0)
                   .reshape(1, 128).astype(jnp.float32),
        "bn2_b": jnp.pad(params["bn2_b"], (0, 64))
                   .reshape(1, 128).astype(jnp.float32),
        # conv3 Cin 64 -> 128 (zeros), Cout C -> 128 (lane-dense store).
        "wc3": conv_w(params["wc3"], 128, 128),
        "bc3": jnp.pad(params["bc3"], (0, 128 - num_channels))
                   .reshape(1, 128).astype(jnp.float32),
        "bc3_raw": params["bc3"],                       # carries static C
        "sel1": _wsel_matrix(s, True),                  # (2s+2, s)
        "sel2": _wsel_matrix(2 * s, True),              # (4s+2, 2s)
        "sel3": _wsel_matrix(4 * s, False),             # (4s+2, 4s)
    }


# ----------------------------------------------------------------------------
# Generator forward
# ----------------------------------------------------------------------------

def generator_forward(packed, noise, labels, code):
    w1 = packed["w1"]
    kp, dout = w1.shape
    s = math.isqrt(dout // 128)                 # static (from weight shapes)
    B = noise.shape[0]
    num_channels = packed["bc3_raw"].shape[0]   # static

    gen_input = jnp.concatenate(
        [noise, labels.astype(noise.dtype), code], axis=-1)
    din = gen_input.shape[-1]
    if din < kp:                                # pad contraction dim to 128 lanes
        gen_input = jnp.pad(gen_input, ((0, 0), (0, kp - din)))

    # Kernel 1: Linear + BN0, wide layout (B, s*s*128).
    h0 = pl.pallas_call(
        functools.partial(_linear_bn_kernel, n_tiles=s * s, eps=1e-5),
        out_shape=jax.ShapeDtypeStruct((B, dout), jnp.bfloat16),
        in_specs=[_vmem_spec()] * 5,
        out_specs=_vmem_spec(),
        compiler_params=_compiler_params(
            gen_input, w1, packed["b1"], extra_bytes=B * dout * 8),
    )(gen_input, w1, packed["b1"], packed["bn0_g"], packed["bn0_b"])

    # Free row-major reshape (B, s*s*128) -> NHWC (B, s, s, 128).
    x0 = h0.reshape(B, s, s, 128)

    # Kernel 2: the whole conv stack (upsamples, convs, BNs, LReLU, tanh).
    conv_args = (x0, packed["sel1"], packed["sel2"], packed["sel3"],
                 packed["wc1"], packed["bn1_g"], packed["bn1_b"],
                 packed["wc2"], packed["bn2_g"], packed["bn2_b"],
                 packed["wc3"], packed["bc3"])
    img_p = pl.pallas_call(
        functools.partial(_conv_stack_kernel, eps=0.8, slope=0.2),
        out_shape=jax.ShapeDtypeStruct((B, 4 * s, 4 * s, 128), jnp.float32),
        in_specs=[_vmem_spec()] * len(conv_args),
        out_specs=_vmem_spec(),
        compiler_params=_compiler_params(
            *conv_args, extra_bytes=B * (4 * s) * (4 * s) * 128 * 4 * 4),
    )(*conv_args)

    img = img_p[..., :num_channels]             # drop the zero-padded channels
    return img.transpose(0, 3, 1, 2)            # NCHW like torch


# ----------------------------------------------------------------------------
# Example run
# ----------------------------------------------------------------------------

if __name__ == "__main__":
    latent_dim, n_classes, code_dim = 16, 4, 2
    img_size, num_channels = 16, 3
    batch = 2

    key = jax.random.PRNGKey(0)
    k_par, k_noise, k_lab, k_code = jax.random.split(key, 4)

    params = init_params(k_par, latent_dim, n_classes, code_dim,
                         img_size, num_channels)
    packed = pack_params(params, img_size, num_channels)   # one-time packing

    noise = jax.random.normal(k_noise, (batch, latent_dim), jnp.float32)
    label_ids = jax.random.randint(k_lab, (batch,), 0, n_classes)
    labels = jax.nn.one_hot(label_ids, n_classes, dtype=jnp.float32)
    code = jax.random.uniform(k_code, (batch, code_dim), jnp.float32,
                              minval=-1.0, maxval=1.0)

    img = jax.jit(generator_forward)(packed, noise, labels, code)
    img = jax.block_until_ready(img)

    assert img.shape == (batch, num_channels, img_size, img_size), img.shape
    assert bool(jnp.all(jnp.isfinite(img)))
    assert bool(jnp.all(jnp.abs(img) <= 1.0))   # tanh output range
    print("KERNEL_OK")
</pallas_src>

<mosaic_0001>
module attributes {stable_mosaic.version = 11 : i64} {
  func.func @_conv_stack_kernel(%arg0: memref<2x4x4x128xbf16, #tpu.memory_space<vmem>>, %arg1: memref<10x4xbf16, #tpu.memory_space<vmem>>, %arg2: memref<18x8xbf16, #tpu.memory_space<vmem>>, %arg3: memref<18x16xbf16, #tpu.memory_space<vmem>>, %arg4: memref<1152x128xbf16, #tpu.memory_space<vmem>>, %arg5: memref<1x128xf32, #tpu.memory_space<vmem>>, %arg6: memref<1x128xf32, #tpu.memory_space<vmem>>, %arg7: memref<1152x128xbf16, #tpu.memory_space<vmem>>, %arg8: memref<1x128xf32, #tpu.memory_space<vmem>>, %arg9: memref<1x128xf32, #tpu.memory_space<vmem>>, %arg10: memref<1152x128xbf16, #tpu.memory_space<vmem>>, %arg11: memref<1x128xf32, #tpu.memory_space<vmem>>, %arg12: memref<2x16x16x128xf32, #tpu.memory_space<vmem>>) attributes {dimension_semantics = [], scalar_prefetch = 0 : i64, scratch_operands = 0 : i64, tpu.core_type = #tpu.core_type<tc>} {
    %c0 = arith.constant 0 : index
    %c0_0 = arith.constant 0 : index
    %c0_1 = arith.constant 0 : index
    %c0_2 = arith.constant 0 : index
    %0 = vector.load %arg0[%c0, %c0_0, %c0_1, %c0_2] : memref<2x4x4x128xbf16, #tpu.memory_space<vmem>>, vector<2x4x4x128xbf16>
    %c0_3 = arith.constant 0 : index
    %c0_4 = arith.constant 0 : index
    %1 = vector.load %arg1[%c0_3, %c0_4] : memref<10x4xbf16, #tpu.memory_space<vmem>>, vector<10x4xbf16>
    %2 = vector.shape_cast %0 : vector<2x4x4x128xbf16> to vector<8x4x128xbf16>
    %3 = vector.shape_cast %1 : vector<10x4xbf16> to vector<1x10x4xbf16>
    %4 = vector.shape_cast %3 : vector<1x10x4xbf16> to vector<1x10x4xbf16>
    %5 = vector.broadcast %4 : vector<1x10x4xbf16> to vector<8x10x4xbf16>
    "tpu.trace_start"() <{level = 10 : i32, message = "nqw,nwc->nqc"}> : () -> ()
    %cst = arith.constant dense<0.000000e+00> : vector<8x10x128xf32>
    %6 = tpu.matmul %5, %2, %cst {dimension_numbers = #tpu.dot_dimension_numbers<[2], [1], [1], [2], [0, 0, 0, 1, 1, 2], [0], [0]>} : vector<8x10x4xbf16>, vector<8x4x128xbf16>, vector<8x10x128xf32> -> vector<8x10x128xf32>
    "tpu.trace_stop"() : () -> ()
    %7 = arith.truncf %6 : vector<8x10x128xf32> to vector<8x10x128xbf16>
    %8 = vector.shape_cast %7 : vector<8x10x128xbf16> to vector<2x4x10x128xbf16>
    %cst_5 = arith.constant 0.000000e+00 : bf16
    %9 = vector.broadcast %cst_5 : bf16 to vector<2x1x10x128xbf16>
    %10 = vector.extract_strided_slice %8 {offsets = [0, 0, 0, 0], sizes = [2, 1, 10, 128], strides = [1, 1, 1, 1]} : vector<2x4x10x128xbf16> to vector<2x1x10x128xbf16>
    %11 = vector.extract_strided_slice %8 {offsets = [0, 1, 0, 0], sizes = [2, 1, 10, 128], strides = [1, 1, 1, 1]} : vector<2x4x10x128xbf16> to vector<2x1x10x128xbf16>
    %12 = vector.extract_strided_slice %8 {offsets = [0, 2, 0, 0], sizes = [2, 1, 10, 128], strides = [1, 1, 1, 1]} : vector<2x4x10x128xbf16> to vector<2x1x10x128xbf16>
    %13 = vector.extract_strided_slice %8 {offsets = [0, 3, 0, 0], sizes = [2, 1, 10, 128], strides = [1, 1, 1, 1]} : vector<2x4x10x128xbf16> to vector<2x1x10x128xbf16>
    %14 = tpu.concatenate %9, %10, %10, %11, %11, %12, %12, %13, %13, %9 in 1 : vector<2x1x10x128xbf16>, vector<2x1x10x128xbf16>, vector<2x1x10x128xbf16>, vector<2x1x10x128xbf16>, vector<2x1x10x128xbf16>, vector<2x1x10x128xbf16>, vector<2x1x10x128xbf16>, vector<2x1x10x128xbf16>, vector<2x1x10x128xbf16>, vector<2x1x10x128xbf16> -> vector<2x10x10x128xbf16>
    %15 = vector.extract_strided_slice %14 {offsets = [0, 0, 0, 0], sizes = [2, 10, 8, 128], strides = [1, 1, 1, 1]} : vector<2x10x10x128xbf16> to vector<2x10x8x128xbf16>
    %16 = vector.extract_strided_slice %14 {offsets = [0, 0, 1, 0], sizes = [2, 10, 8, 128], strides = [1, 1, 1, 1]} : vector<2x10x10x128xbf16> to vector<2x10x8x128xbf16>
    %17 = vector.extract_strided_slice %14 {offsets = [0, 0, 2, 0], sizes = [2, 10, 8, 128], strides = [1, 1, 1, 1]} : vector<2x10x10x128xbf16> to vector<2x10x8x128xbf16>
    %18 = tpu.concatenate %15, %16, %17 in 3 : vector<2x10x8x128xbf16>, vector<2x10x8x128xbf16>, vector<2x10x8x128xbf16> -> vector<2x10x8x384xbf16>
    %19 = vector.extract_strided_slice %18 {offsets = [0, 0, 0, 0], sizes = [2, 8, 8, 384], strides = [1, 1, 1, 1]} : vector<2x10x8x384xbf16> to vector<2x8x8x384xbf16>
    %20 = vector.extract_strided_slice %18 {offsets = [0, 1, 0, 0], sizes = [2, 8, 8, 384], strides = [1, 1, 1, 1]} : vector<2x10x8x384xbf16> to vector<2x8x8x384xbf16>
    %21 = vector.extract_strided_slice %18 {offsets = [0, 2, 0, 0], sizes = [2, 8, 8, 384], strides = [1, 1, 1, 1]} : vector<2x10x8x384xbf16> to vector<2x8x8x384xbf16>
    %22 = tpu.concatenate %19, %20, %21 in 3 : vector<2x8x8x384xbf16>, vector<2x8x8x384xbf16>, vector<2x8x8x384xbf16> -> vector<2x8x8x1152xbf16>
    %23 = vector.shape_cast %22 : vector<2x8x8x1152xbf16> to vector<128x1152xbf16>
    %c0_6 = arith.constant 0 : index
    %c0_7 = arith.constant 0 : index
    %24 = vector.load %arg4[%c0_6, %c0_7] : memref<1152x128xbf16, #tpu.memory_space<vmem>>, vector<1152x128xbf16>
    %cst_8 = arith.constant dense<0.000000e+00> : vector<128x128xf32>
    %25 = tpu.matmul %23, %24, %cst_8 {dimension_numbers = #tpu.dot_dimension_numbers<[1], [0], [0], [1], [0, 0, 1, 1], [], []>} : vector<128x1152xbf16>, vector<1152x128xbf16>, vector<128x128xf32> -> vector<128x128xf32>
    %c0_9 = arith.constant 0 : index
    %c0_10 = arith.constant 0 : index
    %26 = vector.load %arg5[%c0_9, %c0_10] : memref<1x128xf32, #tpu.memory_space<vmem>>, vector<1x128xf32>
    %c0_11 = arith.constant 0 : index
    %c0_12 = arith.constant 0 : index
    %27 = vector.load %arg6[%c0_11, %c0_12] : memref<1x128xf32, #tpu.memory_space<vmem>>, vector<1x128xf32>
    %cst_13 = arith.constant dense<0.000000e+00> : vector<128xf32>
    %28 = vector.multi_reduction <add>, %25, %cst_13 [0] : vector<128x128xf32> to vector<128xf32>
    %29 = vector.shape_cast %28 : vector<128xf32> to vector<1x128xf32>
    %cst_14 = arith.constant 7.812500e-03 : f32
    %30 = vector.broadcast %cst_14 : f32 to vector<1x128xf32>
    %31 = arith.mulf %29, %30 : vector<1x128xf32>
    %32 = vector.broadcast %31 : vector<1x128xf32> to vector<128x128xf32>
    %33 = arith.subf %25, %32 : vector<128x128xf32>
    %34 = arith.mulf %33, %33 : vector<128x128xf32>
    %cst_15 = arith.constant dense<0.000000e+00> : vector<128xf32>
    %35 = vector.multi_reduction <add>, %34, %cst_15 [0] : vector<128x128xf32> to vector<128xf32>
    %36 = vector.shape_cast %35 : vector<128xf32> to vector<1x128xf32>
    %cst_16 = arith.constant 7.812500e-03 : f32
    %37 = vector.broadcast %cst_16 : f32 to vector<1x128xf32>
    %38 = arith.mulf %36, %37 : vector<1x128xf32>
    %cst_17 = arith.constant 8.000000e-01 : f32
    %39 = vector.broadcast %cst_17 : f32 to vector<1x128xf32>
    %40 = arith.addf %38, %39 : vector<1x128xf32>
    %41 = math.rsqrt %40 : vector<1x128xf32>
    %42 = vector.broadcast %41 : vector<1x128xf32> to vector<128x128xf32>
    %43 = arith.mulf %33, %42 : vector<128x128xf32>
    %44 = vector.broadcast %26 : vector<1x128xf32> to vector<128x128xf32>
    %45 = arith.mulf %43, %44 : vector<128x128xf32>
    %46 = vector.broadcast %27 : vector<1x128xf32> to vector<128x128xf32>
    %47 = arith.addf %45, %46 : vector<128x128xf32>
    %cst_18 = arith.constant 2.000000e-01 : f32
    %48 = vector.broadcast %cst_18 : f32 to vector<128x128xf32>
    %49 = arith.mulf %48, %47 : vector<128x128xf32>
    %50 = arith.maximumf %47, %49 : vector<128x128xf32>
    %51 = arith.truncf %50 : vector<128x128xf32> to vector<128x128xbf16>
    %52 = vector.shape_cast %51 : vector<128x128xbf16> to vector<2x8x8x128xbf16>
    %c0_19 = arith.constant 0 : index
    %c0_20 = arith.constant 0 : index
    %53 = vector.load %arg2[%c0_19, %c0_20] : memref<18x8xbf16, #tpu.memory_space<vmem>>, vector<18x8xbf16>
    %54 = vector.shape_cast %52 : vector<2x8x8x128xbf16> to vector<16x8x128xbf16>
    %55 = vector.shape_cast %53 : vector<18x8xbf16> to vector<1x18x8xbf16>
    %56 = vector.shape_cast %55 : vector<1x18x8xbf16> to vector<1x18x8xbf16>
    %57 = vector.broadcast %56 : vector<1x18x8xbf16> to vector<16x18x8xbf16>
    "tpu.trace_start"() <{level = 10 : i32, message = "nqw,nwc->nqc"}> : () -> ()
    %cst_21 = arith.constant dense<0.000000e+00> : vector<16x18x128xf32>
    %58 = tpu.matmul %57, %54, %cst_21 {dimension_numbers = #tpu.dot_dimension_numbers<[2], [1], [1], [2], [0, 0, 0, 1, 1, 2], [0], [0]>} : vector<16x18x8xbf16>, vector<16x8x128xbf16>, vector<16x18x128xf32> -> vector<16x18x128xf32>
    "tpu.trace_stop"() : () -> ()
    %59 = arith.truncf %58 : vector<16x18x128xf32> to vector<16x18x128xbf16>
    %60 = vector.shape_cast %59 : vector<16x18x128xbf16> to vector<2x8x18x128xbf16>
    %cst_22 = arith.constant 0.000000e+00 : bf16
    %61 = vector.broadcast %cst_22 : bf16 to vector<2x1x18x128xbf16>
    %62 = vector.extract_strided_slice %60 {offsets = [0, 0, 0, 0], sizes = [2, 1, 18, 128], strides = [1, 1, 1, 1]} : vector<2x8x18x128xbf16> to vector<2x1x18x128xbf16>
    %63 = vector.extract_strided_slice %60 {offsets = [0, 1, 0, 0], sizes = [2, 1, 18, 128], strides = [1, 1, 1, 1]} : vector<2x8x18x128xbf16> to vector<2x1x18x128xbf16>
    %64 = vector.extract_strided_slice %60 {offsets = [0, 2, 0, 0], sizes = [2, 1, 18, 128], strides = [1, 1, 1, 1]} : vector<2x8x18x128xbf16> to vector<2x1x18x128xbf16>
    %65 = vector.extract_strided_slice %60 {offsets = [0, 3, 0, 0], sizes = [2, 1, 18, 128], strides = [1, 1, 1, 1]} : vector<2x8x18x128xbf16> to vector<2x1x18x128xbf16>
    %66 = vector.extract_strided_slice %60 {offsets = [0, 4, 0, 0], sizes = [2, 1, 18, 128], strides = [1, 1, 1, 1]} : vector<2x8x18x128xbf16> to vector<2x1x18x128xbf16>
    %67 = vector.extract_strided_slice %60 {offsets = [0, 5, 0, 0], sizes = [2, 1, 18, 128], strides = [1, 1, 1, 1]} : vector<2x8x18x128xbf16> to vector<2x1x18x128xbf16>
    %68 = vector.extract_strided_slice %60 {offsets = [0, 6, 0, 0], sizes = [2, 1, 18, 128], strides = [1, 1, 1, 1]} : vector<2x8x18x128xbf16> to vector<2x1x18x128xbf16>
    %69 = vector.extract_strided_slice %60 {offsets = [0, 7, 0, 0], sizes = [2, 1, 18, 128], strides = [1, 1, 1, 1]} : vector<2x8x18x128xbf16> to vector<2x1x18x128xbf16>
    %70 = tpu.concatenate %61, %62, %62, %63, %63, %64, %64, %65, %65, %66, %66, %67, %67, %68, %68, %69 in 1 : vector<2x1x18x128xbf16>, vector<2x1x18x128xbf16>, vector<2x1x18x128xbf16>, vector<2x1x18x128xbf16>, vector<2x1x18x128xbf16>, vector<2x1x18x128xbf16>, vector<2x1x18x128xbf16>, vector<2x1x18x128xbf16>, vector<2x1x18x128xbf16>, vector<2x1x18x128xbf16>, vector<2x1x18x128xbf16>, vector<2x1x18x128xbf16>, vector<2x1x18x128xbf16>, vector<2x1x18x128xbf16>, vector<2x1x18x128xbf16>, vector<2x1x18x128xbf16> -> vector<2x16x18x128xbf16>
    %71 = tpu.concatenate %69, %61 in 1 : vector<2x1x18x128xbf16>, vector<2x1x18x128xbf16> -> vector<2x2x18x128xbf16>
    %72 = tpu.concatenate %70, %71 in 1 : vector<2x16x18x128xbf16>, vector<2x2x18x128xbf16> -> vector<2x18x18x128xbf16>
    %73 = vector.extract_strided_slice %72 {offsets = [0, 0, 0, 0], sizes = [2, 18, 16, 128], strides = [1, 1, 1, 1]} : vector<2x18x18x128xbf16> to vector<2x18x16x128xbf16>
    %74 = vector.extract_strided_slice %72 {offsets = [0, 0, 1, 0], sizes = [2, 18, 16, 128], strides = [1, 1, 1, 1]} : vector<2x18x18x128xbf16> to vector<2x18x16x128xbf16>
    %75 = vector.extract_strided_slice %72 {offsets = [0, 0, 2, 0], sizes = [2, 18, 16, 128], strides = [1, 1, 1, 1]} : vector<2x18x18x128xbf16> to vector<2x18x16x128xbf16>
    %76 = tpu.concatenate %73, %74, %75 in 3 : vector<2x18x16x128xbf16>, vector<2x18x16x128xbf16>, vector<2x18x16x128xbf16> -> vector<2x18x16x384xbf16>
    %77 = vector.extract_strided_slice %76 {offsets = [0, 0, 0, 0], sizes = [2, 16, 16, 384], strides = [1, 1, 1, 1]} : vector<2x18x16x384xbf16> to vector<2x16x16x384xbf16>
    %78 = vector.extract_strided_slice %76 {offsets = [0, 1, 0, 0], sizes = [2, 16, 16, 384], strides = [1, 1, 1, 1]} : vector<2x18x16x384xbf16> to vector<2x16x16x384xbf16>
    %79 = vector.extract_strided_slice %76 {offsets = [0, 2, 0, 0], sizes = [2, 16, 16, 384], strides = [1, 1, 1, 1]} : vector<2x18x16x384xbf16> to vector<2x16x16x384xbf16>
    %80 = tpu.concatenate %77, %78, %79 in 3 : vector<2x16x16x384xbf16>, vector<2x16x16x384xbf16>, vector<2x16x16x384xbf16> -> vector<2x16x16x1152xbf16>
    %81 = vector.shape_cast %80 : vector<2x16x16x1152xbf16> to vector<512x1152xbf16>
    %c0_23 = arith.constant 0 : index
    %c0_24 = arith.constant 0 : index
    %82 = vector.load %arg7[%c0_23, %c0_24] : memref<1152x128xbf16, #tpu.memory_space<vmem>>, vector<1152x128xbf16>
    %cst_25 = arith.constant dense<0.000000e+00> : vector<512x128xf32>
    %83 = tpu.matmul %81, %82, %cst_25 {dimension_numbers = #tpu.dot_dimension_numbers<[1], [0], [0], [1], [0, 0, 1, 1], [], []>} : vector<512x1152xbf16>, vector<1152x128xbf16>, vector<512x128xf32> -> vector<512x128xf32>
    %c0_26 = arith.constant 0 : index
    %c0_27 = arith.constant 0 : index
    %84 = vector.load %arg8[%c0_26, %c0_27] : memref<1x128xf32, #tpu.memory_space<vmem>>, vector<1x128xf32>
    %c0_28 = arith.constant 0 : index
    %c0_29 = arith.constant 0 : index
    %85 = vector.load %arg9[%c0_28, %c0_29] : memref<1x128xf32, #tpu.memory_space<vmem>>, vector<1x128xf32>
    %cst_30 = arith.constant dense<0.000000e+00> : vector<128xf32>
    %86 = vector.multi_reduction <add>, %83, %cst_30 [0] : vector<512x128xf32> to vector<128xf32>
    %87 = vector.shape_cast %86 : vector<128xf32> to vector<1x128xf32>
    %cst_31 = arith.constant 0.001953125 : f32
    %88 = vector.broadcast %cst_31 : f32 to vector<1x128xf32>
    %89 = arith.mulf %87, %88 : vector<1x128xf32>
    %90 = vector.broadcast %89 : vector<1x128xf32> to vector<512x128xf32>
    %91 = arith.subf %83, %90 : vector<512x128xf32>
    %92 = arith.mulf %91, %91 : vector<512x128xf32>
    %cst_32 = arith.constant dense<0.000000e+00> : vector<128xf32>
    %93 = vector.multi_reduction <add>, %92, %cst_32 [0] : vector<512x128xf32> to vector<128xf32>
    %94 = vector.shape_cast %93 : vector<128xf32> to vector<1x128xf32>
    %cst_33 = arith.constant 0.001953125 : f32
    %95 = vector.broadcast %cst_33 : f32 to vector<1x128xf32>
    %96 = arith.mulf %94, %95 : vector<1x128xf32>
    %cst_34 = arith.constant 8.000000e-01 : f32
    %97 = vector.broadcast %cst_34 : f32 to vector<1x128xf32>
    %98 = arith.addf %96, %97 : vector<1x128xf32>
    %99 = math.rsqrt %98 : vector<1x128xf32>
    %100 = vector.broadcast %99 : vector<1x128xf32> to vector<512x128xf32>
    %101 = arith.mulf %91, %100 : vector<512x128xf32>
    %102 = vector.broadcast %84 : vector<1x128xf32> to vector<512x128xf32>
    %103 = arith.mulf %101, %102 : vector<512x128xf32>
    %104 = vector.broadcast %85 : vector<1x128xf32> to vector<512x128xf32>
    %105 = arith.addf %103, %104 : vector<512x128xf32>
    %cst_35 = arith.constant 2.000000e-01 : f32
    %106 = vector.broadcast %cst_35 : f32 to vector<512x128xf32>
    %107 = arith.mulf %106, %105 : vector<512x128xf32>
    %108 = arith.maximumf %105, %107 : vector<512x128xf32>
    %109 = arith.truncf %108 : vector<512x128xf32> to vector<512x128xbf16>
    %110 = vector.shape_cast %109 : vector<512x128xbf16> to vector<2x16x16x128xbf16>
    %c0_36 = arith.constant 0 : index
    %c0_37 = arith.constant 0 : index
    %111 = vector.load %arg3[%c0_36, %c0_37] : memref<18x16xbf16, #tpu.memory_space<vmem>>, vector<18x16xbf16>
    %112 = vector.shape_cast %110 : vector<2x16x16x128xbf16> to vector<32x16x128xbf16>
    %113 = vector.shape_cast %111 : vector<18x16xbf16> to vector<1x18x16xbf16>
    %114 = vector.shape_cast %113 : vector<1x18x16xbf16> to vector<1x18x16xbf16>
    %115 = vector.broadcast %114 : vector<1x18x16xbf16> to vector<32x18x16xbf16>
    "tpu.trace_start"() <{level = 10 : i32, message = "nqw,nwc->nqc"}> : () -> ()
    %cst_38 = arith.constant dense<0.000000e+00> : vector<32x18x128xf32>
    %116 = tpu.matmul %115, %112, %cst_38 {dimension_numbers = #tpu.dot_dimension_numbers<[2], [1], [1], [2], [0, 0, 0, 1, 1, 2], [0], [0]>} : vector<32x18x16xbf16>, vector<32x16x128xbf16>, vector<32x18x128xf32> -> vector<32x18x128xf32>
    "tpu.trace_stop"() : () -> ()
    %117 = arith.truncf %116 : vector<32x18x128xf32> to vector<32x18x128xbf16>
    %118 = vector.shape_cast %117 : vector<32x18x128xbf16> to vector<2x16x18x128xbf16>
    %cst_39 = arith.constant 0.000000e+00 : bf16
    %119 = vector.broadcast %cst_39 : bf16 to vector<2x1x18x128xbf16>
    %120 = tpu.concatenate %119, %118, %119 in 1 : vector<2x1x18x128xbf16>, vector<2x16x18x128xbf16>, vector<2x1x18x128xbf16> -> vector<2x18x18x128xbf16>
    %121 = vector.extract_strided_slice %120 {offsets = [0, 0, 0, 0], sizes = [2, 18, 16, 128], strides = [1, 1, 1, 1]} : vector<2x18x18x128xbf16> to vector<2x18x16x128xbf16>
    %122 = vector.extract_strided_slice %120 {offsets = [0, 0, 1, 0], sizes = [2, 18, 16, 128], strides = [1, 1, 1, 1]} : vector<2x18x18x128xbf16> to vector<2x18x16x128xbf16>
    %123 = vector.extract_strided_slice %120 {offsets = [0, 0, 2, 0], sizes = [2, 18, 16, 128], strides = [1, 1, 1, 1]} : vector<2x18x18x128xbf16> to vector<2x18x16x128xbf16>
    %124 = tpu.concatenate %121, %122, %123 in 3 : vector<2x18x16x128xbf16>, vector<2x18x16x128xbf16>, vector<2x18x16x128xbf16> -> vector<2x18x16x384xbf16>
    %125 = vector.extract_strided_slice %124 {offsets = [0, 0, 0, 0], sizes = [2, 16, 16, 384], strides = [1, 1, 1, 1]} : vector<2x18x16x384xbf16> to vector<2x16x16x384xbf16>
    %126 = vector.extract_strided_slice %124 {offsets = [0, 1, 0, 0], sizes = [2, 16, 16, 384], strides = [1, 1, 1, 1]} : vector<2x18x16x384xbf16> to vector<2x16x16x384xbf16>
    %127 = vector.extract_strided_slice %124 {offsets = [0, 2, 0, 0], sizes = [2, 16, 16, 384], strides = [1, 1, 1, 1]} : vector<2x18x16x384xbf16> to vector<2x16x16x384xbf16>
    %128 = tpu.concatenate %125, %126, %127 in 3 : vector<2x16x16x384xbf16>, vector<2x16x16x384xbf16>, vector<2x16x16x384xbf16> -> vector<2x16x16x1152xbf16>
    %129 = vector.shape_cast %128 : vector<2x16x16x1152xbf16> to vector<512x1152xbf16>
    %c0_40 = arith.constant 0 : index
    %c0_41 = arith.constant 0 : index
    %130 = vector.load %arg10[%c0_40, %c0_41] : memref<1152x128xbf16, #tpu.memory_space<vmem>>, vector<1152x128xbf16>
    %cst_42 = arith.constant dense<0.000000e+00> : vector<512x128xf32>
    %131 = tpu.matmul %129, %130, %cst_42 {dimension_numbers = #tpu.dot_dimension_numbers<[1], [0], [0], [1], [0, 0, 1, 1], [], []>} : vector<512x1152xbf16>, vector<1152x128xbf16>, vector<512x128xf32> -> vector<512x128xf32>
    %c0_43 = arith.constant 0 : index
    %c0_44 = arith.constant 0 : index
    %132 = vector.load %arg11[%c0_43, %c0_44] : memref<1x128xf32, #tpu.memory_space<vmem>>, vector<1x128xf32>
    %133 = vector.broadcast %132 : vector<1x128xf32> to vector<512x128xf32>
    %134 = arith.addf %131, %133 : vector<512x128xf32>
    %135 = math.tanh %134 : vector<512x128xf32>
    %136 = vector.shape_cast %135 : vector<512x128xf32> to vector<2x16x16x128xf32>
    %c0_45 = arith.constant 0 : index
    %c0_46 = arith.constant 0 : index
    %c0_47 = arith.constant 0 : index
    %c0_48 = arith.constant 0 : index
    %137 = vector.load %arg12[%c0_45, %c0_46, %c0_47, %c0_48] : memref<2x16x16x128xf32, #tpu.memory_space<vmem>>, vector<2x16x16x128xf32>
    tpu.vector_store %arg12[%c0_45, %c0_46, %c0_47, %c0_48], %136 {strides = array<i32>} : memref<2x16x16x128xf32, #tpu.memory_space<vmem>>, vector<2x16x16x128xf32>,
    return
  }
}

module attributes {stable_mosaic.version = 11 : i64} {
  func.func @_linear_bn_kernel(%arg0: memref<2x128xf32, #tpu.memory_space<vmem>>, %arg1: memref<128x2048xbf16, #tpu.memory_space<vmem>>, %arg2: memref<1x2048xf32, #tpu.memory_space<vmem>>, %arg3: memref<1x128xf32, #tpu.memory_space<vmem>>, %arg4: memref<1x128xf32, #tpu.memory_space<vmem>>, %arg5: memref<2x2048xbf16, #tpu.memory_space<vmem>>) attributes {dimension_semantics = [], scalar_prefetch = 0 : i64, scratch_operands = 0 : i64, tpu.core_type = #tpu.core_type<tc>} {
    %c0 = arith.constant 0 : index
    %c0_0 = arith.constant 0 : index
    %0 = vector.load %arg0[%c0, %c0_0] : memref<2x128xf32, #tpu.memory_space<vmem>>, vector<2x128xf32>
    %1 = arith.truncf %0 : vector<2x128xf32> to vector<2x128xbf16>
    %c0_1 = arith.constant 0 : index
    %c0_2 = arith.constant 0 : index
    %2 = vector.load %arg1[%c0_1, %c0_2] : memref<128x2048xbf16, #tpu.memory_space<vmem>>, vector<128x2048xbf16>
    %cst = arith.constant dense<0.000000e+00> : vector<2x2048xf32>
    %3 = tpu.matmul %1, %2, %cst {dimension_numbers = #tpu.dot_dimension_numbers<[1], [0], [0], [1], [0, 0, 1, 1], [], []>} : vector<2x128xbf16>, vector<128x2048xbf16>, vector<2x2048xf32> -> vector<2x2048xf32>
    %c0_3 = arith.constant 0 : index
    %c0_4 = arith.constant 0 : index
    %4 = vector.load %arg2[%c0_3, %c0_4] : memref<1x2048xf32, #tpu.memory_space<vmem>>, vector<1x2048xf32>
    %5 = vector.broadcast %4 : vector<1x2048xf32> to vector<2x2048xf32>
    %6 = arith.addf %3, %5 : vector<2x2048xf32>
    %cst_5 = arith.constant dense<0.000000e+00> : vector<2048xf32>
    %7 = vector.multi_reduction <add>, %6, %cst_5 [0] : vector<2x2048xf32> to vector<2048xf32>
    %8 = vector.shape_cast %7 : vector<2048xf32> to vector<1x2048xf32>
    %9 = vector.extract_strided_slice %8 {offsets = [0, 0], sizes = [1, 128], strides = [1, 1]} : vector<1x2048xf32> to vector<1x128xf32>
    %10 = vector.extract_strided_slice %8 {offsets = [0, 128], sizes = [1, 128], strides = [1, 1]} : vector<1x2048xf32> to vector<1x128xf32>
    %11 = arith.addf %9, %10 : vector<1x128xf32>
    %12 = vector.extract_strided_slice %8 {offsets = [0, 256], sizes = [1, 128], strides = [1, 1]} : vector<1x2048xf32> to vector<1x128xf32>
    %13 = arith.addf %11, %12 : vector<1x128xf32>
    %14 = vector.extract_strided_slice %8 {offsets = [0, 384], sizes = [1, 128], strides = [1, 1]} : vector<1x2048xf32> to vector<1x128xf32>
    %15 = arith.addf %13, %14 : vector<1x128xf32>
    %16 = vector.extract_strided_slice %8 {offsets = [0, 512], sizes = [1, 128], strides = [1, 1]} : vector<1x2048xf32> to vector<1x128xf32>
    %17 = arith.addf %15, %16 : vector<1x128xf32>
    %18 = vector.extract_strided_slice %8 {offsets = [0, 640], sizes = [1, 128], strides = [1, 1]} : vector<1x2048xf32> to vector<1x128xf32>
    %19 = arith.addf %17, %18 : vector<1x128xf32>
    %20 = vector.extract_strided_slice %8 {offsets = [0, 768], sizes = [1, 128], strides = [1, 1]} : vector<1x2048xf32> to vector<1x128xf32>
    %21 = arith.addf %19, %20 : vector<1x128xf32>
    %22 = vector.extract_strided_slice %8 {offsets = [0, 896], sizes = [1, 128], strides = [1, 1]} : vector<1x2048xf32> to vector<1x128xf32>
    %23 = arith.addf %21, %22 : vector<1x128xf32>
    %24 = vector.extract_strided_slice %8 {offsets = [0, 1024], sizes = [1, 128], strides = [1, 1]} : vector<1x2048xf32> to vector<1x128xf32>
    %25 = arith.addf %23, %24 : vector<1x128xf32>
    %26 = vector.extract_strided_slice %8 {offsets = [0, 1152], sizes = [1, 128], strides = [1, 1]} : vector<1x2048xf32> to vector<1x128xf32>
    %27 = arith.addf %25, %26 : vector<1x128xf32>
    %28 = vector.extract_strided_slice %8 {offsets = [0, 1280], sizes = [1, 128], strides = [1, 1]} : vector<1x2048xf32> to vector<1x128xf32>
    %29 = arith.addf %27, %28 : vector<1x128xf32>
    %30 = vector.extract_strided_slice %8 {offsets = [0, 1408], sizes = [1, 128], strides = [1, 1]} : vector<1x2048xf32> to vector<1x128xf32>
    %31 = arith.addf %29, %30 : vector<1x128xf32>
    %32 = vector.extract_strided_slice %8 {offsets = [0, 1536], sizes = [1, 128], strides = [1, 1]} : vector<1x2048xf32> to vector<1x128xf32>
    %33 = arith.addf %31, %32 : vector<1x128xf32>
    %34 = vector.extract_strided_slice %8 {offsets = [0, 1664], sizes = [1, 128], strides = [1, 1]} : vector<1x2048xf32> to vector<1x128xf32>
    %35 = arith.addf %33, %34 : vector<1x128xf32>
    %36 = vector.extract_strided_slice %8 {offsets = [0, 1792], sizes = [1, 128], strides = [1, 1]} : vector<1x2048xf32> to vector<1x128xf32>
    %37 = arith.addf %35, %36 : vector<1x128xf32>
    %38 = vector.extract_strided_slice %8 {offsets = [0, 1920], sizes = [1, 128], strides = [1, 1]} : vector<1x2048xf32> to vector<1x128xf32>
    %39 = arith.addf %37, %38 : vector<1x128xf32>
    %cst_6 = arith.constant 3.125000e-02 : f32
    %40 = vector.broadcast %cst_6 : f32 to vector<1x128xf32>
    %41 = arith.mulf %39, %40 : vector<1x128xf32>
    %42 = tpu.concatenate %41, %41, %41, %41, %41, %41, %41, %41, %41, %41, %41, %41, %41, %41, %41, %41 in 1 : vector<1x128xf32>, vector<1x128xf32>, vector<1x128xf32>, vector<1x128xf32>, vector<1x128xf32>, vector<1x128xf32>, vector<1x128xf32>, vector<1x128xf32>, vector<1x128xf32>, vector<1x128xf32>, vector<1x128xf32>, vector<1x128xf32>, vector<1x128xf32>, vector<1x128xf32>, vector<1x128xf32>, vector<1x128xf32> -> vector<1x2048xf32>
    %43 = vector.broadcast %42 : vector<1x2048xf32> to vector<2x2048xf32>
    %44 = arith.subf %6, %43 : vector<2x2048xf32>
    %45 = arith.mulf %44, %44 : vector<2x2048xf32>
    %cst_7 = arith.constant dense<0.000000e+00> : vector<2048xf32>
    %46 = vector.multi_reduction <add>, %45, %cst_7 [0] : vector<2x2048xf32> to vector<2048xf32>
    %47 = vector.shape_cast %46 : vector<2048xf32> to vector<1x2048xf32>
    %48 = vector.extract_strided_slice %47 {offsets = [0, 0], sizes = [1, 128], strides = [1, 1]} : vector<1x2048xf32> to vector<1x128xf32>
    %49 = vector.extract_strided_slice %47 {offsets = [0, 128], sizes = [1, 128], strides = [1, 1]} : vector<1x2048xf32> to vector<1x128xf32>
    %50 = arith.addf %48, %49 : vector<1x128xf32>
    %51 = vector.extract_strided_slice %47 {offsets = [0, 256], sizes = [1, 128], strides = [1, 1]} : vector<1x2048xf32> to vector<1x128xf32>
    %52 = arith.addf %50, %51 : vector<1x128xf32>
    %53 = vector.extract_strided_slice %47 {offsets = [0, 384], sizes = [1, 128], strides = [1, 1]} : vector<1x2048xf32> to vector<1x128xf32>
    %54 = arith.addf %52, %53 : vector<1x128xf32>
    %55 = vector.extract_strided_slice %47 {offsets = [0, 512], sizes = [1, 128], strides = [1, 1]} : vector<1x2048xf32> to vector<1x128xf32>
    %56 = arith.addf %54, %55 : vector<1x128xf32>
    %57 = vector.extract_strided_slice %47 {offsets = [0, 640], sizes = [1, 128], strides = [1, 1]} : vector<1x2048xf32> to vector<1x128xf32>
    %58 = arith.addf %56, %57 : vector<1x128xf32>
    %59 = vector.extract_strided_slice %47 {offsets = [0, 768], sizes = [1, 128], strides = [1, 1]} : vector<1x2048xf32> to vector<1x128xf32>
    %60 = arith.addf %58, %59 : vector<1x128xf32>
    %61 = vector.extract_strided_slice %47 {offsets = [0, 896], sizes = [1, 128], strides = [1, 1]} : vector<1x2048xf32> to vector<1x128xf32>
    %62 = arith.addf %60, %61 : vector<1x128xf32>
    %63 = vector.extract_strided_slice %47 {offsets = [0, 1024], sizes = [1, 128], strides = [1, 1]} : vector<1x2048xf32> to vector<1x128xf32>
    %64 = arith.addf %62, %63 : vector<1x128xf32>
    %65 = vector.extract_strided_slice %47 {offsets = [0, 1152], sizes = [1, 128], strides = [1, 1]} : vector<1x2048xf32> to vector<1x128xf32>
    %66 = arith.addf %64, %65 : vector<1x128xf32>
    %67 = vector.extract_strided_slice %47 {offsets = [0, 1280], sizes = [1, 128], strides = [1, 1]} : vector<1x2048xf32> to vector<1x128xf32>
    %68 = arith.addf %66, %67 : vector<1x128xf32>
    %69 = vector.extract_strided_slice %47 {offsets = [0, 1408], sizes = [1, 128], strides = [1, 1]} : vector<1x2048xf32> to vector<1x128xf32>
    %70 = arith.addf %68, %69 : vector<1x128xf32>
    %71 = vector.extract_strided_slice %47 {offsets = [0, 1536], sizes = [1, 128], strides = [1, 1]} : vector<1x2048xf32> to vector<1x128xf32>
    %72 = arith.addf %70, %71 : vector<1x128xf32>
    %73 = vector.extract_strided_slice %47 {offsets = [0, 1664], sizes = [1, 128], strides = [1, 1]} : vector<1x2048xf32> to vector<1x128xf32>
    %74 = arith.addf %72, %73 : vector<1x128xf32>
    %75 = vector.extract_strided_slice %47 {offsets = [0, 1792], sizes = [1, 128], strides = [1, 1]} : vector<1x2048xf32> to vector<1x128xf32>
    %76 = arith.addf %74, %75 : vector<1x128xf32>
    %77 = vector.extract_strided_slice %47 {offsets = [0, 1920], sizes = [1, 128], strides = [1, 1]} : vector<1x2048xf32> to vector<1x128xf32>
    %78 = arith.addf %76, %77 : vector<1x128xf32>
    %cst_8 = arith.constant 3.125000e-02 : f32
    %79 = vector.broadcast %cst_8 : f32 to vector<1x128xf32>
    %80 = arith.mulf %78, %79 : vector<1x128xf32>
    %c0_9 = arith.constant 0 : index
    %c0_10 = arith.constant 0 : index
    %81 = vector.load %arg3[%c0_9, %c0_10] : memref<1x128xf32, #tpu.memory_space<vmem>>, vector<1x128xf32>
    %cst_11 = arith.constant 9.99999974E-6 : f32
    %82 = vector.broadcast %cst_11 : f32 to vector<1x128xf32>
    %83 = arith.addf %80, %82 : vector<1x128xf32>
    %84 = math.rsqrt %83 : vector<1x128xf32>
    %85 = arith.mulf %81, %84 : vector<1x128xf32>
    %c0_12 = arith.constant 0 : index
    %c0_13 = arith.constant 0 : index
    %86 = vector.load %arg4[%c0_12, %c0_13] : memref<1x128xf32, #tpu.memory_space<vmem>>, vector<1x128xf32>
    %87 = arith.mulf %41, %85 : vector<1x128xf32>
    %88 = arith.subf %86, %87 : vector<1x128xf32>
    %89 = tpu.concatenate %85, %85, %85, %85, %85, %85, %85, %85, %85, %85, %85, %85, %85, %85, %85, %85 in 1 : vector<1x128xf32>, vector<1x128xf32>, vector<1x128xf32>, vector<1x128xf32>, vector<1x128xf32>, vector<1x128xf32>, vector<1x128xf32>, vector<1x128xf32>, vector<1x128xf32>, vector<1x128xf32>, vector<1x128xf32>, vector<1x128xf32>, vector<1x128xf32>, vector<1x128xf32>, vector<1x128xf32>, vector<1x128xf32> -> vector<1x2048xf32>
    %90 = tpu.concatenate %88, %88, %88, %88, %88, %88, %88, %88, %88, %88, %88, %88, %88, %88, %88, %88 in 1 : vector<1x128xf32>, vector<1x128xf32>, vector<1x128xf32>, vector<1x128xf32>, vector<1x128xf32>, vector<1x128xf32>, vector<1x128xf32>, vector<1x128xf32>, vector<1x128xf32>, vector<1x128xf32>, vector<1x128xf32>, vector<1x128xf32>, vector<1x128xf32>, vector<1x128xf32>, vector<1x128xf32>, vector<1x128xf32> -> vector<1x2048xf32>
    %91 = vector.broadcast %89 : vector<1x2048xf32> to vector<2x2048xf32>
    %92 = arith.mulf %6, %91 : vector<2x2048xf32>
    %93 = vector.broadcast %90 : vector<1x2048xf32> to vector<2x2048xf32>
    %94 = arith.addf %92, %93 : vector<2x2048xf32>
    %95 = arith.truncf %94 : vector<2x2048xf32> to vector<2x2048xbf16>
    %c0_14 = arith.constant 0 : index
    %c0_15 = arith.constant 0 : index
    %96 = vector.load %arg5[%c0_14, %c0_15] : memref<2x2048xbf16, #tpu.memory_space<vmem>>, vector<2x2048xbf16>
    tpu.vector_store %arg5[%c0_14, %c0_15], %95 {strides = array<i32>} : memref<2x2048xbf16, #tpu.memory_space<vmem>>, vector<2x2048xbf16>,
    return
  }
}

</mosaic_0001>

<bundles_post_ra>
// kernel: generator_forward.2
= control target key start
LH: loop header
LB: loop body
LE: loop exit
PB: predicated region body
PF: predicated region fallthrough
CT: control target
= control target key end

     0   :  { %10 = vsyncpa [#allocation3], 0  ;;  %s2264_s0 = inlined_call_operand.vmem [shape: f32[2,128], index: 0, kind: input, shape index: {}]   ;;  %s2265_s1 = inlined_call_operand.hbm [shape: bf16[128,2048], index: 1, kind: input, shape index: {}]   ;;  %s2266_s2 = inlined_call_operand.hbm [shape: f32[1,2048], index: 2, kind: input, shape index: {}]   ;;  %s2267_s3 = inlined_call_operand.hbm [shape: f32[1,128], index: 3, kind: input, shape index: {}]   ;;  %s2268_s4 = inlined_call_operand.hbm [shape: f32[1,128], index: 4, kind: input, shape index: {}]   ;;  %s2269_s5 = inlined_call_operand.vmem [shape: bf16[2,2048], index: 5, kind: output, shape index: {}]  }
   0x1   :  { %11 = vsyncpa [#allocation5], 0 }
   0x2   :  { %12 = vsyncpa [#allocation8], 0  ;;  %s1973_s18 = smov [#allocation4]   ;;  %s1974_s20 = smov [#allocation2]  }
   0x3   :  { %s33_s19 = sshll.u32 %s1973_s18, 4  ;;  %s20_s21 = sshll.u32 %s1974_s20, 4  ;;  %s34_s19 = int_to_ptr.vmem [resolvable:$true] %s33_s19  ;;  %s2011_s21 = int_to_ptr.vmem [resolvable:$true] %s20_s21 }
   0x4   :  { %s1879_s24 = scalar_lea.hbm %s2266_s2, 256 }
   0x5   :  { %p1880_p0 = scmp.ne.s32.totalorder %s2266_s2, %s1879_s24  ;;  %p1883_p1 = scmp.lt.u32.totalorder %s1879_s24, %s2266_s2 }
   0x7   :  { %p1885_p2 = pnand %p1883_p1, %p1880_p0 }
   0x9   :  { %1888 = shalt.err (!%p1885_p2)
}
   0xa   :  { %s1889_s29 = scalar_lea.vmem %s34_s19, 256  ;;  %p1894_p4 = scmp.lt.s32.totalorder %s34_s19, %s34_s19 }
   0xb   :  { %p1890_p3 = scmp.ne.s32.totalorder %s34_s19, %s1889_s29  ;;  %p1895_p5 = scmp.lt.s32.totalorder %s1889_s29, %s1889_s29 }
   0xd   :  { %p1896_p6 = por %p1895_p5, %p1894_p4 }
   0xf   :  { %p1897_p7 = pnand %p1896_p6, %p1890_p3 }
  0x11   :  { %1900 = shalt.err (!%p1897_p7)
}
  0x12   :  { %36 = dma.hbm_to_vmem [thread:$0]  %s2266_s2, 256, %s34_s19, [#allocation5]  }
  0x13   :  { %s1901_s9 = scalar_lea.hbm %s2265_s1, 16384 }
  0x14   :  { %p1902_p8 = scmp.ne.s32.totalorder %s2265_s1, %s1901_s9  ;;  %p1905_p9 = scmp.lt.u32.totalorder %s1901_s9, %s2265_s1 }
  0x16   :  { %p1907_p10 = pnand %p1905_p9, %p1902_p8 }
  0x18   :  { %1910 = shalt.err (!%p1907_p10)
}
  0x19   :  { %s1911_s14 = scalar_lea.vmem %s2011_s21, 16384  ;;  %p1916_p12 = scmp.lt.s32.totalorder %s2011_s21, %s2011_s21 }
  0x1a   :  { %p1912_p11 = scmp.ne.s32.totalorder %s2011_s21, %s1911_s14  ;;  %p1917_p13 = scmp.lt.s32.totalorder %s1911_s14, %s1911_s14 }
  0x1c   :  { %p1918_p0 = por %p1917_p13, %p1916_p12 }
  0x1e   :  { %p1919_p1 = pnand %p1918_p0, %p1912_p11 }
  0x20   :  { %1922 = shalt.err (!%p1919_p1)
}
  0x21   :  { %s1975_s2 = smov 1024   ;;  %s1976_s15 = smov 64  }
  0x22   :  { %26 = dma.hbm_to_vmem [thread:$0]  %s2265_s1, 16384, %s2011_s21, [#allocation3], %s1975_s2, %s1975_s2, %s1976_s15  }
  0x23   :  { %s1977_s18 = smov [#allocation6]   ;;  %s1978_s20 = smov [#allocation7]  }
  0x24   :  { %s43_s19 = sshll.u32 %s1977_s18, 4  ;;  %s53_s22 = sshll.u32 %s1978_s20, 4  ;;  %s44_s19 = int_to_ptr.vmem [resolvable:$true] %s43_s19  ;;  %s54_s22 = int_to_ptr.vmem [resolvable:$true] %s53_s22 }
  0x25   :  { %s1923_s25 = scalar_lea.hbm %s2267_s3, 16 }
  0x26   :  { %p1924_p2 = scmp.ne.s32.totalorder %s2267_s3, %s1923_s25  ;;  %p1927_p3 = scmp.lt.u32.totalorder %s1923_s25, %s2267_s3 }
  0x28   :  { %p1929_p4 = pnand %p1927_p3, %p1924_p2 }
  0x2a   :  { %1932 = shalt.err (!%p1929_p4)
}
  0x2b   :  { %s1933_s1 = scalar_lea.vmem %s44_s19, 16  ;;  %s1937_s21 = scalar_lea.vmem %s44_s19, 32 }
  0x2c   :  { %p1934_p5 = scmp.ne.s32.totalorder %s44_s19, %s1933_s1  ;;  %p1938_p6 = scmp.lt.s32.totalorder %s44_s19, %s44_s19 }
  0x2d   :  { %p1939_p7 = scmp.lt.s32.totalorder %s1937_s21, %s1933_s1 }
  0x2f   :  { %p1940_p8 = por %p1939_p7, %p1938_p6 }
  0x31   :  { %p1941_p9 = pnand %p1940_p8, %p1934_p5 }
  0x33   :  { %1944 = shalt.err (!%p1941_p9)
}
  0x34   :  { %46 = dma.hbm_to_vmem [thread:$0]  %s2267_s3, 16, %s44_s19, [#allocation5]  }
  0x35   :  { %s1945_s9 = scalar_lea.hbm %s2268_s4, 16 }
  0x36   :  { %p1946_p10 = scmp.ne.s32.totalorder %s2268_s4, %s1945_s9  ;;  %p1949_p11 = scmp.lt.u32.totalorder %s1945_s9, %s2268_s4 }
  0x38   :  { %p1951_p12 = pnand %p1949_p11, %p1946_p10 }
  0x3a   :  { %1954 = shalt.err (!%p1951_p12)
}
  0x3b   :  { %s1955_s14 = scalar_lea.vmem %s54_s22, 16  ;;  %s1959_s2 = scalar_lea.vmem %s54_s22, 32 }
  0x3c   :  { %p1956_p13 = scmp.ne.s32.totalorder %s54_s22, %s1955_s14  ;;  %p1960_p0 = scmp.lt.s32.totalorder %s54_s22, %s54_s22 }
  0x3d   :  { %p1961_p1 = scmp.lt.s32.totalorder %s1959_s2, %s1955_s14 }
  0x3f   :  { %p1962_p2 = por %p1961_p1, %p1960_p0 }
  0x41   :  { %p1963_p3 = pnand %p1962_p2, %p1956_p13 }
  0x43   :  { %1966 = shalt.err (!%p1963_p3)
}
  0x44   :  { %56 = dma.hbm_to_vmem [thread:$0]  %s2268_s4, 16, %s54_s22, [#allocation8]  }
  0x45   :  { %1967 = dma.done.wait [#allocation3], 16384  }
  0x46   :  { %1968 = vsyncadd [#allocation3], 4294950912 }
  0x47   :  { %1969 = dma.done.wait [#allocation5], 272  }
  0x48   :  { %1970 = vsyncadd [#allocation5], 4294967024 }
  0x49   :  { %1971 = dma.done.wait [#allocation8], 16  }
  0x4a   :  { %1972 = vsyncadd [#allocation8], 4294967280  ;;  %v1979_v0 = vmov 0   ;;  %v72_v1 = vld [vmem:[#allocation2] sm:$0xff]  ;;  %v73_v3 = vld [vmem:[#allocation2 + $0x8] sm:$0xff]  ;;  %vm1252_vm0 = vcmask 1041408  }
  0x4b   :  { %956 = vmatprep.mubr.bf16.mxu0 %v1979_v0  ;;  %997 = vmatprep.mubr.bf16.mxu1 %v1979_v0  ;;  %v80_v2 = vld [vmem:[#allocation2 + $0x40] sm:$0xff]  ;;  %v81_v5 = vld [vmem:[#allocation2 + $0x48] sm:$0xff]  ;;  %v74_v63 = vld [vmem:[#allocation2 + $0x10] sm:$0xff] }
  0x4c   :  { %v1734_v4 = vcombine.high %v72_v1, %v80_v2  ;;  %v1733_v6 = vcombine.low %v72_v1, %v80_v2  ;;  %v88_v7 = vld [vmem:[#allocation2 + $0x80] sm:$0xff]  ;;  %v1736_v9 = vcombine.high %v73_v3, %v81_v5  ;;  %v1735_v10 = vcombine.low %v73_v3, %v81_v5  ;;  %v89_v12 = vld [vmem:[#allocation2 + $0x88] sm:$0xff]  ;;  %v82_v1 = vld [vmem:[#allocation2 + $0x50] sm:$0xff] }
  0x4d   :  { %v96_v8 = vld [vmem:[#allocation2 + $0xc0] sm:$0xff]  ;;  %v97_v13 = vld [vmem:[#allocation2 + $0xc8] sm:$0xff]  ;;  %v75_v2 = vld [vmem:[#allocation2 + $0x18] sm:$0xff] }
  0x4e   :  { %v1750_v11 = vcombine.high %v88_v7, %v96_v8  ;;  %v104_v14 = vld [vmem:[#allocation2 + $0x100] sm:$0xff]  ;;  %924 = vmatprep.subr.bf16.mxu0 %v1734_v4  ;;  %v1752_v15 = vcombine.high %v89_v12, %v97_v13  ;;  %v105_v17 = vld [vmem:[#allocation2 + $0x108] sm:$0xff]  ;;  %965 = vmatprep.subr.bf16.mxu1 %v1736_v9  ;;  %v1749_v19 = vcombine.low %v88_v7, %v96_v8  ;;  %v83_v3 = vld [vmem:[#allocation2 + $0x58] sm:$0xff] }
  0x4f   :  { %v112_v16 = vld [vmem:[#allocation2 + $0x140] sm:$0xff]  ;;  %v113_v18 = vld [vmem:[#allocation2 + $0x148] sm:$0xff]  ;;  %925 = vmatpush1.bf16.msra.mxu0 %v1733_v6  ;;  %966 = vmatpush1.bf16.msra.mxu1 %v1735_v10  ;;  %v1751_v20 = vcombine.low %v89_v12, %v97_v13  ;;  %v1738_v7 = vcombine.high %v74_v63, %v82_v1  ;;  %v1740_v8 = vcombine.high %v75_v2, %v83_v3  ;;  %v90_v9 = vld [vmem:[#allocation2 + $0x90] sm:$0xff] }
  0x50   :  { %926 = vmatprep.subr.bf16.mxu0 %v1750_v11  ;;  %v1766_v21 = vcombine.high %v104_v14, %v112_v16  ;;  %967 = vmatprep.subr.bf16.mxu1 %v1752_v15  ;;  %v1768_v22 = vcombine.high %v105_v17, %v113_v18  ;;  %v120_v23 = vld [vmem:[#allocation2 + $0x180] sm:$0xff]  ;;  %v121_v25 = vld [vmem:[#allocation2 + $0x188] sm:$0xff]  ;;  %v1765_v27 = vcombine.low %v104_v14, %v112_v16  ;;  %v98_v10 = vld [vmem:[#allocation2 + $0xd0] sm:$0xff] }
  0x51   :  { %v128_v24 = vld [vmem:[#allocation2 + $0x1c0] sm:$0xff]  ;;  %v129_v26 = vld [vmem:[#allocation2 + $0x1c8] sm:$0xff]  ;;  %v1767_v28 = vcombine.low %v105_v17, %v113_v18  ;;  %v91_v12 = vld [vmem:[#allocation2 + $0x98] sm:$0xff]  ;;  %v1737_v14 = vcombine.low %v74_v63, %v82_v1  ;;  %v1739_v15 = vcombine.low %v75_v2, %v83_v3  ;;  %v1754_v16 = vcombine.high %v90_v9, %v98_v10 }
  0x52   :  { %v1782_v29 = vcombine.high %v120_v23, %v128_v24  ;;  %v1784_v30 = vcombine.high %v121_v25, %v129_v26  ;;  %v136_v31 = vld [vmem:[#allocation2 + $0x200] sm:$0xff]  ;;  %v137_v33 = vld [vmem:[#allocation2 + $0x208] sm:$0xff]  ;;  %v1781_v35 = vcombine.low %v120_v23, %v128_v24  ;;  %v1783_v36 = vcombine.low %v121_v25, %v129_v26  ;;  %v99_v13 = vld [vmem:[#allocation2 + $0xd8] sm:$0xff] }
  0x53   :  { %927 = vmatpush1.bf16.msra.mxu0 %v1749_v19  ;;  %968 = vmatpush1.bf16.msra.mxu1 %v1751_v20  ;;  %v144_v32 = vld [vmem:[#allocation2 + $0x240] sm:$0xff]  ;;  %v145_v34 = vld [vmem:[#allocation2 + $0x248] sm:$0xff]  ;;  %v1756_v17 = vcombine.high %v91_v12, %v99_v13  ;;  %v106_v18 = vld [vmem:[#allocation2 + $0x110] sm:$0xff]  ;;  %v1755_v23 = vcombine.low %v91_v12, %v99_v13 }
  0x54   :  { %928 = vmatprep.subr.bf16.mxu0 %v1766_v21  ;;  %969 = vmatprep.subr.bf16.mxu1 %v1768_v22  ;;  %v1798_v37 = vcombine.high %v136_v31, %v144_v32  ;;  %v1800_v38 = vcombine.high %v137_v33, %v145_v34  ;;  %v152_v39 = vld [vmem:[#allocation2 + $0x280] sm:$0xff]  ;;  %v153_v41 = vld [vmem:[#allocation2 + $0x288] sm:$0xff]  ;;  %v1797_v43 = vcombine.low %v136_v31, %v144_v32  ;;  %v114_v19 = vld [vmem:[#allocation2 + $0x150] sm:$0xff] }
  0x55   :  { %v160_v40 = vld [vmem:[#allocation2 + $0x2c0] sm:$0xff]  ;;  %v161_v42 = vld [vmem:[#allocation2 + $0x2c8] sm:$0xff]  ;;  %v1799_v44 = vcombine.low %v137_v33, %v145_v34  ;;  %v107_v20 = vld [vmem:[#allocation2 + $0x118] sm:$0xff]  ;;  %v1753_v22 = vcombine.low %v90_v9, %v98_v10  ;;  %v1770_v24 = vcombine.high %v106_v18, %v114_v19 }
  0x56   :  { %v1814_v45 = vcombine.high %v152_v39, %v160_v40  ;;  %v1816_v46 = vcombine.high %v153_v41, %v161_v42  ;;  %v168_v47 = vld [vmem:[#allocation2 + $0x300] sm:$0xff]  ;;  %v169_v49 = vld [vmem:[#allocation2 + $0x308] sm:$0xff]  ;;  %v1813_v51 = vcombine.low %v152_v39, %v160_v40  ;;  %v1815_v52 = vcombine.low %v153_v41, %v161_v42  ;;  %v115_v21 = vld [vmem:[#allocation2 + $0x158] sm:$0xff] }
  0x57   :  { %929 = vmatpush1.bf16.msra.mxu0 %v1765_v27  ;;  %970 = vmatpush1.bf16.msra.mxu1 %v1767_v28  ;;  %v176_v48 = vld [vmem:[#allocation2 + $0x340] sm:$0xff]  ;;  %v177_v50 = vld [vmem:[#allocation2 + $0x348] sm:$0xff]  ;;  %v1772_v25 = vcombine.high %v107_v20, %v115_v21  ;;  %v122_v26 = vld [vmem:[#allocation2 + $0x190] sm:$0xff]  ;;  %v1771_v31 = vcombine.low %v107_v20, %v115_v21 }
  0x58   :  { %930 = vmatprep.subr.bf16.mxu0 %v1782_v29  ;;  %971 = vmatprep.subr.bf16.mxu1 %v1784_v30  ;;  %v1830_v53 = vcombine.high %v168_v47, %v176_v48  ;;  %v1832_v54 = vcombine.high %v169_v49, %v177_v50  ;;  %v184_v55 = vld [vmem:[#allocation2 + $0x380] sm:$0xff]  ;;  %v185_v57 = vld [vmem:[#allocation2 + $0x388] sm:$0xff]  ;;  %v1829_v59 = vcombine.low %v168_v47, %v176_v48  ;;  %v130_v27 = vld [vmem:[#allocation2 + $0x1d0] sm:$0xff] }
  0x59   :  { %v192_v56 = vld [vmem:[#allocation2 + $0x3c0] sm:$0xff]  ;;  %v193_v58 = vld [vmem:[#allocation2 + $0x3c8] sm:$0xff]  ;;  %v1831_v60 = vcombine.low %v169_v49, %v177_v50  ;;  %v123_v28 = vld [vmem:[#allocation2 + $0x198] sm:$0xff]  ;;  %v1769_v30 = vcombine.low %v106_v18, %v114_v19  ;;  %v1786_v32 = vcombine.high %v122_v26, %v130_v27 }
  0x5a   :  { %v1846_v61 = vcombine.high %v184_v55, %v192_v56  ;;  %v1848_v62 = vcombine.high %v185_v57, %v193_v58  ;;  %v1845_v4 = vcombine.low %v184_v55, %v192_v56  ;;  %v70_v5 = vld [vmem:[%s2264_s0] sm:$0x3]  ;;  %v1847_v6 = vcombine.low %v185_v57, %v193_v58  ;;  %v131_v29 = vld [vmem:[#allocation2 + $0x1d8] sm:$0xff]  ;;  %v138_v34 = vld [vmem:[#allocation2 + $0x210] sm:$0xff] }
  0x5b   :  { %931 = vmatpush1.bf16.msra.mxu0 %v1781_v35  ;;  %972 = vmatpush1.bf16.msra.mxu1 %v1783_v36  ;;  %v2071_v11 = vpack.c.bf16 %v70_v5, %v70_v5  ;;  %v1788_v33 = vcombine.high %v123_v28, %v131_v29  ;;  %v146_v35 = vld [vmem:[#allocation2 + $0x250] sm:$0xff]  ;;  %v139_v36 = vld [vmem:[#allocation2 + $0x218] sm:$0xff]  ;;  %v1787_v39 = vcombine.low %v123_v28, %v131_v29  ;;  %v76_v3 = vld [vmem:[#allocation2 + $0x20] sm:$0xff] }
  0x5c   :  { %932 = vmatprep.subr.bf16.mxu0 %v1798_v37  ;;  %973 = vmatprep.subr.bf16.mxu1 %v1800_v38  ;;  %v147_v37 = vld [vmem:[#allocation2 + $0x258] sm:$0xff]  ;;  %v1785_v38 = vcombine.low %v122_v26, %v130_v27  ;;  %v1802_v40 = vcombine.high %v138_v34, %v146_v35  ;;  %v154_v42 = vld [vmem:[#allocation2 + $0x290] sm:$0xff]  ;;  %v77_v5 = vld [vmem:[#allocation2 + $0x28] sm:$0xff] }
  0x5d   :  { %v1804_v41 = vcombine.high %v139_v36, %v147_v37  ;;  %v1803_v47 = vcombine.low %v139_v36, %v147_v37  ;;  %v170_v50 = vld [vmem:[#allocation2 + $0x310] sm:$0xff]  ;;  %v92_v12 = vld [vmem:[#allocation2 + $0xa0] sm:$0xff] }
  0x5e   :  { %v186_v58 = vld [vmem:[#allocation2 + $0x390] sm:$0xff]  ;;  %v100_v13 = vld [vmem:[#allocation2 + $0xe0] sm:$0xff] }
  0x5f   :  { %933 = vmatpush1.bf16.msra.mxu0 %v1797_v43  ;;  %974 = vmatpush1.bf16.msra.mxu1 %v1799_v44  ;;  %v162_v43 = vld [vmem:[#allocation2 + $0x2d0] sm:$0xff]  ;;  %v155_v44 = vld [vmem:[#allocation2 + $0x298] sm:$0xff]  ;;  %v1758_v18 = vcombine.high %v92_v12, %v100_v13  ;;  %v108_v20 = vld [vmem:[#allocation2 + $0x120] sm:$0xff] }
  0x60   :  { %934 = vmatprep.subr.bf16.mxu0 %v1814_v45  ;;  %975 = vmatprep.subr.bf16.mxu1 %v1816_v46  ;;  %v163_v45 = vld [vmem:[#allocation2 + $0x2d8] sm:$0xff]  ;;  %v1801_v46 = vcombine.low %v138_v34, %v146_v35  ;;  %v1818_v48 = vcombine.high %v154_v42, %v162_v43  ;;  %v116_v21 = vld [vmem:[#allocation2 + $0x160] sm:$0xff] }
  0x61   :  { %v1820_v49 = vcombine.high %v155_v44, %v163_v45  ;;  %v1819_v55 = vcombine.low %v155_v44, %v163_v45  ;;  %v1774_v26 = vcombine.high %v108_v20, %v116_v21  ;;  %v124_v28 = vld [vmem:[#allocation2 + $0x1a0] sm:$0xff] }
  0x62   :  { %v132_v29 = vld [vmem:[#allocation2 + $0x1e0] sm:$0xff] }
  0x63   :  { %935 = vmatpush1.bf16.msra.mxu0 %v1813_v51  ;;  %976 = vmatpush1.bf16.msra.mxu1 %v1815_v52  ;;  %v178_v51 = vld [vmem:[#allocation2 + $0x350] sm:$0xff]  ;;  %v171_v52 = vld [vmem:[#allocation2 + $0x318] sm:$0xff]  ;;  %v1790_v34 = vcombine.high %v124_v28, %v132_v29  ;;  %v140_v36 = vld [vmem:[#allocation2 + $0x220] sm:$0xff] }
  0x64   :  { %936 = vmatprep.subr.bf16.mxu0 %v1830_v53  ;;  %977 = vmatprep.subr.bf16.mxu1 %v1832_v54  ;;  %v179_v53 = vld [vmem:[#allocation2 + $0x358] sm:$0xff]  ;;  %v1817_v54 = vcombine.low %v154_v42, %v162_v43  ;;  %v1834_v56 = vcombine.high %v170_v50, %v178_v51  ;;  %v148_v37 = vld [vmem:[#allocation2 + $0x260] sm:$0xff] }
  0x65   :  { %v1836_v57 = vcombine.high %v171_v52, %v179_v53  ;;  %v1835_v63 = vcombine.low %v171_v52, %v179_v53  ;;  %v1806_v42 = vcombine.high %v140_v36, %v148_v37  ;;  %v156_v44 = vld [vmem:[#allocation2 + $0x2a0] sm:$0xff] }
  0x66   :  { %v164_v45 = vld [vmem:[#allocation2 + $0x2e0] sm:$0xff] }
  0x67   :  { %937 = vmatpush1.bf16.msra.mxu0 %v1829_v59  ;;  %978 = vmatpush1.bf16.msra.mxu1 %v1831_v60  ;;  %v194_v59 = vld [vmem:[#allocation2 + $0x3d0] sm:$0xff]  ;;  %v187_v60 = vld [vmem:[#allocation2 + $0x398] sm:$0xff]  ;;  %v172_v52 = vld [vmem:[#allocation2 + $0x320] sm:$0xff] }
  0x68   :  { %938 = vmatprep.subr.bf16.mxu0 %v1846_v61  ;;  %979 = vmatprep.subr.bf16.mxu1 %v1848_v62  ;;  %v195_v61 = vld [vmem:[#allocation2 + $0x3d8] sm:$0xff]  ;;  %v1833_v62 = vcombine.low %v170_v50, %v178_v51  ;;  %v1850_v1 = vcombine.high %v186_v58, %v194_v59  ;;  %v1822_v50 = vcombine.high %v156_v44, %v164_v45  ;;  %v180_v53 = vld [vmem:[#allocation2 + $0x360] sm:$0xff] }
  0x69   :  { %v1852_v2 = vcombine.high %v187_v60, %v195_v61 }
  0x6b   :  { %939 = vmatpush1.bf16.msra.mxu0 %v1845_v4  ;;  %980 = vmatpush1.bf16.msra.mxu1 %v1847_v6  ;;  %v84_v4 = vld [vmem:[#allocation2 + $0x60] sm:$0xff]  ;;  %v85_v6 = vld [vmem:[#allocation2 + $0x68] sm:$0xff] }
  0x6c   :  { %1006 = vmatprep.subr.bf16.mxu0 %v1738_v7  ;;  %1047 = vmatprep.subr.bf16.mxu1 %v1740_v8  ;;  %v1849_v7 = vcombine.low %v186_v58, %v194_v59  ;;  %v1851_v8 = vcombine.low %v187_v60, %v195_v61  ;;  %v1742_v9 = vcombine.high %v76_v3, %v84_v4  ;;  %v188_v60 = vld [vmem:[#allocation2 + $0x3a0] sm:$0xff] }
  0x6d   :  { %v1744_v10 = vcombine.high %v77_v5, %v85_v6  ;;  %v1838_v58 = vcombine.high %v172_v52, %v180_v53  ;;  %v196_v61 = vld [vmem:[#allocation2 + $0x3e0] sm:$0xff] }
  0x6e   :  { %957 = vmatmul.mubr.bf16.vlgmr.msra.gmra.mrb[0].mxu0 %v2071_v11  ;;  %998 = vmatmul.mubr.bf16.vlgmr.msra.gmra.mrb[0].mxu1 %v2071_v11 }
  0x6f   :  { %1007 = vmatpush1.bf16.msra.mxu0 %v1737_v14  ;;  %1048 = vmatpush1.bf16.msra.mxu1 %v1739_v15  ;;  %v93_v14 = vld [vmem:[#allocation2 + $0xa8] sm:$0xff] }
  0x70   :  { %1008 = vmatprep.subr.bf16.mxu0 %v1754_v16  ;;  %1049 = vmatprep.subr.bf16.mxu1 %v1756_v17  ;;  %v101_v15 = vld [vmem:[#allocation2 + $0xe8] sm:$0xff]  ;;  %v1741_v16 = vcombine.low %v76_v3, %v84_v4  ;;  %v1743_v17 = vcombine.low %v77_v5, %v85_v6  ;;  %v1854_v3 = vcombine.high %v188_v60, %v196_v61  ;;  %v78_v5 = vld [vmem:[#allocation2 + $0x30] sm:$0xff] }
  0x71   :  { %1038 = vmatprep.mubr.bf16.mxu0 %v1979_v0  ;;  %1079 = vmatprep.mubr.bf16.mxu1 %v1979_v0  ;;  %v1760_v19 = vcombine.high %v93_v14, %v101_v15  ;;  %v86_v6 = vld [vmem:[#allocation2 + $0x70] sm:$0xff] }
  0x73   :  { %1009 = vmatpush1.bf16.msra.mxu0 %v1753_v22  ;;  %1050 = vmatpush1.bf16.msra.mxu1 %v1755_v23  ;;  %v109_v22 = vld [vmem:[#allocation2 + $0x128] sm:$0xff] }
  0x74   :  { %1010 = vmatprep.subr.bf16.mxu0 %v1770_v24  ;;  %1051 = vmatprep.subr.bf16.mxu1 %v1772_v25  ;;  %v117_v23 = vld [vmem:[#allocation2 + $0x168] sm:$0xff]  ;;  %v1757_v24 = vcombine.low %v92_v12, %v100_v13  ;;  %v1759_v25 = vcombine.low %v93_v14, %v101_v15  ;;  %v1746_v12 = vcombine.high %v78_v5, %v86_v6  ;;  %v94_v14 = vld [vmem:[#allocation2 + $0xb0] sm:$0xff] }
  0x75   :  { %v1776_v27 = vcombine.high %v109_v22, %v117_v23  ;;  %v102_v15 = vld [vmem:[#allocation2 + $0xf0] sm:$0xff] }
  0x77   :  { %1011 = vmatpush1.bf16.msra.mxu0 %v1769_v30  ;;  %1052 = vmatpush1.bf16.msra.mxu1 %v1771_v31  ;;  %v125_v30 = vld [vmem:[#allocation2 + $0x1a8] sm:$0xff] }
  0x78   :  { %1012 = vmatprep.subr.bf16.mxu0 %v1786_v32  ;;  %1053 = vmatprep.subr.bf16.mxu1 %v1788_v33  ;;  %v133_v31 = vld [vmem:[#allocation2 + $0x1e8] sm:$0xff]  ;;  %v1773_v32 = vcombine.low %v108_v20, %v116_v21  ;;  %v1775_v33 = vcombine.low %v109_v22, %v117_v23  ;;  %v1762_v20 = vcombine.high %v94_v14, %v102_v15  ;;  %v110_v22 = vld [vmem:[#allocation2 + $0x130] sm:$0xff] }
  0x79   :  { %v1792_v35 = vcombine.high %v125_v30, %v133_v31  ;;  %v118_v23 = vld [vmem:[#allocation2 + $0x170] sm:$0xff] }
  0x7b   :  { %1013 = vmatpush1.bf16.msra.mxu0 %v1785_v38  ;;  %1054 = vmatpush1.bf16.msra.mxu1 %v1787_v39  ;;  %v141_v38 = vld [vmem:[#allocation2 + $0x228] sm:$0xff] }
  0x7c   :  { %1014 = vmatprep.subr.bf16.mxu0 %v1802_v40  ;;  %1055 = vmatprep.subr.bf16.mxu1 %v1804_v41  ;;  %v149_v39 = vld [vmem:[#allocation2 + $0x268] sm:$0xff]  ;;  %v1789_v40 = vcombine.low %v124_v28, %v132_v29  ;;  %v1791_v41 = vcombine.low %v125_v30, %v133_v31  ;;  %v1778_v28 = vcombine.high %v110_v22, %v118_v23  ;;  %v126_v30 = vld [vmem:[#allocation2 + $0x1b0] sm:$0xff] }
  0x7d   :  { %v1808_v43 = vcombine.high %v141_v38, %v149_v39  ;;  %v134_v31 = vld [vmem:[#allocation2 + $0x1f0] sm:$0xff] }
  0x7f   :  { %1015 = vmatpush1.bf16.msra.mxu0 %v1801_v46  ;;  %1056 = vmatpush1.bf16.msra.mxu1 %v1803_v47  ;;  %v157_v46 = vld [vmem:[#allocation2 + $0x2a8] sm:$0xff] }
  0x80   :  { %1016 = vmatprep.subr.bf16.mxu0 %v1818_v48  ;;  %1057 = vmatprep.subr.bf16.mxu1 %v1820_v49  ;;  %v165_v47 = vld [vmem:[#allocation2 + $0x2e8] sm:$0xff]  ;;  %v1805_v48 = vcombine.low %v140_v36, %v148_v37  ;;  %v1807_v49 = vcombine.low %v141_v38, %v149_v39  ;;  %v1794_v36 = vcombine.high %v126_v30, %v134_v31  ;;  %v142_v38 = vld [vmem:[#allocation2 + $0x230] sm:$0xff] }
  0x81   :  { %v1824_v51 = vcombine.high %v157_v46, %v165_v47  ;;  %v150_v39 = vld [vmem:[#allocation2 + $0x270] sm:$0xff] }
  0x83   :  { %1017 = vmatpush1.bf16.msra.mxu0 %v1817_v54  ;;  %1058 = vmatpush1.bf16.msra.mxu1 %v1819_v55  ;;  %v173_v54 = vld [vmem:[#allocation2 + $0x328] sm:$0xff] }
  0x84   :  { %1018 = vmatprep.subr.bf16.mxu0 %v1834_v56  ;;  %1059 = vmatprep.subr.bf16.mxu1 %v1836_v57  ;;  %v181_v55 = vld [vmem:[#allocation2 + $0x368] sm:$0xff]  ;;  %v1821_v56 = vcombine.low %v156_v44, %v164_v45  ;;  %v1823_v57 = vcombine.low %v157_v46, %v165_v47  ;;  %v1810_v44 = vcombine.high %v142_v38, %v150_v39  ;;  %v158_v45 = vld [vmem:[#allocation2 + $0x2b0] sm:$0xff]  ;;  %v159_v47 = vld [vmem:[#allocation2 + $0x2b8] sm:$0xff] }
  0x85   :  { %v1840_v59 = vcombine.high %v173_v54, %v181_v55  ;;  %v166_v46 = vld [vmem:[#allocation2 + $0x2f0] sm:$0xff] }
  0x87   :  { %1019 = vmatpush1.bf16.msra.mxu0 %v1833_v62  ;;  %1060 = vmatpush1.bf16.msra.mxu1 %v1835_v63  ;;  %v189_v62 = vld [vmem:[#allocation2 + $0x3a8] sm:$0xff] }
  0x88   :  { %1020 = vmatprep.subr.bf16.mxu0 %v1850_v1  ;;  %1061 = vmatprep.subr.bf16.mxu1 %v1852_v2  ;;  %v197_v63 = vld [vmem:[#allocation2 + $0x3e8] sm:$0xff]  ;;  %v1837_v1 = vcombine.low %v172_v52, %v180_v53  ;;  %v1839_v2 = vcombine.low %v173_v54, %v181_v55  ;;  %v174_v53 = vld [vmem:[#allocation2 + $0x330] sm:$0xff]  ;;  %v175_v55 = vld [vmem:[#allocation2 + $0x338] sm:$0xff] }
  0x89   :  { %v1856_v4 = vcombine.high %v189_v62, %v197_v63  ;;  %v182_v54 = vld [vmem:[#allocation2 + $0x370] sm:$0xff] }
  0x8b   :  { %1021 = vmatpush1.bf16.msra.mxu0 %v1849_v7  ;;  %1062 = vmatpush1.bf16.msra.mxu1 %v1851_v8  ;;  %v79_v7 = vld [vmem:[#allocation2 + $0x38] sm:$0xff] }
  0x8c   :  { %1088 = vmatprep.subr.bf16.mxu0 %v1742_v9  ;;  %1129 = vmatprep.subr.bf16.mxu1 %v1744_v10  ;;  %v87_v8 = vld [vmem:[#allocation2 + $0x78] sm:$0xff]  ;;  %v1853_v9 = vcombine.low %v188_v60, %v196_v61  ;;  %v1855_v10 = vcombine.low %v189_v62, %v197_v63  ;;  %v190_v61 = vld [vmem:[#allocation2 + $0x3b0] sm:$0xff] }
  0x8d   :  { %v1748_v13 = vcombine.high %v79_v7, %v87_v8  ;;  %v198_v62 = vld [vmem:[#allocation2 + $0x3f0] sm:$0xff]  ;;  %v191_v63 = vld [vmem:[#allocation2 + $0x3b8] sm:$0xff] }
  0x8e   :  { %1039 = vmatmul.mubr.bf16.vlgmr.msra.gmra.mrb[4].mxu0 %v2071_v11  ;;  %1080 = vmatmul.mubr.bf16.vlgmr.msra.gmra.mrb[4].mxu1 %v2071_v11 }
  0x8f   :  { %1089 = vmatpush1.bf16.msra.mxu0 %v1741_v16  ;;  %1130 = vmatpush1.bf16.msra.mxu1 %v1743_v17  ;;  %v95_v16 = vld [vmem:[#allocation2 + $0xb8] sm:$0xff] }
  0x90   :  { %1090 = vmatprep.subr.bf16.mxu0 %v1758_v18  ;;  %1131 = vmatprep.subr.bf16.mxu1 %v1760_v19  ;;  %v103_v17 = vld [vmem:[#allocation2 + $0xf8] sm:$0xff]  ;;  %v1745_v18 = vcombine.low %v78_v5, %v86_v6  ;;  %v1747_v19 = vcombine.low %v79_v7, %v87_v8  ;;  %v1857_v6 = vcombine.low %v190_v61, %v198_v62 }
  0x91   :  { %1120 = vmatprep.mubr.bf16.mxu0 %v1979_v0  ;;  %1161 = vmatprep.mubr.bf16.mxu1 %v1979_v0  ;;  %v1764_v21 = vcombine.high %v95_v16, %v103_v17 }
  0x93   :  { %1091 = vmatpush1.bf16.msra.mxu0 %v1757_v24  ;;  %1132 = vmatpush1.bf16.msra.mxu1 %v1759_v25  ;;  %v111_v24 = vld [vmem:[#allocation2 + $0x138] sm:$0xff] }
  0x94   :  { %1092 = vmatprep.subr.bf16.mxu0 %v1774_v26  ;;  %1133 = vmatprep.subr.bf16.mxu1 %v1776_v27  ;;  %v119_v25 = vld [vmem:[#allocation2 + $0x178] sm:$0xff]  ;;  %v1761_v26 = vcombine.low %v94_v14, %v102_v15  ;;  %v1763_v27 = vcombine.low %v95_v16, %v103_v17  ;;  %v204_v17 = vlaneseq }
  0x95   :  { %v1780_v29 = vcombine.high %v111_v24, %v119_v25 }
  0x97   :  { %1093 = vmatpush1.bf16.msra.mxu0 %v1773_v32  ;;  %1134 = vmatpush1.bf16.msra.mxu1 %v1775_v33  ;;  %v127_v32 = vld [vmem:[#allocation2 + $0x1b8] sm:$0xff] }
  0x98   :  { %1094 = vmatprep.subr.bf16.mxu0 %v1790_v34  ;;  %1135 = vmatprep.subr.bf16.mxu1 %v1792_v35  ;;  %v135_v33 = vld [vmem:[#allocation2 + $0x1f8] sm:$0xff]  ;;  %v1777_v34 = vcombine.low %v110_v22, %v118_v23  ;;  %v1779_v35 = vcombine.low %v111_v24, %v119_v25  ;;  %v200_v25 = vld [vmem:[#allocation4] sm:$0xff] }
  0x99   :  { %v1796_v37 = vcombine.high %v127_v32, %v135_v33 }
  0x9b   :  { %1095 = vmatpush1.bf16.msra.mxu0 %v1789_v40  ;;  %1136 = vmatpush1.bf16.msra.mxu1 %v1791_v41  ;;  %v143_v40 = vld [vmem:[#allocation2 + $0x238] sm:$0xff] }
  0x9c   :  { %1096 = vmatprep.subr.bf16.mxu0 %v1806_v42  ;;  %1137 = vmatprep.subr.bf16.mxu1 %v1808_v43  ;;  %v151_v41 = vld [vmem:[#allocation2 + $0x278] sm:$0xff]  ;;  %v1793_v42 = vcombine.low %v126_v30, %v134_v31  ;;  %v1795_v43 = vcombine.low %v127_v32, %v135_v33 }
  0x9f   :  { %1097 = vmatpush1.bf16.msra.mxu0 %v1805_v48  ;;  %1138 = vmatpush1.bf16.msra.mxu1 %v1807_v49  ;;  %v167_v48 = vld [vmem:[#allocation2 + $0x2f8] sm:$0xff]  ;;  %v1809_v49 = vcombine.low %v142_v38, %v150_v39 }
  0xa0   :  { %1098 = vmatprep.subr.bf16.mxu0 %v1822_v50  ;;  %1139 = vmatprep.subr.bf16.mxu1 %v1824_v51  ;;  %v1811_v50 = vcombine.low %v143_v40, %v151_v41  ;;  %v1826_v51 = vcombine.high %v158_v45, %v166_v46  ;;  %v1828_v52 = vcombine.high %v159_v47, %v167_v48 }
  0xa3   :  { %1099 = vmatpush1.bf16.msra.mxu0 %v1821_v56  ;;  %1140 = vmatpush1.bf16.msra.mxu1 %v1823_v57  ;;  %v183_v56 = vld [vmem:[#allocation2 + $0x378] sm:$0xff]  ;;  %v1825_v57 = vcombine.low %v158_v45, %v166_v46 }
  0xa4   :  { %1100 = vmatprep.subr.bf16.mxu0 %v1838_v58  ;;  %1141 = vmatprep.subr.bf16.mxu1 %v1840_v59  ;;  %v1827_v58 = vcombine.low %v159_v47, %v167_v48  ;;  %v1842_v59 = vcombine.high %v174_v53, %v182_v54  ;;  %v1844_v60 = vcombine.high %v175_v55, %v183_v56 }
  0xa7   :  { %1101 = vmatpush1.bf16.msra.mxu0 %v1837_v1  ;;  %1142 = vmatpush1.bf16.msra.mxu1 %v1839_v2  ;;  %v199_v1 = vld [vmem:[#allocation2 + $0x3f8] sm:$0xff]  ;;  %v1841_v2 = vcombine.low %v174_v53, %v182_v54 }
  0xa8   :  { %1102 = vmatprep.subr.bf16.mxu0 %v1854_v3  ;;  %1143 = vmatprep.subr.bf16.mxu1 %v1856_v4  ;;  %v1843_v3 = vcombine.low %v175_v55, %v183_v56  ;;  %v1858_v4 = vcombine.high %v190_v61, %v198_v62  ;;  %v1860_v5 = vcombine.high %v191_v63, %v199_v1  ;;  %v2134_v62 = vld [vmem:[#allocation4 + $0x8] sm:$0xff] }
  0xa9   :  { %v1859_v7 = vcombine.low %v191_v63, %v199_v1 }
  0xab   :  { %1103 = vmatpush1.bf16.msra.mxu0 %v1853_v9  ;;  %1144 = vmatpush1.bf16.msra.mxu1 %v1855_v10 }
  0xac   :  { %1170 = vmatprep.subr.bf16.mxu0 %v1746_v12  ;;  %1211 = vmatprep.subr.bf16.mxu1 %v1748_v13 }
  0xae   :  { %1121 = vmatmul.mubr.bf16.vlgmr.msra.gmra.mrb[8].mxu0 %v2071_v11  ;;  %1162 = vmatmul.mubr.bf16.vlgmr.msra.gmra.mrb[8].mxu1 %v2071_v11 }
  0xaf   :  { %1171 = vmatpush1.bf16.msra.mxu0 %v1745_v18  ;;  %1212 = vmatpush1.bf16.msra.mxu1 %v1747_v19  ;;  %v2087_v18 = vshrl.u32 %v204_v17, 7 }
  0xb0   :  { %1172 = vmatprep.subr.bf16.mxu0 %v1762_v20  ;;  %1213 = vmatprep.subr.bf16.mxu1 %v1764_v21 }
  0xb1   :  { %1202 = vmatprep.mubr.bf16.mxu0 %v1979_v0  ;;  %1243 = vmatprep.mubr.bf16.mxu1 %v1979_v0  ;;  %v1812_v0 = vcombine.high %v143_v40, %v151_v41  ;;  %v2090_v22 = vsub.s32 0, %v2087_v18  ;;  %v210_v23 = vsub.s32 1, %v2087_v18  ;;  %v214_v31 = vsub.s32 2, %v2087_v18 }
  0xb3   :  { %1173 = vmatpush1.bf16.msra.mxu0 %v1761_v26  ;;  %1214 = vmatpush1.bf16.msra.mxu1 %v1763_v27  ;;  %v211_v30 = vrot.slane %v200_v25, %v210_v23  ;;  %v243_v17 = vrot.slane %v2134_v62, %v210_v23 }
  0xb4   :  { %1174 = vmatprep.subr.bf16.mxu0 %v1778_v28  ;;  %1215 = vmatprep.subr.bf16.mxu1 %v1780_v29  ;;  %v207_v29 = vrot.slane %v200_v25, %v2090_v22 }
  0xb7   :  { %1175 = vmatpush1.bf16.msra.mxu0 %v1777_v34  ;;  %1216 = vmatpush1.bf16.msra.mxu1 %v1779_v35  ;;  %v218_v34 = vsub.s32 3, %v2087_v18  ;;  %v215_v35 = vrot.slane %v200_v25, %v214_v31 }
  0xb8   :  { %1176 = vmatprep.subr.bf16.mxu0 %v1794_v36  ;;  %1217 = vmatprep.subr.bf16.mxu1 %v1796_v37  ;;  %v222_v36 = vsub.s32 4, %v2087_v18 }
  0xb9   :  { %v219_v39 = vrot.slane %v200_v25, %v218_v34 }
  0xbb   :  { %1177 = vmatpush1.bf16.msra.mxu0 %v1793_v42  ;;  %1218 = vmatpush1.bf16.msra.mxu1 %v1795_v43  ;;  %v223_v43 = vrot.slane %v200_v25, %v222_v36 }
  0xbc   :  { %1178 = vmatprep.subr.bf16.mxu0 %v1810_v44  ;;  %1219 = vmatprep.subr.bf16.mxu1 %v1812_v0  ;;  %v226_v44 = vsub.s32 5, %v2087_v18 }
  0xbf   :  { %1179 = vmatpush1.bf16.msra.mxu0 %v1809_v49  ;;  %1220 = vmatpush1.bf16.msra.mxu1 %v1811_v50  ;;  %v227_v49 = vrot.slane %v200_v25, %v226_v44 }
  0xc0   :  { %1180 = vmatprep.subr.bf16.mxu0 %v1826_v51  ;;  %1221 = vmatprep.subr.bf16.mxu1 %v1828_v52  ;;  %v230_v52 = vsub.s32 6, %v2087_v18 }
  0xc3   :  { %1181 = vmatpush1.bf16.msra.mxu0 %v1825_v57  ;;  %1222 = vmatpush1.bf16.msra.mxu1 %v1827_v58 }
  0xc4   :  { %1182 = vmatprep.subr.bf16.mxu0 %v1842_v59  ;;  %1223 = vmatprep.subr.bf16.mxu1 %v1844_v60  ;;  %v231_v59 = vrot.slane %v200_v25, %v230_v52  ;;  %v234_v60 = vsub.s32 7, %v2087_v18 }
  0xc7   :  { %1183 = vmatpush1.bf16.msra.mxu0 %v1841_v2  ;;  %1224 = vmatpush1.bf16.msra.mxu1 %v1843_v3 }
  0xc8   :  { %1184 = vmatprep.subr.bf16.mxu0 %v1858_v4  ;;  %1225 = vmatprep.subr.bf16.mxu1 %v1860_v5 }
  0xcb   :  { %1185 = vmatpush1.bf16.msra.mxu0 %v1857_v6  ;;  %1226 = vmatpush1.bf16.msra.mxu1 %v1859_v7  ;;  %v235_v6 = vrot.slane %v200_v25, %v234_v60  ;;  %v239_v7 = vrot.slane %v2134_v62, %v2090_v22 }
  0xce   :  { %1203 = vmatmul.mubr.bf16.vlgmr.msra.gmra.mrb[12].mxu0 %v2071_v11  ;;  %1244 = vmatmul.mubr.bf16.vlgmr.msra.gmra.mrb[12].mxu1 %v2071_v11 }
 0x141   :  { %v958_v8 = vpop.f32.mrb[0].mxu0  ;;  %v999_v9 = vpop.f32.mrb[0].mxu1 }
 0x142   :  { %v960_v10 = vpop.f32.mrb[1].mxu0  ;;  %v1001_v12 = vpop.f32.mrb[1].mxu1  ;;  %v2097_v32 = vadd.f32 %v958_v8, %v207_v29  ;;  %v2111_v40 = vadd.f32 %v999_v9, %v215_v35 }
 0x143   :  { %v962_v13 = vpop.f32.mrb[2].mxu0  ;;  %v1003_v15 = vpop.f32.mrb[2].mxu1  ;;  %v2099_v33 = vadd.f32 %v960_v10, %v211_v30  ;;  %v2116_v0 = vadd.f32 %v1001_v12, %v219_v39 }
 0x144   :  { %v963_v14 = vpop.f32.mrb[3].mxu0  ;;  %v1004_v16 = vpop.f32.mrb[3].mxu1  ;;  %v1253_v37 = vsel %vm1252_vm0, %v2097_v32, 0.0  ;;  %v1267_v45 = vsel %vm1252_vm0, %v2111_v40, 0.0 }
 0x145   :  { %v1260_v38 = vsel %vm1252_vm0, %v2099_v33, 0.0  ;;  %v1254_v41 = vrot.slane %v1253_v37, 4  ;;  %v1268_v50 = vrot.slane %v1267_v45, 4  ;;  %v1274_v51 = vsel %vm1252_vm0, %v2116_v0, 0.0 }
 0x146   :  { %v1261_v42 = vrot.slane %v1260_v38, 4  ;;  %v1275_v57 = vrot.slane %v1274_v51, 4 }
 0x147   :  { %v1255_v46 = vadd.f32 %v1254_v41, %v1253_v37  ;;  %v1269_v58 = vadd.f32 %v1268_v50, %v1267_v45 }
 0x148   :  { %v1262_v47 = vadd.f32 %v1261_v42, %v1260_v38  ;;  %v1276_v3 = vadd.f32 %v1275_v57, %v1274_v51 }
 0x149   :  { %v1256_v53 = vrot.slane %v1255_v46, 2  ;;  %v1270_v4 = vrot.slane %v1269_v58, 2 }
 0x14a   :  { %v1263_v54 = vrot.slane %v1262_v47, 2  ;;  %v1277_v16 = vrot.slane %v1276_v3, 2 }
 0x14b   :  { %v1257_v63 = vadd.f32 %v1256_v53, %v1255_v46 }
 0x14c   :  { %v1264_v1 = vadd.f32 %v1263_v54, %v1262_v47  ;;  %v1278_v39 = vadd.f32 %v1277_v16, %v1276_v3 }
 0x14d   :  { %v1258_v12 = vrot.slane %v1257_v63, 1 }
 0x14e   :  { %v1265_v13 = vrot.slane %v1264_v1, 1 }
 0x14f   :  { %v1259_v37 = vadd.f32 %v1258_v12, %v1257_v63 }
 0x150   :  { %v1266_v38 = vadd.f32 %v1265_v13, %v1264_v1 }
 0x152   :  { %v1365_v47 = vadd.f32 %v1266_v38, %v1259_v37 }
 0x161   :  { %v1040_v19 = vpop.f32.mrb[4].mxu0  ;;  %v1081_v20 = vpop.f32.mrb[4].mxu1 }
 0x162   :  { %v1042_v21 = vpop.f32.mrb[5].mxu0  ;;  %v2093_v11 = vpop.f32.mrb[5].mxu1  ;;  %v2120_v48 = vadd.f32 %v1040_v19, %v223_v43  ;;  %v2138_v5 = vadd.f32 %v1081_v20, %v231_v59  ;;  %v1271_v20 = vadd.f32 %v1270_v4, %v1269_v58 }
 0x163   :  { %v1044_v24 = vpop.f32.mrb[6].mxu0  ;;  %v1085_v27 = vpop.f32.mrb[6].mxu1  ;;  %v2129_v56 = vadd.f32 %v1042_v21, %v227_v49  ;;  %v2148_v25 = vadd.f32 %v2093_v11, %v235_v6  ;;  %v247_v49 = vrot.slane %v2134_v62, %v214_v31 }
 0x164   :  { %v1045_v26 = vpop.f32.mrb[7].mxu0  ;;  %v1086_v28 = vpop.f32.mrb[7].mxu1  ;;  %v1281_v55 = vsel %vm1252_vm0, %v2120_v48, 0.0  ;;  %v1295_v24 = vsel %vm1252_vm0, %v2138_v5, 0.0  ;;  %v1272_v41 = vrot.slane %v1271_v20, 1 }
 0x165   :  { %v1282_v61 = vrot.slane %v1281_v55, 4  ;;  %v1288_v2 = vsel %vm1252_vm0, %v2129_v56, 0.0  ;;  %v1296_v23 = vrot.slane %v1295_v24, 4  ;;  %v1302_v42 = vsel %vm1252_vm0, %v2148_v25, 0.0 }
 0x166   :  { %v1289_v9 = vrot.slane %v1288_v2, 4  ;;  %v1303_v51 = vrot.slane %v1302_v42, 4  ;;  %v1273_v54 = vadd.f32 %v1272_v41, %v1271_v20 }
 0x167   :  { %v1283_v8 = vadd.f32 %v1282_v61, %v1281_v55  ;;  %v1297_v50 = vadd.f32 %v1296_v23, %v1295_v24  ;;  %v1279_v55 = vrot.slane %v1278_v39, 1  ;;  %v251_v61 = vrot.slane %v2134_v62, %v218_v34 }
 0x168   :  { %v1290_v30 = vadd.f32 %v1289_v9, %v1288_v2  ;;  %v1366_v63 = vadd.f32 %v1365_v47, %v1273_v54  ;;  %v1304_v3 = vadd.f32 %v1303_v51, %v1302_v42  ;;  %v259_v51 = vrot.slane %v2134_v62, %v226_v44 }
 0x169   :  { %v1284_v29 = vrot.slane %v1283_v8, 2  ;;  %v1298_v2 = vrot.slane %v1297_v50, 2  ;;  %v1280_v6 = vadd.f32 %v1279_v55, %v1278_v39  ;;  %v267_v54 = vrot.slane %v2134_v62, %v234_v60 }
 0x16a   :  { %v1291_v46 = vrot.slane %v1290_v30, 2 }
 0x16b   :  { %v1285_v45 = vadd.f32 %v1284_v29, %v1283_v8  ;;  %v1299_v13 = vadd.f32 %v1298_v2, %v1297_v50 }
 0x16c   :  { %v1292_v59 = vadd.f32 %v1291_v46, %v1290_v30  ;;  %v263_v46 = vrot.slane %v2134_v62, %v230_v52 }
 0x16d   :  { %v1286_v58 = vrot.slane %v1285_v45, 1  ;;  %v1300_v24 = vrot.slane %v1299_v13, 1 }
 0x16e   :  { %v1293_v8 = vrot.slane %v1292_v59, 1 }
 0x16f   :  { %v1301_v37 = vadd.f32 %v1300_v24, %v1299_v13 }
 0x181   :  { %v1122_v10 = vpop.f32.mrb[8].mxu0  ;;  %v1163_v14 = vpop.f32.mrb[8].mxu1 }
 0x182   :  { %v1124_v15 = vpop.f32.mrb[9].mxu0  ;;  %v1165_v19 = vpop.f32.mrb[9].mxu1  ;;  %v2150_v26 = vadd.f32 %v1122_v10, %v239_v7  ;;  %v2166_v1 = vadd.f32 %v1163_v14, %v247_v49  ;;  %v1287_v7 = vadd.f32 %v1286_v58, %v1285_v45  ;;  %v1367_v10 = vadd.f32 %v1366_v63, %v1280_v6 }
 0x183   :  { %v1126_v21 = vpop.f32.mrb[10].mxu0  ;;  %v1167_v28 = vpop.f32.mrb[10].mxu1  ;;  %v2156_v11 = vadd.f32 %v1124_v15, %v243_v17  ;;  %v2168_v9 = vadd.f32 %v1165_v19, %v251_v61  ;;  %v1305_v15 = vrot.slane %v1304_v3, 2  ;;  %v1294_v14 = vadd.f32 %v1293_v8, %v1292_v59 }
 0x184   :  { %v1127_v27 = vpop.f32.mrb[11].mxu0  ;;  %v1168_v35 = vpop.f32.mrb[11].mxu1  ;;  %v1309_v43 = vsel %vm1252_vm0, %v2150_v26, 0.0  ;;  %v1323_v12 = vsel %vm1252_vm0, %v2166_v1, 0.0  ;;  %v1368_v17 = vadd.f32 %v1367_v10, %v1287_v7  ;;  %v255_v45 = vrot.slane %v2134_v62, %v222_v36 }
 0x185   :  { %v1310_v53 = vrot.slane %v1309_v43, 4  ;;  %v1316_v57 = vsel %vm1252_vm0, %v2156_v11, 0.0  ;;  %v1324_v21 = vrot.slane %v1323_v12, 4  ;;  %v1330_v20 = vsel %vm1252_vm0, %v2168_v9, 0.0 }
 0x186   :  { %v1317_v4 = vrot.slane %v1316_v57, 4  ;;  %v1306_v27 = vadd.f32 %v1305_v15, %v1304_v3  ;;  %v1331_v19 = vrot.slane %v1330_v20, 4  ;;  %v1369_v30 = vadd.f32 %v1368_v17, %v1294_v14 }
 0x187   :  { %v1311_v31 = vadd.f32 %v1310_v53, %v1309_v43  ;;  %v1325_v35 = vadd.f32 %v1324_v21, %v1323_v12 }
 0x188   :  { %v1318_v34 = vadd.f32 %v1317_v4, %v1316_v57  ;;  %v1307_v38 = vrot.slane %v1306_v27, 1  ;;  %v1332_v41 = vadd.f32 %v1331_v19, %v1330_v20  ;;  %v1370_v42 = vadd.f32 %v1369_v30, %v1301_v37 }
 0x189   :  { %v1312_v16 = vrot.slane %v1311_v31, 2  ;;  %v1326_v43 = vrot.slane %v1325_v35, 2 }
 0x18a   :  { %v1319_v29 = vrot.slane %v1318_v34, 2  ;;  %v1308_v47 = vadd.f32 %v1307_v38, %v1306_v27  ;;  %v1333_v53 = vrot.slane %v1332_v41, 2 }
 0x18b   :  { %v1313_v28 = vadd.f32 %v1312_v16, %v1311_v31  ;;  %v1327_v57 = vadd.f32 %v1326_v43, %v1325_v35 }
 0x18c   :  { %v1320_v23 = vadd.f32 %v1319_v29, %v1318_v34  ;;  %v1371_v55 = vadd.f32 %v1370_v42, %v1308_v47  ;;  %v1334_v4 = vadd.f32 %v1333_v53, %v1332_v41 }
 0x18d   :  { %v1314_v39 = vrot.slane %v1313_v28, 1  ;;  %v1328_v8 = vrot.slane %v1327_v57, 1 }
 0x18e   :  { %v1321_v50 = vrot.slane %v1320_v23, 1  ;;  %v1335_v29 = vrot.slane %v1334_v4, 1 }
 0x18f   :  { %v1315_v49 = vadd.f32 %v1314_v39, %v1313_v28  ;;  %v1329_v28 = vadd.f32 %v1328_v8, %v1327_v57 }
 0x190   :  { %v1322_v63 = vadd.f32 %v1321_v50, %v1320_v23  ;;  %v1336_v43 = vadd.f32 %v1335_v29, %v1334_v4 }
 0x191   :  { %v1372_v52 = vadd.f32 %v1371_v55, %v1315_v49 }
 0x193   :  { %v1373_v14 = vadd.f32 %v1372_v52, %v1322_v63 }
 0x195   :  { %v1374_v38 = vadd.f32 %v1373_v14, %v1329_v28 }
 0x197   :  { %v1375_v49 = vadd.f32 %v1374_v38, %v1336_v43 }
 0x1a1   :  { %v1204_v58 = vpop.f32.mrb[12].mxu0  ;;  %v1245_v59 = vpop.f32.mrb[12].mxu1 }
 0x1a2   :  { %v2186_v36 = vadd.f32 %v1204_v58, %v255_v45  ;;  %v1206_v61 = vpop.f32.mrb[13].mxu0  ;;  %v2188_v2 = vadd.f32 %v1245_v59, %v263_v46  ;;  %v1247_v31 = vpop.f32.mrb[13].mxu1 }
 0x1a3   :  { %v2190_v3 = vadd.f32 %v1206_v61, %v259_v51  ;;  %v1208_v44 = vpop.f32.mrb[14].mxu0  ;;  %v2194_v60 = vadd.f32 %v1247_v31, %v267_v54  ;;  %v1249_v7 = vpop.f32.mrb[14].mxu1 }
 0x1a4   :  { %v1337_v6 = vsel %vm1252_vm0, %v2186_v36, 0.0  ;;  %v1209_v62 = vpop.f32.mrb[15].mxu0  ;;  %v1351_v12 = vsel %vm1252_vm0, %v2188_v2, 0.0  ;;  %v1250_v15 = vpop.f32.mrb[15].mxu1 }
 0x1a5   :  { %v1338_v10 = vrot.slane %v1337_v6, 4  ;;  %v1344_v13 = vsel %vm1252_vm0, %v2190_v3, 0.0  ;;  %v1352_v16 = vrot.slane %v1351_v12, 4  ;;  %v1358_v17 = vsel %vm1252_vm0, %v2194_v60, 0.0 }
 0x1a6   :  { %v1345_v34 = vrot.slane %v1344_v13, 4  ;;  %v1359_v20 = vrot.slane %v1358_v17, 4 }
 0x1a7   :  { %v1339_v21 = vadd.f32 %v1338_v10, %v1337_v6  ;;  %v1353_v24 = vadd.f32 %v1352_v16, %v1351_v12 }
 0x1a8   :  { %v1346_v27 = vadd.f32 %v1345_v34, %v1344_v13  ;;  %v1360_v30 = vadd.f32 %v1359_v20, %v1358_v17 }
 0x1a9   :  { %v1340_v19 = vrot.slane %v1339_v21, 2  ;;  %v1354_v35 = vrot.slane %v1353_v24, 2 }
 0x1aa   :  { %v1347_v37 = vrot.slane %v1346_v27, 2  ;;  %v1361_v23 = vrot.slane %v1360_v30, 2 }
 0x1ab   :  { %v1341_v39 = vadd.f32 %v1340_v19, %v1339_v21  ;;  %v1355_v41 = vadd.f32 %v1354_v35, %v1353_v24 }
 0x1ac   :  { %v1348_v42 = vadd.f32 %v1347_v37, %v1346_v27  ;;  %v1362_v46 = vadd.f32 %v1361_v23, %v1360_v30 }
 0x1ad   :  { %v1342_v45 = vrot.slane %v1341_v39, 1  ;;  %v1356_v51 = vrot.slane %v1355_v41, 1 }
 0x1ae   :  { %v1349_v47 = vrot.slane %v1348_v42, 1  ;;  %v1363_v55 = vrot.slane %v1362_v46, 1 }
 0x1af   :  { %v1343_v50 = vadd.f32 %v1342_v45, %v1341_v39  ;;  %v1357_v57 = vadd.f32 %v1356_v51, %v1355_v41 }
 0x1b0   :  { %v1350_v53 = vadd.f32 %v1349_v47, %v1348_v42  ;;  %v1364_v59 = vadd.f32 %v1363_v55, %v1362_v46 }
 0x1b1   :  { %v1376_v54 = vadd.f32 %v1375_v49, %v1343_v50 }
 0x1b3   :  { %v1377_v58 = vadd.f32 %v1376_v54, %v1350_v53 }
 0x1b5   :  { %v1378_v61 = vadd.f32 %v1377_v58, %v1357_v57 }
 0x1b7   :  { %v1379_v52 = vadd.f32 %v1378_v61, %v1364_v59 }
 0x1b9   :  { %v2202_v63 = vmul.f32 0.03125, %v1379_v52 }
 0x1bb   :  { %v1384_v31 = vrot.slane %v2202_v63, %v2090_v22 }
 0x1bd   :  { %v1385_v44 = vsub.f32 %v2097_v32, %v1384_v31  ;;  %v1386_v4 = vsub.f32 %v2099_v33, %v1384_v31  ;;  %v1387_v6 = vsub.f32 %v2111_v40, %v1384_v31  ;;  %v1388_v8 = vsub.f32 %v2116_v0, %v1384_v31 }
 0x1be   :  { %v1389_v10 = vsub.f32 %v2120_v48, %v1384_v31  ;;  %v1390_v16 = vsub.f32 %v2129_v56, %v1384_v31  ;;  %v1391_v17 = vsub.f32 %v2138_v5, %v1384_v31  ;;  %v1392_v27 = vsub.f32 %v2148_v25, %v1384_v31 }
 0x1bf   :  { %v1401_v62 = vmul.f32 %v1385_v44, %v1385_v44  ;;  %v1402_v7 = vmul.f32 %v1386_v4, %v1386_v4  ;;  %v1403_v12 = vmul.f32 %v1387_v6, %v1387_v6  ;;  %v1404_v34 = vmul.f32 %v1388_v8, %v1388_v8 }
 0x1c0   :  { %v1405_v14 = vmul.f32 %v1389_v10, %v1389_v10  ;;  %v1406_v28 = vmul.f32 %v1390_v16, %v1390_v16  ;;  %v1407_v19 = vmul.f32 %v1391_v17, %v1391_v17  ;;  %v1393_v39 = vsub.f32 %v2150_v26, %v1384_v31 }
 0x1c1   :  { %v1417_v13 = vsel %vm1252_vm0, %v1401_v62, 0.0  ;;  %v1424_v15 = vsel %vm1252_vm0, %v1402_v7, 0.0  ;;  %v1431_v24 = vsel %vm1252_vm0, %v1403_v12, 0.0  ;;  %v1438_v29 = vsel %vm1252_vm0, %v1404_v34, 0.0 }
 0x1c2   :  { %v1418_v21 = vrot.slane %v1417_v13, 4  ;;  %v1425_v20 = vrot.slane %v1424_v15, 4  ;;  %v1432_v30 = vrot.slane %v1431_v24, 4  ;;  %v1445_v38 = vsel %vm1252_vm0, %v1405_v14, 0.0 }
 0x1c3   :  { %v1439_v23 = vrot.slane %v1438_v29, 4  ;;  %v1408_v41 = vmul.f32 %v1392_v27, %v1392_v27  ;;  %v1452_v42 = vsel %vm1252_vm0, %v1406_v28, 0.0  ;;  %v1394_v43 = vsub.f32 %v2156_v11, %v1384_v31 }
 0x1c4   :  { %v1419_v35 = vadd.f32 %v1418_v21, %v1417_v13  ;;  %v1426_v37 = vadd.f32 %v1425_v20, %v1424_v15  ;;  %v1433_v45 = vadd.f32 %v1432_v30, %v1431_v24  ;;  %v1446_v46 = vrot.slane %v1445_v38, 4 }
 0x1c5   :  { %v1459_v47 = vsel %vm1252_vm0, %v1407_v19, 0.0  ;;  %v1395_v49 = vsub.f32 %v2166_v1, %v1384_v31  ;;  %v1409_v53 = vmul.f32 %v1393_v39, %v1393_v39  ;;  %v1440_v54 = vadd.f32 %v1439_v23, %v1438_v29 }
 0x1c6   :  { %v1420_v50 = vrot.slane %v1419_v35, 2  ;;  %v1427_v51 = vrot.slane %v1426_v37, 2  ;;  %v1453_v55 = vrot.slane %v1452_v42, 4  ;;  %v1460_v57 = vrot.slane %v1459_v47, 4 }
 0x1c7   :  { %v1466_v58 = vsel %vm1252_vm0, %v1408_v41, 0.0  ;;  %v1396_v59 = vsub.f32 %v2168_v9, %v1384_v31  ;;  %v1410_v61 = vmul.f32 %v1394_v43, %v1394_v43  ;;  %v1434_v52 = vrot.slane %v1433_v45, 2 }
 0x1c8   :  { %v1447_v44 = vadd.f32 %v1446_v46, %v1445_v38  ;;  %v1397_v4 = vsub.f32 %v2186_v36, %v1384_v31  ;;  %v1411_v6 = vmul.f32 %v1395_v49, %v1395_v49  ;;  %v1421_v62 = vadd.f32 %v1420_v50, %v1419_v35 }
 0x1c9   :  { %v1428_v7 = vadd.f32 %v1427_v51, %v1426_v37  ;;  %v1441_v8 = vrot.slane %v1440_v54, 2  ;;  %v1454_v10 = vadd.f32 %v1453_v55, %v1452_v42  ;;  %v1467_v12 = vrot.slane %v1466_v58, 4 }
 0x1ca   :  { %v1473_v13 = vsel %vm1252_vm0, %v1409_v53, 0.0  ;;  %v1398_v15 = vsub.f32 %v2190_v3, %v1384_v31  ;;  %v1399_v16 = vsub.f32 %v2188_v2, %v1384_v31  ;;  %v1400_v34 = vsub.f32 %v2194_v60, %v1384_v31 }
 0x1cb   :  { %v1461_v17 = vadd.f32 %v1460_v57, %v1459_v47  ;;  %v1412_v14 = vmul.f32 %v1396_v59, %v1396_v59  ;;  %v1435_v21 = vadd.f32 %v1434_v52, %v1433_v45  ;;  %v1448_v20 = vrot.slane %v1447_v44, 2 }
 0x1cc   :  { %v1480_v24 = vsel %vm1252_vm0, %v1410_v61, 0.0  ;;  %v1413_v27 = vmul.f32 %v1397_v4, %v1397_v4  ;;  %v1422_v28 = vrot.slane %v1421_v62, 1  ;;  %v1429_v29 = vrot.slane %v1428_v7, 1 }
 0x1cd   :  { %v1474_v19 = vrot.slane %v1473_v13, 4  ;;  %v1442_v30 = vadd.f32 %v1441_v8, %v1440_v54  ;;  %v1455_v35 = vrot.slane %v1454_v10, 2  ;;  %v1468_v37 = vadd.f32 %v1467_v12, %v1466_v58 }
 0x1ce   :  { %v1487_v38 = vsel %vm1252_vm0, %v1411_v6, 0.0  ;;  %v1414_v39 = vmul.f32 %v1398_v15, %v1398_v15  ;;  %v1415_v23 = vmul.f32 %v1399_v16, %v1399_v16  ;;  %v1462_v41 = vrot.slane %v1461_v17, 2 }
 0x1cf   :  { %v1481_v42 = vrot.slane %v1480_v24, 4  ;;  %v1416_v31 = vmul.f32 %v1400_v34, %v1400_v34  ;;  %v1436_v43 = vrot.slane %v1435_v21, 1  ;;  %v1449_v46 = vadd.f32 %v1448_v20, %v1447_v44 }
 0x1d0   :  { %v1494_v45 = vsel %vm1252_vm0, %v1412_v14, 0.0  ;;  %v1423_v47 = vadd.f32 %v1422_v28, %v1421_v62  ;;  %v1430_v49 = vadd.f32 %v1429_v29, %v1428_v7  ;;  %v1475_v50 = vadd.f32 %v1474_v19, %v1473_v13 }
 0x1d1   :  { %v1488_v51 = vrot.slane %v1487_v38, 4  ;;  %v1443_v53 = vrot.slane %v1442_v30, 1  ;;  %v1456_v55 = vadd.f32 %v1455_v35, %v1454_v10  ;;  %v1469_v54 = vrot.slane %v1468_v37, 2 }
 0x1d2   :  { %v1501_v57 = vsel %vm1252_vm0, %v1413_v27, 0.0  ;;  %v1463_v58 = vadd.f32 %v1462_v41, %v1461_v17  ;;  %v1482_v59 = vadd.f32 %v1481_v42, %v1480_v24  ;;  %v1495_v61 = vrot.slane %v1494_v45, 4 }
 0x1d3   :  { %v1437_v52 = vadd.f32 %v1436_v43, %v1435_v21  ;;  %v1450_v4 = vrot.slane %v1449_v46, 1  ;;  %v1508_v6 = vsel %vm1252_vm0, %v1414_v39, 0.0  ;;  %v1515_v44 = vsel %vm1252_vm0, %v1415_v23, 0.0 }
 0x1d4   :  { %v1476_v8 = vrot.slane %v1475_v50, 2  ;;  %v1489_v12 = vadd.f32 %v1488_v51, %v1487_v38  ;;  %v1502_v62 = vrot.slane %v1501_v57, 4  ;;  %v1529_v7 = vadd.f32 %v1430_v49, %v1423_v47 }
 0x1d5   :  { %v1444_v13 = vadd.f32 %v1443_v53, %v1442_v30  ;;  %v1457_v15 = vrot.slane %v1456_v55, 1  ;;  %v1470_v16 = vadd.f32 %v1469_v54, %v1468_v37  ;;  %v1522_v10 = vsel %vm1252_vm0, %v1416_v31, 0.0 }
 0x1d6   :  { %v1483_v34 = vrot.slane %v1482_v59, 2  ;;  %v1496_v14 = vadd.f32 %v1495_v61, %v1494_v45  ;;  %v1509_v17 = vrot.slane %v1508_v6, 4  ;;  %v1530_v20 = vadd.f32 %v1529_v7, %v1437_v52 }
 0x1d7   :  { %v1451_v24 = vadd.f32 %v1450_v4, %v1449_v46  ;;  %v1464_v21 = vrot.slane %v1463_v58, 1  ;;  %v1516_v27 = vrot.slane %v1515_v44, 4  ;;  %v1477_v28 = vadd.f32 %v1476_v8, %v1475_v50 }
 0x1d8   :  { %v1490_v29 = vrot.slane %v1489_v12, 2  ;;  %v1503_v19 = vadd.f32 %v1502_v62, %v1501_v57  ;;  %v1531_v35 = vadd.f32 %v1530_v20, %v1444_v13  ;;  %v1458_v39 = vadd.f32 %v1457_v15, %v1456_v55 }
 0x1d9   :  { %v1471_v38 = vrot.slane %v1470_v16, 1  ;;  %v1523_v23 = vrot.slane %v1522_v10, 4  ;;  %v1484_v41 = vadd.f32 %v1483_v34, %v1482_v59  ;;  %v1497_v30 = vrot.slane %v1496_v14, 2 }
 0x1da   :  { %v1510_v42 = vadd.f32 %v1509_v17, %v1508_v6  ;;  %v1532_v37 = vadd.f32 %v1531_v35, %v1451_v24  ;;  %v1465_v43 = vadd.f32 %v1464_v21, %v1463_v58  ;;  %v1517_v31 = vadd.f32 %v1516_v27, %v1515_v44 }
 0x1db   :  { %v1478_v47 = vrot.slane %v1477_v28, 1  ;;  %v1491_v45 = vadd.f32 %v1490_v29, %v1489_v12  ;;  %v1504_v49 = vrot.slane %v1503_v19, 2  ;;  %v1472_v46 = vadd.f32 %v1471_v38, %v1470_v16 }
 0x1dc   :  { %v1533_v51 = vadd.f32 %v1532_v37, %v1458_v39  ;;  %v1524_v53 = vadd.f32 %v1523_v23, %v1522_v10  ;;  %v1485_v54 = vrot.slane %v1484_v41, 1  ;;  %v1498_v50 = vadd.f32 %v1497_v30, %v1496_v14 }
 0x1dd   :  { %v1511_v61 = vrot.slane %v1510_v42, 2  ;;  %v1518_v52 = vrot.slane %v1517_v31, 2  ;;  %v1479_v55 = vadd.f32 %v1478_v47, %v1477_v28  ;;  %v1492_v4 = vrot.slane %v1491_v45, 1 }
 0x1de   :  { %v1534_v57 = vadd.f32 %v1533_v51, %v1465_v43  ;;  %v1505_v8 = vadd.f32 %v1504_v49, %v1503_v19  ;;  %v1525_v62 = vrot.slane %v1524_v53, 2  ;;  %v1486_v6 = vadd.f32 %v1485_v54, %v1484_v41 }
 0x1df   :  { %v1499_v7 = vrot.slane %v1498_v50, 1  ;;  %v1512_v58 = vadd.f32 %v1511_v61, %v1510_v42  ;;  %v1493_v13 = vadd.f32 %v1492_v4, %v1491_v45  ;;  %v1519_v15 = vadd.f32 %v1518_v52, %v1517_v31  ;;  %v1545_v42 = vld [vmem:[#allocation6] sm:$0x1]  ;;  %v1549_v45 = vld [vmem:[#allocation7] sm:$0x1] }
 0x1e0   :  { %v1535_v59 = vadd.f32 %v1534_v57, %v1472_v46  ;;  %v1506_v12 = vrot.slane %v1505_v8, 1  ;;  %v1526_v17 = vadd.f32 %v1525_v62, %v1524_v53  ;;  %v1980_v37 = vmov 1966171168  }
 0x1e1   :  { %v1500_v16 = vadd.f32 %v1499_v7, %v1498_v50  ;;  %v1513_v10 = vrot.slane %v1512_v58, 1  ;;  %v1520_v24 = vrot.slane %v1519_v15, 1  ;;  %v1629_v43 = vunpack.c.l.s4 %v1980_v37 }
 0x1e2   :  { %v1536_v44 = vadd.f32 %v1535_v59, %v1479_v55  ;;  %v1507_v20 = vadd.f32 %v1506_v12, %v1505_v8  ;;  %v1527_v28 = vrot.slane %v1526_v17, 1 }
 0x1e3   :  { %v1514_v27 = vadd.f32 %v1513_v10, %v1512_v58  ;;  %v1521_v19 = vadd.f32 %v1520_v24, %v1519_v15  ;;  %v1630_v49 = vunpack.c.0.s8 %v1629_v43 }
 0x1e4   :  { %v1537_v34 = vadd.f32 %v1536_v44, %v1486_v6  ;;  %v1528_v39 = vadd.f32 %v1527_v28, %v1526_v17 }
 0x1e5   :  { %v1633_v50 = vsub.s32 %v1630_v49, %v2087_v18 }
 0x1e6   :  { %v1538_v14 = vadd.f32 %v1537_v34, %v1493_v13 }
 0x1e8   :  { %v1539_v21 = vadd.f32 %v1538_v14, %v1500_v16 }
 0x1ea   :  { %v1540_v29 = vadd.f32 %v1539_v21, %v1507_v20 }
 0x1ec   :  { %v1541_v35 = vadd.f32 %v1540_v29, %v1514_v27 }
 0x1ee   :  { %v1542_v38 = vadd.f32 %v1541_v35, %v1521_v19 }
 0x1f0   :  { %v1543_v23 = vadd.f32 %v1542_v38, %v1528_v39 }
 0x1f2   :  { %v1544_v41 = vmul.f32 0.03125, %v1543_v23 }
 0x1f4   :  { %v1546_v30 = vadd.f32 1e-05, %v1544_v41 }
 0x1f6   :  { %1877 = vrsqrt.f32 %v1546_v30 }
 0x200   :  { %v1878_v31 = vpop.eup %1877 }
 0x201   :  { %v1548_v47 = vmul.f32 %v1878_v31, %v1545_v42 }
 0x203   :  { %v1550_v51 = vmul.f32 %v1548_v47, %v2202_v63  ;;  %v1555_v46 = vrot.slane %v1548_v47, %v2090_v22 }
 0x205   :  { %v1551_v53 = vsub.f32 %v1549_v45, %v1550_v51  ;;  %v1556_v54 = vmul.f32 %v1555_v46, %v2097_v32  ;;  %v1557_v61 = vmul.f32 %v1555_v46, %v2099_v33  ;;  %v1558_v57 = vmul.f32 %v1555_v46, %v2111_v40 }
 0x206   :  { %v1559_v52 = vmul.f32 %v1555_v46, %v2116_v0  ;;  %v1560_v55 = vmul.f32 %v1555_v46, %v2120_v48  ;;  %v1561_v4 = vmul.f32 %v1555_v46, %v2129_v56  ;;  %v1562_v8 = vmul.f32 %v1555_v46, %v2138_v5 }
 0x207   :  { %v1563_v63 = vmul.f32 %v1555_v46, %v2148_v25  ;;  %v1564_v59 = vmul.f32 %v1555_v46, %v2150_v26  ;;  %v1565_v32 = vmul.f32 %v1555_v46, %v2156_v11  ;;  %v1566_v18 = vmul.f32 %v1555_v46, %v2166_v1 }
 0x208   :  { %v1567_v33 = vmul.f32 %v1555_v46, %v2168_v9  ;;  %v1575_v40 = vrot.slane %v1551_v53, %v2090_v22  ;;  %v1568_v0 = vmul.f32 %v1555_v46, %v2186_v36  ;;  %v1569_v48 = vmul.f32 %v1555_v46, %v2190_v3 }
 0x209   :  { %v1570_v56 = vmul.f32 %v1555_v46, %v2188_v2  ;;  %v1571_v5 = vmul.f32 %v1555_v46, %v2194_v60 }
 0x20a   :  { %v1576_v62 = vadd.f32 %v1575_v40, %v1556_v54  ;;  %v1577_v25 = vadd.f32 %v1575_v40, %v1557_v61  ;;  %v1578_v6 = vadd.f32 %v1575_v40, %v1558_v57  ;;  %v1579_v26 = vadd.f32 %v1575_v40, %v1559_v52 }
 0x20b   :  { %v1580_v7 = vadd.f32 %v1575_v40, %v1560_v55  ;;  %v1581_v11 = vadd.f32 %v1575_v40, %v1561_v4  ;;  %v1582_v58 = vadd.f32 %v1575_v40, %v1562_v8  ;;  %v1583_v1 = vadd.f32 %v1575_v40, %v1563_v63 }
 0x20c   :  { %v1584_v44 = vadd.f32 %v1575_v40, %v1564_v59  ;;  %v1585_v9 = vadd.f32 %v1575_v40, %v1565_v32  ;;  %v1586_v13 = vadd.f32 %v1575_v40, %v1566_v18  ;;  %v1587_v22 = vadd.f32 %v1575_v40, %v1567_v33 }
 0x20d   :  { %v1588_v12 = vadd.f32 %v1575_v40, %v1568_v0  ;;  %v1589_v36 = vadd.f32 %v1575_v40, %v1569_v48  ;;  %v1590_v15 = vadd.f32 %v1575_v40, %v1570_v56  ;;  %v1591_v3 = vadd.f32 %v1575_v40, %v1571_v5 }
 0x20e   :  { %v1861_v34 = vpack.c.bf16 %v1577_v25, %v1576_v62  ;;  %v1862_v2 = vpack.c.bf16 %v1579_v26, %v1578_v6  ;;  %v1863_v16 = vpack.c.bf16 %v1581_v11, %v1580_v7  ;;  %v1864_v60 = vpack.c.bf16 %v1583_v1, %v1582_v58 }
 0x20f   :  { %v1865_v10 = vpack.c.bf16 %v1585_v9, %v1584_v44  ;;  %v1866_v17 = vpack.c.bf16 %v1587_v22, %v1586_v13  ;;  %v1867_v14 = vpack.c.bf16 %v1589_v36, %v1588_v12  ;;  %v1868_v20 = vpack.c.bf16 %v1591_v3, %v1590_v15 }
 0x210   :  { %v1634_v24 = vrot.slane %v1861_v34, %v1633_v50  ;;  %v1641_v21 = vrot.slane %v1862_v2, %v1633_v50  ;;  %v1648_v27 = vrot.slane %v1863_v16, %v1633_v50  ;;  %v1655_v28 = vrot.slane %v1864_v60, %v1633_v50 }
 0x211   :  { %v1683_v29 = vrot.slane %v1865_v10, %v1633_v50  ;;  %v1690_v19 = vrot.slane %v1866_v17, %v1633_v50  ;;  %v1697_v35 = vrot.slane %v1867_v14, %v1633_v50  ;;  %v1704_v39 = vrot.slane %v1868_v20, %v1633_v50 }
 0x212   :  { %v1656_v38 = vcombine.low %v1634_v24, %v1641_v21  ;;  %v1657_v23 = vcombine.low %v1648_v27, %v1655_v28 }
 0x213   :  { %v1705_v41 = vcombine.low %v1683_v29, %v1690_v19  ;;  %v1706_v30 = vcombine.low %v1697_v35, %v1704_v39 }
 0x214   :  { %v1664_v42 = vrot.slane %v1656_v38, %v1633_v50  ;;  %v1671_v37 = vrot.slane %v1657_v23, %v1633_v50 }
 0x215   :  { %v1713_v43 = vrot.slane %v1705_v41, %v1633_v50  ;;  %v1720_v31 = vrot.slane %v1706_v30, %v1633_v50 }
 0x216   :  { %v1672_v47 = vcombine.low %v1664_v42, %v1671_v37 }
 0x217   :  { %v1721_v45 = vcombine.low %v1713_v43, %v1720_v31 }
 0x218   :  { %1724 = vst [vmem:[%s2269_s5] sm:$0xff] %v1672_v47 }
 0x219   :  { %1725 = vst [vmem:[%s2269_s5 + $0x8] sm:$0xff] %v1721_v45 }
 0x21a   :  { %1730 = vsyncpa [#allocation3], 1 }
 0x21b   :  { %1731 = vsyncpa [#allocation5], 1 }
 0x21c   :  { %1732 = vsyncpa [#allocation8], 1 }

// kernel: generator_forward.3
= control target key start
LH: loop header
LB: loop body
LE: loop exit
PB: predicated region body
PF: predicated region fallthrough
CT: control target
= control target key end

     0   :  { %17 = vsyncpa [#allocation3], 0  ;;  %s17554_s0 = inlined_call_operand.vmem [shape: bf16[2,4,4,128], index: 0, kind: input, shape index: {}]   ;;  %s17555_s1 = inlined_call_operand.vmem [shape: bf16[10,4], index: 1, kind: input, shape index: {}]   ;;  %s17556_s2 = inlined_call_operand.vmem [shape: bf16[18,8], index: 2, kind: input, shape index: {}]   ;;  %s17557_s3 = inlined_call_operand.vmem [shape: bf16[18,16], index: 3, kind: input, shape index: {}]   ;;  %s17558_s4 = inlined_call_operand.vmem [shape: bf16[1152,128], index: 4, kind: input, shape index: {}]   ;;  %s17559_s5 = inlined_call_operand.hbm [shape: f32[1,128], index: 5, kind: input, shape index: {}]   ;;  %s17560_s6 = inlined_call_operand.hbm [shape: f32[1,128], index: 6, kind: input, shape index: {}]   ;;  %s17561_s7 = inlined_call_operand.vmem [shape: bf16[1152,128], index: 7, kind: input, shape index: {}]   ;;  %s17562_s8 = inlined_call_operand.hbm [shape: f32[1,128], index: 8, kind: input, shape index: {}]   ;;  %s17563_s9 = inlined_call_operand.hbm [shape: f32[1,128], index: 9, kind: input, shape index: {}]   ;;  %s17564_s10 = inlined_call_operand.hbm [shape: bf16[1152,128], index: 10, kind: input, shape index: {}]   ;;  %s17565_s11 = inlined_call_operand.hbm [shape: f32[1,128], index: 11, kind: input, shape index: {}]   ;;  %s17566_s12 = inlined_call_operand.vmem [shape: f32[2,16,16,128], index: 12, kind: output, shape index: {}]  }
   0x1   :  { %18 = vsyncpa [#allocation5], 0 }
   0x2   :  { %19 = vsyncpa [#allocation8], 0 }
   0x3   :  { %20 = vsyncpa [#allocation11], 0  ;;  %s13038_s21 = smov [#allocation4]   ;;  %s13039_s23 = smov [#allocation7]  }
   0x4   :  { %s47_s22 = sshll.u32 %s13038_s21, 4  ;;  %s69_s24 = sshll.u32 %s13039_s23, 4  ;;  %s48_s22 = int_to_ptr.vmem [resolvable:$true] %s47_s22  ;;  %s70_s24 = int_to_ptr.vmem [resolvable:$true] %s69_s24 }
   0x5   :  { %s12898_s27 = scalar_lea.hbm %s17560_s6, 16 }
   0x6   :  { %p12899_p0 = scmp.ne.s32.totalorder %s17560_s6, %s12898_s27  ;;  %p12902_p1 = scmp.lt.u32.totalorder %s12898_s27, %s17560_s6 }
   0x8   :  { %p12904_p2 = pnand %p12902_p1, %p12899_p0 }
   0xa   :  { %12907 = shalt.err (!%p12904_p2)
}
   0xb   :  { %s12908_s14 = scalar_lea.vmem %s48_s22, 16  ;;  %s12912_s15 = scalar_lea.vmem %s48_s22, 32 }
   0xc   :  { %p12909_p3 = scmp.ne.s32.totalorder %s48_s22, %s12908_s14  ;;  %p12913_p4 = scmp.lt.s32.totalorder %s48_s22, %s48_s22 }
   0xd   :  { %p12914_p5 = scmp.lt.s32.totalorder %s12912_s15, %s12908_s14 }
   0xf   :  { %p12915_p6 = por %p12914_p5, %p12913_p4 }
  0x11   :  { %p12916_p7 = pnand %p12915_p6, %p12909_p3 }
  0x13   :  { %12919 = shalt.err (!%p12916_p7)
}
  0x14   :  { %50 = dma.hbm_to_vmem [thread:$0]  %s17560_s6, 16, %s48_s22, [#allocation5]  }
  0x15   :  { %s12920_s20 = scalar_lea.hbm %s17563_s9, 16 }
  0x16   :  { %p12921_p8 = scmp.ne.s32.totalorder %s17563_s9, %s12920_s20  ;;  %p12924_p9 = scmp.lt.u32.totalorder %s12920_s20, %s17563_s9 }
  0x18   :  { %p12926_p10 = pnand %p12924_p9, %p12921_p8 }
  0x1a   :  { %12929 = shalt.err (!%p12926_p10)
}
  0x1b   :  { %s12930_s27 = scalar_lea.vmem %s70_s24, 16  ;;  %s12934_s28 = scalar_lea.vmem %s70_s24, 32 }
  0x1c   :  { %p12931_p11 = scmp.ne.s32.totalorder %s70_s24, %s12930_s27  ;;  %p12935_p12 = scmp.lt.s32.totalorder %s70_s24, %s70_s24 }
  0x1d   :  { %p12936_p13 = scmp.lt.s32.totalorder %s12934_s28, %s12930_s27 }
  0x1f   :  { %p12937_p0 = por %p12936_p13, %p12935_p12 }
  0x21   :  { %p12938_p1 = pnand %p12937_p0, %p12931_p11 }
  0x23   :  { %12941 = shalt.err (!%p12938_p1)
}
  0x24   :  { %72 = dma.hbm_to_vmem [thread:$0]  %s17563_s9, 16, %s70_s24, [#allocation8]  }
  0x25   :  { %s13040_s29 = smov [#allocation2]   ;;  %s13041_s13 = smov [#allocation6]  }
  0x26   :  { %s37_s30 = sshll.u32 %s13040_s29, 4  ;;  %s59_s14 = sshll.u32 %s13041_s13, 4  ;;  %s38_s30 = int_to_ptr.vmem [resolvable:$true] %s37_s30  ;;  %s60_s14 = int_to_ptr.vmem [resolvable:$true] %s59_s14 }
  0x27   :  { %s12942_s17 = scalar_lea.hbm %s17559_s5, 16 }
  0x28   :  { %p12943_p2 = scmp.ne.s32.totalorder %s17559_s5, %s12942_s17  ;;  %p12946_p3 = scmp.lt.u32.totalorder %s12942_s17, %s17559_s5 }
  0x2a   :  { %p12948_p4 = pnand %p12946_p3, %p12943_p2 }
  0x2c   :  { %12951 = shalt.err (!%p12948_p4)
}
  0x2d   :  { %s12952_s9 = scalar_lea.vmem %s38_s30, 16  ;;  %s12956_s24 = scalar_lea.vmem %s38_s30, 32 }
  0x2e   :  { %p12953_p5 = scmp.ne.s32.totalorder %s38_s30, %s12952_s9  ;;  %p12957_p6 = scmp.lt.s32.totalorder %s38_s30, %s38_s30 }
  0x2f   :  { %p12958_p7 = scmp.lt.s32.totalorder %s12956_s24, %s12952_s9 }
  0x31   :  { %p12959_p8 = por %p12958_p7, %p12957_p6 }
  0x33   :  { %p12960_p9 = pnand %p12959_p8, %p12953_p5 }
  0x35   :  { %12963 = shalt.err (!%p12960_p9)
}
  0x36   :  { %40 = dma.hbm_to_vmem [thread:$0]  %s17559_s5, 16, %s38_s30, [#allocation3]  }
  0x37   :  { %s12964_s28 = scalar_lea.hbm %s17562_s8, 16 }
  0x38   :  { %p12965_p10 = scmp.ne.s32.totalorder %s17562_s8, %s12964_s28  ;;  %p12968_p11 = scmp.lt.u32.totalorder %s12964_s28, %s17562_s8 }
  0x3a   :  { %p12970_p12 = pnand %p12968_p11, %p12965_p10 }
  0x3c   :  { %12973 = shalt.err (!%p12970_p12)
}
  0x3d   :  { %s12974_s15 = scalar_lea.vmem %s60_s14, 16  ;;  %s12978_s16 = scalar_lea.vmem %s60_s14, 32 }
  0x3e   :  { %p12975_p13 = scmp.ne.s32.totalorder %s60_s14, %s12974_s15  ;;  %p12979_p0 = scmp.lt.s32.totalorder %s60_s14, %s60_s14 }
  0x3f   :  { %p12980_p1 = scmp.lt.s32.totalorder %s12978_s16, %s12974_s15 }
  0x41   :  { %p12981_p2 = por %p12980_p1, %p12979_p0 }
  0x43   :  { %p12982_p3 = pnand %p12981_p2, %p12975_p13 }
  0x45   :  { %12985 = shalt.err (!%p12982_p3)
}
  0x46   :  { %62 = dma.hbm_to_vmem [thread:$0]  %s17562_s8, 16, %s60_s14, [#allocation5]  }
  0x47   :  { %s13042_s17 = smov [#allocation9]   ;;  %s12986_s21 = scalar_lea.hbm %s17564_s10, 9216 }
  0x48   :  { %s78_s18 = sshll.u32 %s13042_s17, 4  ;;  %p12987_p4 = scmp.ne.s32.totalorder %s17564_s10, %s12986_s21  ;;  %s79_s18 = int_to_ptr.vmem [resolvable:$true] %s78_s18 }
  0x49   :  { %p12990_p5 = scmp.lt.u32.totalorder %s12986_s21, %s17564_s10 }
  0x4b   :  { %p12992_p6 = pnand %p12990_p5, %p12987_p4 }
  0x4d   :  { %12995 = shalt.err (!%p12992_p6)
}
  0x4e   :  { %s12996_s26 = scalar_lea.vmem %s79_s18, 9216  ;;  %p13001_p8 = scmp.lt.s32.totalorder %s79_s18, %s79_s18 }
  0x4f   :  { %p12997_p7 = scmp.ne.s32.totalorder %s79_s18, %s12996_s26  ;;  %p13002_p9 = scmp.lt.s32.totalorder %s12996_s26, %s12996_s26 }
  0x51   :  { %p13003_p10 = por %p13002_p9, %p13001_p8 }
  0x53   :  { %p13004_p11 = pnand %p13003_p10, %p12997_p7 }
  0x55   :  { %13007 = shalt.err (!%p13004_p11)
}
  0x56   :  { %s13043_s8 = smov 64   ;;  %s13044_s14 = smov 4  }
  0x57   :  { %84 = dma.hbm_to_vmem [thread:$0]  %s17564_s10, 9216, %s79_s18, [#allocation8], %s13043_s8, %s13043_s8, %s13044_s14  }
  0x58   :  { %s13045_s6 = smov [#allocation10]   ;;  %s13008_s15 = scalar_lea.hbm %s17565_s11, 16 }
  0x59   :  { %s91_s22 = sshll.u32 %s13045_s6, 4  ;;  %p13009_p12 = scmp.ne.s32.totalorder %s17565_s11, %s13008_s15  ;;  %s92_s22 = int_to_ptr.vmem [resolvable:$true] %s91_s22 }
  0x5a   :  { %p13012_p13 = scmp.lt.u32.totalorder %s13008_s15, %s17565_s11 }
  0x5c   :  { %p13014_p0 = pnand %p13012_p13, %p13009_p12 }
  0x5e   :  { %13017 = shalt.err (!%p13014_p0)
}
  0x5f   :  { %s13018_s19 = scalar_lea.vmem %s92_s22, 16  ;;  %s13022_s10 = scalar_lea.vmem %s92_s22, 32 }
  0x60   :  { %p13019_p1 = scmp.ne.s32.totalorder %s92_s22, %s13018_s19  ;;  %p13023_p2 = scmp.lt.s32.totalorder %s92_s22, %s92_s22 }
  0x61   :  { %p13024_p3 = scmp.lt.s32.totalorder %s13022_s10, %s13018_s19 }
  0x63   :  { %p13025_p4 = por %p13024_p3, %p13023_p2 }
  0x65   :  { %p13026_p5 = pnand %p13025_p4, %p13019_p1 }
  0x67   :  { %13029 = shalt.err (!%p13026_p5)
}
  0x68   :  { %94 = dma.hbm_to_vmem [thread:$0]  %s17565_s11, 16, %s92_s22, [#allocation11]  }
  0x69   :  { %13030 = dma.done.wait [#allocation3], 16  }
  0x6a   :  { %13031 = vsyncadd [#allocation3], 4294967280 }
  0x6b   :  { %13032 = dma.done.wait [#allocation5], 32  }
  0x6c   :  { %13033 = vsyncadd [#allocation5], 4294967264 }
  0x6d   :  { %13034 = dma.done.wait [#allocation8], 9232  }
  0x6e   :  { %13035 = vsyncadd [#allocation8], 4294958064 }
  0x6f   :  { %13036 = dma.done.wait [#allocation11], 16  }
  0x70   :  { %13037 = vsyncadd [#allocation11], 4294967280  ;;  %v13046_v0 = vmov 0.0   ;;  %vm13047_vm0 = vmmov 0   ;;  %vm133_vm1 = vcmask 1041408   ;;  %vm129_vm2 = vcmask 31744  }
  0x71   :  { %11157 = vmatprep.subr.bf16.mxu0 %v13046_v0  ;;  %11163 = vmatprep.subr.bf16.mxu1 %v13046_v0  ;;  %v114_v1 = vld [vmem:[%s17554_s0] sm:$0x3]  ;;  %v115_v2 = vld [vmem:[%s17554_s0 + $0x2] sm:$0x3]  ;;  %v116_v6 = vld [vmem:[%s17554_s0 + $0x4] sm:$0x3] }
  0x72   :  { %11159 = vmatprep.mubr.msk.bf16.mxu0 %vm13047_vm0, %v13046_v0  ;;  %11165 = vmatprep.mubr.msk.bf16.mxu1 %vm13047_vm0, %v13046_v0  ;;  %v135_v3 = vsel %vm133_vm1, %v114_v1, 0  ;;  %v179_v4 = vsel %vm133_vm1, %v115_v2, 0  ;;  %v12544_v5 = vld [vmem:[%s17555_s1] sm:$0x1f]   ;;  %v117_v7 = vld [vmem:[%s17554_s0 + $0x6] sm:$0x3] }
  0x73   :  { %11158 = vmatpush3.bf16.msra.mxu0 %v135_v3  ;;  %11164 = vmatpush3.bf16.msra.mxu1 %v179_v4  ;;  %v223_v8 = vsel %vm133_vm1, %v116_v6, 0  ;;  %v267_v9 = vsel %vm133_vm1, %v117_v7, 0  ;;  %v118_v10 = vld [vmem:[%s17554_s0 + $0x8] sm:$0x3]  ;;  %v119_v11 = vld [vmem:[%s17554_s0 + $0xa] sm:$0x3] }
  0x74   :  { %11169 = vmatprep.subr.bf16.mxu0 %v13046_v0  ;;  %11175 = vmatprep.subr.bf16.mxu1 %v13046_v0  ;;  %v311_v12 = vsel %vm133_vm1, %v118_v10, 0  ;;  %v355_v13 = vsel %vm133_vm1, %v119_v11, 0  ;;  %v120_v14 = vld [vmem:[%s17554_s0 + $0xc] sm:$0x3]  ;;  %v121_v15 = vld [vmem:[%s17554_s0 + $0xe] sm:$0x3] }
  0x75   :  { %v399_v16 = vsel %vm133_vm1, %v120_v14, 0  ;;  %v12545_v17 = vld [vmem:[%s17558_s4 + $0xc0] sm:$0xff]   ;;  %v443_v18 = vsel %vm133_vm1, %v121_v15, 0  ;;  %v12547_v21 = vld [vmem:[%s17558_s4 + $0xc8] sm:$0xff]   ;;  %v12551_v26 = vld [vmem:[%s17558_s4 + $0xd0] sm:$0xff]   ;;  %vm2002_vm3 = vcmask 64512  }
  0x76   :  { %11160 = vmatmul.mubr.msk.bf16.vlgmr.msra.gmra.mrb[0].mxu0 %vm129_vm2, %v12544_v5  ;;  %11166 = vmatmul.mubr.msk.bf16.vlgmr.msra.gmra.mrb[0].mxu1 %vm129_vm2, %v12544_v5  ;;  %v12548_v19 = vld [vmem:[%s17558_s4 + $0x40] sm:$0xff]   ;;  %v12552_v23 = vld [vmem:[%s17558_s4 + $0x48] sm:$0xff]   ;;  %v12556_v27 = vld [vmem:[%s17558_s4 + $0x50] sm:$0xff]   ;;  %vm2009_vm4 = vcmask 1043456   ;;  %vm2858_vm5 = vsmask.f32 7424 }
  0x77   :  { %11170 = vmatpush3.bf16.msra.mxu0 %v223_v8  ;;  %11171 = vmatprep.mubr.msk.bf16.mxu0 %vm13047_vm0, %v13046_v0  ;;  %v12546_v20 = vld [vmem:[%s17558_s4 + $0x80] sm:$0xff]   ;;  %v12549_v24 = vld [vmem:[%s17558_s4 + $0x88] sm:$0xff]   ;;  %v12553_v28 = vld [vmem:[%s17558_s4 + $0x90] sm:$0xff]   ;;  %vm3101_vm6 = vcmask 1046528   ;;  %vm5836_vm7 = vcmask 130048  }
  0x78   :  { %11176 = vmatpush3.bf16.msra.mxu1 %v267_v9  ;;  %11177 = vmatprep.mubr.msk.bf16.mxu1 %vm13047_vm0, %v13046_v0  ;;  %v12550_v22 = vld [vmem:[%s17558_s4] sm:$0xff]   ;;  %v12554_v25 = vld [vmem:[%s17558_s4 + $0x8] sm:$0xff]   ;;  %v12558_v29 = vld [vmem:[%s17558_s4 + $0x10] sm:$0xff]  }
  0x79   :  { %11181 = vmatprep.subr.bf16.mxu0 %v13046_v0  ;;  %11187 = vmatprep.subr.bf16.mxu1 %v13046_v0  ;;  %v12555_v30 = vld [vmem:[%s17558_s4 + $0xd8] sm:$0xff]   ;;  %v12559_v34 = vld [vmem:[%s17558_s4 + $0xe0] sm:$0xff]   ;;  %v12563_v38 = vld [vmem:[%s17558_s4 + $0xe8] sm:$0xff]  }
  0x7a   :  { %v12560_v31 = vld [vmem:[%s17558_s4 + $0x58] sm:$0xff]   ;;  %v12564_v35 = vld [vmem:[%s17558_s4 + $0x60] sm:$0xff]   ;;  %v12565_v39 = vld [vmem:[%s17558_s4 + $0xa8] sm:$0xff]  }
  0x7b   :  { %v12557_v32 = vld [vmem:[%s17558_s4 + $0x98] sm:$0xff]   ;;  %v12561_v36 = vld [vmem:[%s17558_s4 + $0xa0] sm:$0xff]   ;;  %v12567_v40 = vld [vmem:[%s17558_s4 + $0xf0] sm:$0xff]  }
  0x7c   :  { %v12562_v33 = vld [vmem:[%s17558_s4 + $0x18] sm:$0xff]   ;;  %v12566_v37 = vld [vmem:[%s17558_s4 + $0x20] sm:$0xff]   ;;  %v12568_v41 = vld [vmem:[%s17558_s4 + $0x68] sm:$0xff]  }
  0x7d   :  { %v12569_v42 = vld [vmem:[%s17558_s4 + $0xb0] sm:$0xff]   ;;  %v12570_v43 = vld [vmem:[%s17558_s4 + $0x28] sm:$0xff]   ;;  %v12571_v44 = vld [vmem:[%s17558_s4 + $0xf8] sm:$0xff]  }
  0x7e   :  { %11172 = vmatmul.mubr.msk.bf16.vlgmr.msra.gmra.mrb[4].mxu0 %vm129_vm2, %v12544_v5  ;;  %11178 = vmatmul.mubr.msk.bf16.vlgmr.msra.gmra.mrb[4].mxu1 %vm129_vm2, %v12544_v5  ;;  %v12572_v45 = vld [vmem:[%s17558_s4 + $0x70] sm:$0xff]   ;;  %v12573_v46 = vld [vmem:[%s17558_s4 + $0xb8] sm:$0xff]   ;;  %v12577_v50 = vld [vmem:[%s17558_s4 + $0x1c0] sm:$0xff]  }
  0x7f   :  { %11182 = vmatpush3.bf16.msra.mxu0 %v311_v12  ;;  %11188 = vmatpush3.bf16.msra.mxu1 %v355_v13  ;;  %v12574_v47 = vld [vmem:[%s17558_s4 + $0x30] sm:$0xff]   ;;  %v12575_v48 = vld [vmem:[%s17558_s4 + $0x78] sm:$0xff]   ;;  %v12580_v51 = vld [vmem:[%s17558_s4 + $0x140] sm:$0xff]  }
  0x80   :  { %11183 = vmatprep.mubr.msk.bf16.mxu0 %vm13047_vm0, %v13046_v0  ;;  %11189 = vmatprep.mubr.msk.bf16.mxu1 %vm13047_vm0, %v13046_v0  ;;  %v12576_v49 = vld [vmem:[%s17558_s4 + $0x38] sm:$0xff]   ;;  %v12578_v8 = vld [vmem:[%s17558_s4 + $0x180] sm:$0xff]   ;;  %v12579_v12 = vld [vmem:[%s17558_s4 + $0x1c8] sm:$0xff]  }
  0x81   :  { %11193 = vmatprep.subr.bf16.mxu0 %v13046_v0  ;;  %11199 = vmatprep.subr.bf16.mxu1 %v13046_v0 }
  0x86   :  { %11184 = vmatmul.mubr.msk.bf16.vlgmr.msra.gmra.mrb[8].mxu0 %vm129_vm2, %v12544_v5  ;;  %11190 = vmatmul.mubr.msk.bf16.vlgmr.msra.gmra.mrb[8].mxu1 %vm129_vm2, %v12544_v5 }
  0x87   :  { %11194 = vmatpush3.bf16.msra.mxu0 %v399_v16  ;;  %11195 = vmatprep.mubr.msk.bf16.mxu0 %vm13047_vm0, %v13046_v0 }
  0x88   :  { %11200 = vmatpush3.bf16.msra.mxu1 %v443_v18  ;;  %11201 = vmatprep.mubr.msk.bf16.mxu1 %vm13047_vm0, %v13046_v0  ;;  %v17567_v0 = vmov 0  }
  0x89   :  { %10725 = vmatprep.subr.bf16.mxu1 %v12545_v17  ;;  %10661 = vmatprep.subr.bf16.mxu0 %v12548_v19  ;;  %v13342_v1 = vrot.slane %v17567_v0, 1 }
  0x8b   :  { %17711 = vst [vmem:[#allocation16_spill] sm:$0xff] %v13342_v1 }
  0x8e   :  { %11196 = vmatmul.mubr.msk.bf16.vlgmr.msra.gmra.mrb[12].mxu0 %vm129_vm2, %v12544_v5  ;;  %11202 = vmatmul.mubr.msk.bf16.vlgmr.msra.gmra.mrb[12].mxu1 %vm129_vm2, %v12544_v5 }
  0x8f   :  { %10726 = vmatpush3.bf16.msra.mxu1 %v12546_v20  ;;  %10662 = vmatpush3.bf16.msra.mxu0 %v12550_v22 }
  0x90   :  { %10727 = vmatprep.subr.bf16.mxu1 %v12547_v21  ;;  %10663 = vmatprep.subr.bf16.mxu0 %v12552_v23 }
  0x93   :  { %10728 = vmatpush3.bf16.msra.mxu1 %v12549_v24  ;;  %10664 = vmatpush3.bf16.msra.mxu0 %v12554_v25  ;;  %v12581_v25 = vld [vmem:[%s17558_s4 + $0x188] sm:$0xff]  }
  0x94   :  { %10729 = vmatprep.subr.bf16.mxu1 %v12551_v26  ;;  %10665 = vmatprep.subr.bf16.mxu0 %v12556_v27 }
  0x97   :  { %10730 = vmatpush3.bf16.msra.mxu1 %v12553_v28  ;;  %10666 = vmatpush3.bf16.msra.mxu0 %v12558_v29 }
  0x98   :  { %10731 = vmatprep.subr.bf16.mxu1 %v12555_v30  ;;  %10667 = vmatprep.subr.bf16.mxu0 %v12560_v31  ;;  %v12582_v31 = vld [vmem:[%s17558_s4 + $0x100] sm:$0xff]  }
  0x9b   :  { %10732 = vmatpush3.bf16.msra.mxu1 %v12557_v32  ;;  %10668 = vmatpush3.bf16.msra.mxu0 %v12562_v33 }
  0x9c   :  { %10733 = vmatprep.subr.bf16.mxu1 %v12559_v34  ;;  %10669 = vmatprep.subr.bf16.mxu0 %v12564_v35  ;;  %v12583_v34 = vld [vmem:[%s17558_s4 + $0x1d0] sm:$0xff]   ;;  %v12584_v35 = vld [vmem:[%s17558_s4 + $0x148] sm:$0xff]  }
  0x9f   :  { %10734 = vmatpush3.bf16.msra.mxu1 %v12561_v36  ;;  %10670 = vmatpush3.bf16.msra.mxu0 %v12566_v37 }
  0xa0   :  { %10735 = vmatprep.subr.bf16.mxu1 %v12563_v38  ;;  %10671 = vmatprep.subr.bf16.mxu0 %v12568_v41 }
  0xa3   :  { %10736 = vmatpush3.bf16.msra.mxu1 %v12565_v39  ;;  %10672 = vmatpush3.bf16.msra.mxu0 %v12570_v43  ;;  %v12585_v43 = vld [vmem:[%s17558_s4 + $0x190] sm:$0xff]  }
  0xa4   :  { %10737 = vmatprep.subr.bf16.mxu1 %v12567_v40  ;;  %10673 = vmatprep.subr.bf16.mxu0 %v12572_v45 }
  0xa7   :  { %10738 = vmatpush3.bf16.msra.mxu1 %v12569_v42  ;;  %10674 = vmatpush3.bf16.msra.mxu0 %v12574_v47  ;;  %v12587_v47 = vld [vmem:[%s17558_s4 + $0x1d8] sm:$0xff]  }
  0xa8   :  { %10739 = vmatprep.subr.bf16.mxu1 %v12571_v44  ;;  %10675 = vmatprep.subr.bf16.mxu0 %v12575_v48 }
  0xab   :  { %10740 = vmatpush3.bf16.msra.mxu1 %v12573_v46  ;;  %10676 = vmatpush3.bf16.msra.mxu0 %v12576_v49  ;;  %v12586_v46 = vld [vmem:[%s17558_s4 + $0x108] sm:$0xff]  }
  0xac   :  { %10853 = vmatprep.subr.bf16.mxu1 %v12577_v50  ;;  %10789 = vmatprep.subr.bf16.mxu0 %v12580_v51 }
 0x149   :  { %v171_v52 = vpop.f32.mrb[0].mxu0  ;;  %v215_v53 = vpop.f32.mrb[0].mxu1 }
 0x14a   :  { %v11161_v54 = vpop.f32.mrb[1].mxu0  ;;  %v11167_v55 = vpop.f32.mrb[1].mxu1  ;;  %v10615_v56 = vpack.c.bf16 %v171_v52, %v171_v52  ;;  %v13339_v57 = vpack.c.bf16 %v215_v53, %v171_v52  ;;  %v10617_v4 = vpack.c.bf16 %v215_v53, %v215_v53 }
 0x14b   :  { %v174_v58 = vpop.f32.mrb[2].mxu0  ;;  %v218_v59 = vpop.f32.mrb[2].mxu1 }
 0x14c   :  { %v486_v60 = vpack.c.bf16 %v174_v58, %v171_v52  ;;  %v487_v61 = vpack.c.bf16 %v218_v59, %v215_v53  ;;  %v11162_v62 = vpop.f32.mrb[3].mxu0  ;;  %1415 = vmatprep.mubr.bf16.mxu1 %v10615_v56  ;;  %v11168_v63 = vpop.f32.mrb[3].mxu1  ;;  %v12588_v52 = vld [vmem:[%s17558_s4 + $0x150] sm:$0xff]  }
 0x14e   :  { %v13344_v2 = vrot.slane %v486_v60, 1  ;;  %v504_v3 = vshll.u32 %v486_v60, 16  ;;  %v509_v5 = vshrl.u32 %v487_v61, 16  ;;  %v511_v6 = vshll.u32 %v487_v61, 16 }
 0x14f   :  { %v13346_v7 = vrot.slane %v487_v61, 1  ;;  %v502_v10 = vshrl.u32 %v486_v60, 16  ;;  %v10224_v32 = vcombine.low %v17567_v0, %v486_v60  ;;  %v12589_v61 = vld [vmem:[%s17558_s4 + $0x198] sm:$0xff]  }
 0x150   :  { %v10226_v9 = vcombine.low %v13342_v1, %v13344_v2  ;;  %v506_v11 = vrot.slane %v504_v3, 1  ;;  %v513_v15 = vrot.slane %v511_v6, 1  ;;  %v12590_v6 = vld [vmem:[%s17558_s4 + $0x110] sm:$0xff]  }
 0x151   :  { %v259_v13 = vpop.f32.mrb[4].mxu0  ;;  %v13356_v14 = vpop.f32.mrb[4].mxu1  ;;  %v13360_v16 = vcombine.low %v13344_v2, %v13346_v7 }
 0x152   :  { %v11173_v17 = vpop.f32.mrb[5].mxu0  ;;  %1416 = vmatmul.mubr.bf16.vlgmr.msra.gmra.mrb[16].mxu1 %v10226_v9  ;;  %v11179_v18 = vpop.f32.mrb[5].mxu1  ;;  %v13362_v19 = vor.u32 %v506_v11, %v502_v10  ;;  %v13364_v20 = vpack.c.bf16 %v259_v13, %v215_v53  ;;  %v13366_v23 = vor.u32 %v513_v15, %v509_v5  ;;  %v13369_v24 = vpack.c.bf16 %v13356_v14, %v259_v13  ;;  %v12591_v9 = vld [vmem:[%s17558_s4 + $0x1e0] sm:$0xff]   ;;  %v12592_v10 = vld [vmem:[%s17558_s4 + $0x158] sm:$0xff]  }
 0x153   :  { %v262_v21 = vpop.f32.mrb[6].mxu0  ;;  %1423 = vmatprep.mubr.bf16.mxu1 %v10617_v4  ;;  %v306_v22 = vpop.f32.mrb[6].mxu1  ;;  %10854 = vmatpush3.bf16.msra.mxu1 %v12578_v8  ;;  %v10619_v39 = vpack.c.bf16 %v259_v13, %v259_v13  ;;  %v10621_v15 = vpack.c.bf16 %v13356_v14, %v13356_v14 }
 0x154   :  { %v488_v26 = vpack.c.bf16 %v262_v21, %v259_v13  ;;  %v10225_v27 = vcombine.low %v13342_v1, %v13362_v19  ;;  %v13377_v28 = vpack.c.bf16 %v306_v22, %v13356_v14  ;;  %v11174_v29 = vpop.f32.mrb[7].mxu0  ;;  %v11180_v30 = vpop.f32.mrb[7].mxu1  ;;  %10855 = vmatprep.subr.bf16.mxu1 %v12579_v12  ;;  %v13385_v33 = vcombine.low %v13362_v19, %v13366_v23  ;;  %v12593_v22 = vld [vmem:[%s17558_s4 + $0x1a0] sm:$0xff]   ;;  %v12595_v14 = vld [vmem:[%s17558_s4 + $0x1e8] sm:$0xff]  }
 0x156   :  { %v516_v36 = vshrl.u32 %v488_v26, 16  ;;  %v518_v37 = vshll.u32 %v488_v26, 16  ;;  %v13393_v38 = vrot.slane %v488_v26, 1  ;;  %1318 = vmatprep.mubr.bf16.mxu0 %v10225_v27  ;;  %v523_v40 = vshrl.u32 %v13377_v28, 16  ;;  %v12594_v26 = vld [vmem:[%s17558_s4 + $0x118] sm:$0xff]  }
 0x157   :  { %1319 = vmatmul.mubr.bf16.vlgmr.msra.gmra.mrb[16].mxu0 %v10224_v32  ;;  %v525_v41 = vshll.u32 %v13377_v28, 16  ;;  %v13398_v42 = vrot.slane %v13377_v28, 1  ;;  %10856 = vmatpush3.bf16.msra.mxu1 %v12581_v25  ;;  %v12596_v32 = vld [vmem:[%s17558_s4 + $0x160] sm:$0xff]  }
 0x158   :  { %v520_v44 = vrot.slane %v518_v37, 1  ;;  %1326 = vmatprep.mubr.bf16.mxu0 %v13385_v33  ;;  %v13406_v45 = vcombine.low %v13346_v7, %v13393_v38  ;;  %10790 = vmatpush3.bf16.msra.mxu0 %v12582_v31 }
 0x159   :  { %v13414_v48 = vpop.f32.mrb[8].mxu0  ;;  %v13416_v49 = vpop.f32.mrb[8].mxu1  ;;  %v527_v50 = vrot.slane %v525_v41, 1  ;;  %v13420_v51 = vcombine.low %v13393_v38, %v13398_v42  ;;  %10857 = vmatprep.subr.bf16.mxu1 %v12583_v34  ;;  %10791 = vmatprep.subr.bf16.mxu0 %v12584_v35 }
 0x15a   :  { %1424 = vmatmul.mubr.bf16.gmra.mrb[20].mxu1 %v13360_v16  ;;  %v13426_v53 = vor.u32 %v520_v44, %v516_v36  ;;  %v11185_v54 = vpop.f32.mrb[9].mxu0  ;;  %v11191_v55 = vpop.f32.mrb[9].mxu1  ;;  %v13430_v56 = vpack.c.bf16 %v13416_v49, %v13414_v48 }
 0x15b   :  { %1431 = vmatprep.mubr.bf16.mxu1 %v10619_v39  ;;  %v350_v58 = vpop.f32.mrb[10].mxu0  ;;  %v394_v59 = vpop.f32.mrb[10].mxu1  ;;  %v13432_v60 = vor.u32 %v527_v50, %v523_v40  ;;  %10858 = vmatpush3.bf16.msra.mxu1 %v12585_v43  ;;  %v12597_v43 = vld [vmem:[%s17558_s4 + $0x1a8] sm:$0xff]   ;;  %v12598_v54 = vld [vmem:[%s17558_s4 + $0x120] sm:$0xff]  }
 0x15c   :  { %v13439_v62 = vcombine.low %v13366_v23, %v13426_v53  ;;  %v13442_v63 = vpack.c.bf16 %v350_v58, %v13414_v48  ;;  %v491_v3 = vpack.c.bf16 %v394_v59, %v13416_v49  ;;  %v11186_v4 = vpop.f32.mrb[11].mxu0  ;;  %v11192_v5 = vpop.f32.mrb[11].mxu1  ;;  %10792 = vmatpush3.bf16.msra.mxu0 %v12586_v46  ;;  %10859 = vmatprep.subr.bf16.mxu1 %v12587_v47  ;;  %v12599_v58 = vld [vmem:[%s17558_s4 + $0x1f0] sm:$0xff]   ;;  %v12600_v59 = vld [vmem:[%s17558_s4 + $0x168] sm:$0xff]  }
 0x15d   :  { %v13450_v8 = vcombine.low %v13426_v53, %v13432_v60  ;;  %10793 = vmatprep.subr.bf16.mxu0 %v12588_v52  ;;  %v10622_v5 = vpack.c.bf16 %v13414_v48, %v13414_v48  ;;  %v12602_v48 = vld [vmem:[%s17558_s4 + $0x128] sm:$0xff]  }
 0x15e   :  { %v530_v11 = vshrl.u32 %v13442_v63, 16  ;;  %v532_v12 = vshll.u32 %v13442_v63, 16  ;;  %v13461_v13 = vrot.slane %v13442_v63, 1  ;;  %v537_v17 = vshrl.u32 %v491_v3, 16 }
 0x15f   :  { %1327 = vmatmul.mubr.bf16.gmra.mrb[20].mxu0 %v13339_v57  ;;  %v539_v18 = vshll.u32 %v491_v3, 16  ;;  %v13466_v21 = vrot.slane %v491_v3, 1  ;;  %10860 = vmatpush3.bf16.msra.mxu1 %v12589_v61 }
 0x160   :  { %1334 = vmatprep.mubr.bf16.mxu0 %v13439_v62  ;;  %v534_v25 = vrot.slane %v532_v12, 1  ;;  %10794 = vmatpush3.bf16.msra.mxu0 %v12590_v6 }
 0x161   :  { %v13478_v27 = vpop.f32.mrb[12].mxu0  ;;  %v13480_v29 = vpop.f32.mrb[12].mxu1  ;;  %v541_v30 = vrot.slane %v539_v18, 1  ;;  %v13484_v31 = vcombine.low %v13461_v13, %v13466_v21  ;;  %10861 = vmatprep.subr.bf16.mxu1 %v12591_v9  ;;  %10795 = vmatprep.subr.bf16.mxu0 %v12592_v10 }
 0x162   :  { %1432 = vmatmul.mubr.bf16.gmra.mrb[24].mxu1 %v13406_v45  ;;  %v11197_v34 = vpop.f32.mrb[13].mxu0  ;;  %v13490_v35 = vor.u32 %v534_v25, %v530_v11  ;;  %v11203_v36 = vpop.f32.mrb[13].mxu1  ;;  %v13494_v37 = vpack.c.bf16 %v13478_v27, %v13416_v49  ;;  %v13503_v44 = vpack.c.bf16 %v13480_v29, %v13478_v27  ;;  %v12601_v11 = vld [vmem:[%s17558_s4 + $0x1b0] sm:$0xff]  }
 0x163   :  { %1439 = vmatprep.mubr.bf16.mxu1 %v10621_v15  ;;  %v438_v39 = vpop.f32.mrb[14].mxu0  ;;  %v482_v40 = vpop.f32.mrb[14].mxu1  ;;  %v13496_v41 = vor.u32 %v541_v30, %v537_v17  ;;  %10862 = vmatpush3.bf16.msra.mxu1 %v12593_v22  ;;  %v12603_v17 = vld [vmem:[%s17558_s4 + $0x1f8] sm:$0xff]   ;;  %v12604_v25 = vld [vmem:[%s17558_s4 + $0x170] sm:$0xff]  }
 0x164   :  { %v492_v46 = vpack.c.bf16 %v438_v39, %v13478_v27  ;;  %v13507_v47 = vpack.c.bf16 %v482_v40, %v13480_v29  ;;  %v11198_v50 = vpop.f32.mrb[15].mxu0  ;;  %v11204_v52 = vpop.f32.mrb[15].mxu1  ;;  %10796 = vmatpush3.bf16.msra.mxu0 %v12594_v26  ;;  %10863 = vmatprep.subr.bf16.mxu1 %v12595_v14  ;;  %v12605_v30 = vld [vmem:[%s17558_s4 + $0x1b8] sm:$0xff]   ;;  %v12606_v36 = vld [vmem:[%s17558_s4 + $0x130] sm:$0xff]  }
 0x165   :  { %v13514_v55 = vcombine.low %v13490_v35, %v13496_v41  ;;  %10797 = vmatprep.subr.bf16.mxu0 %v12596_v32  ;;  %v10252_v32 = vcombine.low %v13342_v1, %v13490_v35  ;;  %v12607_v40 = vld [vmem:[%s17558_s4 + $0x178] sm:$0xff]   ;;  %v12609_v52 = vld [vmem:[%s17558_s4 + $0x200] sm:$0xff]  }
 0x166   :  { %v544_v61 = vshrl.u32 %v492_v46, 16  ;;  %v546_v3 = vshll.u32 %v492_v46, 16  ;;  %v13522_v4 = vrot.slane %v492_v46, 1  ;;  %v551_v6 = vshrl.u32 %v13507_v47, 16  ;;  %v12608_v50 = vld [vmem:[%s17558_s4 + $0x138] sm:$0xff]  }
 0x167   :  { %1335 = vmatmul.mubr.bf16.gmra.mrb[24].mxu0 %v13364_v20  ;;  %10864 = vmatpush3.bf16.msra.mxu1 %v12597_v43  ;;  %v553_v9 = vshll.u32 %v13507_v47, 16  ;;  %v13530_v10 = vrot.slane %v13507_v47, 1  ;;  %v10624_v43 = vpack.c.bf16 %v13416_v49, %v13416_v49  ;;  %v10253_v46 = vcombine.low %v13342_v1, %v13461_v13 }
 0x168   :  { %1342 = vmatprep.mubr.bf16.mxu0 %v13450_v8  ;;  %v548_v12 = vrot.slane %v546_v3, 1  ;;  %v13538_v15 = vcombine.low %v13466_v21, %v13522_v4  ;;  %10798 = vmatpush3.bf16.msra.mxu0 %v12598_v54  ;;  %v10251_v49 = vcombine.low %v17567_v0, %v13442_v63  ;;  %v10626_v54 = vpack.c.bf16 %v13478_v27, %v13478_v27 }
 0x169   :  { %v555_v18 = vrot.slane %v553_v9, 1  ;;  %v13548_v22 = vcombine.low %v13522_v4, %v13530_v10  ;;  %10865 = vmatprep.subr.bf16.mxu1 %v12599_v58  ;;  %10799 = vmatprep.subr.bf16.mxu0 %v12600_v59  ;;  %v10628_v58 = vpack.c.bf16 %v13480_v29, %v13480_v29  ;;  %v10229_v63 = vcombine.low %v13344_v2, %v13344_v2  ;;  %v12610_v29 = vld [vmem:[%s17558_s4 + $0x208] sm:$0xff]  }
 0x16a   :  { %1440 = vmatmul.mubr.bf16.gmra.mrb[28].mxu1 %v13420_v51  ;;  %v13554_v26 = vor.u32 %v548_v12, %v544_v61  ;;  %v10228_v27 = vcombine.low %v13362_v19, %v13362_v19  ;;  %v10234_v2 = vcombine.low %v13366_v23, %v13366_v23  ;;  %v10241_v19 = vcombine.low %v13393_v38, %v13393_v38  ;;  %v12614_v38 = vld [vmem:[%s17558_s4 + $0x228] sm:$0xff]   ;;  %v12616_v61 = vld [vmem:[%s17558_s4 + $0x238] sm:$0xff]  }
 0x16b   :  { %1447 = vmatprep.mubr.bf16.mxu1 %v10622_v5  ;;  %v13556_v14 = vor.u32 %v555_v18, %v551_v6  ;;  %10866 = vmatpush3.bf16.msra.mxu1 %v12601_v11  ;;  %v10240_v23 = vcombine.low %v13426_v53, %v13426_v53  ;;  %v10248_v59 = vcombine.low %v13377_v28, %v17567_v0 }
 0x16c   :  { %v13565_v34 = vcombine.low %v13496_v41, %v13554_v26  ;;  %10800 = vmatpush3.bf16.msra.mxu0 %v12602_v48  ;;  %10867 = vmatprep.subr.bf16.mxu1 %v12603_v17  ;;  %v10246_v53 = vcombine.low %v13432_v60, %v13432_v60  ;;  %v10256_v28 = vcombine.low %v13461_v13, %v13461_v13 }
 0x16d   :  { %v13572_v39 = vcombine.low %v13554_v26, %v13556_v14  ;;  %10801 = vmatprep.subr.bf16.mxu0 %v12604_v25  ;;  %v10261_v13 = vcombine.low %v13496_v41, %v13496_v41  ;;  %v10275_v41 = vcombine.low %v13507_v47, %v17567_v0  ;;  %v10273_v3 = vcombine.low %v13556_v14, %v13556_v14 }
 0x16e   :  { %v10277_v47 = vcombine.low %v13530_v10, %v13342_v1 }
 0x16f   :  { %1343 = vmatmul.mubr.bf16.gmra.mrb[28].mxu0 %v13369_v24  ;;  %10868 = vmatpush3.bf16.msra.mxu1 %v12605_v30 }
 0x170   :  { %1350 = vmatprep.mubr.bf16.mxu0 %v10252_v32  ;;  %10802 = vmatpush3.bf16.msra.mxu0 %v12606_v36 }
 0x171   :  { %10803 = vmatprep.subr.bf16.mxu0 %v12607_v40 }
 0x172   :  { %1448 = vmatmul.mubr.bf16.gmra.mrb[32].mxu1 %v10253_v46 }
 0x173   :  { %1455 = vmatprep.mubr.bf16.mxu1 %v10624_v43 }
 0x174   :  { %10804 = vmatpush3.bf16.msra.mxu0 %v12608_v50 }
 0x175   :  { %11205 = vmatprep.subr.bf16.mxu0 %v12609_v52 }
 0x177   :  { %1351 = vmatmul.mubr.bf16.gmra.mrb[32].mxu0 %v10251_v49 }
 0x178   :  { %1358 = vmatprep.mubr.bf16.mxu0 %v13514_v55 }
 0x17a   :  { %1456 = vmatmul.mubr.bf16.gmra.mrb[36].mxu1 %v13484_v31 }
 0x17b   :  { %1463 = vmatprep.mubr.bf16.mxu1 %v10626_v54 }
 0x17f   :  { %1359 = vmatmul.mubr.bf16.gmra.mrb[36].mxu0 %v13430_v56 }
 0x180   :  { %1366 = vmatprep.mubr.bf16.mxu0 %v13565_v34 }
 0x182   :  { %1464 = vmatmul.mubr.bf16.gmra.mrb[40].mxu1 %v13538_v15 }
 0x183   :  { %1471 = vmatprep.mubr.bf16.mxu1 %v10628_v58 }
 0x187   :  { %1367 = vmatmul.mubr.bf16.gmra.mrb[40].mxu0 %v13494_v37 }
 0x188   :  { %1374 = vmatprep.mubr.bf16.mxu0 %v13572_v39 }
 0x18a   :  { %1472 = vmatmul.mubr.bf16.gmra.mrb[44].mxu1 %v13548_v22 }
 0x18b   :  { %1609 = vmatprep.mubr.bf16.mxu1 %v13385_v33  ;;  %v10235_v33 = vcombine.low %v13346_v7, %v13346_v7  ;;  %v12612_v7 = vld [vmem:[%s17558_s4 + $0x218] sm:$0xff]  }
 0x18f   :  { %1375 = vmatmul.mubr.bf16.gmra.mrb[44].mxu0 %v13503_v44 }
 0x190   :  { %1512 = vmatprep.mubr.bf16.mxu0 %v10229_v63 }
 0x192   :  { %1610 = vmatmul.mubr.bf16.vlgmr.msra.gmra.mrb[48].mxu1 %v13339_v57  ;;  %v12611_v57 = vld [vmem:[%s17558_s4 + $0x210] sm:$0xff]  }
 0x193   :  { %1617 = vmatprep.mubr.bf16.mxu1 %v13439_v62  ;;  %v12613_v62 = vld [vmem:[%s17558_s4 + $0x220] sm:$0xff]  }
 0x197   :  { %1513 = vmatmul.mubr.bf16.vlgmr.msra.gmra.mrb[48].mxu0 %v10228_v27 }
 0x198   :  { %1520 = vmatprep.mubr.bf16.mxu0 %v10235_v33  ;;  %11206 = vmatpush3.bf16.msra.mxu0 %v12609_v52 }
 0x199   :  { %11207 = vmatprep.subr.bf16.mxu0 %v12610_v29 }
 0x19a   :  { %1618 = vmatmul.mubr.bf16.gmra.mrb[52].mxu1 %v13364_v20  ;;  %v10249_v20 = vcombine.low %v13432_v60, %v13342_v1  ;;  %v10255_v60 = vcombine.low %v13490_v35, %v13490_v35  ;;  %v10276_v35 = vcombine.low %v13556_v14, %v13342_v1 }
 0x19b   :  { %1625 = vmatprep.mubr.bf16.mxu1 %v13450_v8  ;;  %v10247_v8 = vcombine.low %v13398_v42, %v13398_v42 }
 0x19c   :  { %11208 = vmatpush3.bf16.msra.mxu0 %v12610_v29 }
 0x19d   :  { %11209 = vmatprep.subr.bf16.mxu0 %v12611_v57 }
 0x19f   :  { %1521 = vmatmul.mubr.bf16.gmra.mrb[52].mxu0 %v10234_v2 }
 0x1a0   :  { %1528 = vmatprep.mubr.bf16.mxu0 %v10241_v19  ;;  %11210 = vmatpush3.bf16.msra.mxu0 %v12611_v57 }
 0x1a1   :  { %11211 = vmatprep.subr.bf16.mxu0 %v12612_v7 }
 0x1a2   :  { %1626 = vmatmul.mubr.bf16.gmra.mrb[56].mxu1 %v13369_v24  ;;  %v12615_v24 = vld [vmem:[%s17558_s4 + $0x230] sm:$0xff]  }
 0x1a3   :  { %1633 = vmatprep.mubr.bf16.mxu1 %v10249_v20 }
 0x1a4   :  { %11212 = vmatpush3.bf16.msra.mxu0 %v12612_v7 }
 0x1a5   :  { %11213 = vmatprep.subr.bf16.mxu0 %v12613_v62 }
 0x1a7   :  { %1529 = vmatmul.mubr.bf16.gmra.mrb[56].mxu0 %v10240_v23 }
 0x1a8   :  { %1536 = vmatprep.mubr.bf16.mxu0 %v10247_v8  ;;  %11214 = vmatpush3.bf16.msra.mxu0 %v12613_v62 }
 0x1a9   :  { %11215 = vmatprep.subr.bf16.mxu0 %v12614_v38 }
 0x1aa   :  { %1634 = vmatmul.mubr.bf16.gmra.mrb[60].mxu1 %v10248_v59 }
 0x1ab   :  { %1641 = vmatprep.mubr.bf16.mxu1 %v13514_v55  ;;  %v10262_v55 = vcombine.low %v13466_v21, %v13466_v21  ;;  %v10267_v21 = vcombine.low %v13554_v26, %v13554_v26 }
 0x1ac   :  { %11216 = vmatpush3.bf16.msra.mxu0 %v12614_v38 }
 0x1ad   :  { %11217 = vmatprep.subr.bf16.mxu0 %v12615_v24 }
 0x1af   :  { %1537 = vmatmul.mubr.bf16.gmra.mrb[60].mxu0 %v10246_v53 }
 0x1b0   :  { %1544 = vmatprep.mubr.bf16.mxu0 %v10256_v28  ;;  %11218 = vmatpush3.bf16.msra.mxu0 %v12615_v24 }
 0x1b1   :  { %11219 = vmatprep.subr.bf16.mxu0 %v12616_v61 }
 0x1b2   :  { %1642 = vmatmul.mubr.bf16.gmra.mrb[64].mxu1 %v13430_v56  ;;  %v10268_v56 = vcombine.low %v13522_v4, %v13522_v4 }
 0x1b3   :  { %1649 = vmatprep.mubr.bf16.mxu1 %v13565_v34 }
 0x1b4   :  { %11220 = vmatpush3.bf16.msra.mxu0 %v12616_v61 }
 0x1b7   :  { %1545 = vmatmul.mubr.bf16.gmra.mrb[64].mxu0 %v10255_v60 }
 0x1b8   :  { %1552 = vmatprep.mubr.bf16.mxu0 %v10262_v55 }
 0x1ba   :  { %1650 = vmatmul.mubr.bf16.gmra.mrb[68].mxu1 %v13494_v37  ;;  %v10274_v37 = vcombine.low %v13530_v10, %v13530_v10 }
 0x1bb   :  { %1657 = vmatprep.mubr.bf16.mxu1 %v13572_v39 }
 0x1bf   :  { %1553 = vmatmul.mubr.bf16.gmra.mrb[68].mxu0 %v10261_v13 }
 0x1c0   :  { %1560 = vmatprep.mubr.bf16.mxu0 %v10268_v56 }
 0x1c2   :  { %1658 = vmatmul.mubr.bf16.gmra.mrb[72].mxu1 %v13503_v44  ;;  %v10250_v44 = vcombine.low %v13398_v42, %v13342_v1 }
 0x1c3   :  { %1665 = vmatprep.mubr.bf16.mxu1 %v10276_v35 }
 0x1c7   :  { %1561 = vmatmul.mubr.bf16.gmra.mrb[72].mxu0 %v10267_v21 }
 0x1c8   :  { %1568 = vmatprep.mubr.bf16.mxu0 %v10274_v37 }
 0x1ca   :  { %1666 = vmatmul.mubr.bf16.gmra.mrb[76].mxu1 %v10275_v41 }
 0x1cf   :  { %1569 = vmatmul.mubr.bf16.gmra.mrb[76].mxu0 %v10273_v3 }
 0x1d0   :  { %11221 = vmatprep.mubr.bf16.mxu0 %v13360_v16 }
 0x1d7   :  { %11222 = vmatmul.mubr.bf16.vlgmr.msra.gmra.mrb[80].mxu0 %v13406_v45 }
 0x1d8   :  { %11225 = vmatprep.mubr.bf16.mxu0 %v13420_v51 }
 0x1df   :  { %11226 = vmatmul.mubr.bf16.gmra.mrb[84].mxu0 %v10250_v44 }
 0x1e0   :  { %11229 = vmatprep.mubr.bf16.mxu0 %v13484_v31 }
 0x1e7   :  { %11230 = vmatmul.mubr.bf16.gmra.mrb[88].mxu0 %v13538_v15 }
 0x1e8   :  { %11233 = vmatprep.mubr.bf16.mxu0 %v13548_v22 }
 0x1ef   :  { %11234 = vmatmul.mubr.bf16.gmra.mrb[92].mxu0 %v10277_v47 }
 0x225   :  { %v10741_v4 = vpop.f32.mrb[16].mxu1 }
 0x226   :  { %v10742_v16 = vpop.f32.mrb[17].mxu1 }
 0x227   :  { %v10744_v5 = vpop.f32.mrb[18].mxu1  ;;  %v10743_v45 = vadd.f32 %v10742_v16, %v10741_v4 }
 0x228   :  { %v10745_v6 = vpop.f32.mrb[19].mxu1 }
 0x229   :  { %v10746_v51 = vadd.f32 %v10745_v6, %v10744_v5 }
 0x22a   :  { %v10677_v9 = vpop.f32.mrb[16].mxu0 }
 0x22b   :  { %v10678_v11 = vpop.f32.mrb[17].mxu0 }
 0x22c   :  { %v10679_v42 = vadd.f32 %v10678_v11, %v10677_v9  ;;  %v10680_v12 = vpop.f32.mrb[18].mxu0 }
 0x22d   :  { %v10681_v48 = vpop.f32.mrb[19].mxu0  ;;  %v10747_v31 = vpop.f32.mrb[20].mxu1 }
 0x22e   :  { %v13686_v17 = vadd.f32 %v10743_v45, %v10679_v42  ;;  %v10682_v15 = vadd.f32 %v10681_v48, %v10680_v12  ;;  %v10748_v18 = vpop.f32.mrb[21].mxu1 }
 0x22f   :  { %v10750_v22 = vpop.f32.mrb[22].mxu1  ;;  %v10749_v25 = vadd.f32 %v10748_v18, %v10747_v31 }
 0x230   :  { %v13688_v10 = vadd.f32 %v10746_v51, %v10682_v15  ;;  %v10751_v26 = vpop.f32.mrb[23].mxu1 }
 0x231   :  { %v10752_v14 = vadd.f32 %v10751_v26, %v10750_v22 }
 0x232   :  { %v10683_v30 = vpop.f32.mrb[20].mxu0 }
 0x233   :  { %v10684_v32 = vpop.f32.mrb[21].mxu0 }
 0x234   :  { %v10685_v34 = vadd.f32 %v10684_v32, %v10683_v30  ;;  %v10686_v36 = vpop.f32.mrb[22].mxu0 }
 0x235   :  { %v10687_v39 = vpop.f32.mrb[23].mxu0  ;;  %v10753_v40 = vpop.f32.mrb[24].mxu1 }
 0x236   :  { %v13690_v43 = vadd.f32 %v10749_v25, %v10685_v34  ;;  %v10688_v46 = vadd.f32 %v10687_v39, %v10686_v36  ;;  %v10754_v50 = vpop.f32.mrb[25].mxu1 }
 0x237   :  { %v10756_v52 = vpop.f32.mrb[26].mxu1  ;;  %v10755_v49 = vadd.f32 %v10754_v50, %v10753_v40 }
 0x238   :  { %v13692_v54 = vadd.f32 %v10752_v14, %v10688_v46  ;;  %v10757_v58 = vpop.f32.mrb[27].mxu1 }
 0x239   :  { %v10758_v63 = vadd.f32 %v10757_v58, %v10756_v52 }
 0x23a   :  { %v10689_v27 = vpop.f32.mrb[24].mxu0 }
 0x23b   :  { %v10690_v29 = vpop.f32.mrb[25].mxu0 }
 0x23c   :  { %v10691_v33 = vadd.f32 %v10690_v29, %v10689_v27  ;;  %v10692_v57 = vpop.f32.mrb[26].mxu0 }
 0x23d   :  { %v10693_v2 = vpop.f32.mrb[27].mxu0  ;;  %v10759_v7 = vpop.f32.mrb[28].mxu1 }
 0x23e   :  { %v13694_v19 = vadd.f32 %v10755_v49, %v10691_v33  ;;  %v10694_v20 = vadd.f32 %v10693_v2, %v10692_v57  ;;  %v10760_v62 = vpop.f32.mrb[29].mxu1 }
 0x23f   :  { %v10762_v23 = vpop.f32.mrb[30].mxu1  ;;  %v10761_v38 = vadd.f32 %v10760_v62, %v10759_v7 }
 0x240   :  { %v13696_v8 = vadd.f32 %v10758_v63, %v10694_v20  ;;  %v10763_v59 = vpop.f32.mrb[31].mxu1 }
 0x241   :  { %v10764_v24 = vadd.f32 %v10763_v59, %v10762_v23 }
 0x242   :  { %v10695_v53 = vpop.f32.mrb[28].mxu0 }
 0x243   :  { %v10696_v61 = vpop.f32.mrb[29].mxu0 }
 0x244   :  { %v10697_v28 = vadd.f32 %v10696_v61, %v10695_v53  ;;  %v10698_v60 = vpop.f32.mrb[30].mxu0 }
 0x245   :  { %v10699_v55 = vpop.f32.mrb[31].mxu0  ;;  %v10765_v13 = vpop.f32.mrb[32].mxu1 }
 0x246   :  { %v13698_v56 = vadd.f32 %v10761_v38, %v10697_v28  ;;  %v10700_v35 = vadd.f32 %v10699_v55, %v10698_v60  ;;  %v10766_v21 = vpop.f32.mrb[33].mxu1 }
 0x247   :  { %v10768_v37 = vpop.f32.mrb[34].mxu1  ;;  %v10767_v41 = vadd.f32 %v10766_v21, %v10765_v13 }
 0x248   :  { %v13700_v3 = vadd.f32 %v10764_v24, %v10700_v35  ;;  %v10769_v44 = vpop.f32.mrb[35].mxu1 }
 0x249   :  { %v10770_v47 = vadd.f32 %v10769_v44, %v10768_v37 }
 0x24a   :  { %v10701_v4 = vpop.f32.mrb[32].mxu0 }
 0x24b   :  { %v10702_v16 = vpop.f32.mrb[33].mxu0 }
 0x24c   :  { %v10703_v5 = vadd.f32 %v10702_v16, %v10701_v4  ;;  %v10704_v45 = vpop.f32.mrb[34].mxu0 }
 0x24d   :  { %v10705_v6 = vpop.f32.mrb[35].mxu0  ;;  %v10771_v51 = vpop.f32.mrb[36].mxu1 }
 0x24e   :  { %v13702_v9 = vadd.f32 %v10767_v41, %v10703_v5  ;;  %v10706_v11 = vadd.f32 %v10705_v6, %v10704_v45  ;;  %v10772_v42 = vpop.f32.mrb[37].mxu1 }
 0x24f   :  { %v10774_v12 = vpop.f32.mrb[38].mxu1  ;;  %v10773_v48 = vadd.f32 %v10772_v42, %v10771_v51 }
 0x250   :  { %v13704_v31 = vadd.f32 %v10770_v47, %v10706_v11  ;;  %v10775_v15 = vpop.f32.mrb[39].mxu1 }
 0x251   :  { %v10776_v18 = vadd.f32 %v10775_v15, %v10774_v12 }
 0x252   :  { %v10707_v22 = vpop.f32.mrb[36].mxu0 }
 0x253   :  { %v10708_v25 = vpop.f32.mrb[37].mxu0 }
 0x254   :  { %v10709_v26 = vadd.f32 %v10708_v25, %v10707_v22  ;;  %v10710_v14 = vpop.f32.mrb[38].mxu0 }
 0x255   :  { %v10711_v30 = vpop.f32.mrb[39].mxu0  ;;  %v10777_v32 = vpop.f32.mrb[40].mxu1 }
 0x256   :  { %v13706_v34 = vadd.f32 %v10773_v48, %v10709_v26  ;;  %v10712_v36 = vadd.f32 %v10711_v30, %v10710_v14  ;;  %v10778_v39 = vpop.f32.mrb[41].mxu1 }
 0x257   :  { %v10780_v40 = vpop.f32.mrb[42].mxu1  ;;  %v10779_v46 = vadd.f32 %v10778_v39, %v10777_v32 }
 0x258   :  { %v13708_v50 = vadd.f32 %v10776_v18, %v10712_v36  ;;  %v10781_v52 = vpop.f32.mrb[43].mxu1 }
 0x259   :  { %v10782_v49 = vadd.f32 %v10781_v52, %v10780_v40 }
 0x25a   :  { %v10713_v58 = vpop.f32.mrb[40].mxu0 }
 0x25b   :  { %v10714_v63 = vpop.f32.mrb[41].mxu0 }
 0x25c   :  { %v10715_v27 = vadd.f32 %v10714_v63, %v10713_v58  ;;  %v10716_v29 = vpop.f32.mrb[42].mxu0 }
 0x25d   :  { %v10717_v33 = vpop.f32.mrb[43].mxu0  ;;  %v10783_v57 = vpop.f32.mrb[44].mxu1 }
 0x25e   :  { %v13710_v2 = vadd.f32 %v10779_v46, %v10715_v27  ;;  %v10718_v7 = vadd.f32 %v10717_v33, %v10716_v29  ;;  %v10784_v20 = vpop.f32.mrb[45].mxu1 }
 0x25f   :  { %v10786_v62 = vpop.f32.mrb[46].mxu1  ;;  %v10785_v23 = vadd.f32 %v10784_v20, %v10783_v57 }
 0x260   :  { %v13712_v38 = vadd.f32 %v10782_v49, %v10718_v7  ;;  %v10787_v59 = vpop.f32.mrb[47].mxu1 }
 0x261   :  { %v10788_v24 = vadd.f32 %v10787_v59, %v10786_v62 }
 0x262   :  { %v10719_v53 = vpop.f32.mrb[44].mxu0 }
 0x263   :  { %v10720_v61 = vpop.f32.mrb[45].mxu0 }
 0x264   :  { %v10721_v28 = vadd.f32 %v10720_v61, %v10719_v53  ;;  %v10722_v60 = vpop.f32.mrb[46].mxu0 }
 0x265   :  { %v10723_v55 = vpop.f32.mrb[47].mxu0  ;;  %v10869_v13 = vpop.f32.mrb[48].mxu1 }
 0x266   :  { %v13714_v35 = vadd.f32 %v10785_v23, %v10721_v28  ;;  %v10724_v21 = vadd.f32 %v10723_v55, %v10722_v60  ;;  %v10870_v37 = vpop.f32.mrb[49].mxu1 }
 0x267   :  { %v10872_v41 = vpop.f32.mrb[50].mxu1  ;;  %v10871_v44 = vadd.f32 %v10870_v37, %v10869_v13 }
 0x268   :  { %v13716_v47 = vadd.f32 %v10788_v24, %v10724_v21  ;;  %v10873_v4 = vpop.f32.mrb[51].mxu1 }
 0x269   :  { %v10874_v16 = vadd.f32 %v10873_v4, %v10872_v41 }
 0x26a   :  { %v10805_v5 = vpop.f32.mrb[48].mxu0 }
 0x26b   :  { %v10806_v45 = vpop.f32.mrb[49].mxu0 }
 0x26c   :  { %v10807_v6 = vadd.f32 %v10806_v45, %v10805_v5  ;;  %v10808_v51 = vpop.f32.mrb[50].mxu0 }
 0x26d   :  { %v10809_v11 = vpop.f32.mrb[51].mxu0  ;;  %v10875_v42 = vpop.f32.mrb[52].mxu1 }
 0x26e   :  { %v1515_v12 = vadd.f32 %v10807_v6, %v13686_v17  ;;  %v10810_v48 = vadd.f32 %v10809_v11, %v10808_v51  ;;  %v10876_v15 = vpop.f32.mrb[53].mxu1 }
 0x26f   :  { %v10878_v18 = vpop.f32.mrb[54].mxu1  ;;  %v10877_v22 = vadd.f32 %v10876_v15, %v10875_v42 }
 0x270   :  { %v1518_v25 = vadd.f32 %v10810_v48, %v13688_v10  ;;  %v10879_v26 = vpop.f32.mrb[55].mxu1  ;;  %v13720_v14 = vadd.f32 %v10871_v44, %v1515_v12 }
 0x271   :  { %v10880_v30 = vadd.f32 %v10879_v26, %v10878_v18 }
 0x272   :  { %v10811_v32 = vpop.f32.mrb[52].mxu0  ;;  %v13722_v36 = vadd.f32 %v10874_v16, %v1518_v25 }
 0x273   :  { %v10812_v39 = vpop.f32.mrb[53].mxu0 }
 0x274   :  { %v10813_v40 = vadd.f32 %v10812_v39, %v10811_v32  ;;  %v10814_v46 = vpop.f32.mrb[54].mxu0 }
 0x275   :  { %v10815_v52 = vpop.f32.mrb[55].mxu0  ;;  %v10881_v49 = vpop.f32.mrb[56].mxu1 }
 0x276   :  { %v1523_v17 = vadd.f32 %v10813_v40, %v13690_v43  ;;  %v10816_v58 = vadd.f32 %v10815_v52, %v10814_v46  ;;  %v10882_v63 = vpop.f32.mrb[57].mxu1 }
 0x277   :  { %v10884_v27 = vpop.f32.mrb[58].mxu1  ;;  %v10883_v29 = vadd.f32 %v10882_v63, %v10881_v49 }
 0x278   :  { %v1526_v10 = vadd.f32 %v10816_v58, %v13692_v54  ;;  %v10885_v33 = vpop.f32.mrb[59].mxu1  ;;  %v13726_v57 = vadd.f32 %v10877_v22, %v1523_v17 }
 0x279   :  { %v10886_v7 = vadd.f32 %v10885_v33, %v10884_v27 }
 0x27a   :  { %v10817_v20 = vpop.f32.mrb[56].mxu0  ;;  %v13728_v62 = vadd.f32 %v10880_v30, %v1526_v10 }
 0x27b   :  { %v10818_v23 = vpop.f32.mrb[57].mxu0 }
 0x27c   :  { %v10819_v59 = vadd.f32 %v10818_v23, %v10817_v20  ;;  %v10820_v24 = vpop.f32.mrb[58].mxu0 }
 0x27d   :  { %v10821_v53 = vpop.f32.mrb[59].mxu0  ;;  %v10887_v61 = vpop.f32.mrb[60].mxu1 }
 0x27e   :  { %v1531_v43 = vadd.f32 %v10819_v59, %v13694_v19  ;;  %v10822_v28 = vadd.f32 %v10821_v53, %v10820_v24  ;;  %v10888_v60 = vpop.f32.mrb[61].mxu1 }
 0x27f   :  { %v10890_v55 = vpop.f32.mrb[62].mxu1  ;;  %v10889_v13 = vadd.f32 %v10888_v60, %v10887_v61 }
 0x280   :  { %v1534_v54 = vadd.f32 %v10822_v28, %v13696_v8  ;;  %v10891_v21 = vpop.f32.mrb[63].mxu1  ;;  %v13732_v37 = vadd.f32 %v10883_v29, %v1531_v43 }
 0x281   :  { %v10892_v41 = vadd.f32 %v10891_v21, %v10890_v55 }
 0x282   :  { %v10823_v44 = vpop.f32.mrb[60].mxu0  ;;  %v13734_v4 = vadd.f32 %v10886_v7, %v1534_v54 }
 0x283   :  { %v10824_v16 = vpop.f32.mrb[61].mxu0 }
 0x284   :  { %v10825_v5 = vadd.f32 %v10824_v16, %v10823_v44  ;;  %v10826_v45 = vpop.f32.mrb[62].mxu0 }
 0x285   :  { %v10827_v6 = vpop.f32.mrb[63].mxu0  ;;  %v10893_v51 = vpop.f32.mrb[64].mxu1 }
 0x286   :  { %v1539_v19 = vadd.f32 %v10825_v5, %v13698_v56  ;;  %v10828_v11 = vadd.f32 %v10827_v6, %v10826_v45  ;;  %v10894_v42 = vpop.f32.mrb[65].mxu1 }
 0x287   :  { %v10896_v12 = vpop.f32.mrb[66].mxu1  ;;  %v10895_v48 = vadd.f32 %v10894_v42, %v10893_v51 }
 0x288   :  { %v1542_v8 = vadd.f32 %v10828_v11, %v13700_v3  ;;  %v10897_v15 = vpop.f32.mrb[67].mxu1  ;;  %v13738_v18 = vadd.f32 %v10889_v13, %v1539_v19 }
 0x289   :  { %v10898_v22 = vadd.f32 %v10897_v15, %v10896_v12 }
 0x28a   :  { %v10829_v25 = vpop.f32.mrb[64].mxu0  ;;  %v13740_v26 = vadd.f32 %v10892_v41, %v1542_v8 }
 0x28b   :  { %v10830_v30 = vpop.f32.mrb[65].mxu0 }
 0x28c   :  { %v10831_v32 = vadd.f32 %v10830_v30, %v10829_v25  ;;  %v10832_v39 = vpop.f32.mrb[66].mxu0 }
 0x28d   :  { %v10833_v40 = vpop.f32.mrb[67].mxu0  ;;  %v10899_v46 = vpop.f32.mrb[68].mxu1 }
 0x28e   :  { %v1547_v56 = vadd.f32 %v10831_v32, %v13702_v9  ;;  %v10834_v52 = vadd.f32 %v10833_v40, %v10832_v39  ;;  %v10900_v49 = vpop.f32.mrb[69].mxu1 }
 0x28f   :  { %v10902_v17 = vpop.f32.mrb[70].mxu1  ;;  %v10901_v58 = vadd.f32 %v10900_v49, %v10899_v46 }
 0x290   :  { %v1550_v3 = vadd.f32 %v10834_v52, %v13704_v31  ;;  %v10903_v63 = vpop.f32.mrb[71].mxu1  ;;  %v13744_v27 = vadd.f32 %v10895_v48, %v1547_v56 }
 0x291   :  { %v10904_v29 = vadd.f32 %v10903_v63, %v10902_v17  ;;  %v13758_v17 = vld [vmem:[%s17556_s2] sm:$0xff]  }
 0x292   :  { %v10835_v10 = vpop.f32.mrb[68].mxu0  ;;  %v13746_v33 = vadd.f32 %v10898_v22, %v1550_v3  ;;  %11239 = vmatprep.mubr.msk.bf16.mxu1 %vm2002_vm3, %v13758_v17  ;;  %11263 = vmatprep.mubr.msk.bf16.mxu0 %vm2002_vm3, %v13758_v17 }
 0x293   :  { %v10836_v7 = vpop.f32.mrb[69].mxu0 }
 0x294   :  { %v10837_v20 = vadd.f32 %v10836_v7, %v10835_v10  ;;  %v10838_v23 = vpop.f32.mrb[70].mxu0 }
 0x295   :  { %v10839_v59 = vpop.f32.mrb[71].mxu0  ;;  %v10905_v24 = vpop.f32.mrb[72].mxu1 }
 0x296   :  { %v1555_v9 = vadd.f32 %v10837_v20, %v13706_v34  ;;  %v10840_v53 = vadd.f32 %v10839_v59, %v10838_v23  ;;  %v10906_v61 = vpop.f32.mrb[73].mxu1 }
 0x297   :  { %v10908_v43 = vpop.f32.mrb[74].mxu1  ;;  %v10907_v28 = vadd.f32 %v10906_v61, %v10905_v24 }
 0x298   :  { %v1558_v31 = vadd.f32 %v10840_v53, %v13708_v50  ;;  %v10909_v60 = vpop.f32.mrb[75].mxu1  ;;  %v1652_v55 = vadd.f32 %v10901_v58, %v1555_v9 }
 0x299   :  { %v10910_v13 = vadd.f32 %v10909_v60, %v10908_v43 }
 0x29a   :  { %v10841_v54 = vpop.f32.mrb[72].mxu0  ;;  %v1655_v21 = vadd.f32 %v10904_v29, %v1558_v31 }
 0x29b   :  { %v10842_v41 = vpop.f32.mrb[73].mxu0 }
 0x29c   :  { %v10843_v44 = vadd.f32 %v10842_v41, %v10841_v54  ;;  %v10844_v16 = vpop.f32.mrb[74].mxu0 }
 0x29d   :  { %v10845_v5 = vpop.f32.mrb[75].mxu0  ;;  %v10911_v45 = vpop.f32.mrb[76].mxu1 }
 0x29e   :  { %v1563_v6 = vadd.f32 %v10843_v44, %v13710_v2  ;;  %v10846_v51 = vadd.f32 %v10845_v5, %v10844_v16  ;;  %v10912_v34 = vpop.f32.mrb[77].mxu1 }
 0x29f   :  { %v10914_v19 = vpop.f32.mrb[78].mxu1  ;;  %v10913_v11 = vadd.f32 %v10912_v34, %v10911_v45 }
 0x2a0   :  { %v1566_v42 = vadd.f32 %v10846_v51, %v13712_v38  ;;  %v10915_v12 = vpop.f32.mrb[79].mxu1  ;;  %v1660_v50 = vadd.f32 %v10907_v28, %v1563_v6 }
 0x2a1   :  { %v10916_v48 = vadd.f32 %v10915_v12, %v10914_v19 }
 0x2a2   :  { %v10847_v8 = vpop.f32.mrb[76].mxu0  ;;  %v1663_v15 = vadd.f32 %v10910_v13, %v1566_v42 }
 0x2a3   :  { %v10848_v22 = vpop.f32.mrb[77].mxu0 }
 0x2a4   :  { %v10849_v25 = vadd.f32 %v10848_v22, %v10847_v8  ;;  %v10850_v30 = vpop.f32.mrb[78].mxu0 }
 0x2a5   :  { %v10851_v32 = vpop.f32.mrb[79].mxu0 }
 0x2a6   :  { %v1571_v39 = vadd.f32 %v10849_v25, %v13714_v35  ;;  %v10852_v40 = vadd.f32 %v10851_v32, %v10850_v30 }
 0x2a8   :  { %v1574_v2 = vadd.f32 %v10852_v40, %v13716_v47  ;;  %v1668_v46 = vadd.f32 %v10913_v11, %v1571_v39 }
 0x2aa   :  { %v11223_v56 = vpop.f32.mrb[80].mxu0  ;;  %v1671_v52 = vadd.f32 %v10916_v48, %v1574_v2 }
 0x2ab   :  { %v1717_v49 = vadd.f32 %v11223_v56, %v13726_v57  ;;  %v1708_v38 = vpop.f32.mrb[81].mxu0 }
 0x2ac   :  { %v1709_v58 = vadd.f32 %v1708_v38, %v13720_v14  ;;  %v11224_v3 = vpop.f32.mrb[82].mxu0 }
 0x2ad   :  { %v1720_v35 = vadd.f32 %v11224_v3, %v13728_v62  ;;  %v1711_v63 = vpop.f32.mrb[83].mxu0 }
 0x2ae   :  { %v1712_v47 = vadd.f32 %v1711_v63, %v13722_v36 }
 0x2b0   :  { %v1773_v57 = vadd.f32 %v1712_v47, %v1709_v58 }
 0x2b2   :  { %v1774_v29 = vadd.f32 %v1773_v57, %v1717_v49  ;;  %v11227_v10 = vpop.f32.mrb[84].mxu0 }
 0x2b3   :  { %v1733_v7 = vadd.f32 %v11227_v10, %v13738_v18  ;;  %v1724_v20 = vpop.f32.mrb[85].mxu0 }
 0x2b4   :  { %v1725_v14 = vadd.f32 %v1724_v20, %v13732_v37  ;;  %v1775_v23 = vadd.f32 %v1774_v29, %v1720_v35  ;;  %v11228_v59 = vpop.f32.mrb[86].mxu0 }
 0x2b5   :  { %v1736_v62 = vadd.f32 %v11228_v59, %v13740_v26  ;;  %v1727_v24 = vpop.f32.mrb[87].mxu0 }
 0x2b6   :  { %v1776_v9 = vadd.f32 %v1775_v23, %v1725_v14  ;;  %v1728_v53 = vadd.f32 %v1727_v24, %v13734_v4 }
 0x2b8   :  { %v1777_v61 = vadd.f32 %v1776_v9, %v1728_v53 }
 0x2ba   :  { %v1778_v43 = vadd.f32 %v1777_v61, %v1733_v7  ;;  %v11231_v28 = vpop.f32.mrb[88].mxu0 }
 0x2bb   :  { %v1749_v36 = vadd.f32 %v11231_v28, %v1652_v55  ;;  %v1740_v31 = vpop.f32.mrb[89].mxu0 }
 0x2bc   :  { %v1741_v60 = vadd.f32 %v1740_v31, %v13744_v27  ;;  %v1779_v13 = vadd.f32 %v1778_v43, %v1736_v62  ;;  %v11232_v18 = vpop.f32.mrb[90].mxu0 }
 0x2bd   :  { %v1752_v54 = vadd.f32 %v11232_v18, %v1655_v21  ;;  %v1743_v41 = vpop.f32.mrb[91].mxu0 }
 0x2be   :  { %v1780_v37 = vadd.f32 %v1779_v13, %v1741_v60  ;;  %v1744_v44 = vadd.f32 %v1743_v41, %v13746_v33 }
 0x2c0   :  { %v1781_v16 = vadd.f32 %v1780_v37, %v1744_v44 }
 0x2c2   :  { %v1782_v26 = vadd.f32 %v1781_v16, %v1749_v36  ;;  %v11235_v5 = vpop.f32.mrb[92].mxu0 }
 0x2c3   :  { %v1765_v45 = vadd.f32 %v11235_v5, %v1668_v46  ;;  %v1756_v6 = vpop.f32.mrb[93].mxu0 }
 0x2c4   :  { %v1757_v4 = vadd.f32 %v1756_v6, %v1660_v50  ;;  %v1783_v51 = vadd.f32 %v1782_v26, %v1752_v54  ;;  %v11236_v34 = vpop.f32.mrb[94].mxu0 }
 0x2c5   :  { %v1768_v19 = vadd.f32 %v11236_v34, %v1671_v52  ;;  %v1759_v55 = vpop.f32.mrb[95].mxu0 }
 0x2c6   :  { %v1784_v11 = vadd.f32 %v1783_v51, %v1757_v4  ;;  %v1760_v42 = vadd.f32 %v1759_v55, %v1663_v15 }
 0x2c8   :  { %v1785_v27 = vadd.f32 %v1784_v11, %v1760_v42 }
 0x2ca   :  { %v1786_v12 = vadd.f32 %v1785_v27, %v1765_v45 }
 0x2cc   :  { %v1787_v48 = vadd.f32 %v1786_v12, %v1768_v19 }
 0x2ce   :  { %v1788_v21 = vrot.slane %v1787_v48, 4 }
 0x2d0   :  { %v1789_v8 = vadd.f32 %v1788_v21, %v1787_v48 }
 0x2d2   :  { %v1790_v22 = vrot.slane %v1789_v8, 2 }
 0x2d4   :  { %v1791_v25 = vadd.f32 %v1790_v22, %v1789_v8  ;;  %v13811_v22 = vld [vmem:[#allocation2] ss:$0 sm:$0xff] }
 0x2d6   :  { %v1792_v33 = vrot.slane %v1791_v25, 1 }
 0x2d8   :  { %v1793_v30 = vadd.f32 %v1792_v33, %v1791_v25 }
 0x2da   :  { %v1794_v32 = vmul.f32 0.0078125, %v1793_v30 }
 0x2dc   :  { %v1795_v39 = vsub.f32 %v1709_v58, %v1794_v32  ;;  %v1796_v40 = vsub.f32 %v1712_v47, %v1794_v32  ;;  %v1797_v2 = vsub.f32 %v1717_v49, %v1794_v32  ;;  %v13773_v50 = vsub.f32 %v1720_v35, %v1794_v32 }
 0x2dd   :  { %v1799_v46 = vsub.f32 %v1725_v14, %v1794_v32  ;;  %v13775_v56 = vsub.f32 %v1728_v53, %v1794_v32  ;;  %v1801_v52 = vsub.f32 %v1733_v7, %v1794_v32  ;;  %v13777_v15 = vsub.f32 %v1736_v62, %v1794_v32 }
 0x2de   :  { %v1803_v38 = vsub.f32 %v1741_v60, %v1794_v32  ;;  %v13779_v3 = vsub.f32 %v1744_v44, %v1794_v32  ;;  %v13781_v63 = vsub.f32 %v1749_v36, %v1794_v32  ;;  %v13783_v57 = vsub.f32 %v1752_v54, %v1794_v32 }
 0x2df   :  { %v13785_v29 = vsub.f32 %v1757_v4, %v1794_v32  ;;  %v1808_v58 = vsub.f32 %v1760_v42, %v1794_v32  ;;  %v13787_v47 = vsub.f32 %v1765_v45, %v1794_v32  ;;  %v13789_v49 = vsub.f32 %v1768_v19, %v1794_v32 }
 0x2e0   :  { %v1811_v35 = vmul.f32 %v1795_v39, %v1795_v39  ;;  %v1812_v10 = vmul.f32 %v1796_v40, %v1796_v40  ;;  %v1813_v20 = vmul.f32 %v1797_v2, %v1797_v2  ;;  %v1814_v14 = vmul.f32 %v13773_v50, %v13773_v50 }
 0x2e1   :  { %v1815_v59 = vmul.f32 %v1799_v46, %v1799_v46  ;;  %v1816_v24 = vmul.f32 %v13775_v56, %v13775_v56  ;;  %v1817_v53 = vmul.f32 %v1801_v52, %v1801_v52  ;;  %v1818_v43 = vmul.f32 %v13777_v15, %v13777_v15 }
 0x2e2   :  { %v1827_v7 = vadd.f32 %v1812_v10, %v1811_v35  ;;  %v1819_v36 = vmul.f32 %v1803_v38, %v1803_v38  ;;  %v1820_v60 = vmul.f32 %v13779_v3, %v13779_v3  ;;  %v1821_v18 = vmul.f32 %v13781_v63, %v13781_v63  ;;  %v13819_v35 = vld [vmem:[#allocation4] ss:$0 sm:$0xff] }
 0x2e3   :  { %v1822_v41 = vmul.f32 %v13783_v57, %v13783_v57  ;;  %v1823_v44 = vmul.f32 %v13785_v29, %v13785_v29  ;;  %v1824_v26 = vmul.f32 %v1808_v58, %v1808_v58  ;;  %v1825_v45 = vmul.f32 %v13787_v47, %v13787_v47 }
 0x2e4   :  { %v1828_v23 = vadd.f32 %v1827_v7, %v1813_v20  ;;  %v1826_v4 = vmul.f32 %v13789_v49, %v13789_v49 }
 0x2e6   :  { %v1829_v62 = vadd.f32 %v1828_v23, %v1814_v14 }
 0x2e8   :  { %v1830_v9 = vadd.f32 %v1829_v62, %v1815_v59 }
 0x2ea   :  { %v1831_v61 = vadd.f32 %v1830_v9, %v1816_v24 }
 0x2ec   :  { %v1832_v28 = vadd.f32 %v1831_v61, %v1817_v53 }
 0x2ee   :  { %v1833_v31 = vadd.f32 %v1832_v28, %v1818_v43 }
 0x2f0   :  { %v1834_v13 = vadd.f32 %v1833_v31, %v1819_v36 }
 0x2f2   :  { %v1835_v54 = vadd.f32 %v1834_v13, %v1820_v60 }
 0x2f4   :  { %v1836_v37 = vadd.f32 %v1835_v54, %v1821_v18 }
 0x2f6   :  { %v1837_v16 = vadd.f32 %v1836_v37, %v1822_v41 }
 0x2f8   :  { %v1838_v5 = vadd.f32 %v1837_v16, %v1823_v44 }
 0x2fa   :  { %v1839_v6 = vadd.f32 %v1838_v5, %v1824_v26 }
 0x2fc   :  { %v1840_v51 = vadd.f32 %v1839_v6, %v1825_v45 }
 0x2fe   :  { %v1841_v34 = vadd.f32 %v1840_v51, %v1826_v4 }
 0x300   :  { %v1842_v19 = vrot.slane %v1841_v34, 4 }
 0x302   :  { %v1843_v55 = vadd.f32 %v1842_v19, %v1841_v34 }
 0x304   :  { %v1844_v11 = vrot.slane %v1843_v55, 2 }
 0x306   :  { %v1845_v42 = vadd.f32 %v1844_v11, %v1843_v55  ;;  %v13853_v55 = vld [vmem:[%s17556_s2 + $0x8] ss:$0 sps:$4 sm:$0x11]  }
 0x308   :  { %v1846_v27 = vrot.slane %v1845_v42, 1 }
 0x30a   :  { %v1847_v12 = vadd.f32 %v1846_v27, %v1845_v42 }
 0x30c   :  { %v1848_v48 = vmul.f32 0.0078125, %v1847_v12 }
 0x30e   :  { %v1849_v21 = vadd.f32 0.8, %v1848_v48 }
 0x310   :  { %12765 = vrsqrt.f32 %v1849_v21 }
 0x31a   :  { %v13809_v8 = vpop.eup %12765 }
 0x31b   :  { %v13814_v25 = vmul.f32 %v13809_v8, %v1808_v58  ;;  %v1851_v33 = vmul.f32 %v13809_v8, %v1795_v39  ;;  %v1855_v30 = vmul.f32 %v13809_v8, %v1799_v46  ;;  %v1852_v32 = vmul.f32 %v13809_v8, %v1796_v40 }
 0x31c   :  { %v1857_v10 = vmul.f32 %v13809_v8, %v1801_v52  ;;  %v1853_v20 = vmul.f32 %v13809_v8, %v1797_v2  ;;  %v1859_v7 = vmul.f32 %v13809_v8, %v1803_v38  ;;  %v1854_v14 = vmul.f32 %v13809_v8, %v13773_v50 }
 0x31d   :  { %v1873_v58 = vmul.f32 %v13811_v22, %v1851_v33  ;;  %v1877_v23 = vmul.f32 %v13811_v22, %v1855_v30  ;;  %v1874_v39 = vmul.f32 %v13811_v22, %v1852_v32  ;;  %v1861_v50 = vmul.f32 %v13809_v8, %v13781_v63 }
 0x31e   :  { %v1879_v46 = vmul.f32 %v13811_v22, %v1857_v10  ;;  %v1875_v40 = vmul.f32 %v13811_v22, %v1853_v20  ;;  %v1881_v59 = vmul.f32 %v13811_v22, %v1859_v7  ;;  %v1876_v28 = vmul.f32 %v13811_v22, %v1854_v14 }
 0x31f   :  { %v1895_v52 = vadd.f32 %v13819_v35, %v1873_v58  ;;  %v1899_v2 = vadd.f32 %v13819_v35, %v1877_v23  ;;  %v1896_v38 = vadd.f32 %v13819_v35, %v1874_v39  ;;  %v1883_v13 = vmul.f32 %v13811_v22, %v1861_v50 }
 0x320   :  { %v1901_v62 = vadd.f32 %v13819_v35, %v1879_v46  ;;  %v1897_v24 = vadd.f32 %v13819_v35, %v1875_v40  ;;  %v1903_v9 = vadd.f32 %v13819_v35, %v1881_v59  ;;  %v1898_v16 = vadd.f32 %v13819_v35, %v1876_v28 }
 0x321   :  { %v1911_v53 = vmul.f32 0.2, %v1895_v52  ;;  %v1915_v61 = vmul.f32 0.2, %v1899_v2  ;;  %v1912_v43 = vmul.f32 0.2, %v1896_v38  ;;  %v1905_v45 = vadd.f32 %v13819_v35, %v1883_v13 }
 0x322   :  { %v1917_v36 = vmul.f32 0.2, %v1901_v62  ;;  %v1913_v31 = vmul.f32 0.2, %v1897_v24  ;;  %v1919_v60 = vmul.f32 0.2, %v1903_v9  ;;  %v1856_v6 = vmul.f32 %v13809_v8, %v13775_v56 }
 0x323   :  { %v1927_v18 = vmax.f32 %v1895_v52, %v1911_v53  ;;  %v1931_v54 = vmax.f32 %v1899_v2, %v1915_v61  ;;  %v1928_v41 = vmax.f32 %v1896_v38, %v1912_v43  ;;  %v1914_v56 = vmul.f32 0.2, %v1898_v16 }
 0x324   :  { %v1933_v63 = vmax.f32 %v1901_v62, %v1917_v36  ;;  %v1929_v26 = vmax.f32 %v1897_v24, %v1913_v31  ;;  %v1935_v5 = vmax.f32 %v1903_v9, %v1919_v60  ;;  %v1863_v11 = vmul.f32 %v13809_v8, %v13785_v29 }
 0x325   :  { %v10629_v37 = vpack.c.bf16 %v1927_v18, %v1927_v18  ;;  %v10633_v44 = vpack.c.bf16 %v1931_v54, %v1931_v54  ;;  %v10630_v34 = vpack.c.bf16 %v1928_v41, %v1928_v41  ;;  %v1921_v12 = vmul.f32 0.2, %v1905_v45 }
 0x326   :  { %v10635_v19 = vpack.c.bf16 %v1933_v63, %v1933_v63  ;;  %v10631_v42 = vpack.c.bf16 %v1929_v26, %v1929_v26  ;;  %v10637_v27 = vpack.c.bf16 %v1935_v5, %v1935_v5  ;;  %v1865_v48 = vmul.f32 %v13809_v8, %v13787_v47 }
 0x327   :  { %12517 = vmatprep.subr.msk.bf16.mxu1 %vm2009_vm4, %v10629_v37  ;;  %12521 = vmatprep.subr.msk.bf16.mxu0 %vm2009_vm4, %v10633_v44  ;;  %v2011_v4 = vsel %vm2009_vm4, %v10629_v37, 0  ;;  %v2215_v51 = vsel %vm2009_vm4, %v10633_v44, 0  ;;  %v2062_v21 = vsel %vm2009_vm4, %v10630_v34, 0  ;;  %v1878_v30 = vmul.f32 %v13811_v22, %v1856_v6 }
 0x328   :  { %11238 = vmatpush3.bf16.msra.mxu1 %v2011_v4  ;;  %11262 = vmatpush3.bf16.msra.mxu0 %v2215_v51  ;;  %v2317_v33 = vsel %vm2009_vm4, %v10635_v19, 0  ;;  %v1885_v29 = vmul.f32 %v13811_v22, %v1863_v11  ;;  %v1930_v47 = vmax.f32 %v1898_v16, %v1914_v56  ;;  %v1858_v32 = vmul.f32 %v13809_v8, %v13777_v15 }
 0x329   :  { %12518 = vmatprep.subr.msk.bf16.mxu1 %vm2009_vm4, %v10630_v34  ;;  %12523 = vmatprep.subr.msk.bf16.mxu0 %vm2009_vm4, %v10635_v19  ;;  %v1937_v10 = vmax.f32 %v1905_v45, %v1921_v12  ;;  %v1900_v20 = vadd.f32 %v13819_v35, %v1878_v30  ;;  %v1866_v14 = vmul.f32 %v13809_v8, %v13789_v49  ;;  %v2113_v23 = vsel %vm2009_vm4, %v10631_v42, 0 }
 0x32a   :  { %v1907_v7 = vadd.f32 %v13819_v35, %v1885_v29  ;;  %v10632_v58 = vpack.c.bf16 %v1930_v47, %v1930_v47  ;;  %v2419_v39 = vsel %vm2009_vm4, %v10637_v27, 0  ;;  %v1880_v46 = vmul.f32 %v13811_v22, %v1858_v32  ;;  %v12622_v47 = vld [vmem:[%s17561_s7 + $0x18] sm:$0xff]   ;;  %v12623_v32 = vld [vmem:[%s17561_s7 + $0x20] sm:$0xff]  }
 0x32b   :  { %11240 = vmatmul.mubr.msk.bf16.vlgmr.msra.gmra.mrb[80].mxu1 %vm2002_vm3, %v13853_v55  ;;  %11264 = vmatmul.mubr.msk.bf16.vlgmr.msra.gmra.mrb[96].mxu0 %vm2002_vm3, %v13853_v55  ;;  %v1888_v40 = vmul.f32 %v13811_v22, %v1866_v14  ;;  %v10639_v15 = vpack.c.bf16 %v1937_v10, %v1937_v10  ;;  %v1916_v59 = vmul.f32 0.2, %v1900_v20  ;;  %v1887_v49 = vmul.f32 %v13811_v22, %v1865_v48  ;;  %v12626_v14 = vld [vmem:[%s17561_s7 + $0x38] sm:$0xff]  }
 0x32c   :  { %11244 = vmatpush3.bf16.msra.mxu1 %v2062_v21  ;;  %11274 = vmatpush3.bf16.msra.mxu0 %v2317_v33  ;;  %v1923_v52 = vmul.f32 0.2, %v1907_v7  ;;  %v1902_v38 = vadd.f32 %v13819_v35, %v1880_v46  ;;  %v1860_v50 = vmul.f32 %v13809_v8, %v13779_v3  ;;  %v2164_v43 = vsel %vm2009_vm4, %v10632_v58, 0  ;;  %v12621_v33 = vld [vmem:[%s17561_s7 + $0x10] sm:$0xff]   ;;  %v12632_v46 = vld [vmem:[%s17561_s7 + $0x68] sm:$0xff]  }
 0x32d   :  { %12519 = vmatprep.subr.msk.bf16.mxu1 %vm2009_vm4, %v10631_v42  ;;  %12525 = vmatprep.subr.msk.bf16.mxu0 %vm2009_vm4, %v10637_v27  ;;  %v1910_v2 = vadd.f32 %v13819_v35, %v1888_v40  ;;  %v1932_v62 = vmax.f32 %v1900_v20, %v1916_v59  ;;  %v1909_v9 = vadd.f32 %v13819_v35, %v1887_v49  ;;  %v2521_v28 = vsel %vm2009_vm4, %v10639_v15, 0  ;;  %v12619_v42 = vld [vmem:[%s17561_s7] sm:$0xff]   ;;  %v12624_v20 = vld [vmem:[%s17561_s7 + $0x28] sm:$0xff]   ;;  %v12633_v40 = vld [vmem:[%s17561_s7 + $0x70] sm:$0xff]  }
 0x32e   :  { %11245 = vmatprep.mubr.msk.bf16.mxu1 %vm2002_vm3, %v13758_v17  ;;  %11275 = vmatprep.mubr.msk.bf16.mxu0 %vm2002_vm3, %v13758_v17  ;;  %v1939_v24 = vmax.f32 %v1907_v7, %v1923_v52  ;;  %v1918_v36 = vmul.f32 0.2, %v1902_v38  ;;  %v1882_v31 = vmul.f32 %v13811_v22, %v1860_v50  ;;  %v1862_v63 = vmul.f32 %v13809_v8, %v13783_v57  ;;  %v12625_v7 = vld [vmem:[%s17561_s7 + $0x30] sm:$0xff]   ;;  %v12635_v59 = vld [vmem:[%s17561_s7 + $0x80] sm:$0xff]   ;;  %v12636_v52 = vld [vmem:[%s17561_s7 + $0x88] sm:$0xff]  }
 0x32f   :  { %v1926_v53 = vmul.f32 0.2, %v1910_v2  ;;  %v10634_v3 = vpack.c.bf16 %v1932_v62, %v1932_v62  ;;  %v1925_v13 = vmul.f32 0.2, %v1909_v9  ;;  %v1886_v51 = vmul.f32 %v13811_v22, %v13814_v25  ;;  %v12637_v49 = vld [vmem:[%s17561_s7 + $0x90] sm:$0xff]  }
 0x330   :  { %v10641_v60 = vpack.c.bf16 %v1939_v24, %v1939_v24  ;;  %v1904_v41 = vadd.f32 %v13819_v35, %v1882_v31  ;;  %v1934_v37 = vmax.f32 %v1902_v38, %v1918_v36  ;;  %v1884_v26 = vmul.f32 %v13811_v22, %v1862_v63  ;;  %v12639_v38 = vld [vmem:[%s17561_s7 + $0xa0] sm:$0xff]  }
 0x331   :  { %v1942_v61 = vmax.f32 %v1910_v2, %v1926_v53  ;;  %v1941_v44 = vmax.f32 %v1909_v9, %v1925_v13  ;;  %v2266_v5 = vsel %vm2009_vm4, %v10634_v3, 0  ;;  %v1908_v25 = vadd.f32 %v13819_v35, %v1886_v51  ;;  %v12638_v2 = vld [vmem:[%s17561_s7 + $0x98] sm:$0xff]  }
 0x332   :  { %v1920_v16 = vmul.f32 0.2, %v1904_v41  ;;  %v2623_v45 = vsel %vm2009_vm4, %v10641_v60, 0  ;;  %v10636_v6 = vpack.c.bf16 %v1934_v37, %v1934_v37  ;;  %v1906_v8 = vadd.f32 %v13819_v35, %v1884_v26  ;;  %v12620_v35 = vld [vmem:[%s17561_s7 + $0x8] sm:$0xff]  }
 0x333   :  { %11246 = vmatmul.mubr.msk.bf16.vlgmr.msra.gmra.mrb[84].mxu1 %vm2002_vm3, %v13853_v55  ;;  %11276 = vmatmul.mubr.msk.bf16.vlgmr.msra.gmra.mrb[100].mxu0 %vm2002_vm3, %v13853_v55  ;;  %v13908_v18 = vpack.c.bf16 %v1942_v61, %v1942_v61  ;;  %v10643_v4 = vpack.c.bf16 %v1941_v44, %v1941_v44  ;;  %v1924_v48 = vmul.f32 0.2, %v1908_v25 }
 0x334   :  { %11250 = vmatpush3.bf16.msra.mxu1 %v2113_v23  ;;  %11286 = vmatpush3.bf16.msra.mxu0 %v2419_v39  ;;  %v1936_v57 = vmax.f32 %v1904_v41, %v1920_v16  ;;  %v2368_v34 = vsel %vm2009_vm4, %v10636_v6, 0  ;;  %v1922_v11 = vmul.f32 0.2, %v1906_v8  ;;  %v12629_v23 = vld [vmem:[%s17561_s7 + $0x50] sm:$0xff]   ;;  %v12630_v39 = vld [vmem:[%s17561_s7 + $0x58] sm:$0xff]  }
 0x335   :  { %12520 = vmatprep.subr.msk.bf16.mxu1 %vm2009_vm4, %v10632_v58  ;;  %12527 = vmatprep.subr.msk.bf16.mxu0 %vm2009_vm4, %v10639_v15  ;;  %v13914_v54 = vsel %vm2009_vm4, %v13908_v18, 0  ;;  %v2725_v19 = vsel %vm2009_vm4, %v10643_v4, 0  ;;  %v1940_v21 = vmax.f32 %v1908_v25, %v1924_v48  ;;  %v12627_v58 = vld [vmem:[%s17561_s7 + $0x40] sm:$0xff]   ;;  %v12634_v15 = vld [vmem:[%s17561_s7 + $0x78] sm:$0xff]  }
 0x336   :  { %11251 = vmatprep.mubr.msk.bf16.mxu1 %vm2002_vm3, %v13758_v17  ;;  %11287 = vmatprep.mubr.msk.bf16.mxu0 %vm2002_vm3, %v13758_v17  ;;  %v10638_v56 = vpack.c.bf16 %v1936_v57, %v1936_v57  ;;  %v1938_v22 = vmax.f32 %v1906_v8, %v1922_v11 }
 0x337   :  { %v10642_v29 = vpack.c.bf16 %v1940_v21, %v1940_v21 }
 0x338   :  { %v2470_v27 = vsel %vm2009_vm4, %v10638_v56, 0  ;;  %v10640_v12 = vpack.c.bf16 %v1938_v22, %v1938_v22  ;;  %v12640_v22 = vld [vmem:[%s17561_s7 + $0xa8] sm:$0xff]  }
 0x339   :  { %v2674_v10 = vsel %vm2009_vm4, %v10642_v29, 0 }
 0x33a   :  { %v2572_v30 = vsel %vm2009_vm4, %v10640_v12, 0 }
 0x33b   :  { %11252 = vmatmul.mubr.msk.bf16.vlgmr.msra.gmra.mrb[88].mxu1 %vm2002_vm3, %v13853_v55  ;;  %11288 = vmatmul.mubr.msk.bf16.vlgmr.msra.gmra.mrb[104].mxu0 %vm2002_vm3, %v13853_v55 }
 0x33c   :  { %11256 = vmatpush3.bf16.msra.mxu1 %v2164_v43  ;;  %11298 = vmatpush3.bf16.msra.mxu0 %v2521_v28 }
 0x33d   :  { %12522 = vmatprep.subr.msk.bf16.mxu1 %vm2009_vm4, %v10634_v3  ;;  %12529 = vmatprep.subr.msk.bf16.mxu0 %vm2009_vm4, %v10641_v60 }
 0x33e   :  { %11257 = vmatprep.mubr.msk.bf16.mxu1 %vm2002_vm3, %v13758_v17  ;;  %11299 = vmatprep.mubr.msk.bf16.mxu0 %vm2002_vm3, %v13758_v17 }
 0x343   :  { %11258 = vmatmul.mubr.msk.bf16.vlgmr.msra.gmra.mrb[92].mxu1 %vm2002_vm3, %v13853_v55  ;;  %11300 = vmatmul.mubr.msk.bf16.vlgmr.msra.gmra.mrb[108].mxu0 %vm2002_vm3, %v13853_v55 }
 0x344   :  { %11268 = vmatpush3.bf16.msra.mxu1 %v2266_v5  ;;  %11310 = vmatpush3.bf16.msra.mxu0 %v2623_v45 }
 0x345   :  { %12524 = vmatprep.subr.msk.bf16.mxu1 %vm2009_vm4, %v10636_v6  ;;  %12531 = vmatprep.subr.msk.bf16.mxu0 %vm2009_vm4, %v10643_v4 }
 0x346   :  { %11269 = vmatprep.mubr.msk.bf16.mxu1 %vm2002_vm3, %v13758_v17  ;;  %11311 = vmatprep.mubr.msk.bf16.mxu0 %vm2002_vm3, %v13758_v17 }
 0x34b   :  { %11270 = vmatmul.mubr.msk.bf16.vlgmr.msra.gmra.mrb[96].mxu1 %vm2002_vm3, %v13853_v55  ;;  %11312 = vmatmul.mubr.msk.bf16.vlgmr.msra.gmra.mrb[112].mxu0 %vm2002_vm3, %v13853_v55 }
 0x34c   :  { %11280 = vmatpush3.bf16.msra.mxu1 %v2368_v34  ;;  %11322 = vmatpush3.bf16.msra.mxu0 %v2725_v19 }
 0x34d   :  { %12526 = vmatprep.subr.msk.bf16.mxu1 %vm2009_vm4, %v10638_v56  ;;  %11281 = vmatprep.mubr.msk.bf16.mxu1 %vm2002_vm3, %v13758_v17 }
 0x34e   :  { %11323 = vmatprep.mubr.msk.bf16.mxu0 %vm2002_vm3, %v13758_v17  ;;  %3744 = vmatprep.subr.bf16.mxu0 %v17567_v0 }
 0x353   :  { %11282 = vmatmul.mubr.msk.bf16.vlgmr.msra.gmra.mrb[100].mxu1 %vm2002_vm3, %v13853_v55  ;;  %11324 = vmatmul.mubr.msk.bf16.vlgmr.msra.gmra.mrb[116].mxu0 %vm2002_vm3, %v13853_v55 }
 0x354   :  { %11292 = vmatpush3.bf16.msra.mxu1 %v2470_v27  ;;  %11293 = vmatprep.mubr.msk.bf16.mxu1 %vm2002_vm3, %v13758_v17 }
 0x355   :  { %12528 = vmatprep.subr.msk.bf16.mxu1 %vm2009_vm4, %v10640_v12  ;;  %3745 = vmatpush1.bf16.msra.mxu0 %v12619_v42 }
 0x356   :  { %3746 = vmatprep.subr.bf16.mxu0 %v17567_v0  ;;  %3776 = vmatprep.mubr.bf16.mxu0 %v13342_v1 }
 0x359   :  { %3747 = vmatpush1.bf16.msra.mxu0 %v12620_v35 }
 0x35a   :  { %3748 = vmatprep.subr.bf16.mxu0 %v17567_v0 }
 0x35b   :  { %11294 = vmatmul.mubr.msk.bf16.vlgmr.msra.gmra.mrb[104].mxu1 %vm2002_vm3, %v13853_v55 }
 0x35c   :  { %11304 = vmatpush3.bf16.msra.mxu1 %v2572_v30  ;;  %11305 = vmatprep.mubr.msk.bf16.mxu1 %vm2002_vm3, %v13758_v17 }
 0x35d   :  { %12530 = vmatprep.subr.msk.bf16.mxu1 %vm2009_vm4, %v10642_v29  ;;  %3749 = vmatpush1.bf16.msra.mxu0 %v12621_v33 }
 0x35e   :  { %3750 = vmatprep.subr.bf16.mxu0 %v17567_v0 }
 0x361   :  { %3751 = vmatpush1.bf16.msra.mxu0 %v12622_v47 }
 0x362   :  { %3752 = vmatprep.subr.bf16.mxu0 %v17567_v0 }
 0x363   :  { %11306 = vmatmul.mubr.msk.bf16.vlgmr.msra.gmra.mrb[108].mxu1 %vm2002_vm3, %v13853_v55 }
 0x364   :  { %11316 = vmatpush3.bf16.msra.mxu1 %v2674_v10  ;;  %11317 = vmatprep.mubr.msk.bf16.mxu1 %vm2002_vm3, %v13758_v17 }
 0x365   :  { %12532 = vmatprep.subr.msk.bf16.mxu1 %vm2009_vm4, %v13908_v18  ;;  %3753 = vmatpush1.bf16.msra.mxu0 %v12623_v32 }
 0x366   :  { %3754 = vmatprep.subr.bf16.mxu0 %v17567_v0 }
 0x369   :  { %3755 = vmatpush1.bf16.msra.mxu0 %v12624_v20 }
 0x36a   :  { %3756 = vmatprep.subr.bf16.mxu0 %v17567_v0 }
 0x36b   :  { %11318 = vmatmul.mubr.msk.bf16.vlgmr.msra.gmra.mrb[112].mxu1 %vm2002_vm3, %v13853_v55 }
 0x36c   :  { %11328 = vmatpush3.bf16.msra.mxu1 %v13914_v54  ;;  %11329 = vmatprep.mubr.msk.bf16.mxu1 %vm2002_vm3, %v13758_v17  ;;  %v12628_v17 = vld [vmem:[%s17561_s7 + $0x48] sm:$0xff]  }
 0x36d   :  { %3757 = vmatpush1.bf16.msra.mxu0 %v12625_v7 }
 0x36e   :  { %3758 = vmatprep.subr.bf16.mxu0 %v17567_v0 }
 0x371   :  { %3759 = vmatpush1.bf16.msra.mxu0 %v12626_v14 }
 0x372   :  { %3760 = vmatprep.subr.bf16.mxu0 %v17567_v0 }
 0x373   :  { %11330 = vmatmul.mubr.msk.bf16.vlgmr.msra.gmra.mrb[116].mxu1 %vm2002_vm3, %v13853_v55  ;;  %v12631_v55 = vld [vmem:[%s17561_s7 + $0x60] sm:$0xff]  }
 0x375   :  { %3761 = vmatpush1.bf16.msra.mxu0 %v12627_v58 }
 0x376   :  { %3762 = vmatprep.subr.bf16.mxu0 %v17567_v0 }
 0x379   :  { %3763 = vmatpush1.bf16.msra.mxu0 %v12628_v17 }
 0x37a   :  { %3764 = vmatprep.subr.bf16.mxu0 %v17567_v0 }
 0x37d   :  { %3765 = vmatpush1.bf16.msra.mxu0 %v12629_v23 }
 0x37e   :  { %3766 = vmatprep.subr.bf16.mxu0 %v17567_v0 }
 0x381   :  { %3767 = vmatpush1.bf16.msra.mxu0 %v12630_v39 }
 0x382   :  { %3768 = vmatprep.subr.bf16.mxu0 %v17567_v0 }
 0x385   :  { %3769 = vmatpush1.bf16.msra.mxu0 %v12631_v55 }
 0x386   :  { %3770 = vmatprep.subr.bf16.mxu0 %v17567_v0 }
 0x389   :  { %3771 = vmatpush1.bf16.msra.mxu0 %v12632_v46 }
 0x38a   :  { %3772 = vmatprep.subr.bf16.mxu0 %v17567_v0 }
 0x38d   :  { %3773 = vmatpush1.bf16.msra.mxu0 %v12633_v40 }
 0x38e   :  { %3774 = vmatprep.subr.bf16.mxu0 %v17567_v0 }
 0x391   :  { %3775 = vmatpush1.bf16.msra.mxu0 %v12634_v15 }
 0x392   :  { %4033 = vmatprep.subr.bf16.mxu0 %v17567_v0 }
 0x394   :  { %3777 = vmatmul.mubr.bf16.vlgmr.msra.gmra.mrb[120].mxu0 %v17567_v0 }
 0x395   :  { %4034 = vmatpush1.bf16.msra.mxu0 %v12635_v59 }
 0x396   :  { %4035 = vmatprep.subr.bf16.mxu0 %v17567_v0 }
 0x399   :  { %4036 = vmatpush1.bf16.msra.mxu0 %v12636_v52 }
 0x39a   :  { %4037 = vmatprep.subr.bf16.mxu0 %v17567_v0 }
 0x39d   :  { %4038 = vmatpush1.bf16.msra.mxu0 %v12637_v49 }
 0x39e   :  { %4039 = vmatprep.subr.bf16.mxu0 %v17567_v0 }
 0x3a1   :  { %4040 = vmatpush1.bf16.msra.mxu0 %v12638_v2 }
 0x3a2   :  { %4041 = vmatprep.subr.bf16.mxu0 %v17567_v0 }
 0x3a5   :  { %4042 = vmatpush1.bf16.msra.mxu0 %v12639_v38  ;;  %v12641_v38 = vld [vmem:[%s17561_s7 + $0xb0] sm:$0xff]  }
 0x3a6   :  { %4043 = vmatprep.subr.bf16.mxu0 %v17567_v0 }
 0x3a9   :  { %4044 = vmatpush1.bf16.msra.mxu0 %v12640_v22 }
 0x3aa   :  { %4045 = vmatprep.subr.bf16.mxu0 %v17567_v0 }
 0x3ad   :  { %4046 = vmatpush1.bf16.msra.mxu0 %v12641_v38 }
 0x3ae   :  { %4047 = vmatprep.subr.bf16.mxu0 %v17567_v0 }
 0x3fe   :  { %v11241_v50 = vpop.f32.mrb[80].mxu1  ;;  %v14065_v62 = vpop.f32.mrb[96].mxu0 }
 0x3ff   :  { %v2047_v24 = vpop.f32.mrb[81].mxu1  ;;  %v2251_v9 = vpop.f32.mrb[97].mxu0  ;;  %v14068_v53 = vpack.c.bf16 %v11241_v50, %v11241_v50 }
 0x400   :  { %v11242_v61 = vpop.f32.mrb[82].mxu1  ;;  %v11266_v43 = vpop.f32.mrb[98].mxu0 }
 0x401   :  { %v2050_v28 = vpop.f32.mrb[83].mxu1  ;;  %v2254_v36 = vpop.f32.mrb[99].mxu0  ;;  %v2868_v13 = vshll.u32 %v14068_v53, 16 }
 0x402   :  { %v14070_v31 = vpack.c.bf16 %v2050_v28, %v2047_v24  ;;  %v14072_v3 = vpack.c.bf16 %v2254_v36, %v2251_v9 }
 0x403   :  { %v2870_v5 = vrot.slane %v2868_v13, 1 }
 0x404   :  { %v2863_v60 = vshll.u32 %v14070_v31, 16  ;;  %v2861_v18 = vshrl.u32 %v14070_v31, 16  ;;  %v2909_v38 = vshrl.u32 %v14072_v3, 16 }
 0x406   :  { %v2865_v54 = vrot.slane %v2863_v60, 1  ;;  %v11247_v41 = vpop.f32.mrb[84].mxu1  ;;  %v14077_v63 = vpop.f32.mrb[100].mxu0 }
 0x407   :  { %v14079_v37 = vpack.c.bf16 %v11247_v41, %v11247_v41  ;;  %v2098_v44 = vpop.f32.mrb[85].mxu1  ;;  %v2353_v16 = vpop.f32.mrb[101].mxu0 }
 0x408   :  { %v2866_v26 = vor.u32 %v2865_v54, %v2861_v18  ;;  %v11248_v45 = vpop.f32.mrb[86].mxu1  ;;  %v11278_v6 = vpop.f32.mrb[102].mxu0 }
 0x409   :  { %v2101_v4 = vpop.f32.mrb[87].mxu1  ;;  %v2356_v57 = vpop.f32.mrb[103].mxu0  ;;  %v2880_v34 = vshll.u32 %v14079_v37, 16 }
 0x40a   :  { %v14082_v8 = vsel %vm2858_vm5, %v2866_v26, %v2870_v5  ;;  %v14084_v51 = vpack.c.bf16 %v2101_v4, %v2098_v44  ;;  %v14087_v19 = vpack.c.bf16 %v2356_v57, %v2353_v16 }
 0x40b   :  { %3784 = vmatprep.mubr.bf16.mxu0 %v14082_v8  ;;  %v2882_v42 = vrot.slane %v2880_v34, 1 }
 0x40c   :  { %3785 = vmatmul.mubr.bf16.gmra.mrb[124].mxu0 %v14070_v31  ;;  %v2873_v56 = vshrl.u32 %v14084_v51, 16  ;;  %v2875_v11 = vshll.u32 %v14084_v51, 16 }
 0x40d   :  { %3792 = vmatprep.mubr.bf16.mxu0 %v14082_v8 }
 0x40e   :  { %v2877_v25 = vrot.slane %v2875_v11, 1  ;;  %v11253_v27 = vpop.f32.mrb[88].mxu1  ;;  %v14097_v12 = vpop.f32.mrb[104].mxu0 }
 0x40f   :  { %v2149_v48 = vpop.f32.mrb[89].mxu1  ;;  %v2455_v35 = vpop.f32.mrb[105].mxu0  ;;  %v14109_v7 = vpack.c.bf16 %v11253_v27, %v11253_v27 }
 0x410   :  { %v2878_v21 = vor.u32 %v2877_v25, %v2873_v56  ;;  %v11254_v33 = vpop.f32.mrb[90].mxu1  ;;  %v11290_v30 = vpop.f32.mrb[106].mxu0 }
 0x411   :  { %v2152_v29 = vpop.f32.mrb[91].mxu1  ;;  %v2458_v47 = vpop.f32.mrb[107].mxu0  ;;  %v2892_v15 = vshll.u32 %v14109_v7, 16 }
 0x412   :  { %v14101_v32 = vsel %vm2858_vm5, %v2878_v21, %v2882_v42  ;;  %v14103_v10 = vpack.c.bf16 %v2152_v29, %v2149_v48  ;;  %v14105_v20 = vpack.c.bf16 %v2458_v47, %v2455_v35  ;;  %v12642_v48 = vld [vmem:[%s17561_s7 + $0xb8] sm:$0xff]  }
 0x413   :  { %v2894_v9 = vrot.slane %v2892_v15, 1  ;;  %4048 = vmatpush1.bf16.msra.mxu0 %v12642_v48 }
 0x414   :  { %3793 = vmatmul.mubr.bf16.gmra.mrb[128].mxu0 %v14070_v31  ;;  %v2887_v14 = vshll.u32 %v14103_v10, 16  ;;  %v2885_v46 = vshrl.u32 %v14103_v10, 16  ;;  %4049 = vmatprep.subr.bf16.mxu0 %v17567_v0 }
 0x415   :  { %3800 = vmatprep.mubr.bf16.mxu0 %v14101_v32 }
 0x416   :  { %v11259_v58 = vpop.f32.mrb[92].mxu1  ;;  %v14112_v55 = vpop.f32.mrb[108].mxu0  ;;  %v2889_v40 = vrot.slane %v2887_v14, 1 }
 0x417   :  { %v2200_v17 = vpop.f32.mrb[93].mxu1  ;;  %v2557_v52 = vpop.f32.mrb[109].mxu0  ;;  %v14139_v26 = vpack.c.bf16 %v11259_v58, %v11259_v58 }
 0x418   :  { %v11260_v23 = vpop.f32.mrb[94].mxu1  ;;  %v11302_v49 = vpop.f32.mrb[110].mxu0  ;;  %v2890_v24 = vor.u32 %v2889_v40, %v2885_v46  ;;  %v2911_v46 = vshll.u32 %v14072_v3, 16 }
 0x419   :  { %v2203_v39 = vpop.f32.mrb[95].mxu1  ;;  %v2560_v2 = vpop.f32.mrb[111].mxu0  ;;  %v2904_v22 = vshll.u32 %v14139_v26, 16 }
 0x41a   :  { %v14116_v59 = vpack.c.bf16 %v2203_v39, %v2200_v17  ;;  %v14123_v50 = vpack.c.bf16 %v2560_v2, %v2557_v52  ;;  %v14131_v13 = vsel %vm2858_vm5, %v2890_v24, %v2894_v9  ;;  %v14169_v39 = vpack.c.bf16 %v14065_v62, %v14065_v62  ;;  %v12643_v62 = vld [vmem:[%s17561_s7 + $0xc0] sm:$0xff]  }
 0x41b   :  { %v2906_v30 = vrot.slane %v2904_v22, 1  ;;  %v2913_v24 = vrot.slane %v2911_v46, 1  ;;  %4050 = vmatpush1.bf16.msra.mxu0 %v12643_v62 }
 0x41c   :  { %3801 = vmatmul.mubr.bf16.gmra.mrb[132].mxu0 %v14084_v51  ;;  %v2899_v5 = vshll.u32 %v14116_v59, 16  ;;  %v2897_v56 = vshrl.u32 %v14116_v59, 16  ;;  %v2916_v2 = vshll.u32 %v14169_v39, 16  ;;  %4051 = vmatprep.subr.bf16.mxu0 %v17567_v0 }
 0x41d   :  { %3808 = vmatprep.mubr.bf16.mxu0 %v14101_v32 }
 0x41e   :  { %v14125_v61 = vpop.f32.mrb[96].mxu1  ;;  %v14128_v60 = vpop.f32.mrb[112].mxu0  ;;  %v2901_v11 = vrot.slane %v2899_v5, 1 }
 0x41f   :  { %v2302_v43 = vpop.f32.mrb[97].mxu1  ;;  %v2659_v54 = vpop.f32.mrb[113].mxu0 }
 0x420   :  { %v11272_v28 = vpop.f32.mrb[98].mxu1  ;;  %v11314_v41 = vpop.f32.mrb[114].mxu0  ;;  %v2902_v33 = vor.u32 %v2901_v11, %v2897_v56  ;;  %v12644_v56 = vld [vmem:[%s17561_s7 + $0xc8] sm:$0xff]  }
 0x421   :  { %v2305_v36 = vpop.f32.mrb[99].mxu1  ;;  %v2662_v44 = vpop.f32.mrb[115].mxu0  ;;  %v2914_v28 = vor.u32 %v2913_v24, %v2909_v38  ;;  %4052 = vmatpush1.bf16.msra.mxu0 %v12644_v56  ;;  %v12647_v56 = vld [vmem:[%s17561_s7 + $0xe0] sm:$0xff]  }
 0x422   :  { %v14133_v18 = vpack.c.bf16 %v2305_v36, %v2302_v43  ;;  %v14137_v16 = vpack.c.bf16 %v2662_v44, %v2659_v54  ;;  %v14161_v17 = vsel %vm2858_vm5, %v2902_v33, %v2906_v30  ;;  %v2918_v43 = vrot.slane %v2916_v2, 1  ;;  %4053 = vmatprep.subr.bf16.mxu0 %v17567_v0 }
 0x423   :  { %v14191_v54 = vpack.c.bf16 %v14125_v61, %v14125_v61  ;;  %v2935_v33 = vshll.u32 %v14087_v19, 16 }
 0x424   :  { %3809 = vmatmul.mubr.bf16.gmra.mrb[136].mxu0 %v14084_v51  ;;  %v14185_v36 = vsel %vm2858_vm5, %v2914_v28, %v2918_v43  ;;  %v2923_v41 = vshll.u32 %v14133_v18, 16  ;;  %v2921_v44 = vshrl.u32 %v14133_v18, 16  ;;  %v12646_v43 = vld [vmem:[%s17561_s7 + $0xd8] sm:$0xff]  }
 0x425   :  { %3816 = vmatprep.mubr.bf16.mxu0 %v14131_v13 }
 0x426   :  { %v14142_v45 = vpop.f32.mrb[100].mxu1  ;;  %v14144_v34 = vpop.f32.mrb[116].mxu0  ;;  %v2925_v5 = vrot.slane %v2923_v41, 1 }
 0x427   :  { %v2404_v6 = vpop.f32.mrb[101].mxu1  ;;  %v2761_v42 = vpop.f32.mrb[117].mxu0 }
 0x428   :  { %v11284_v4 = vpop.f32.mrb[102].mxu1  ;;  %v11326_v27 = vpop.f32.mrb[118].mxu0  ;;  %v2926_v61 = vor.u32 %v2925_v5, %v2921_v44 }
 0x429   :  { %v2407_v57 = vpop.f32.mrb[103].mxu1  ;;  %v2764_v35 = vpop.f32.mrb[119].mxu0 }
 0x42a   :  { %v14148_v25 = vpack.c.bf16 %v2407_v57, %v2404_v6  ;;  %v14155_v21 = vpack.c.bf16 %v2764_v35, %v2761_v42  ;;  %v2928_v6 = vshll.u32 %v14191_v54, 16  ;;  %v14213_v35 = vpack.c.bf16 %v14077_v63, %v14077_v63 }
 0x42c   :  { %3817 = vmatmul.mubr.bf16.gmra.mrb[140].mxu0 %v14103_v10  ;;  %v2930_v11 = vrot.slane %v2928_v6, 1  ;;  %v2940_v30 = vshll.u32 %v14213_v35, 16  ;;  %v2945_v2 = vshrl.u32 %v14148_v25, 16 }
 0x42d   :  { %3824 = vmatprep.mubr.bf16.mxu0 %v14131_v13 }
 0x42e   :  { %v14157_v29 = vpop.f32.mrb[104].mxu1  ;;  %v14207_v48 = vsel %vm2858_vm5, %v2926_v61, %v2930_v11  ;;  %v2942_v46 = vrot.slane %v2940_v30, 1  ;;  %v14256_v61 = vpack.c.bf16 %v14097_v12, %v14097_v12  ;;  %v2959_v11 = vshll.u32 %v14105_v20, 16  ;;  %v12649_v12 = vld [vmem:[%s17561_s7 + $0xf0] sm:$0xff]  }
 0x42f   :  { %v2506_v47 = vpop.f32.mrb[105].mxu1 }
 0x430   :  { %v11296_v14 = vpop.f32.mrb[106].mxu1  ;;  %v2961_v30 = vrot.slane %v2959_v11, 1 }
 0x431   :  { %v2509_v58 = vpop.f32.mrb[107].mxu1  ;;  %v2937_v14 = vrot.slane %v2935_v33, 1  ;;  %v2957_v33 = vshrl.u32 %v14105_v20, 16 }
 0x432   :  { %v14163_v23 = vpack.c.bf16 %v2509_v58, %v2506_v47  ;;  %v2933_v47 = vshrl.u32 %v14087_v19, 16  ;;  %v12645_v58 = vld [vmem:[%s17561_s7 + $0xd0] sm:$0xff]  }
 0x433   :  { %4054 = vmatpush1.bf16.msra.mxu0 %v12645_v58  ;;  %v12650_v58 = vld [vmem:[%s17561_s7 + $0xf8] sm:$0xff]  }
 0x434   :  { %3825 = vmatmul.mubr.bf16.gmra.mrb[144].mxu0 %v14103_v10  ;;  %4055 = vmatprep.subr.bf16.mxu0 %v17567_v0 }
 0x435   :  { %3832 = vmatprep.mubr.bf16.mxu0 %v14161_v17 }
 0x436   :  { %v14172_v40 = vpop.f32.mrb[108].mxu1 }
 0x437   :  { %v2608_v15 = vpop.f32.mrb[109].mxu1  ;;  %4056 = vmatpush1.bf16.msra.mxu0 %v12646_v43 }
 0x438   :  { %v11308_v52 = vpop.f32.mrb[110].mxu1  ;;  %4057 = vmatprep.subr.bf16.mxu0 %v17567_v0 }
 0x439   :  { %v2611_v49 = vpop.f32.mrb[111].mxu1  ;;  %v14231_v52 = vpack.c.bf16 %v14142_v45, %v14142_v45 }
 0x43a   :  { %v14176_v9 = vpack.c.bf16 %v2611_v49, %v2608_v15  ;;  %v2938_v15 = vor.u32 %v2937_v14, %v2933_v47  ;;  %v2947_v49 = vshll.u32 %v14148_v25, 16  ;;  %v2962_v14 = vor.u32 %v2961_v30, %v2957_v33 }
 0x43b   :  { %v2952_v24 = vshll.u32 %v14231_v52, 16  ;;  %4058 = vmatpush1.bf16.msra.mxu0 %v12647_v56 }
 0x43c   :  { %3833 = vmatmul.mubr.bf16.gmra.mrb[148].mxu0 %v14116_v59  ;;  %v14225_v63 = vsel %vm2858_vm5, %v2938_v15, %v2942_v46  ;;  %v2949_v38 = vrot.slane %v2947_v49, 1  ;;  %4059 = vmatprep.subr.bf16.mxu0 %v17567_v0  ;;  %v14283_v15 = vpack.c.bf16 %v14157_v29, %v14157_v29  ;;  %v2971_v49 = vshll.u32 %v14163_v23, 16 }
 0x43d   :  { %3840 = vmatprep.mubr.bf16.mxu0 %v14161_v17  ;;  %v2954_v45 = vrot.slane %v2952_v24, 1  ;;  %v14297_v29 = vpack.c.bf16 %v14112_v55, %v14112_v55  ;;  %v14311_v55 = vpack.c.bf16 %v14172_v40, %v14172_v40  ;;  %v2995_v33 = vshll.u32 %v14176_v9, 16 }
 0x43e   :  { %v14197_v4 = vpop.f32.mrb[112].mxu1  ;;  %v2950_v28 = vor.u32 %v2949_v38, %v2945_v2  ;;  %v2969_v2 = vshrl.u32 %v14163_v23, 16  ;;  %v2973_v38 = vrot.slane %v2971_v49, 1  ;;  %v2976_v24 = vshll.u32 %v14283_v15, 16 }
 0x43f   :  { %v2710_v57 = vpop.f32.mrb[113].mxu1  ;;  %v2993_v30 = vshrl.u32 %v14176_v9, 16  ;;  %v14325_v40 = vpack.c.bf16 %v14128_v60, %v14128_v60  ;;  %v14339_v60 = vpack.c.bf16 %v14197_v4, %v14197_v4  ;;  %v14353_v4 = vpack.c.bf16 %v14144_v34, %v14144_v34 }
 0x440   :  { %v11320_v22 = vpop.f32.mrb[114].mxu1  ;;  %v2974_v43 = vor.u32 %v2973_v38, %v2969_v2  ;;  %v3007_v2 = vshll.u32 %v14137_v16, 16 }
 0x441   :  { %v2713_v42 = vpop.f32.mrb[115].mxu1  ;;  %v12648_v22 = vld [vmem:[%s17561_s7 + $0xe8] sm:$0xff]   ;;  %v3012_v38 = vshll.u32 %v14325_v40, 16 }
 0x442   :  { %v14203_v27 = vpack.c.bf16 %v2713_v42, %v2710_v57  ;;  %v14247_v57 = vsel %vm2858_vm5, %v2950_v28, %v2954_v45  ;;  %v2964_v42 = vshll.u32 %v14256_v61, 16  ;;  %4060 = vmatpush1.bf16.msra.mxu0 %v12648_v22  ;;  %v2978_v28 = vrot.slane %v2976_v24, 1 }
 0x443   :  { %4061 = vmatprep.subr.bf16.mxu0 %v17567_v0  ;;  %v3005_v24 = vshrl.u32 %v14137_v16, 16 }
 0x444   :  { %3841 = vmatmul.mubr.bf16.gmra.mrb[152].mxu0 %v14116_v59  ;;  %v2966_v47 = vrot.slane %v2964_v42, 1  ;;  %v14291_v45 = vsel %vm2858_vm5, %v2974_v43, %v2978_v28  ;;  %v3009_v43 = vrot.slane %v3007_v2, 1  ;;  %v3014_v28 = vrot.slane %v3012_v38, 1 }
 0x445   :  { %3848 = vmatprep.mubr.bf16.mxu0 %v14185_v36 }
 0x446   :  { %v14238_v62 = vpop.f32.mrb[116].mxu1  ;;  %4062 = vmatpush1.bf16.msra.mxu0 %v12649_v12  ;;  %v14276_v46 = vsel %vm2858_vm5, %v2962_v14, %v2966_v47  ;;  %v2997_v12 = vrot.slane %v2995_v33, 1  ;;  %v3000_v47 = vshll.u32 %v14311_v55, 16 }
 0x447   :  { %v2812_v41 = vpop.f32.mrb[117].mxu1  ;;  %4063 = vmatprep.subr.bf16.mxu0 %v17567_v0  ;;  %v14367_v34 = vpack.c.bf16 %v14238_v62, %v14238_v62  ;;  %v12651_v62 = vld [vmem:[%s17561_s7 + $0x100] sm:$0xff]  }
 0x448   :  { %v11332_v44 = vpop.f32.mrb[118].mxu1  ;;  %v2998_v14 = vor.u32 %v2997_v12, %v2993_v30 }
 0x449   :  { %v2815_v5 = vpop.f32.mrb[119].mxu1  ;;  %v2988_v44 = vshll.u32 %v14297_v29, 16 }
 0x44a   :  { %v14244_v6 = vpack.c.bf16 %v2815_v5, %v2812_v41  ;;  %4064 = vmatpush1.bf16.msra.mxu0 %v12650_v58  ;;  %v2983_v41 = vshll.u32 %v14123_v50, 16  ;;  %v2981_v5 = vshrl.u32 %v14123_v50, 16  ;;  %v3002_v58 = vrot.slane %v3000_v47, 1 }
 0x44b   :  { %4322 = vmatprep.subr.bf16.mxu0 %v17567_v0  ;;  %v2990_v11 = vrot.slane %v2988_v44, 1  ;;  %v3031_v47 = vshll.u32 %v14155_v21, 16 }
 0x44c   :  { %3849 = vmatmul.mubr.bf16.gmra.mrb[156].mxu0 %v14072_v3  ;;  %v2985_v56 = vrot.slane %v2983_v41, 1  ;;  %v14319_v49 = vsel %vm2858_vm5, %v2998_v14, %v3002_v58  ;;  %v3010_v41 = vor.u32 %v3009_v43, %v3005_v24  ;;  %v3036_v14 = vshll.u32 %v14353_v4, 16 }
 0x44d   :  { %3856 = vmatprep.mubr.bf16.mxu0 %v14185_v36  ;;  %v3029_v58 = vshrl.u32 %v14155_v21, 16  ;;  %v3033_v2 = vrot.slane %v3031_v47, 1  ;;  %v3103_v47 = vrot.slane %v14070_v31, 1 }
 0x44e   :  { %v2986_v22 = vor.u32 %v2985_v56, %v2981_v5  ;;  %v14334_v44 = vsel %vm2858_vm5, %v3010_v41, %v3014_v28  ;;  %v3019_v5 = vshll.u32 %v14203_v27, 16  ;;  %v3017_v56 = vshrl.u32 %v14203_v27, 16 }
 0x44f   :  { %v3038_v38 = vrot.slane %v3036_v14, 1  ;;  %v3034_v24 = vor.u32 %v3033_v2, %v3029_v58  ;;  %v3043_v28 = vshll.u32 %v14244_v6, 16  ;;  %v3041_v41 = vshrl.u32 %v14244_v6, 16  ;;  %v12653_v58 = vld [vmem:[%s17561_s7 + $0x110] sm:$0xff]  }
 0x450   :  { %v14306_v42 = vsel %vm2858_vm5, %v2986_v22, %v2990_v11  ;;  %v3021_v11 = vrot.slane %v3019_v5, 1  ;;  %v3024_v22 = vshll.u32 %v14339_v60, 16  ;;  %v3104_v14 = vrot.slane %v14068_v53, 1  ;;  %v12655_v53 = vld [vmem:[%s17561_s7 + $0x120] sm:$0xff]  }
 0x451   :  { %v14362_v43 = vsel %vm2858_vm5, %v3034_v24, %v3038_v38  ;;  %v3045_v5 = vrot.slane %v3043_v28, 1  ;;  %v12654_v38 = vld [vmem:[%s17561_s7 + $0x118] sm:$0xff]   ;;  %v12656_v24 = vld [vmem:[%s17561_s7 + $0x128] sm:$0xff]   ;;  %v3106_v28 = vrot.slane %v14084_v51, 1 }
 0x452   :  { %v3022_v33 = vor.u32 %v3021_v11, %v3017_v56  ;;  %v3026_v30 = vrot.slane %v3024_v22, 1  ;;  %v3048_v56 = vshll.u32 %v14367_v34, 16  ;;  %v14397_v2 = vsel %vm3101_vm6, %v3103_v47, %v3104_v14  ;;  %v12659_v14 = vld [vmem:[%s17561_s7 + $0x140] sm:$0xff]  }
 0x453   :  { %v3046_v11 = vor.u32 %v3045_v5, %v3041_v41  ;;  %v3107_v41 = vrot.slane %v14079_v37, 1  ;;  %v3109_v37 = vrot.slane %v14103_v10, 1 }
 0x454   :  { %3857 = vmatmul.mubr.bf16.gmra.mrb[160].mxu0 %v14072_v3  ;;  %v14347_v12 = vsel %vm2858_vm5, %v3022_v33, %v3026_v30  ;;  %v3050_v22 = vrot.slane %v3048_v56, 1  ;;  %v12652_v30 = vld [vmem:[%s17561_s7 + $0x108] sm:$0xff]   ;;  %v12657_v56 = vld [vmem:[%s17561_s7 + $0x130] sm:$0xff]  }
 0x455   :  { %3864 = vmatprep.mubr.bf16.mxu0 %v14207_v48  ;;  %v14419_v5 = vsel %vm3101_vm6, %v3106_v28, %v3107_v41  ;;  %v12661_v41 = vld [vmem:[%s17561_s7 + $0x150] sm:$0xff]  }
 0x456   :  { %v14375_v33 = vsel %vm2858_vm5, %v3046_v11, %v3050_v22  ;;  %v3110_v11 = vrot.slane %v14109_v7, 1  ;;  %v3112_v7 = vrot.slane %v14116_v59, 1 }
 0x458   :  { %v14432_v22 = vsel %vm3101_vm6, %v3109_v37, %v3110_v11  ;;  %v12662_v11 = vld [vmem:[%s17561_s7 + $0x158] sm:$0xff]  }
 0x45c   :  { %3865 = vmatmul.mubr.bf16.gmra.mrb[164].mxu0 %v14133_v18 }
 0x45d   :  { %3872 = vmatprep.mubr.bf16.mxu0 %v14207_v48 }
 0x464   :  { %3873 = vmatmul.mubr.bf16.gmra.mrb[168].mxu0 %v14133_v18 }
 0x465   :  { %3880 = vmatprep.mubr.bf16.mxu0 %v14225_v63 }
 0x46c   :  { %3881 = vmatmul.mubr.bf16.gmra.mrb[172].mxu0 %v14087_v19 }
 0x46d   :  { %3888 = vmatprep.mubr.bf16.mxu0 %v14225_v63 }
 0x474   :  { %3889 = vmatmul.mubr.bf16.gmra.mrb[176].mxu0 %v14087_v19 }
 0x475   :  { %3896 = vmatprep.mubr.bf16.mxu0 %v14247_v57 }
 0x47c   :  { %3897 = vmatmul.mubr.bf16.gmra.mrb[180].mxu0 %v14148_v25 }
 0x47d   :  { %3904 = vmatprep.mubr.bf16.mxu0 %v13342_v1 }
 0x484   :  { %3905 = vmatmul.mubr.bf16.gmra.mrb[184].mxu0 %v17567_v0 }
 0x485   :  { %3912 = vmatprep.mubr.bf16.mxu0 %v14276_v46 }
 0x48c   :  { %3913 = vmatmul.mubr.bf16.gmra.mrb[188].mxu0 %v14105_v20 }
 0x48d   :  { %3920 = vmatprep.mubr.bf16.mxu0 %v14276_v46 }
 0x494   :  { %3921 = vmatmul.mubr.bf16.gmra.mrb[192].mxu0 %v14105_v20 }
 0x495   :  { %3928 = vmatprep.mubr.bf16.mxu0 %v14291_v45 }
 0x49c   :  { %3929 = vmatmul.mubr.bf16.gmra.mrb[196].mxu0 %v14163_v23 }
 0x49d   :  { %3936 = vmatprep.mubr.bf16.mxu0 %v14291_v45 }
 0x4a4   :  { %3937 = vmatmul.mubr.bf16.gmra.mrb[200].mxu0 %v14163_v23 }
 0x4a5   :  { %3944 = vmatprep.mubr.bf16.mxu0 %v14306_v42 }
 0x4ac   :  { %3945 = vmatmul.mubr.bf16.gmra.mrb[204].mxu0 %v14123_v50 }
 0x4ad   :  { %3952 = vmatprep.mubr.bf16.mxu0 %v14306_v42 }
 0x4b4   :  { %3953 = vmatmul.mubr.bf16.gmra.mrb[208].mxu0 %v14123_v50 }
 0x4b5   :  { %3960 = vmatprep.mubr.bf16.mxu0 %v14319_v49 }
 0x4bc   :  { %3961 = vmatmul.mubr.bf16.gmra.mrb[212].mxu0 %v14176_v9 }
 0x4bd   :  { %3968 = vmatprep.mubr.bf16.mxu0 %v14319_v49 }
 0x4c4   :  { %3969 = vmatmul.mubr.bf16.gmra.mrb[216].mxu0 %v14176_v9 }
 0x4c5   :  { %3976 = vmatprep.mubr.bf16.mxu0 %v14334_v44 }
 0x4cc   :  { %3977 = vmatmul.mubr.bf16.gmra.mrb[220].mxu0 %v14137_v16 }
 0x4cd   :  { %3984 = vmatprep.mubr.bf16.mxu0 %v14334_v44 }
 0x4d4   :  { %3985 = vmatmul.mubr.bf16.gmra.mrb[224].mxu0 %v14137_v16 }
 0x4d5   :  { %3992 = vmatprep.mubr.bf16.mxu0 %v14347_v12 }
 0x4dc   :  { %3993 = vmatmul.mubr.bf16.gmra.mrb[228].mxu0 %v14203_v27 }
 0x4dd   :  { %4000 = vmatprep.mubr.bf16.mxu0 %v14347_v12 }
 0x4e4   :  { %4001 = vmatmul.mubr.bf16.gmra.mrb[232].mxu0 %v14203_v27 }
 0x4e5   :  { %4008 = vmatprep.mubr.bf16.mxu0 %v14362_v43 }
 0x4ec   :  { %4009 = vmatmul.mubr.bf16.gmra.mrb[236].mxu0 %v14155_v21 }
 0x4ed   :  { %4016 = vmatprep.mubr.bf16.mxu0 %v14362_v43 }
 0x4f4   :  { %4017 = vmatmul.mubr.bf16.gmra.mrb[240].mxu0 %v14155_v21 }
 0x4f5   :  { %4024 = vmatprep.mubr.bf16.mxu0 %v14375_v33 }
 0x4fc   :  { %4025 = vmatmul.mubr.bf16.gmra.mrb[244].mxu0 %v14244_v6 }
 0x4fd   :  { %4065 = vmatprep.mubr.bf16.mxu0 %v14070_v31 }
 0x504   :  { %4066 = vmatmul.mubr.bf16.vlgmr.msra.gmra.mrb[120].mxu0 %v13342_v1 }
 0x505   :  { %4073 = vmatprep.mubr.bf16.mxu0 %v14070_v31  ;;  %4323 = vmatpush1.bf16.msra.mxu0 %v12651_v62  ;;  %v12658_v62 = vld [vmem:[%s17561_s7 + $0x138] sm:$0xff]  }
 0x506   :  { %4324 = vmatprep.subr.bf16.mxu0 %v17567_v0 }
 0x509   :  { %4325 = vmatpush1.bf16.msra.mxu0 %v12652_v30  ;;  %v3113_v30 = vrot.slane %v14139_v26, 1  ;;  %v3116_v26 = vrot.slane %v14169_v39, 1  ;;  %v3118_v39 = vrot.slane %v14133_v18, 1 }
 0x50a   :  { %4326 = vmatprep.subr.bf16.mxu0 %v17567_v0 }
 0x50b   :  { %v14445_v47 = vsel %vm3101_vm6, %v3112_v7, %v3113_v30  ;;  %v3125_v7 = vrot.slane %v14231_v52, 1  ;;  %v12664_v30 = vld [vmem:[%s17561_s7 + $0x168] sm:$0xff]   ;;  %v12666_v52 = vld [vmem:[%s17561_s7 + $0x178] sm:$0xff]  }
 0x50c   :  { %4074 = vmatmul.mubr.bf16.gmra.mrb[124].mxu0 %v14397_v2 }
 0x50d   :  { %4081 = vmatprep.mubr.bf16.mxu0 %v14084_v51  ;;  %4327 = vmatpush1.bf16.msra.mxu0 %v12653_v58  ;;  %v3115_v58 = vrot.slane %v14072_v3, 1 }
 0x50e   :  { %4328 = vmatprep.subr.bf16.mxu0 %v17567_v0 }
 0x511   :  { %4329 = vmatpush1.bf16.msra.mxu0 %v12654_v38  ;;  %v14458_v38 = vsel %vm3101_vm6, %v3115_v58, %v3116_v26  ;;  %v12665_v26 = vld [vmem:[%s17561_s7 + $0x170] sm:$0xff]   ;;  %v3128_v58 = vrot.slane %v14256_v61, 1  ;;  %v3134_v61 = vrot.slane %v14297_v29, 1  ;;  %v3140_v29 = vrot.slane %v14325_v40, 1 }
 0x512   :  { %4330 = vmatprep.subr.bf16.mxu0 %v17567_v0  ;;  %v3146_v40 = vrot.slane %v14353_v4, 1  ;;  %v12667_v4 = vld [vmem:[%s17561_s7 + $0x180] sm:$0xff]  }
 0x514   :  { %4082 = vmatmul.mubr.bf16.gmra.mrb[128].mxu0 %v14397_v2 }
 0x515   :  { %4089 = vmatprep.mubr.bf16.mxu0 %v14084_v51  ;;  %4331 = vmatpush1.bf16.msra.mxu0 %v12655_v53  ;;  %v12660_v53 = vld [vmem:[%s17561_s7 + $0x148] sm:$0xff]  }
 0x516   :  { %4332 = vmatprep.subr.bf16.mxu0 %v17567_v0 }
 0x519   :  { %4333 = vmatpush1.bf16.msra.mxu0 %v12656_v24  ;;  %v3119_v24 = vrot.slane %v14191_v54, 1  ;;  %v3122_v54 = vrot.slane %v14213_v35, 1  ;;  %v12663_v35 = vld [vmem:[%s17561_s7 + $0x160] sm:$0xff]  }
 0x51a   :  { %4334 = vmatprep.subr.bf16.mxu0 %v17567_v0 }
 0x51b   :  { %v14471_v28 = vsel %vm3101_vm6, %v3118_v39, %v3119_v24  ;;  %v3130_v24 = vrot.slane %v14163_v23, 1 }
 0x51c   :  { %4090 = vmatmul.mubr.bf16.gmra.mrb[132].mxu0 %v14419_v5 }
 0x51d   :  { %4097 = vmatprep.mubr.bf16.mxu0 %v14103_v10  ;;  %4335 = vmatpush1.bf16.msra.mxu0 %v12657_v56  ;;  %v3121_v56 = vrot.slane %v14087_v19, 1 }
 0x51e   :  { %4336 = vmatprep.subr.bf16.mxu0 %v17567_v0 }
 0x51f   :  { %v14484_v37 = vsel %vm3101_vm6, %v3121_v56, %v3122_v54  ;;  %v3133_v56 = vrot.slane %v14123_v50, 1 }
 0x521   :  { %4337 = vmatpush1.bf16.msra.mxu0 %v12658_v62  ;;  %v3124_v62 = vrot.slane %v14148_v25, 1 }
 0x522   :  { %4338 = vmatprep.subr.bf16.mxu0 %v17567_v0 }
 0x524   :  { %4098 = vmatmul.mubr.bf16.gmra.mrb[136].mxu0 %v14419_v5 }
 0x525   :  { %4105 = vmatprep.mubr.bf16.mxu0 %v14103_v10  ;;  %4339 = vmatpush1.bf16.msra.mxu0 %v12659_v14  ;;  %v14504_v14 = vsel %vm3101_vm6, %v3124_v62, %v3125_v7  ;;  %v3139_v7 = vrot.slane %v14137_v16, 1 }
 0x526   :  { %4340 = vmatprep.subr.bf16.mxu0 %v17567_v0 }
 0x529   :  { %4341 = vmatpush1.bf16.msra.mxu0 %v12660_v53  ;;  %v3127_v53 = vrot.slane %v14105_v20, 1 }
 0x52a   :  { %4342 = vmatprep.subr.bf16.mxu0 %v17567_v0 }
 0x52b   :  { %v14522_v39 = vsel %vm3101_vm6, %v3127_v53, %v3128_v58  ;;  %v3145_v58 = vrot.slane %v14155_v21, 1 }
 0x52c   :  { %4106 = vmatmul.mubr.bf16.gmra.mrb[140].mxu0 %v14432_v22 }
 0x52d   :  { %4113 = vmatprep.mubr.bf16.mxu0 %v14116_v59  ;;  %4343 = vmatpush1.bf16.msra.mxu0 %v12661_v41  ;;  %v3131_v41 = vrot.slane %v14283_v15, 1  ;;  %v3136_v15 = vrot.slane %v14176_v9, 1  ;;  %v14576_v53 = vsel %vm3101_vm6, %v3145_v58, %v3146_v40  ;;  %v12677_v40 = vld [vmem:[%s17561_s7 + $0x1d0] sm:$0xff]   ;;  %v12678_v58 = vld [vmem:[%s17561_s7 + $0x1d8] sm:$0xff]  }
 0x52e   :  { %4344 = vmatprep.subr.bf16.mxu0 %v17567_v0 }
 0x52f   :  { %v14531_v54 = vsel %vm3101_vm6, %v3130_v24, %v3131_v41  ;;  %v3149_v24 = vrot.slane %v14367_v34, 1  ;;  %v12668_v34 = vld [vmem:[%s17561_s7 + $0x188] sm:$0xff]  }
 0x531   :  { %4345 = vmatpush1.bf16.msra.mxu0 %v12662_v11  ;;  %v14540_v11 = vsel %vm3101_vm6, %v3133_v56, %v3134_v61  ;;  %v12669_v61 = vld [vmem:[%s17561_s7 + $0x190] sm:$0xff]   ;;  %v12670_v56 = vld [vmem:[%s17561_s7 + $0x198] sm:$0xff]  }
 0x532   :  { %4346 = vmatprep.subr.bf16.mxu0 %v17567_v0 }
 0x534   :  { %4114 = vmatmul.mubr.bf16.gmra.mrb[144].mxu0 %v14432_v22 }
 0x535   :  { %4121 = vmatprep.mubr.bf16.mxu0 %v14116_v59  ;;  %4347 = vmatpush1.bf16.msra.mxu0 %v12663_v35  ;;  %v3137_v35 = vrot.slane %v14311_v55, 1  ;;  %v3142_v55 = vrot.slane %v14203_v27, 1 }
 0x536   :  { %4348 = vmatprep.subr.bf16.mxu0 %v17567_v0 }
 0x537   :  { %v14549_v62 = vsel %vm3101_vm6, %v3136_v15, %v3137_v35  ;;  %v12671_v15 = vld [vmem:[%s17561_s7 + $0x1a0] sm:$0xff]   ;;  %v12672_v35 = vld [vmem:[%s17561_s7 + $0x1a8] sm:$0xff]  }
 0x539   :  { %4349 = vmatpush1.bf16.msra.mxu0 %v12664_v30  ;;  %v14558_v30 = vsel %vm3101_vm6, %v3139_v7, %v3140_v29  ;;  %v12673_v29 = vld [vmem:[%s17561_s7 + $0x1b0] sm:$0xff]   ;;  %v12674_v7 = vld [vmem:[%s17561_s7 + $0x1b8] sm:$0xff]  }
 0x53a   :  { %4350 = vmatprep.subr.bf16.mxu0 %v17567_v0 }
 0x53c   :  { %4122 = vmatmul.mubr.bf16.gmra.mrb[148].mxu0 %v14445_v47 }
 0x53d   :  { %4129 = vmatprep.mubr.bf16.mxu0 %v14072_v3  ;;  %4351 = vmatpush1.bf16.msra.mxu0 %v12665_v26  ;;  %v3143_v26 = vrot.slane %v14339_v60, 1  ;;  %v3148_v60 = vrot.slane %v14244_v6, 1 }
 0x53e   :  { %4352 = vmatprep.subr.bf16.mxu0 %v17567_v0 }
 0x53f   :  { %v14585_v41 = vsel %vm3101_vm6, %v3148_v60, %v3149_v24  ;;  %v12679_v60 = vld [vmem:[%s17561_s7 + $0x1e0] sm:$0xff]   ;;  %v12680_v24 = vld [vmem:[%s17561_s7 + $0x1e8] sm:$0xff]  }
 0x541   :  { %4353 = vmatpush1.bf16.msra.mxu0 %v12666_v52  ;;  %v14567_v52 = vsel %vm3101_vm6, %v3142_v55, %v3143_v26  ;;  %v12675_v55 = vld [vmem:[%s17561_s7 + $0x1c0] sm:$0xff]   ;;  %v12676_v26 = vld [vmem:[%s17561_s7 + $0x1c8] sm:$0xff]  }
 0x542   :  { %4611 = vmatprep.subr.bf16.mxu0 %v17567_v0 }
 0x544   :  { %4130 = vmatmul.mubr.bf16.gmra.mrb[152].mxu0 %v14445_v47 }
 0x545   :  { %4137 = vmatprep.mubr.bf16.mxu0 %v14072_v3 }
 0x54c   :  { %4138 = vmatmul.mubr.bf16.gmra.mrb[156].mxu0 %v14458_v38 }
 0x54d   :  { %4145 = vmatprep.mubr.bf16.mxu0 %v14133_v18 }
 0x554   :  { %4146 = vmatmul.mubr.bf16.gmra.mrb[160].mxu0 %v14458_v38 }
 0x555   :  { %4153 = vmatprep.mubr.bf16.mxu0 %v14133_v18 }
 0x55c   :  { %4154 = vmatmul.mubr.bf16.gmra.mrb[164].mxu0 %v14471_v28 }
 0x55d   :  { %4161 = vmatprep.mubr.bf16.mxu0 %v14087_v19 }
 0x564   :  { %4162 = vmatmul.mubr.bf16.gmra.mrb[168].mxu0 %v14471_v28 }
 0x565   :  { %4169 = vmatprep.mubr.bf16.mxu0 %v14087_v19 }
 0x56c   :  { %4170 = vmatmul.mubr.bf16.gmra.mrb[172].mxu0 %v14484_v37 }
 0x56d   :  { %4177 = vmatprep.mubr.bf16.mxu0 %v14148_v25 }
 0x574   :  { %4178 = vmatmul.mubr.bf16.gmra.mrb[176].mxu0 %v14484_v37 }
 0x575   :  { %4185 = vmatprep.mubr.bf16.mxu0 %v14148_v25 }
 0x57c   :  { %4186 = vmatmul.mubr.bf16.gmra.mrb[180].mxu0 %v14504_v14 }
 0x57d   :  { %4193 = vmatprep.mubr.bf16.mxu0 %v14105_v20 }
 0x584   :  { %4194 = vmatmul.mubr.bf16.gmra.mrb[184].mxu0 %v13342_v1 }
 0x585   :  { %4201 = vmatprep.mubr.bf16.mxu0 %v14105_v20 }
 0x58c   :  { %4202 = vmatmul.mubr.bf16.gmra.mrb[188].mxu0 %v14522_v39 }
 0x58d   :  { %4209 = vmatprep.mubr.bf16.mxu0 %v14163_v23 }
 0x594   :  { %4210 = vmatmul.mubr.bf16.gmra.mrb[192].mxu0 %v14522_v39 }
 0x595   :  { %4217 = vmatprep.mubr.bf16.mxu0 %v14163_v23 }
 0x59c   :  { %4218 = vmatmul.mubr.bf16.gmra.mrb[196].mxu0 %v14531_v54 }
 0x59d   :  { %4225 = vmatprep.mubr.bf16.mxu0 %v14123_v50 }
 0x5a4   :  { %4226 = vmatmul.mubr.bf16.gmra.mrb[200].mxu0 %v14531_v54 }
 0x5a5   :  { %4233 = vmatprep.mubr.bf16.mxu0 %v14123_v50 }
 0x5ac   :  { %4234 = vmatmul.mubr.bf16.gmra.mrb[204].mxu0 %v14540_v11 }
 0x5ad   :  { %4241 = vmatprep.mubr.bf16.mxu0 %v14176_v9 }
 0x5b4   :  { %4242 = vmatmul.mubr.bf16.gmra.mrb[208].mxu0 %v14540_v11 }
 0x5b5   :  { %4249 = vmatprep.mubr.bf16.mxu0 %v14176_v9 }
 0x5bc   :  { %4250 = vmatmul.mubr.bf16.gmra.mrb[212].mxu0 %v14549_v62 }
 0x5bd   :  { %4257 = vmatprep.mubr.bf16.mxu0 %v14137_v16 }
 0x5c4   :  { %4258 = vmatmul.mubr.bf16.gmra.mrb[216].mxu0 %v14549_v62 }
 0x5c5   :  { %4265 = vmatprep.mubr.bf16.mxu0 %v14137_v16 }
 0x5cc   :  { %4266 = vmatmul.mubr.bf16.gmra.mrb[220].mxu0 %v14558_v30 }
 0x5cd   :  { %4273 = vmatprep.mubr.bf16.mxu0 %v14203_v27 }
 0x5d4   :  { %4274 = vmatmul.mubr.bf16.gmra.mrb[224].mxu0 %v14558_v30 }
 0x5d5   :  { %4281 = vmatprep.mubr.bf16.mxu0 %v14203_v27 }
 0x5dc   :  { %4282 = vmatmul.mubr.bf16.gmra.mrb[228].mxu0 %v14567_v52 }
 0x5dd   :  { %4289 = vmatprep.mubr.bf16.mxu0 %v14155_v21 }
 0x5e4   :  { %4290 = vmatmul.mubr.bf16.gmra.mrb[232].mxu0 %v14567_v52 }
 0x5e5   :  { %4297 = vmatprep.mubr.bf16.mxu0 %v14155_v21 }
 0x5ec   :  { %4298 = vmatmul.mubr.bf16.gmra.mrb[236].mxu0 %v14576_v53 }
 0x5ed   :  { %4305 = vmatprep.mubr.bf16.mxu0 %v14244_v6 }
 0x5f4   :  { %4306 = vmatmul.mubr.bf16.gmra.mrb[240].mxu0 %v14576_v53 }
 0x5f5   :  { %4313 = vmatprep.mubr.bf16.mxu0 %v14244_v6 }
 0x5fc   :  { %4314 = vmatmul.mubr.bf16.gmra.mrb[244].mxu0 %v14585_v41 }
 0x5fd   :  { %4354 = vmatprep.mubr.bf16.mxu0 %v14397_v2 }
 0x604   :  { %4355 = vmatmul.mubr.bf16.vlgmr.msra.gmra.mrb[120].mxu0 %v14082_v8 }
 0x605   :  { %4362 = vmatprep.mubr.bf16.mxu0 %v14397_v2  ;;  %4612 = vmatpush1.bf16.msra.mxu0 %v12667_v4  ;;  %v12681_v4 = vld [vmem:[%s17561_s7 + $0x1f0] sm:$0xff]  }
 0x606   :  { %4613 = vmatprep.subr.bf16.mxu0 %v17567_v0 }
 0x609   :  { %4614 = vmatpush1.bf16.msra.mxu0 %v12668_v34  ;;  %v12682_v34 = vld [vmem:[%s17561_s7 + $0x1f8] sm:$0xff]  }
 0x60a   :  { %4615 = vmatprep.subr.bf16.mxu0 %v17567_v0 }
 0x60c   :  { %4363 = vmatmul.mubr.bf16.gmra.mrb[124].mxu0 %v14082_v8 }
 0x60d   :  { %4370 = vmatprep.mubr.bf16.mxu0 %v14419_v5  ;;  %4616 = vmatpush1.bf16.msra.mxu0 %v12669_v61  ;;  %v12683_v61 = vld [vmem:[%s17561_s7 + $0x200] sm:$0xff]  }
 0x60e   :  { %4617 = vmatprep.subr.bf16.mxu0 %v17567_v0 }
 0x611   :  { %4618 = vmatpush1.bf16.msra.mxu0 %v12670_v56  ;;  %v12684_v56 = vld [vmem:[%s17561_s7 + $0x208] sm:$0xff]  }
 0x612   :  { %4619 = vmatprep.subr.bf16.mxu0 %v17567_v0 }
 0x614   :  { %4371 = vmatmul.mubr.bf16.gmra.mrb[128].mxu0 %v14101_v32 }
 0x615   :  { %4378 = vmatprep.mubr.bf16.mxu0 %v14419_v5  ;;  %4620 = vmatpush1.bf16.msra.mxu0 %v12671_v15  ;;  %v12685_v15 = vld [vmem:[%s17561_s7 + $0x210] sm:$0xff]  }
 0x616   :  { %4621 = vmatprep.subr.bf16.mxu0 %v17567_v0 }
 0x619   :  { %4622 = vmatpush1.bf16.msra.mxu0 %v12672_v35 }
 0x61a   :  { %4623 = vmatprep.subr.bf16.mxu0 %v17567_v0 }
 0x61c   :  { %4379 = vmatmul.mubr.bf16.gmra.mrb[132].mxu0 %v14101_v32 }
 0x61d   :  { %4386 = vmatprep.mubr.bf16.mxu0 %v14432_v22  ;;  %4624 = vmatpush1.bf16.msra.mxu0 %v12673_v29 }
 0x61e   :  { %4625 = vmatprep.subr.bf16.mxu0 %v17567_v0 }
 0x621   :  { %4626 = vmatpush1.bf16.msra.mxu0 %v12674_v7 }
 0x622   :  { %4627 = vmatprep.subr.bf16.mxu0 %v17567_v0 }
 0x624   :  { %4387 = vmatmul.mubr.bf16.gmra.mrb[136].mxu0 %v14131_v13 }
 0x625   :  { %4394 = vmatprep.mubr.bf16.mxu0 %v14432_v22  ;;  %4628 = vmatpush1.bf16.msra.mxu0 %v12675_v55 }
 0x626   :  { %4629 = vmatprep.subr.bf16.mxu0 %v17567_v0 }
 0x629   :  { %4630 = vmatpush1.bf16.msra.mxu0 %v12676_v26 }
 0x62a   :  { %4631 = vmatprep.subr.bf16.mxu0 %v17567_v0 }
 0x62c   :  { %4395 = vmatmul.mubr.bf16.gmra.mrb[140].mxu0 %v14131_v13 }
 0x62d   :  { %4402 = vmatprep.mubr.bf16.mxu0 %v14445_v47  ;;  %4632 = vmatpush1.bf16.msra.mxu0 %v12677_v40 }
 0x62e   :  { %4633 = vmatprep.subr.bf16.mxu0 %v17567_v0 }
 0x631   :  { %4634 = vmatpush1.bf16.msra.mxu0 %v12678_v58 }
 0x632   :  { %4635 = vmatprep.subr.bf16.mxu0 %v17567_v0 }
 0x634   :  { %4403 = vmatmul.mubr.bf16.gmra.mrb[144].mxu0 %v14161_v17 }
 0x635   :  { %4410 = vmatprep.mubr.bf16.mxu0 %v14445_v47  ;;  %4636 = vmatpush1.bf16.msra.mxu0 %v12679_v60 }
 0x636   :  { %4637 = vmatprep.subr.bf16.mxu0 %v17567_v0 }
 0x639   :  { %4638 = vmatpush1.bf16.msra.mxu0 %v12680_v24 }
 0x63a   :  { %4639 = vmatprep.subr.bf16.mxu0 %v17567_v0 }
 0x63c   :  { %4411 = vmatmul.mubr.bf16.gmra.mrb[148].mxu0 %v14161_v17 }
 0x63d   :  { %4418 = vmatprep.mubr.bf16.mxu0 %v14458_v38  ;;  %4640 = vmatpush1.bf16.msra.mxu0 %v12681_v4 }
 0x63e   :  { %4641 = vmatprep.subr.bf16.mxu0 %v17567_v0 }
 0x641   :  { %4642 = vmatpush1.bf16.msra.mxu0 %v12682_v34 }
 0x642   :  { %11333 = vmatprep.subr.bf16.mxu0 %v12683_v61 }
 0x644   :  { %4419 = vmatmul.mubr.bf16.gmra.mrb[152].mxu0 %v14185_v36 }
 0x645   :  { %4426 = vmatprep.mubr.bf16.mxu0 %v14458_v38 }
 0x64c   :  { %4427 = vmatmul.mubr.bf16.gmra.mrb[156].mxu0 %v14185_v36 }
 0x64d   :  { %4434 = vmatprep.mubr.bf16.mxu0 %v14471_v28 }
 0x654   :  { %4435 = vmatmul.mubr.bf16.gmra.mrb[160].mxu0 %v14207_v48 }
 0x655   :  { %4442 = vmatprep.mubr.bf16.mxu0 %v14471_v28 }
 0x65c   :  { %4443 = vmatmul.mubr.bf16.gmra.mrb[164].mxu0 %v14207_v48 }
 0x65d   :  { %4450 = vmatprep.mubr.bf16.mxu0 %v14484_v37 }
 0x664   :  { %4451 = vmatmul.mubr.bf16.gmra.mrb[168].mxu0 %v14225_v63 }
 0x665   :  { %4458 = vmatprep.mubr.bf16.mxu0 %v14484_v37 }
 0x66c   :  { %4459 = vmatmul.mubr.bf16.gmra.mrb[172].mxu0 %v14225_v63 }
 0x66d   :  { %4466 = vmatprep.mubr.bf16.mxu0 %v14504_v14 }
 0x674   :  { %4467 = vmatmul.mubr.bf16.gmra.mrb[176].mxu0 %v14247_v57 }
 0x675   :  { %4474 = vmatprep.mubr.bf16.mxu0 %v14504_v14 }
 0x67c   :  { %4475 = vmatmul.mubr.bf16.gmra.mrb[180].mxu0 %v14247_v57 }
 0x67d   :  { %4482 = vmatprep.mubr.bf16.mxu0 %v14522_v39 }
 0x684   :  { %4483 = vmatmul.mubr.bf16.gmra.mrb[184].mxu0 %v14276_v46 }
 0x685   :  { %4490 = vmatprep.mubr.bf16.mxu0 %v14522_v39 }
 0x68c   :  { %4491 = vmatmul.mubr.bf16.gmra.mrb[188].mxu0 %v14276_v46 }
 0x68d   :  { %4498 = vmatprep.mubr.bf16.mxu0 %v14531_v54 }
 0x694   :  { %4499 = vmatmul.mubr.bf16.gmra.mrb[192].mxu0 %v14291_v45 }
 0x695   :  { %4506 = vmatprep.mubr.bf16.mxu0 %v14531_v54 }
 0x69c   :  { %4507 = vmatmul.mubr.bf16.gmra.mrb[196].mxu0 %v14291_v45 }
 0x69d   :  { %4514 = vmatprep.mubr.bf16.mxu0 %v14540_v11 }
 0x6a4   :  { %4515 = vmatmul.mubr.bf16.gmra.mrb[200].mxu0 %v14306_v42 }
 0x6a5   :  { %4522 = vmatprep.mubr.bf16.mxu0 %v14540_v11 }
 0x6ac   :  { %4523 = vmatmul.mubr.bf16.gmra.mrb[204].mxu0 %v14306_v42 }
 0x6ad   :  { %4530 = vmatprep.mubr.bf16.mxu0 %v14549_v62 }
 0x6b4   :  { %4531 = vmatmul.mubr.bf16.gmra.mrb[208].mxu0 %v14319_v49 }
 0x6b5   :  { %4538 = vmatprep.mubr.bf16.mxu0 %v14549_v62 }
 0x6bc   :  { %4539 = vmatmul.mubr.bf16.gmra.mrb[212].mxu0 %v14319_v49 }
 0x6bd   :  { %4546 = vmatprep.mubr.bf16.mxu0 %v14558_v30 }
 0x6c4   :  { %4547 = vmatmul.mubr.bf16.gmra.mrb[216].mxu0 %v14334_v44 }
 0x6c5   :  { %4554 = vmatprep.mubr.bf16.mxu0 %v14558_v30 }
 0x6cc   :  { %4555 = vmatmul.mubr.bf16.gmra.mrb[220].mxu0 %v14334_v44 }
 0x6cd   :  { %4562 = vmatprep.mubr.bf16.mxu0 %v14567_v52 }
 0x6d4   :  { %4563 = vmatmul.mubr.bf16.gmra.mrb[224].mxu0 %v14347_v12 }
 0x6d5   :  { %4570 = vmatprep.mubr.bf16.mxu0 %v14567_v52 }
 0x6dc   :  { %4571 = vmatmul.mubr.bf16.gmra.mrb[228].mxu0 %v14347_v12 }
 0x6dd   :  { %4578 = vmatprep.mubr.bf16.mxu0 %v14576_v53 }
 0x6e4   :  { %4579 = vmatmul.mubr.bf16.gmra.mrb[232].mxu0 %v14362_v43 }
 0x6e5   :  { %4586 = vmatprep.mubr.bf16.mxu0 %v14576_v53 }
 0x6ec   :  { %4587 = vmatmul.mubr.bf16.gmra.mrb[236].mxu0 %v14362_v43 }
 0x6ed   :  { %4594 = vmatprep.mubr.bf16.mxu0 %v14585_v41 }
 0x6f4   :  { %4595 = vmatmul.mubr.bf16.gmra.mrb[240].mxu0 %v14375_v33 }
 0x6f5   :  { %4602 = vmatprep.mubr.bf16.mxu0 %v14585_v41 }
 0x6fc   :  { %4603 = vmatmul.mubr.bf16.gmra.mrb[244].mxu0 %v14375_v33 }
 0x6fd   :  { %4643 = vmatprep.mubr.bf16.mxu0 %v14082_v8  ;;  %v12687_v8 = vld [vmem:[%s17561_s7 + $0x220] sm:$0xff]  }
 0x704   :  { %4644 = vmatmul.mubr.bf16.vlgmr.msra.gmra.mrb[120].mxu0 %v14070_v31  ;;  %v12686_v31 = vld [vmem:[%s17561_s7 + $0x218] sm:$0xff]  }
 0x705   :  { %4651 = vmatprep.mubr.bf16.mxu0 %v14101_v32  ;;  %11334 = vmatpush3.bf16.msra.mxu0 %v12683_v61 }
 0x706   :  { %11335 = vmatprep.subr.bf16.mxu0 %v12684_v56 }
 0x709   :  { %11336 = vmatpush3.bf16.msra.mxu0 %v12684_v56 }
 0x70a   :  { %11337 = vmatprep.subr.bf16.mxu0 %v12685_v15 }
 0x70c   :  { %4652 = vmatmul.mubr.bf16.gmra.mrb[124].mxu0 %v14084_v51 }
 0x70d   :  { %4659 = vmatprep.mubr.bf16.mxu0 %v14101_v32  ;;  %11338 = vmatpush3.bf16.msra.mxu0 %v12685_v15 }
 0x70e   :  { %11339 = vmatprep.subr.bf16.mxu0 %v12686_v31 }
 0x711   :  { %11340 = vmatpush3.bf16.msra.mxu0 %v12686_v31 }
 0x712   :  { %11341 = vmatprep.subr.bf16.mxu0 %v12687_v8 }
 0x714   :  { %4660 = vmatmul.mubr.bf16.gmra.mrb[128].mxu0 %v14084_v51  ;;  %v12688_v51 = vld [vmem:[%s17561_s7 + $0x228] sm:$0xff]  }
 0x715   :  { %4667 = vmatprep.mubr.bf16.mxu0 %v14131_v13  ;;  %11342 = vmatpush3.bf16.msra.mxu0 %v12687_v8 }
 0x716   :  { %11343 = vmatprep.subr.bf16.mxu0 %v12688_v51 }
 0x719   :  { %11344 = vmatpush3.bf16.msra.mxu0 %v12688_v51 }
 0x71c   :  { %4668 = vmatmul.mubr.bf16.gmra.mrb[132].mxu0 %v14103_v10 }
 0x71d   :  { %4675 = vmatprep.mubr.bf16.mxu0 %v14131_v13 }
 0x724   :  { %4676 = vmatmul.mubr.bf16.gmra.mrb[136].mxu0 %v14103_v10 }
 0x725   :  { %4683 = vmatprep.mubr.bf16.mxu0 %v14161_v17 }
 0x72c   :  { %4684 = vmatmul.mubr.bf16.gmra.mrb[140].mxu0 %v14116_v59 }
 0x72d   :  { %4691 = vmatprep.mubr.bf16.mxu0 %v14161_v17 }
 0x734   :  { %4692 = vmatmul.mubr.bf16.gmra.mrb[144].mxu0 %v14116_v59 }
 0x735   :  { %4699 = vmatprep.mubr.bf16.mxu0 %v14185_v36 }
 0x73c   :  { %4700 = vmatmul.mubr.bf16.gmra.mrb[148].mxu0 %v14072_v3 }
 0x73d   :  { %4707 = vmatprep.mubr.bf16.mxu0 %v14185_v36 }
 0x744   :  { %4708 = vmatmul.mubr.bf16.gmra.mrb[152].mxu0 %v14072_v3  ;;  %v12689_v3 = vld [vmem:[%s17561_s7 + $0x230] sm:$0xff]  }
 0x745   :  { %4715 = vmatprep.mubr.bf16.mxu0 %v14207_v48  ;;  %11345 = vmatprep.subr.bf16.mxu0 %v12689_v3 }
 0x746   :  { %11346 = vmatpush3.bf16.msra.mxu0 %v12689_v3 }
 0x74c   :  { %4716 = vmatmul.mubr.bf16.gmra.mrb[156].mxu0 %v14133_v18 }
 0x74d   :  { %4723 = vmatprep.mubr.bf16.mxu0 %v14207_v48 }
 0x754   :  { %4724 = vmatmul.mubr.bf16.gmra.mrb[160].mxu0 %v14133_v18 }
 0x755   :  { %4731 = vmatprep.mubr.bf16.mxu0 %v14225_v63 }
 0x75c   :  { %4732 = vmatmul.mubr.bf16.gmra.mrb[164].mxu0 %v14087_v19 }
 0x75d   :  { %4739 = vmatprep.mubr.bf16.mxu0 %v14225_v63 }
 0x764   :  { %4740 = vmatmul.mubr.bf16.gmra.mrb[168].mxu0 %v14087_v19  ;;  %v12690_v19 = vld [vmem:[%s17561_s7 + $0x238] sm:$0xff]  }
 0x765   :  { %4747 = vmatprep.mubr.bf16.mxu0 %v14247_v57  ;;  %11347 = vmatprep.subr.bf16.mxu0 %v12690_v19 }
 0x766   :  { %11348 = vmatpush3.bf16.msra.mxu0 %v12690_v19 }
 0x76c   :  { %4748 = vmatmul.mubr.bf16.gmra.mrb[172].mxu0 %v14148_v25 }
 0x76d   :  { %4755 = vmatprep.mubr.bf16.mxu0 %v14247_v57 }
 0x774   :  { %4756 = vmatmul.mubr.bf16.gmra.mrb[176].mxu0 %v14148_v25 }
 0x775   :  { %4763 = vmatprep.mubr.bf16.mxu0 %v13342_v1 }
 0x77c   :  { %4764 = vmatmul.mubr.bf16.gmra.mrb[180].mxu0 %v17567_v0 }
 0x77d   :  { %4771 = vmatprep.mubr.bf16.mxu0 %v14276_v46 }
 0x784   :  { %4772 = vmatmul.mubr.bf16.gmra.mrb[184].mxu0 %v14105_v20 }
 0x785   :  { %4779 = vmatprep.mubr.bf16.mxu0 %v14291_v45 }
 0x78c   :  { %4780 = vmatmul.mubr.bf16.gmra.mrb[188].mxu0 %v14163_v23 }
 0x78d   :  { %4787 = vmatprep.mubr.bf16.mxu0 %v14291_v45 }
 0x794   :  { %4788 = vmatmul.mubr.bf16.gmra.mrb[192].mxu0 %v14163_v23 }
 0x795   :  { %4795 = vmatprep.mubr.bf16.mxu0 %v14306_v42 }
 0x79c   :  { %4796 = vmatmul.mubr.bf16.gmra.mrb[196].mxu0 %v14123_v50 }
 0x79d   :  { %4803 = vmatprep.mubr.bf16.mxu0 %v14306_v42 }
 0x7a4   :  { %4804 = vmatmul.mubr.bf16.gmra.mrb[200].mxu0 %v14123_v50 }
 0x7a5   :  { %4811 = vmatprep.mubr.bf16.mxu0 %v14319_v49 }
 0x7ac   :  { %4812 = vmatmul.mubr.bf16.gmra.mrb[204].mxu0 %v14176_v9 }
 0x7ad   :  { %4819 = vmatprep.mubr.bf16.mxu0 %v14319_v49 }
 0x7b4   :  { %4820 = vmatmul.mubr.bf16.gmra.mrb[208].mxu0 %v14176_v9 }
 0x7b5   :  { %4827 = vmatprep.mubr.bf16.mxu0 %v14334_v44 }
 0x7bc   :  { %4828 = vmatmul.mubr.bf16.gmra.mrb[212].mxu0 %v14137_v16 }
 0x7bd   :  { %4835 = vmatprep.mubr.bf16.mxu0 %v14334_v44 }
 0x7c4   :  { %4836 = vmatmul.mubr.bf16.gmra.mrb[216].mxu0 %v14137_v16 }
 0x7c5   :  { %4843 = vmatprep.mubr.bf16.mxu0 %v14347_v12 }
 0x7cc   :  { %4844 = vmatmul.mubr.bf16.gmra.mrb[220].mxu0 %v14203_v27 }
 0x7cd   :  { %4851 = vmatprep.mubr.bf16.mxu0 %v14347_v12 }
 0x7d4   :  { %4852 = vmatmul.mubr.bf16.gmra.mrb[224].mxu0 %v14203_v27 }
 0x7d5   :  { %4859 = vmatprep.mubr.bf16.mxu0 %v14362_v43 }
 0x7d7   :  { %v14794_v32 = vpop.f32.mrb[120].mxu0 }
 0x7d8   :  { %v4647_v10 = vpop.f32.mrb[121].mxu0 }
 0x7d9   :  { %v14796_v20 = vpop.f32.mrb[122].mxu0 }
 0x7da   :  { %v4650_v59 = vpop.f32.mrb[123].mxu0 }
 0x7dc   :  { %4860 = vmatmul.mubr.bf16.gmra.mrb[228].mxu0 %v14155_v21 }
 0x7dd   :  { %4867 = vmatprep.mubr.bf16.mxu0 %v14362_v43 }
 0x7df   :  { %v14800_v50 = vpop.f32.mrb[124].mxu0 }
 0x7e0   :  { %v4655_v13 = vpop.f32.mrb[125].mxu0 }
 0x7e1   :  { %v14802_v18 = vpop.f32.mrb[126].mxu0 }
 0x7e2   :  { %v4658_v16 = vpop.f32.mrb[127].mxu0 }
 0x7e4   :  { %4868 = vmatmul.mubr.bf16.gmra.mrb[232].mxu0 %v14155_v21 }
 0x7e5   :  { %4875 = vmatprep.mubr.bf16.mxu0 %v14375_v33 }
 0x7e7   :  { %v14806_v25 = vpop.f32.mrb[128].mxu0 }
 0x7e8   :  { %v4663_v17 = vpop.f32.mrb[129].mxu0 }
 0x7e9   :  { %v14808_v23 = vpop.f32.mrb[130].mxu0 }
 0x7ea   :  { %v4666_v9 = vpop.f32.mrb[131].mxu0 }
 0x7ec   :  { %4876 = vmatmul.mubr.bf16.gmra.mrb[236].mxu0 %v14244_v6 }
 0x7ed   :  { %4883 = vmatprep.mubr.bf16.mxu0 %v14375_v33 }
 0x7ef   :  { %v14812_v36 = vpop.f32.mrb[132].mxu0 }
 0x7f0   :  { %v4671_v27 = vpop.f32.mrb[133].mxu0 }
 0x7f1   :  { %v14814_v48 = vpop.f32.mrb[134].mxu0 }
 0x7f2   :  { %v4674_v63 = vpop.f32.mrb[135].mxu0 }
 0x7f4   :  { %4884 = vmatmul.mubr.bf16.gmra.mrb[240].mxu0 %v14244_v6 }
 0x7f5   :  { %4891 = vmatprep.mubr.bf16.mxu0 %v13342_v1 }
 0x7f7   :  { %v14818_v21 = vpop.f32.mrb[136].mxu0 }
 0x7f8   :  { %v4679_v57 = vpop.f32.mrb[137].mxu0 }
 0x7f9   :  { %v14820_v46 = vpop.f32.mrb[138].mxu0 }
 0x7fa   :  { %v4682_v45 = vpop.f32.mrb[139].mxu0 }
 0x7fc   :  { %4892 = vmatmul.mubr.bf16.gmra.mrb[244].mxu0 %v17567_v0 }
 0x7fd   :  { %11349 = vmatprep.mubr.bf16.mxu0 %v14397_v2 }
 0x7ff   :  { %v14824_v42 = vpop.f32.mrb[140].mxu0 }
 0x800   :  { %v4687_v49 = vpop.f32.mrb[141].mxu0 }
 0x801   :  { %v14826_v44 = vpop.f32.mrb[142].mxu0 }
 0x802   :  { %v4690_v12 = vpop.f32.mrb[143].mxu0 }
 0x804   :  { %11350 = vmatmul.mubr.bf16.vlgmr.msra.gmra.mrb[248].mxu0 %v14419_v5 }
 0x805   :  { %11353 = vmatprep.mubr.bf16.mxu0 %v14419_v5 }
 0x807   :  { %v14830_v6 = vpop.f32.mrb[144].mxu0 }
 0x808   :  { %v4695_v43 = vpop.f32.mrb[145].mxu0 }
 0x809   :  { %v14832_v33 = vpop.f32.mrb[146].mxu0 }
 0x80a   :  { %v4698_v35 = vpop.f32.mrb[147].mxu0 }
 0x80c   :  { %11354 = vmatmul.mubr.bf16.gmra.mrb[252].mxu0 %v14432_v22 }
 0x80d   :  { %11357 = vmatprep.mubr.bf16.mxu0 %v14432_v22 }
 0x80f   :  { %v14836_v2 = vpop.f32.mrb[148].mxu0 }
 0x810   :  { %v4703_v29 = vpop.f32.mrb[149].mxu0 }
 0x811   :  { %v14838_v7 = vpop.f32.mrb[150].mxu0 }
 0x812   :  { %v4706_v55 = vpop.f32.mrb[151].mxu0 }
 0x814   :  { %11358 = vmatmul.mubr.bf16.gmra.mrb[0].mxu0 %v14445_v47 }
 0x815   :  { %11361 = vmatprep.mubr.bf16.mxu0 %v14445_v47 }
 0x817   :  { %v14842_v5 = vpop.f32.mrb[152].mxu0 }
 0x818   :  { %v4711_v26 = vpop.f32.mrb[153].mxu0 }
 0x819   :  { %v14844_v40 = vpop.f32.mrb[154].mxu0 }
 0x81a   :  { %v4714_v58 = vpop.f32.mrb[155].mxu0 }
 0x81c   :  { %11362 = vmatmul.mubr.bf16.gmra.mrb[4].mxu0 %v14458_v38 }
 0x81d   :  { %11365 = vmatprep.mubr.bf16.mxu0 %v14458_v38 }
 0x81f   :  { %v14848_v22 = vpop.f32.mrb[156].mxu0 }
 0x820   :  { %v4719_v60 = vpop.f32.mrb[157].mxu0 }
 0x821   :  { %v14850_v24 = vpop.f32.mrb[158].mxu0 }
 0x822   :  { %v4722_v4 = vpop.f32.mrb[159].mxu0 }
 0x824   :  { %11366 = vmatmul.mubr.bf16.gmra.mrb[8].mxu0 %v14471_v28 }
 0x825   :  { %11369 = vmatprep.mubr.bf16.mxu0 %v14471_v28 }
 0x827   :  { %v14854_v47 = vpop.f32.mrb[160].mxu0 }
 0x828   :  { %v4727_v34 = vpop.f32.mrb[161].mxu0 }
 0x829   :  { %v14856_v61 = vpop.f32.mrb[162].mxu0 }
 0x82a   :  { %v4730_v56 = vpop.f32.mrb[163].mxu0 }
 0x82c   :  { %11370 = vmatmul.mubr.bf16.gmra.mrb[12].mxu0 %v14484_v37 }
 0x82d   :  { %11373 = vmatprep.mubr.bf16.mxu0 %v14484_v37 }
 0x82f   :  { %v14860_v38 = vpop.f32.mrb[164].mxu0 }
 0x830   :  { %v4735_v15 = vpop.f32.mrb[165].mxu0 }
 0x831   :  { %v14862_v31 = vpop.f32.mrb[166].mxu0 }
 0x832   :  { %v4738_v8 = vpop.f32.mrb[167].mxu0 }
 0x834   :  { %11374 = vmatmul.mubr.bf16.gmra.mrb[16].mxu0 %v14504_v14 }
 0x835   :  { %11377 = vmatprep.mubr.bf16.mxu0 %v14504_v14 }
 0x837   :  { %v14866_v28 = vpop.f32.mrb[168].mxu0 }
 0x838   :  { %v4743_v51 = vpop.f32.mrb[169].mxu0 }
 0x839   :  { %v14868_v3 = vpop.f32.mrb[170].mxu0 }
 0x83a   :  { %v4746_v19 = vpop.f32.mrb[171].mxu0 }
 0x83c   :  { %11378 = vmatmul.mubr.bf16.gmra.mrb[20].mxu0 %v13342_v1 }
 0x83d   :  { %11381 = vmatprep.mubr.bf16.mxu0 %v14522_v39 }
 0x83f   :  { %v14872_v37 = vpop.f32.mrb[172].mxu0 }
 0x840   :  { %v4751_v10 = vpop.f32.mrb[173].mxu0 }
 0x841   :  { %v14874_v59 = vpop.f32.mrb[174].mxu0 }
 0x842   :  { %v4754_v13 = vpop.f32.mrb[175].mxu0 }
 0x844   :  { %11382 = vmatmul.mubr.bf16.gmra.mrb[24].mxu0 %v14531_v54 }
 0x845   :  { %11385 = vmatprep.mubr.bf16.mxu0 %v14531_v54 }
 0x847   :  { %v14878_v14 = vpop.f32.mrb[176].mxu0 }
 0x848   :  { %v4759_v16 = vpop.f32.mrb[177].mxu0 }
 0x849   :  { %v14880_v17 = vpop.f32.mrb[178].mxu0 }
 0x84a   :  { %v4762_v9 = vpop.f32.mrb[179].mxu0 }
 0x84c   :  { %11386 = vmatmul.mubr.bf16.gmra.mrb[28].mxu0 %v14540_v11 }
 0x84d   :  { %11389 = vmatprep.mubr.bf16.mxu0 %v14540_v11 }
 0x84f   :  { %v14884_v39 = vpop.f32.mrb[180].mxu0 }
 0x850   :  { %v4767_v27 = vpop.f32.mrb[181].mxu0 }
 0x851   :  { %v14886_v63 = vpop.f32.mrb[182].mxu0 }
 0x852   :  { %v4770_v57 = vpop.f32.mrb[183].mxu0 }
 0x854   :  { %11390 = vmatmul.mubr.bf16.gmra.mrb[32].mxu0 %v14549_v62 }
 0x855   :  { %11393 = vmatprep.mubr.bf16.mxu0 %v14549_v62 }
 0x857   :  { %v14890_v54 = vpop.f32.mrb[184].mxu0 }
 0x858   :  { %v4775_v45 = vpop.f32.mrb[185].mxu0 }
 0x859   :  { %v14892_v49 = vpop.f32.mrb[186].mxu0 }
 0x85a   :  { %v4778_v12 = vpop.f32.mrb[187].mxu0 }
 0x85c   :  { %11394 = vmatmul.mubr.bf16.gmra.mrb[36].mxu0 %v14558_v30 }
 0x85d   :  { %11397 = vmatprep.mubr.bf16.mxu0 %v14558_v30 }
 0x85f   :  { %v14896_v11 = vpop.f32.mrb[188].mxu0 }
 0x860   :  { %v4783_v43 = vpop.f32.mrb[189].mxu0 }
 0x861   :  { %v14898_v35 = vpop.f32.mrb[190].mxu0 }
 0x862   :  { %v4786_v29 = vpop.f32.mrb[191].mxu0 }
 0x864   :  { %11398 = vmatmul.mubr.bf16.gmra.mrb[40].mxu0 %v14567_v52 }
 0x865   :  { %11401 = vmatprep.mubr.bf16.mxu0 %v14567_v52 }
 0x867   :  { %v14902_v62 = vpop.f32.mrb[192].mxu0 }
 0x868   :  { %v4791_v55 = vpop.f32.mrb[193].mxu0 }
 0x869   :  { %v14904_v26 = vpop.f32.mrb[194].mxu0 }
 0x86a   :  { %v4794_v58 = vpop.f32.mrb[195].mxu0 }
 0x86c   :  { %11402 = vmatmul.mubr.bf16.gmra.mrb[44].mxu0 %v14576_v53 }
 0x86d   :  { %11405 = vmatprep.mubr.bf16.mxu0 %v14576_v53 }
 0x86f   :  { %v14908_v30 = vpop.f32.mrb[196].mxu0 }
 0x870   :  { %v4799_v60 = vpop.f32.mrb[197].mxu0 }
 0x871   :  { %v14910_v4 = vpop.f32.mrb[198].mxu0 }
 0x872   :  { %v4802_v34 = vpop.f32.mrb[199].mxu0 }
 0x874   :  { %11406 = vmatmul.mubr.bf16.gmra.mrb[48].mxu0 %v14585_v41 }
 0x875   :  { %11409 = vmatprep.mubr.bf16.mxu0 %v14585_v41 }
 0x877   :  { %v14914_v52 = vpop.f32.mrb[200].mxu0 }
 0x878   :  { %v4807_v56 = vpop.f32.mrb[201].mxu0 }
 0x879   :  { %v14916_v15 = vpop.f32.mrb[202].mxu0 }
 0x87a   :  { %v4810_v8 = vpop.f32.mrb[203].mxu0 }
 0x87c   :  { %11410 = vmatmul.mubr.bf16.gmra.mrb[52].mxu0 %v13342_v1 }
 0x87f   :  { %v14919_v51 = vpop.f32.mrb[204].mxu0 }
 0x880   :  { %v4815_v53 = vpop.f32.mrb[205].mxu0 }
 0x881   :  { %v14921_v19 = vpop.f32.mrb[206].mxu0 }
 0x882   :  { %v4818_v10 = vpop.f32.mrb[207].mxu0 }
 0x887   :  { %v14923_v13 = vpop.f32.mrb[208].mxu0 }
 0x888   :  { %v4823_v16 = vpop.f32.mrb[209].mxu0 }
 0x889   :  { %v14925_v9 = vpop.f32.mrb[210].mxu0 }
 0x88a   :  { %v4826_v41 = vpop.f32.mrb[211].mxu0 }
 0x88f   :  { %v14927_v27 = vpop.f32.mrb[212].mxu0 }
 0x890   :  { %v4831_v57 = vpop.f32.mrb[213].mxu0 }
 0x891   :  { %v14929_v45 = vpop.f32.mrb[214].mxu0 }
 0x892   :  { %v4834_v12 = vpop.f32.mrb[215].mxu0 }
 0x897   :  { %v14931_v43 = vpop.f32.mrb[216].mxu0 }
 0x898   :  { %v4839_v29 = vpop.f32.mrb[217].mxu0 }
 0x899   :  { %v14933_v55 = vpop.f32.mrb[218].mxu0 }
 0x89a   :  { %17712 = vst [vmem:[#allocation17_spill] sm:$0xff] %v14933_v55  ;;  %v4842_v58 = vpop.f32.mrb[219].mxu0 }
 0x89f   :  { %v14935_v60 = vpop.f32.mrb[220].mxu0 }
 0x8a0   :  { %v4847_v34 = vpop.f32.mrb[221].mxu0 }
 0x8a1   :  { %v14937_v56 = vpop.f32.mrb[222].mxu0 }
 0x8a2   :  { %17713 = vst [vmem:[#allocation18_spill] sm:$0xff] %v14937_v56  ;;  %v4850_v8 = vpop.f32.mrb[223].mxu0 }
 0x8a7   :  { %v14939_v53 = vpop.f32.mrb[224].mxu0 }
 0x8a8   :  { %17714 = vst [vmem:[#allocation19_spill] sm:$0xff] %v14939_v53  ;;  %v4855_v10 = vpop.f32.mrb[225].mxu0 }
 0x8a9   :  { %v14941_v16 = vpop.f32.mrb[226].mxu0 }
 0x8aa   :  { %17715 = vst [vmem:[#allocation20_spill] sm:$0xff] %v14941_v16  ;;  %v4858_v41 = vpop.f32.mrb[227].mxu0 }
 0x8af   :  { %v14943_v57 = vpop.f32.mrb[228].mxu0 }
 0x8b0   :  { %17716 = vst [vmem:[#allocation21_spill] sm:$0xff] %v14943_v57  ;;  %v4863_v12 = vpop.f32.mrb[229].mxu0 }
 0x8b1   :  { %v14945_v0 = vpop.f32.mrb[230].mxu0 }
 0x8b2   :  { %17717 = vst [vmem:[#allocation22_spill] sm:$0xff] %v14945_v0  ;;  %v4866_v29 = vpop.f32.mrb[231].mxu0 }
 0x8b7   :  { %v14947_v1 = vpop.f32.mrb[232].mxu0 }
 0x8b8   :  { %17718 = vst [vmem:[#allocation23_spill] sm:$0xff] %v14947_v1  ;;  %v4871_v58 = vpop.f32.mrb[233].mxu0 }
 0x8b9   :  { %v14949_v55 = vpop.f32.mrb[234].mxu0 }
 0x8ba   :  { %17719 = vst [vmem:[#allocation24_spill] sm:$0xff] %v14949_v55  ;;  %v4874_v34 = vpop.f32.mrb[235].mxu0 }
 0x8bf   :  { %v14951_v56 = vpop.f32.mrb[236].mxu0 }
 0x8c0   :  { %v4879_v8 = vpop.f32.mrb[237].mxu0 }
 0x8c1   :  { %v14953_v53 = vpop.f32.mrb[238].mxu0 }
 0x8c2   :  { %17720 = vst [vmem:[#allocation25_spill] sm:$0xff] %v14953_v53  ;;  %v4882_v10 = vpop.f32.mrb[239].mxu0 }
 0x8c7   :  { %v14955_v16 = vpop.f32.mrb[240].mxu0 }
 0x8c8   :  { %v4887_v41 = vpop.f32.mrb[241].mxu0 }
 0x8c9   :  { %v14957_v57 = vpop.f32.mrb[242].mxu0 }
 0x8ca   :  { %17721 = vst [vmem:[#allocation26_spill] sm:$0xff] %v14957_v57  ;;  %v4890_v12 = vpop.f32.mrb[243].mxu0 }
 0x8cf   :  { %v14959_v0 = vpop.f32.mrb[244].mxu0 }
 0x8d0   :  { %v4895_v29 = vpop.f32.mrb[245].mxu0 }
 0x8d1   :  { %v14961_v1 = vpop.f32.mrb[246].mxu0 }
 0x8d2   :  { %17722 = vst [vmem:[#allocation27_spill] sm:$0xff] %v14961_v1  ;;  %v4898_v58 = vpop.f32.mrb[247].mxu0 }
 0x8d7   :  { %v11351_v55 = vpop.f32.mrb[248].mxu0 }
 0x8d8   :  { %v14964_v34 = vadd.f32 %v11351_v55, %v14800_v50  ;;  %v4934_v8 = vpop.f32.mrb[249].mxu0 }
 0x8d9   :  { %v14967_v53 = vadd.f32 %v4934_v8, %v14794_v32  ;;  %v11352_v10 = vpop.f32.mrb[250].mxu0 }
 0x8da   :  { %v14970_v41 = vadd.f32 %v11352_v10, %v14802_v18  ;;  %v4937_v57 = vpop.f32.mrb[251].mxu0 }
 0x8db   :  { %v14973_v12 = vadd.f32 %v4937_v57, %v14796_v20 }
 0x8dd   :  { %17723 = vst [vmem:[#allocation28_spill] sm:$0xff] %v14973_v12  ;;  %v5191_v29 = vadd.f32 %v14973_v12, %v14967_v53 }
 0x8df   :  { %v5192_v58 = vadd.f32 %v5191_v29, %v14964_v34  ;;  %v11355_v1 = vpop.f32.mrb[252].mxu0 }
 0x8e0   :  { %v14979_v50 = vadd.f32 %v11355_v1, %v14812_v36  ;;  %v4950_v55 = vpop.f32.mrb[253].mxu0 }
 0x8e1   :  { %v14982_v32 = vadd.f32 %v4950_v55, %v14806_v25  ;;  %v5193_v18 = vadd.f32 %v5192_v58, %v14970_v41  ;;  %v11356_v8 = vpop.f32.mrb[254].mxu0 }
 0x8e2   :  { %v14986_v10 = vadd.f32 %v11356_v8, %v14814_v48  ;;  %v4953_v20 = vpop.f32.mrb[255].mxu0 }
 0x8e3   :  { %v5194_v57 = vadd.f32 %v5193_v18, %v14982_v32  ;;  %v14990_v12 = vadd.f32 %v4953_v20, %v14808_v23 }
 0x8e5   :  { %v5195_v29 = vadd.f32 %v5194_v57, %v14990_v12 }
 0x8e7   :  { %v5196_v1 = vadd.f32 %v5195_v29, %v14979_v50  ;;  %v11359_v36 = vpop.f32.mrb[0].mxu0 }
 0x8e8   :  { %v14995_v25 = vadd.f32 %v11359_v36, %v14824_v42  ;;  %v4966_v55 = vpop.f32.mrb[1].mxu0 }
 0x8e9   :  { %v14998_v58 = vadd.f32 %v4966_v55, %v14818_v21  ;;  %v5197_v48 = vadd.f32 %v5196_v1, %v14986_v10  ;;  %v11360_v8 = vpop.f32.mrb[2].mxu0 }
 0x8ea   :  { %v15002_v18 = vadd.f32 %v11360_v8, %v14826_v44  ;;  %v4969_v23 = vpop.f32.mrb[3].mxu0 }
 0x8eb   :  { %v5198_v20 = vadd.f32 %v5197_v48, %v14998_v58  ;;  %v15006_v57 = vadd.f32 %v4969_v23, %v14820_v46 }
 0x8ed   :  { %v5199_v29 = vadd.f32 %v5198_v20, %v15006_v57 }
 0x8ef   :  { %v5200_v42 = vadd.f32 %v5199_v29, %v14995_v25  ;;  %v11363_v36 = vpop.f32.mrb[4].mxu0 }
 0x8f0   :  { %v15011_v21 = vadd.f32 %v11363_v36, %v14836_v2  ;;  %v4982_v55 = vpop.f32.mrb[5].mxu0 }
 0x8f1   :  { %v15014_v1 = vadd.f32 %v4982_v55, %v14830_v6  ;;  %v5201_v44 = vadd.f32 %v5200_v42, %v15002_v18  ;;  %v11364_v8 = vpop.f32.mrb[6].mxu0 }
 0x8f2   :  { %v15018_v48 = vadd.f32 %v11364_v8, %v14838_v7  ;;  %v4985_v46 = vpop.f32.mrb[7].mxu0 }
 0x8f3   :  { %v5202_v23 = vadd.f32 %v5201_v44, %v15014_v1  ;;  %v15022_v20 = vadd.f32 %v4985_v46, %v14832_v33 }
 0x8f5   :  { %v5203_v29 = vadd.f32 %v5202_v23, %v15022_v20 }
 0x8f7   :  { %v5204_v2 = vadd.f32 %v5203_v29, %v15011_v21  ;;  %v11367_v36 = vpop.f32.mrb[8].mxu0 }
 0x8f8   :  { %v15027_v6 = vadd.f32 %v11367_v36, %v14848_v22  ;;  %v4998_v55 = vpop.f32.mrb[9].mxu0 }
 0x8f9   :  { %v15030_v42 = vadd.f32 %v4998_v55, %v14842_v5  ;;  %v5205_v7 = vadd.f32 %v5204_v2, %v15018_v48  ;;  %v11368_v8 = vpop.f32.mrb[10].mxu0 }
 0x8fa   :  { %v15034_v44 = vadd.f32 %v11368_v8, %v14850_v24  ;;  %v5001_v33 = vpop.f32.mrb[11].mxu0 }
 0x8fb   :  { %v5206_v46 = vadd.f32 %v5205_v7, %v15030_v42  ;;  %v15038_v23 = vadd.f32 %v5001_v33, %v14844_v40 }
 0x8fd   :  { %v5207_v29 = vadd.f32 %v5206_v46, %v15038_v23 }
 0x8ff   :  { %v5208_v22 = vadd.f32 %v5207_v29, %v15027_v6  ;;  %v11371_v36 = vpop.f32.mrb[12].mxu0 }
 0x900   :  { %v15043_v5 = vadd.f32 %v11371_v36, %v14860_v38  ;;  %v5014_v55 = vpop.f32.mrb[13].mxu0 }
 0x901   :  { %v15046_v2 = vadd.f32 %v5014_v55, %v14854_v47  ;;  %v5209_v24 = vadd.f32 %v5208_v22, %v15034_v44  ;;  %v11372_v8 = vpop.f32.mrb[14].mxu0 }
 0x902   :  { %v15050_v7 = vadd.f32 %v11372_v8, %v14862_v31  ;;  %v5017_v40 = vpop.f32.mrb[15].mxu0 }
 0x903   :  { %v5210_v33 = vadd.f32 %v5209_v24, %v15046_v2  ;;  %v15054_v46 = vadd.f32 %v5017_v40, %v14856_v61 }
 0x905   :  { %v5211_v29 = vadd.f32 %v5210_v33, %v15054_v46 }
 0x907   :  { %v5212_v38 = vadd.f32 %v5211_v29, %v15043_v5  ;;  %v11375_v36 = vpop.f32.mrb[16].mxu0 }
 0x908   :  { %v15059_v47 = vadd.f32 %v11375_v36, %v14872_v37  ;;  %v5030_v55 = vpop.f32.mrb[17].mxu0 }
 0x909   :  { %v15062_v22 = vadd.f32 %v5030_v55, %v14866_v28  ;;  %v5213_v31 = vadd.f32 %v5212_v38, %v15050_v7  ;;  %v11376_v8 = vpop.f32.mrb[18].mxu0 }
 0x90a   :  { %v15066_v24 = vadd.f32 %v11376_v8, %v14874_v59  ;;  %v5033_v61 = vpop.f32.mrb[19].mxu0 }
 0x90b   :  { %v5214_v40 = vadd.f32 %v5213_v31, %v15062_v22  ;;  %v15070_v33 = vadd.f32 %v5033_v61, %v14868_v3 }
 0x90c   :  { %17724 = vst [vmem:[#allocation29_spill] sm:$0xff] %v15066_v24 }
 0x90d   :  { %v5215_v29 = vadd.f32 %v5214_v40, %v15070_v33 }
 0x90f   :  { %v5216_v37 = vadd.f32 %v5215_v29, %v15059_v47  ;;  %v11379_v36 = vpop.f32.mrb[20].mxu0 }
 0x910   :  { %v15075_v28 = vadd.f32 %v11379_v36, %v14884_v39  ;;  %v5046_v55 = vpop.f32.mrb[21].mxu0 }
 0x911   :  { %v15078_v38 = vadd.f32 %v5046_v55, %v14878_v14  ;;  %v5217_v59 = vadd.f32 %v5216_v37, %v15066_v24  ;;  %v11380_v8 = vpop.f32.mrb[22].mxu0 }
 0x912   :  { %17725 = vst [vmem:[#allocation30_spill] sm:$0xff] %v15075_v28  ;;  %v15082_v31 = vadd.f32 %v11380_v8, %v14886_v63  ;;  %v5049_v3 = vpop.f32.mrb[23].mxu0 }
 0x913   :  { %17726 = vst [vmem:[#allocation31_spill] sm:$0xff] %v15078_v38  ;;  %v5218_v61 = vadd.f32 %v5217_v59, %v15078_v38  ;;  %v15086_v40 = vadd.f32 %v5049_v3, %v14880_v17 }
 0x914   :  { %17727 = vst [vmem:[#allocation32_spill] sm:$0xff] %v15082_v31 }
 0x915   :  { %17728 = vst [vmem:[#allocation33_spill] sm:$0xff] %v15086_v40  ;;  %v5219_v29 = vadd.f32 %v5218_v61, %v15086_v40  ;;  %v17752_v40 = vld [vmem:[#allocation26_spill] sm:$0xff] }
 0x917   :  { %v5220_v39 = vadd.f32 %v5219_v29, %v15075_v28  ;;  %v11383_v36 = vpop.f32.mrb[24].mxu0 }
 0x918   :  { %v15091_v14 = vadd.f32 %v11383_v36, %v14896_v11  ;;  %v5062_v55 = vpop.f32.mrb[25].mxu0 }
 0x919   :  { %v15094_v37 = vadd.f32 %v5062_v55, %v14890_v54  ;;  %v5221_v63 = vadd.f32 %v5220_v39, %v15082_v31  ;;  %v11384_v8 = vpop.f32.mrb[26].mxu0  ;;  %v17750_v31 = vld [vmem:[#allocation24_spill] sm:$0xff] }
 0x91a   :  { %17729 = vst [vmem:[#allocation34_spill] sm:$0xff] %v15091_v14  ;;  %v15098_v59 = vadd.f32 %v11384_v8, %v14898_v35  ;;  %v5065_v17 = vpop.f32.mrb[27].mxu0 }
 0x91b   :  { %17730 = vst [vmem:[#allocation35_spill] sm:$0xff] %v15094_v37  ;;  %v5222_v3 = vadd.f32 %v5221_v63, %v15094_v37  ;;  %v15102_v61 = vadd.f32 %v5065_v17, %v14892_v49  ;;  %v17749_v37 = vld [vmem:[#allocation25_spill] sm:$0xff] }
 0x91c   :  { %17731 = vst [vmem:[#allocation36_spill] sm:$0xff] %v15098_v59 }
 0x91d   :  { %17732 = vst [vmem:[#allocation37_spill] sm:$0xff] %v15102_v61  ;;  %v5223_v29 = vadd.f32 %v5222_v3, %v15102_v61 }
 0x91f   :  { %v5224_v11 = vadd.f32 %v5223_v29, %v15091_v14  ;;  %v11387_v36 = vpop.f32.mrb[28].mxu0  ;;  %v17747_v14 = vld [vmem:[#allocation20_spill] sm:$0xff] }
 0x920   :  { %v15107_v54 = vadd.f32 %v11387_v36, %v14908_v30  ;;  %v5078_v55 = vpop.f32.mrb[29].mxu0 }
 0x921   :  { %v15110_v39 = vadd.f32 %v5078_v55, %v14902_v62  ;;  %v5225_v35 = vadd.f32 %v5224_v11, %v15098_v59  ;;  %v11388_v8 = vpop.f32.mrb[30].mxu0 }
 0x922   :  { %17733 = vst [vmem:[#allocation38_spill] sm:$0xff] %v15107_v54  ;;  %v15114_v63 = vadd.f32 %v11388_v8, %v14910_v4  ;;  %v5081_v49 = vpop.f32.mrb[31].mxu0 }
 0x923   :  { %17734 = vst [vmem:[#allocation39_spill] sm:$0xff] %v15110_v39  ;;  %v5226_v17 = vadd.f32 %v5225_v35, %v15110_v39  ;;  %v15118_v3 = vadd.f32 %v5081_v49, %v14904_v26 }
 0x924   :  { %17735 = vst [vmem:[#allocation40_spill] sm:$0xff] %v15114_v63 }
 0x925   :  { %17736 = vst [vmem:[#allocation41_spill] sm:$0xff] %v15118_v3  ;;  %v5227_v29 = vadd.f32 %v5226_v17, %v15118_v3  ;;  %v17745_v3 = vld [vmem:[#allocation19_spill] sm:$0xff] }
 0x927   :  { %v5228_v30 = vadd.f32 %v5227_v29, %v15107_v54  ;;  %v11391_v36 = vpop.f32.mrb[32].mxu0 }
 0x928   :  { %v15123_v62 = vadd.f32 %v11391_v36, %v14919_v51  ;;  %v5094_v55 = vpop.f32.mrb[33].mxu0 }
 0x929   :  { %v15126_v11 = vadd.f32 %v5094_v55, %v14914_v52  ;;  %v5229_v4 = vadd.f32 %v5228_v30, %v15114_v63  ;;  %v11392_v8 = vpop.f32.mrb[34].mxu0  ;;  %v17743_v63 = vld [vmem:[#allocation17_spill] sm:$0xff] }
 0x92a   :  { %17737 = vst [vmem:[#allocation42_spill] sm:$0xff] %v15123_v62  ;;  %v15130_v35 = vadd.f32 %v11392_v8, %v14921_v19  ;;  %v5097_v26 = vpop.f32.mrb[35].mxu0 }
 0x92b   :  { %17738 = vst [vmem:[#allocation43_spill] sm:$0xff] %v15126_v11  ;;  %v5230_v49 = vadd.f32 %v5229_v4, %v15126_v11  ;;  %v15134_v17 = vadd.f32 %v5097_v26, %v14916_v15 }
 0x92c   :  { %17739 = vst [vmem:[#allocation44_spill] sm:$0xff] %v15130_v35 }
 0x92d   :  { %17740 = vst [vmem:[#allocation45_spill] sm:$0xff] %v15134_v17  ;;  %v5231_v29 = vadd.f32 %v5230_v49, %v15134_v17 }
 0x92f   :  { %v5232_v51 = vadd.f32 %v5231_v29, %v15123_v62  ;;  %v11395_v36 = vpop.f32.mrb[36].mxu0 }
 0x930   :  { %v15139_v52 = vadd.f32 %v11395_v36, %v14927_v27  ;;  %v5110_v55 = vpop.f32.mrb[37].mxu0 }
 0x931   :  { %v15142_v30 = vadd.f32 %v5110_v55, %v14923_v13  ;;  %v5233_v19 = vadd.f32 %v5232_v51, %v15130_v35  ;;  %v11396_v8 = vpop.f32.mrb[38].mxu0  ;;  %v17742_v35 = vld [vmem:[#allocation18_spill] sm:$0xff] }
 0x932   :  { %v15146_v4 = vadd.f32 %v11396_v8, %v14929_v45  ;;  %v5113_v15 = vpop.f32.mrb[39].mxu0 }
 0x933   :  { %17741 = vst [vmem:[#allocation46_spill] sm:$0xff] %v15142_v30  ;;  %v5234_v26 = vadd.f32 %v5233_v19, %v15142_v30  ;;  %v5114_v49 = vadd.f32 %v5113_v15, %v14925_v9 }
 0x935   :  { %v5235_v29 = vadd.f32 %v5234_v26, %v5114_v49  ;;  %v17744_v26 = vld [vmem:[#allocation21_spill] sm:$0xff] }
 0x937   :  { %v5236_v62 = vadd.f32 %v5235_v29, %v15139_v52  ;;  %v11399_v27 = vpop.f32.mrb[40].mxu0 }
 0x938   :  { %v5135_v36 = vadd.f32 %v11399_v27, %v14935_v60  ;;  %v5126_v17 = vpop.f32.mrb[41].mxu0 }
 0x939   :  { %v5127_v13 = vadd.f32 %v5126_v17, %v14931_v43  ;;  %v5237_v51 = vadd.f32 %v5236_v62, %v15146_v4  ;;  %v11400_v55 = vpop.f32.mrb[42].mxu0  ;;  %v17746_v43 = vld [vmem:[#allocation22_spill] sm:$0xff] }
 0x93a   :  { %v5138_v45 = vadd.f32 %v11400_v55, %v17742_v35  ;;  %v5129_v8 = vpop.f32.mrb[43].mxu0 }
 0x93b   :  { %v5238_v11 = vadd.f32 %v5237_v51, %v5127_v13  ;;  %v5130_v19 = vadd.f32 %v5129_v8, %v17743_v63 }
 0x93d   :  { %v5239_v30 = vadd.f32 %v5238_v11, %v5130_v19 }
 0x93f   :  { %v5240_v9 = vadd.f32 %v5239_v30, %v5135_v36  ;;  %v11403_v15 = vpop.f32.mrb[44].mxu0  ;;  %v17748_v30 = vld [vmem:[#allocation23_spill] sm:$0xff] }
 0x940   :  { %v5151_v29 = vadd.f32 %v11403_v15, %v17744_v26  ;;  %v5142_v54 = vpop.f32.mrb[45].mxu0 }
 0x941   :  { %v5143_v60 = vadd.f32 %v5142_v54, %v17745_v3  ;;  %v5241_v27 = vadd.f32 %v5240_v9, %v5138_v45  ;;  %v11404_v39 = vpop.f32.mrb[46].mxu0 }
 0x942   :  { %v5154_v17 = vadd.f32 %v11404_v39, %v17746_v43  ;;  %v5145_v62 = vpop.f32.mrb[47].mxu0 }
 0x943   :  { %v5242_v59 = vadd.f32 %v5241_v27, %v5143_v60  ;;  %v5146_v35 = vadd.f32 %v5145_v62, %v17747_v14 }
 0x945   :  { %v5243_v55 = vadd.f32 %v5242_v59, %v5146_v35 }
 0x947   :  { %v5244_v51 = vadd.f32 %v5243_v55, %v5151_v29  ;;  %v11407_v61 = vpop.f32.mrb[48].mxu0  ;;  %v17751_v55 = vld [vmem:[#allocation27_spill] sm:$0xff] }
 0x948   :  { %v5167_v63 = vadd.f32 %v11407_v61, %v14951_v56  ;;  %v5158_v11 = vpop.f32.mrb[49].mxu0 }
 0x949   :  { %v5159_v8 = vadd.f32 %v5158_v11, %v17748_v30  ;;  %v5245_v15 = vadd.f32 %v5244_v51, %v5154_v17  ;;  %v11408_v26 = vpop.f32.mrb[50].mxu0 }
 0x94a   :  { %v5170_v54 = vadd.f32 %v11408_v26, %v17749_v37  ;;  %v5161_v3 = vpop.f32.mrb[51].mxu0 }
 0x94b   :  { %v5246_v9 = vadd.f32 %v5245_v15, %v5159_v8  ;;  %v5162_v39 = vadd.f32 %v5161_v3, %v17750_v31 }
 0x94d   :  { %v5247_v43 = vadd.f32 %v5246_v9, %v5162_v39 }
 0x94f   :  { %v5248_v27 = vadd.f32 %v5247_v43, %v5167_v63  ;;  %v11411_v28 = vpop.f32.mrb[52].mxu0 }
 0x950   :  { %v5183_v14 = vadd.f32 %v11411_v28, %v14959_v0  ;;  %v5174_v59 = vpop.f32.mrb[53].mxu0 }
 0x951   :  { %v5175_v62 = vadd.f32 %v5174_v59, %v14955_v16  ;;  %v5249_v56 = vadd.f32 %v5248_v27, %v5170_v54  ;;  %v11412_v61 = vpop.f32.mrb[54].mxu0 }
 0x952   :  { %v5186_v11 = vadd.f32 %v11412_v61, %v17751_v55  ;;  %v5177_v51 = vpop.f32.mrb[55].mxu0 }
 0x953   :  { %v5250_v30 = vadd.f32 %v5249_v56, %v5175_v62  ;;  %v5178_v37 = vadd.f32 %v5177_v51, %v17752_v40 }
 0x955   :  { %v5251_v26 = vadd.f32 %v5250_v30, %v5178_v37 }
 0x957   :  { %v5252_v15 = vadd.f32 %v5251_v26, %v5183_v14 }
 0x959   :  { %v5253_v38 = vadd.f32 %v5252_v15, %v5186_v11 }
 0x95b   :  { %v5254_v31 = vrot.slane %v5253_v38, 4 }
 0x95d   :  { %v5255_v3 = vadd.f32 %v5254_v31, %v5253_v38 }
 0x95f   :  { %v5256_v9 = vrot.slane %v5255_v3, 2 }
 0x961   :  { %v5257_v43 = vadd.f32 %v5256_v9, %v5255_v3 }
 0x963   :  { %v5258_v24 = vrot.slane %v5257_v43, 1 }
 0x965   :  { %v5259_v0 = vadd.f32 %v5258_v24, %v5257_v43 }
 0x967   :  { %v15168_v28 = vmul.f32 0.001953125, %v5259_v0 }
 0x969   :  { %v15171_v16 = vsub.f32 %v5114_v49, %v15168_v28  ;;  %v15175_v27 = vsub.f32 %v15139_v52, %v15168_v28  ;;  %v15179_v40 = vsub.f32 %v15146_v4, %v15168_v28  ;;  %v15182_v59 = vsub.f32 %v5127_v13, %v15168_v28 }
 0x96a   :  { %v15185_v38 = vsub.f32 %v5130_v19, %v15168_v28  ;;  %v15188_v24 = vsub.f32 %v5135_v36, %v15168_v28  ;;  %v15191_v49 = vsub.f32 %v5138_v45, %v15168_v28  ;;  %v15194_v56 = vsub.f32 %v5143_v60, %v15168_v28 }
 0x96b   :  { %v15197_v52 = vsub.f32 %v5146_v35, %v15168_v28  ;;  %v15200_v4 = vsub.f32 %v5151_v29, %v15168_v28  ;;  %v15203_v13 = vsub.f32 %v5154_v17, %v15168_v28  ;;  %v15206_v19 = vsub.f32 %v5159_v8, %v15168_v28 }
 0x96c   :  { %v15209_v36 = vsub.f32 %v5162_v39, %v15168_v28  ;;  %v15212_v45 = vsub.f32 %v5167_v63, %v15168_v28  ;;  %v15215_v60 = vsub.f32 %v5170_v54, %v15168_v28  ;;  %v15218_v35 = vsub.f32 %v5175_v62, %v15168_v28  ;;  %v17758_v63 = vld [vmem:[#allocation28_spill] sm:$0xff] }
 0x96d   :  { %17753 = vst [vmem:[#allocation18_spill] sm:$0xff] %v15206_v19  ;;  %v15221_v29 = vsub.f32 %v5178_v37, %v15168_v28  ;;  %v15224_v17 = vsub.f32 %v5183_v14, %v15168_v28  ;;  %v15227_v8 = vsub.f32 %v5186_v11, %v15168_v28  ;;  %v15231_v39 = vsub.f32 %v14967_v53, %v15168_v28 }
 0x96e   :  { %17754 = vst [vmem:[#allocation17_spill] sm:$0xff] %v15209_v36  ;;  %17755 = vst [vmem:[#allocation21_spill] sm:$0xff] %v15212_v45  ;;  %v15235_v54 = vsub.f32 %v17758_v63, %v15168_v28  ;;  %v15239_v62 = vsub.f32 %v14964_v34, %v15168_v28  ;;  %v15247_v55 = vsub.f32 %v14970_v41, %v15168_v28 }
 0x96f   :  { %17756 = vst [vmem:[#allocation19_spill] sm:$0xff] %v15215_v60  ;;  %17757 = vst [vmem:[#allocation22_spill] sm:$0xff] %v15218_v35  ;;  %v5325_v61 = vmul.f32 %v15231_v39, %v15231_v39  ;;  %v15251_v53 = vsub.f32 %v14982_v32, %v15168_v28  ;;  %v15257_v34 = vsub.f32 %v14990_v12, %v15168_v28 }
 0x970   :  { %v5326_v14 = vmul.f32 %v15235_v54, %v15235_v54  ;;  %v5327_v11 = vmul.f32 %v15239_v62, %v15239_v62  ;;  %v5328_v30 = vmul.f32 %v15247_v55, %v15247_v55  ;;  %v15263_v41 = vsub.f32 %v14979_v50, %v15168_v28 }
 0x971   :  { %v5329_v32 = vmul.f32 %v15251_v53, %v15251_v53  ;;  %v15269_v15 = vsub.f32 %v14986_v10, %v15168_v28  ;;  %v5330_v12 = vmul.f32 %v15257_v34, %v15257_v34  ;;  %v15275_v3 = vsub.f32 %v14998_v58, %v15168_v28 }
 0x972   :  { %v5389_v51 = vadd.f32 %v5326_v14, %v5325_v61  ;;  %v5331_v50 = vmul.f32 %v15263_v41, %v15263_v41  ;;  %v15281_v43 = vsub.f32 %v15006_v57, %v15168_v28  ;;  %v15287_v63 = vsub.f32 %v14995_v25, %v15168_v28 }
 0x973   :  { %v5332_v10 = vmul.f32 %v15269_v15, %v15269_v15  ;;  %v5333_v58 = vmul.f32 %v15275_v3, %v15275_v3  ;;  %v15293_v14 = vsub.f32 %v15002_v18, %v15168_v28 }
 0x974   :  { %v5390_v37 = vadd.f32 %v5389_v51, %v5327_v11  ;;  %v5334_v57 = vmul.f32 %v15281_v43, %v15281_v43  ;;  %v15299_v51 = vsub.f32 %v15014_v1, %v15168_v28  ;;  %v5335_v25 = vmul.f32 %v15287_v63, %v15287_v63 }
 0x975   :  { %v5336_v18 = vmul.f32 %v15293_v14, %v15293_v14 }
 0x976   :  { %v5391_v26 = vadd.f32 %v5390_v37, %v5328_v30  ;;  %v15305_v37 = vsub.f32 %v15022_v20, %v15168_v28  ;;  %v5337_v1 = vmul.f32 %v15299_v51, %v15299_v51 }
 0x978   :  { %v5392_v31 = vadd.f32 %v5391_v26, %v5329_v32  ;;  %v15311_v26 = vsub.f32 %v15011_v21, %v15168_v28  ;;  %v5338_v20 = vmul.f32 %v15305_v37, %v15305_v37 }
 0x97a   :  { %v5393_v9 = vadd.f32 %v5392_v31, %v5330_v12  ;;  %v15317_v31 = vsub.f32 %v15018_v48, %v15168_v28  ;;  %v5339_v21 = vmul.f32 %v15311_v26, %v15311_v26 }
 0x97c   :  { %v5394_v0 = vadd.f32 %v5393_v9, %v5331_v50  ;;  %v15323_v9 = vsub.f32 %v15030_v42, %v15168_v28  ;;  %v5340_v48 = vmul.f32 %v15317_v31, %v15317_v31 }
 0x97e   :  { %v5395_v61 = vadd.f32 %v5394_v0, %v5332_v10  ;;  %v15329_v0 = vsub.f32 %v15038_v23, %v15168_v28  ;;  %v5341_v42 = vmul.f32 %v15323_v9, %v15323_v9 }
 0x980   :  { %v5396_v11 = vadd.f32 %v5395_v61, %v5333_v58  ;;  %v15335_v61 = vsub.f32 %v15027_v6, %v15168_v28  ;;  %v5342_v23 = vmul.f32 %v15329_v0, %v15329_v0 }
 0x982   :  { %v5397_v30 = vadd.f32 %v5396_v11, %v5334_v57  ;;  %v15341_v11 = vsub.f32 %v15034_v44, %v15168_v28  ;;  %v5343_v6 = vmul.f32 %v15335_v61, %v15335_v61 }
 0x984   :  { %v5398_v32 = vadd.f32 %v5397_v30, %v5335_v25  ;;  %v15347_v30 = vsub.f32 %v15046_v2, %v15168_v28  ;;  %v5344_v44 = vmul.f32 %v15341_v11, %v15341_v11 }
 0x986   :  { %v5399_v12 = vadd.f32 %v5398_v32, %v5336_v18  ;;  %v15353_v32 = vsub.f32 %v15054_v46, %v15168_v28  ;;  %v5345_v2 = vmul.f32 %v15347_v30, %v15347_v30 }
 0x988   :  { %v5400_v50 = vadd.f32 %v5399_v12, %v5337_v1  ;;  %v15359_v12 = vsub.f32 %v15043_v5, %v15168_v28  ;;  %v5346_v46 = vmul.f32 %v15353_v32, %v15353_v32 }
 0x98a   :  { %v5401_v10 = vadd.f32 %v5400_v50, %v5338_v20  ;;  %v15365_v50 = vsub.f32 %v15050_v7, %v15168_v28  ;;  %v5347_v5 = vmul.f32 %v15359_v12, %v15359_v12 }
 0x98c   :  { %v5402_v58 = vadd.f32 %v5401_v10, %v5339_v21  ;;  %v15371_v10 = vsub.f32 %v15062_v22, %v15168_v28  ;;  %v5348_v7 = vmul.f32 %v15365_v50, %v15365_v50 }
 0x98e   :  { %v5403_v57 = vadd.f32 %v5402_v58, %v5340_v48  ;;  %v15377_v58 = vsub.f32 %v15070_v33, %v15168_v28  ;;  %v5349_v22 = vmul.f32 %v15371_v10, %v15371_v10 }
 0x990   :  { %v5404_v25 = vadd.f32 %v5403_v57, %v5341_v42  ;;  %v15383_v57 = vsub.f32 %v15059_v47, %v15168_v28  ;;  %v5350_v33 = vmul.f32 %v15377_v58, %v15377_v58 }
 0x992   :  { %v5405_v18 = vadd.f32 %v5404_v25, %v5342_v23  ;;  %v17759_v25 = vld [vmem:[#allocation29_spill] sm:$0xff]  ;;  %v5351_v47 = vmul.f32 %v15383_v57, %v15383_v57 }
 0x994   :  { %v5406_v1 = vadd.f32 %v5405_v18, %v5343_v6  ;;  %v15389_v6 = vsub.f32 %v17759_v25, %v15168_v28 }
 0x996   :  { %v5407_v20 = vadd.f32 %v5406_v1, %v5344_v44  ;;  %v17760_v44 = vld [vmem:[#allocation31_spill] sm:$0xff] }
 0x997   :  { %v15395_v1 = vsub.f32 %v17760_v44, %v15168_v28  ;;  %v17768_v44 = vld [vmem:[#allocation35_spill] sm:$0xff] }
 0x998   :  { %v5408_v21 = vadd.f32 %v5407_v20, %v5345_v2  ;;  %v17762_v20 = vld [vmem:[#allocation33_spill] sm:$0xff] }
 0x999   :  { %17761 = vst [vmem:[#allocation20_spill] sm:$0xff] %v15395_v1 }
 0x99a   :  { %v5409_v48 = vadd.f32 %v5408_v21, %v5346_v46  ;;  %v15401_v46 = vsub.f32 %v17762_v20, %v15168_v28  ;;  %v5352_v21 = vmul.f32 %v15389_v6, %v15389_v6  ;;  %v15419_v20 = vsub.f32 %v17768_v44, %v15168_v28  ;;  %v17774_v44 = vld [vmem:[#allocation36_spill] sm:$0xff] }
 0x99c   :  { %v5410_v42 = vadd.f32 %v5409_v48, %v5347_v5  ;;  %17763 = vst [vmem:[#allocation23_spill] sm:$0xff] %v15401_v46  ;;  %v17764_v48 = vld [vmem:[#allocation30_spill] sm:$0xff]  ;;  %17769 = vst [vmem:[#allocation27_spill] sm:$0xff] %v15419_v20 }
 0x99e   :  { %v5411_v23 = vadd.f32 %v5410_v42, %v5348_v7  ;;  %v15407_v7 = vsub.f32 %v17764_v48, %v15168_v28  ;;  %v5353_v42 = vmul.f32 %v15395_v1, %v15395_v1  ;;  %v17770_v48 = vld [vmem:[#allocation37_spill] sm:$0xff] }
 0x99f   :  { %v15425_v1 = vsub.f32 %v17770_v48, %v15168_v28  ;;  %v17776_v48 = vld [vmem:[#allocation39_spill] sm:$0xff] }
 0x9a0   :  { %v5412_v18 = vadd.f32 %v5411_v23, %v5349_v22  ;;  %17765 = vst [vmem:[#allocation25_spill] sm:$0xff] %v15407_v7  ;;  %v17766_v23 = vld [vmem:[#allocation32_spill] sm:$0xff] }
 0x9a1   :  { %v15413_v25 = vsub.f32 %v17766_v23, %v15168_v28  ;;  %17771 = vst [vmem:[#allocation26_spill] sm:$0xff] %v15425_v1  ;;  %v17772_v23 = vld [vmem:[#allocation34_spill] sm:$0xff] }
 0x9a2   :  { %v5413_v2 = vadd.f32 %v5412_v18, %v5350_v33  ;;  %v5354_v33 = vmul.f32 %v15401_v46, %v15401_v46  ;;  %v15431_v46 = vsub.f32 %v17772_v23, %v15168_v28  ;;  %v17778_v23 = vld [vmem:[#allocation41_spill] sm:$0xff] }
 0x9a3   :  { %17767 = vst [vmem:[#allocation24_spill] sm:$0xff] %v15413_v25 }
 0x9a4   :  { %v5414_v5 = vadd.f32 %v5413_v2, %v5351_v47  ;;  %v5355_v47 = vmul.f32 %v15407_v7, %v15407_v7  ;;  %17773 = vst [vmem:[#allocation28_spill] sm:$0xff] %v15431_v46  ;;  %v15437_v7 = vsub.f32 %v17774_v44, %v15168_v28 }
 0x9a6   :  { %v5415_v22 = vadd.f32 %v5414_v5, %v5352_v21  ;;  %v5356_v21 = vmul.f32 %v15413_v25, %v15413_v25  ;;  %17775 = vst [vmem:[#allocation29_spill] sm:$0xff] %v15437_v7  ;;  %v15443_v25 = vsub.f32 %v17776_v48, %v15168_v28  ;;  %v17783_v48 = vld [vmem:[#allocation40_spill] sm:$0xff] }
 0x9a8   :  { %v5416_v18 = vadd.f32 %v5415_v22, %v5353_v42  ;;  %v5357_v42 = vmul.f32 %v15419_v20, %v15419_v20  ;;  %17777 = vst [vmem:[#allocation31_spill] sm:$0xff] %v15443_v25  ;;  %v15449_v20 = vsub.f32 %v17778_v23, %v15168_v28 }
 0x9aa   :  { %v5417_v2 = vadd.f32 %v5416_v18, %v5354_v33  ;;  %v5358_v33 = vmul.f32 %v15425_v1, %v15425_v1  ;;  %17779 = vst [vmem:[#allocation33_spill] sm:$0xff] %v15449_v20  ;;  %v17788_v1 = vld [vmem:[#allocation42_spill] sm:$0xff] }
 0x9ac   :  { %v5418_v5 = vadd.f32 %v5417_v2, %v5355_v47  ;;  %v5359_v47 = vmul.f32 %v15431_v46, %v15431_v46 }
 0x9ae   :  { %v5419_v22 = vadd.f32 %v5418_v5, %v5356_v21  ;;  %v5360_v21 = vmul.f32 %v15437_v7, %v15437_v7  ;;  %v17785_v7 = vld [vmem:[#allocation43_spill] sm:$0xff] }
 0x9af   :  { %v15474_v46 = vsub.f32 %v17785_v7, %v15168_v28 }
 0x9b0   :  { %v5420_v18 = vadd.f32 %v5419_v22, %v5357_v42  ;;  %v15456_v42 = vld [vmem:[%s17557_s3] sm:$0xff]  }
 0x9b1   :  { %17780 = vst [vmem:[#allocation30_spill] sm:$0xff] %v15456_v42  ;;  %v17781_v22 = vld [vmem:[#allocation38_spill] sm:$0xff]  ;;  %11415 = vmatprep.mubr.msk.bf16.mxu1 %vm5836_vm7, %v15456_v42  ;;  %v5365_v7 = vmul.f32 %v15474_v46, %v15474_v46 }
 0x9b2   :  { %v5421_v2 = vadd.f32 %v5420_v18, %v5358_v33  ;;  %v15460_v44 = vsub.f32 %v17781_v22, %v15168_v28  ;;  %v5361_v33 = vmul.f32 %v15443_v25, %v15443_v25 }
 0x9b4   :  { %v5422_v5 = vadd.f32 %v5421_v2, %v5359_v47  ;;  %17782 = vst [vmem:[#allocation32_spill] sm:$0xff] %v15460_v44  ;;  %v15468_v47 = vsub.f32 %v17783_v48, %v15168_v28  ;;  %v5362_v2 = vmul.f32 %v15449_v20, %v15449_v20  ;;  %v5363_v22 = vmul.f32 %v15460_v44, %v15460_v44 }
 0x9b5   :  { %v15486_v20 = vsub.f32 %v17788_v1, %v15168_v28 }
 0x9b6   :  { %v5423_v18 = vadd.f32 %v5422_v5, %v5360_v21  ;;  %17784 = vst [vmem:[#allocation35_spill] sm:$0xff] %v15468_v47  ;;  %v17786_v21 = vld [vmem:[#allocation45_spill] sm:$0xff]  ;;  %v5364_v48 = vmul.f32 %v15468_v47, %v15468_v47 }
 0x9b7   :  { %v15480_v5 = vsub.f32 %v17786_v21, %v15168_v28  ;;  %v17790_v21 = vld [vmem:[#allocation46_spill] sm:$0xff]  ;;  %v5367_v1 = vmul.f32 %v15486_v20, %v15486_v20 }
 0x9b8   :  { %v5424_v23 = vadd.f32 %v5423_v18, %v5361_v33  ;;  %v17789_v18 = vld [vmem:[#allocation44_spill] sm:$0xff]  ;;  %v15498_v47 = vsub.f32 %v17790_v21, %v15168_v28  ;;  %v5372_v21 = vmul.f32 %v15179_v40, %v15179_v40 }
 0x9b9   :  { %17787 = vst [vmem:[#allocation37_spill] sm:$0xff] %v15480_v5  ;;  %v15492_v44 = vsub.f32 %v17789_v18, %v15168_v28  ;;  %v5371_v28 = vmul.f32 %v15175_v27, %v15175_v27 }
 0x9ba   :  { %v5425_v25 = vadd.f32 %v5424_v23, %v5362_v2  ;;  %v5366_v2 = vmul.f32 %v15480_v5, %v15480_v5  ;;  %v5370_v5 = vmul.f32 %v15171_v16, %v15171_v16 }
 0x9bc   :  { %v5426_v42 = vadd.f32 %v5425_v25, %v5363_v22  ;;  %v5368_v22 = vmul.f32 %v15492_v44, %v15492_v44 }
 0x9be   :  { %v5427_v33 = vadd.f32 %v5426_v42, %v5364_v48  ;;  %v5369_v48 = vmul.f32 %v15498_v47, %v15498_v47 }
 0x9c0   :  { %v5428_v23 = vadd.f32 %v5427_v33, %v5365_v7 }
 0x9c2   :  { %v5429_v25 = vadd.f32 %v5428_v23, %v5366_v2  ;;  %v5373_v23 = vmul.f32 %v15182_v59, %v15182_v59 }
 0x9c4   :  { %v5430_v42 = vadd.f32 %v5429_v25, %v5367_v1  ;;  %v5374_v25 = vmul.f32 %v15185_v38, %v15185_v38 }
 0x9c6   :  { %v5431_v18 = vadd.f32 %v5430_v42, %v5368_v22  ;;  %v5375_v42 = vmul.f32 %v15188_v24, %v15188_v24 }
 0x9c8   :  { %v5432_v7 = vadd.f32 %v5431_v18, %v5369_v48  ;;  %v5376_v18 = vmul.f32 %v15191_v49, %v15191_v49 }
 0x9ca   :  { %v5433_v33 = vadd.f32 %v5432_v7, %v5370_v5  ;;  %v5377_v7 = vmul.f32 %v15194_v56, %v15194_v56 }
 0x9cc   :  { %v5434_v2 = vadd.f32 %v5433_v33, %v5371_v28  ;;  %v5378_v33 = vmul.f32 %v15197_v52, %v15197_v52 }
 0x9ce   :  { %v5435_v1 = vadd.f32 %v5434_v2, %v5372_v21  ;;  %v5379_v2 = vmul.f32 %v15200_v4, %v15200_v4 }
 0x9d0   :  { %v5436_v22 = vadd.f32 %v5435_v1, %v5373_v23  ;;  %v5380_v1 = vmul.f32 %v15203_v13, %v15203_v13 }
 0x9d2   :  { %v5437_v48 = vadd.f32 %v5436_v22, %v5374_v25  ;;  %v5381_v22 = vmul.f32 %v15206_v19, %v15206_v19 }
 0x9d4   :  { %v5438_v5 = vadd.f32 %v5437_v48, %v5375_v42  ;;  %v5382_v48 = vmul.f32 %v15209_v36, %v15209_v36 }
 0x9d6   :  { %v5439_v28 = vadd.f32 %v5438_v5, %v5376_v18  ;;  %v5383_v5 = vmul.f32 %v15212_v45, %v15212_v45 }
 0x9d8   :  { %v5440_v21 = vadd.f32 %v5439_v28, %v5377_v7  ;;  %v5384_v28 = vmul.f32 %v15215_v60, %v15215_v60 }
 0x9da   :  { %v5441_v23 = vadd.f32 %v5440_v21, %v5378_v33  ;;  %v5385_v21 = vmul.f32 %v15218_v35, %v15218_v35 }
 0x9dc   :  { %v5442_v25 = vadd.f32 %v5441_v23, %v5379_v2  ;;  %v5386_v23 = vmul.f32 %v15221_v29, %v15221_v29 }
 0x9de   :  { %v5443_v42 = vadd.f32 %v5442_v25, %v5380_v1  ;;  %v5387_v25 = vmul.f32 %v15224_v17, %v15224_v17 }
 0x9e0   :  { %v5444_v18 = vadd.f32 %v5443_v42, %v5381_v22  ;;  %v5388_v42 = vmul.f32 %v15227_v8, %v15227_v8 }
 0x9e2   :  { %v5445_v7 = vadd.f32 %v5444_v18, %v5382_v48 }
 0x9e4   :  { %v5446_v33 = vadd.f32 %v5445_v7, %v5383_v5 }
 0x9e6   :  { %v5447_v2 = vadd.f32 %v5446_v33, %v5384_v28 }
 0x9e8   :  { %v5448_v1 = vadd.f32 %v5447_v2, %v5385_v21  ;;  %v15546_v21 = vld [vmem:[#allocation6] ss:$0 sm:$0xff] }
 0x9ea   :  { %v5449_v22 = vadd.f32 %v5448_v1, %v5386_v23 }
 0x9ec   :  { %v5450_v48 = vadd.f32 %v5449_v22, %v5387_v25  ;;  %v17800_v22 = vld [vmem:[#allocation20_spill] sm:$0xff] }
 0x9ee   :  { %v5451_v18 = vadd.f32 %v5450_v48, %v5388_v42  ;;  %v17801_v42 = vld [vmem:[#allocation23_spill] sm:$0xff]  ;;  %v17802_v48 = vld [vmem:[#allocation25_spill] sm:$0xff] }
 0x9f0   :  { %v5452_v45 = vrot.slane %v5451_v18, 4 }
 0x9f2   :  { %v5453_v60 = vadd.f32 %v5452_v45, %v5451_v18  ;;  %v17803_v18 = vld [vmem:[#allocation24_spill] sm:$0xff] }
 0x9f4   :  { %v5454_v5 = vrot.slane %v5453_v60, 2 }
 0x9f6   :  { %v5455_v7 = vadd.f32 %v5454_v5, %v5453_v60  ;;  %v17804_v5 = vld [vmem:[#allocation27_spill] sm:$0xff] }
 0x9f8   :  { %v5456_v36 = vrot.slane %v5455_v7, 1 }
 0x9fa   :  { %v5457_v35 = vadd.f32 %v5456_v36, %v5455_v7  ;;  %v17805_v7 = vld [vmem:[#allocation26_spill] sm:$0xff] }
 0x9fc   :  { %v5458_v28 = vmul.f32 0.001953125, %v5457_v35 }
 0x9fe   :  { %v5459_v33 = vadd.f32 0.8, %v5458_v28  ;;  %v17806_v28 = vld [vmem:[#allocation28_spill] sm:$0xff] }
 0xa00   :  { %12767 = vrsqrt.f32 %v5459_v33  ;;  %v17807_v33 = vld [vmem:[#allocation29_spill] sm:$0xff] }
 0xa0a   :  { %v15544_v19 = vpop.eup %12767 }
 0xa0b   :  { %v5522_v2 = vmul.f32 %v15544_v19, %v15221_v29  ;;  %v15555_v45 = vmul.f32 %v15544_v19, %v15231_v39  ;;  %v15559_v36 = vmul.f32 %v15544_v19, %v15235_v54  ;;  %v15563_v60 = vmul.f32 %v15544_v19, %v15239_v62 }
 0xa0c   :  { %v15567_v35 = vmul.f32 %v15544_v19, %v15247_v55  ;;  %v15571_v29 = vmul.f32 %v15544_v19, %v15251_v53  ;;  %v15575_v39 = vmul.f32 %v15544_v19, %v15257_v34  ;;  %v15579_v54 = vmul.f32 %v15544_v19, %v15263_v41 }
 0xa0d   :  { %v15551_v23 = vmul.f32 %v15546_v21, %v5522_v2  ;;  %v15583_v62 = vmul.f32 %v15544_v19, %v15269_v15  ;;  %v15587_v55 = vmul.f32 %v15544_v19, %v15275_v3  ;;  %v15591_v53 = vmul.f32 %v15544_v19, %v15281_v43 }
 0xa0e   :  { %v15595_v34 = vmul.f32 %v15544_v19, %v15287_v63  ;;  %v15599_v41 = vmul.f32 %v15544_v19, %v15293_v14  ;;  %v15603_v15 = vmul.f32 %v15544_v19, %v15299_v51  ;;  %v15607_v3 = vmul.f32 %v15544_v19, %v15305_v37 }
 0xa0f   :  { %17791 = vst [vmem:[#allocation34_spill] sm:$0xff] %v15551_v23  ;;  %v15611_v43 = vmul.f32 %v15544_v19, %v15311_v26  ;;  %v15615_v63 = vmul.f32 %v15544_v19, %v15317_v31  ;;  %v15619_v14 = vmul.f32 %v15544_v19, %v15323_v9  ;;  %v15623_v51 = vmul.f32 %v15544_v19, %v15329_v0  ;;  %v17809_v23 = vld [vmem:[#allocation33_spill] sm:$0xff] }
 0xa10   :  { %17792 = vst [vmem:[#allocation36_spill] sm:$0xff] %v15603_v15  ;;  %17793 = vst [vmem:[#allocation39_spill] sm:$0xff] %v15607_v3  ;;  %v15627_v37 = vmul.f32 %v15544_v19, %v15335_v61  ;;  %v15631_v26 = vmul.f32 %v15544_v19, %v15341_v11  ;;  %v5481_v31 = vmul.f32 %v15544_v19, %v15347_v30  ;;  %v17816_v3 = vld [vmem:[#allocation19_spill] sm:$0xff]  ;;  %v17817_v15 = vld [vmem:[#allocation22_spill] sm:$0xff] }
 0xa11   :  { %17794 = vst [vmem:[#allocation41_spill] sm:$0xff] %v15611_v43  ;;  %17795 = vst [vmem:[#allocation38_spill] sm:$0xff] %v15615_v63  ;;  %v5482_v1 = vmul.f32 %v15544_v19, %v15353_v32  ;;  %v5483_v9 = vmul.f32 %v15544_v19, %v15359_v12  ;;  %v5484_v0 = vmul.f32 %v15544_v19, %v15365_v50  ;;  %v17814_v63 = vld [vmem:[#allocation17_spill] sm:$0xff] }
 0xa12   :  { %17796 = vst [vmem:[#allocation40_spill] sm:$0xff] %v15619_v14  ;;  %17797 = vst [vmem:[#allocation43_spill] sm:$0xff] %v15623_v51  ;;  %v5485_v61 = vmul.f32 %v15544_v19, %v15371_v10  ;;  %v5486_v25 = vmul.f32 %v15544_v19, %v15377_v58  ;;  %v5487_v11 = vmul.f32 %v15544_v19, %v15383_v57  ;;  %v17812_v51 = vld [vmem:[#allocation37_spill] sm:$0xff]  ;;  %v17813_v14 = vld [vmem:[#allocation18_spill] sm:$0xff] }
 0xa13   :  { %17798 = vst [vmem:[#allocation45_spill] sm:$0xff] %v15627_v37  ;;  %17799 = vst [vmem:[#allocation42_spill] sm:$0xff] %v15631_v26  ;;  %v5488_v30 = vmul.f32 %v15544_v19, %v15389_v6  ;;  %v5489_v32 = vmul.f32 %v15544_v19, %v17800_v22  ;;  %v5490_v12 = vmul.f32 %v15544_v19, %v17801_v42  ;;  %v17808_v22 = vld [vmem:[#allocation31_spill] sm:$0xff]  ;;  %v17810_v26 = vld [vmem:[#allocation32_spill] sm:$0xff] }
 0xa14   :  { %v5491_v50 = vmul.f32 %v15544_v19, %v17802_v48  ;;  %v5492_v10 = vmul.f32 %v15544_v19, %v17803_v18  ;;  %v5493_v58 = vmul.f32 %v15544_v19, %v17804_v5  ;;  %v5494_v57 = vmul.f32 %v15544_v19, %v17805_v7  ;;  %v17811_v37 = vld [vmem:[#allocation35_spill] sm:$0xff]  ;;  %v17815_v43 = vld [vmem:[#allocation21_spill] sm:$0xff] }
 0xa15   :  { %v5495_v6 = vmul.f32 %v15544_v19, %v17806_v28  ;;  %v5496_v2 = vmul.f32 %v15544_v19, %v17807_v33  ;;  %v5497_v42 = vmul.f32 %v15544_v19, %v17808_v22  ;;  %v5498_v48 = vmul.f32 %v15544_v19, %v17809_v23 }
 0xa16   :  { %v5499_v18 = vmul.f32 %v15544_v19, %v17810_v26  ;;  %v5500_v5 = vmul.f32 %v15544_v19, %v17811_v37  ;;  %v5501_v7 = vmul.f32 %v15544_v19, %v15474_v46  ;;  %v5502_v28 = vmul.f32 %v15544_v19, %v17812_v51 }
 0xa17   :  { %v5503_v33 = vmul.f32 %v15544_v19, %v15486_v20  ;;  %v5504_v22 = vmul.f32 %v15544_v19, %v15492_v44  ;;  %v5505_v23 = vmul.f32 %v15544_v19, %v15498_v47  ;;  %v5506_v26 = vmul.f32 %v15544_v19, %v15171_v16 }
 0xa18   :  { %v5507_v37 = vmul.f32 %v15544_v19, %v15175_v27  ;;  %v5508_v46 = vmul.f32 %v15544_v19, %v15179_v40  ;;  %v5509_v51 = vmul.f32 %v15544_v19, %v15182_v59  ;;  %v5510_v20 = vmul.f32 %v15544_v19, %v15185_v38 }
 0xa19   :  { %v5511_v44 = vmul.f32 %v15544_v19, %v15188_v24  ;;  %v5512_v47 = vmul.f32 %v15544_v19, %v15191_v49  ;;  %v5513_v16 = vmul.f32 %v15544_v19, %v15194_v56  ;;  %v5514_v27 = vmul.f32 %v15544_v19, %v15197_v52 }
 0xa1a   :  { %v5515_v40 = vmul.f32 %v15544_v19, %v15200_v4  ;;  %v5516_v59 = vmul.f32 %v15544_v19, %v15203_v13  ;;  %v5517_v38 = vmul.f32 %v15544_v19, %v17813_v14  ;;  %v5518_v24 = vmul.f32 %v15544_v19, %v17814_v63 }
 0xa1b   :  { %v5519_v49 = vmul.f32 %v15544_v19, %v17815_v43  ;;  %v5520_v56 = vmul.f32 %v15544_v19, %v17816_v3  ;;  %v5521_v52 = vmul.f32 %v15544_v19, %v17817_v15  ;;  %v5523_v4 = vmul.f32 %v15544_v19, %v15224_v17 }
 0xa1c   :  { %v5524_v13 = vmul.f32 %v15544_v19, %v15227_v8  ;;  %v5531_v14 = vmul.f32 %v15546_v21, %v15555_v45  ;;  %v5532_v63 = vmul.f32 %v15546_v21, %v15559_v36  ;;  %v5533_v43 = vmul.f32 %v15546_v21, %v15563_v60 }
 0xa1d   :  { %v5534_v3 = vmul.f32 %v15546_v21, %v15567_v35  ;;  %v5535_v15 = vmul.f32 %v15546_v21, %v15571_v29  ;;  %v5536_v17 = vmul.f32 %v15546_v21, %v15575_v39  ;;  %v5537_v19 = vmul.f32 %v15546_v21, %v15579_v54 }
 0xa1e   :  { %v5538_v8 = vmul.f32 %v15546_v21, %v15583_v62  ;;  %v5539_v45 = vmul.f32 %v15546_v21, %v15587_v55  ;;  %v5540_v36 = vmul.f32 %v15546_v21, %v15591_v53  ;;  %v15741_v60 = vmul.f32 %v15546_v21, %v15595_v34 }
 0xa1f   :  { %v15745_v35 = vmul.f32 %v15546_v21, %v15599_v41  ;;  %v15748_v29 = vmul.f32 %v15546_v21, %v5481_v31  ;;  %v15751_v39 = vmul.f32 %v15546_v21, %v5482_v1  ;;  %v15754_v54 = vmul.f32 %v15546_v21, %v5483_v9 }
 0xa20   :  { %v15757_v62 = vmul.f32 %v15546_v21, %v5484_v0  ;;  %v15760_v55 = vmul.f32 %v15546_v21, %v5485_v61  ;;  %v15763_v53 = vmul.f32 %v15546_v21, %v5486_v25  ;;  %v15766_v34 = vmul.f32 %v15546_v21, %v5487_v11 }
 0xa21   :  { %v15769_v41 = vmul.f32 %v15546_v21, %v5488_v30  ;;  %v15772_v31 = vmul.f32 %v15546_v21, %v5489_v32  ;;  %v15775_v1 = vmul.f32 %v15546_v21, %v5490_v12  ;;  %v15778_v9 = vmul.f32 %v15546_v21, %v5491_v50 }
 0xa22   :  { %v15781_v0 = vmul.f32 %v15546_v21, %v5492_v10  ;;  %v15784_v61 = vmul.f32 %v15546_v21, %v5493_v58  ;;  %v15787_v25 = vmul.f32 %v15546_v21, %v5494_v57  ;;  %v15790_v11 = vmul.f32 %v15546_v21, %v5495_v6 }
 0xa23   :  { %v15793_v30 = vmul.f32 %v15546_v21, %v5496_v2  ;;  %v15796_v32 = vmul.f32 %v15546_v21, %v5497_v42  ;;  %v15799_v12 = vmul.f32 %v15546_v21, %v5498_v48  ;;  %v15802_v50 = vmul.f32 %v15546_v21, %v5499_v18 }
 0xa24   :  { %v15805_v10 = vmul.f32 %v15546_v21, %v5500_v5  ;;  %v15808_v58 = vmul.f32 %v15546_v21, %v5501_v7  ;;  %v15811_v57 = vmul.f32 %v15546_v21, %v5502_v28  ;;  %v15814_v6 = vmul.f32 %v15546_v21, %v5503_v33 }
 0xa25   :  { %v15817_v2 = vmul.f32 %v15546_v21, %v5504_v22  ;;  %v15820_v42 = vmul.f32 %v15546_v21, %v5505_v23  ;;  %v15823_v48 = vmul.f32 %v15546_v21, %v5506_v26  ;;  %v15826_v18 = vmul.f32 %v15546_v21, %v5507_v37  ;;  %v15840_v22 = vld [vmem:[#allocation7] ss:$0 sm:$0xff] }
 0xa26   :  { %v15829_v5 = vmul.f32 %v15546_v21, %v5508_v46  ;;  %v15832_v7 = vmul.f32 %v15546_v21, %v5509_v51  ;;  %v15835_v28 = vmul.f32 %v15546_v21, %v5510_v20  ;;  %v15838_v33 = vmul.f32 %v15546_v21, %v5511_v44 }
 0xa27   :  { %v15843_v23 = vmul.f32 %v15546_v21, %v5512_v47  ;;  %v15846_v26 = vmul.f32 %v15546_v21, %v5513_v16  ;;  %v15849_v37 = vmul.f32 %v15546_v21, %v5514_v27  ;;  %v15852_v46 = vmul.f32 %v15546_v21, %v5515_v40 }
 0xa28   :  { %17818 = vst [vmem:[#allocation44_spill] sm:$0xff] %v15832_v7  ;;  %17819 = vst [vmem:[#allocation46_spill] sm:$0xff] %v15835_v28  ;;  %v15855_v51 = vmul.f32 %v15546_v21, %v5516_v59  ;;  %v15858_v20 = vmul.f32 %v15546_v21, %v5517_v38  ;;  %v15861_v44 = vmul.f32 %v15546_v21, %v5518_v24 }
 0xa29   :  { %17820 = vst [vmem:[#allocation20_spill] sm:$0xff] %v15838_v33  ;;  %17821 = vst [vmem:[#allocation23_spill] sm:$0xff] %v15843_v23  ;;  %v15864_v47 = vmul.f32 %v15546_v21, %v5519_v49  ;;  %v15867_v16 = vmul.f32 %v15546_v21, %v5520_v56  ;;  %v15870_v27 = vmul.f32 %v15546_v21, %v5521_v52  ;;  %v17837_v33 = vld [vmem:[#allocation40_spill] sm:$0xff] }
 0xa2a   :  { %17822 = vst [vmem:[#allocation25_spill] sm:$0xff] %v15846_v26  ;;  %17823 = vst [vmem:[#allocation24_spill] sm:$0xff] %v15849_v37  ;;  %v15873_v40 = vmul.f32 %v15546_v21, %v5523_v4  ;;  %v15876_v59 = vmul.f32 %v15546_v21, %v5524_v13  ;;  %v5601_v38 = vadd.f32 %v15840_v22, %v5531_v14  ;;  %v17835_v37 = vld [vmem:[#allocation41_spill] sm:$0xff]  ;;  %v17836_v26 = vld [vmem:[#allocation38_spill] sm:$0xff] }
 0xa2b   :  { %17824 = vst [vmem:[#allocation27_spill] sm:$0xff] %v15852_v46  ;;  %17825 = vst [vmem:[#allocation26_spill] sm:$0xff] %v15855_v51  ;;  %v5602_v24 = vadd.f32 %v15840_v22, %v5532_v63  ;;  %v5604_v49 = vadd.f32 %v15840_v22, %v5534_v3  ;;  %v5605_v52 = vadd.f32 %v15840_v22, %v5535_v15  ;;  %v17834_v15 = vld [vmem:[#allocation39_spill] sm:$0xff] }
 0xa2c   :  { %17826 = vst [vmem:[#allocation28_spill] sm:$0xff] %v15858_v20  ;;  %17827 = vst [vmem:[#allocation29_spill] sm:$0xff] %v15861_v44  ;;  %v5603_v44 = vadd.f32 %v15840_v22, %v5533_v43  ;;  %v5607_v4 = vadd.f32 %v15840_v22, %v5537_v19  ;;  %v5608_v14 = vadd.f32 %v15840_v22, %v5538_v8 }
 0xa2d   :  { %17828 = vst [vmem:[#allocation31_spill] sm:$0xff] %v15864_v47  ;;  %17829 = vst [vmem:[#allocation33_spill] sm:$0xff] %v15867_v16  ;;  %v17833_v47 = vld [vmem:[#allocation36_spill] sm:$0xff]  ;;  %v5666_v13 = vmul.f32 0.2, %v5602_v24  ;;  %v5609_v43 = vadd.f32 %v15840_v22, %v5539_v45  ;;  %v5610_v3 = vadd.f32 %v15840_v22, %v5540_v36  ;;  %v5545_v19 = vmul.f32 %v15546_v21, %v17835_v37 }
 0xa2e   :  { %17830 = vst [vmem:[#allocation32_spill] sm:$0xff] %v15870_v27  ;;  %17831 = vst [vmem:[#allocation35_spill] sm:$0xff] %v15873_v40  ;;  %v5543_v56 = vmul.f32 %v15546_v21, %v17833_v47  ;;  %v5606_v27 = vadd.f32 %v15840_v22, %v5536_v17  ;;  %v5665_v40 = vmul.f32 0.2, %v5601_v38  ;;  %v5668_v16 = vmul.f32 0.2, %v5604_v49 }
 0xa2f   :  { %17832 = vst [vmem:[#allocation37_spill] sm:$0xff] %v15876_v59  ;;  %v5667_v59 = vmul.f32 0.2, %v5603_v44  ;;  %v5669_v63 = vmul.f32 0.2, %v5605_v52  ;;  %v5730_v51 = vmax.f32 %v5602_v24, %v5666_v13  ;;  %v5544_v17 = vmul.f32 %v15546_v21, %v17834_v15 }
 0xa30   :  { %v5729_v20 = vmax.f32 %v5601_v38, %v5665_v40  ;;  %v5670_v46 = vmul.f32 0.2, %v5606_v27  ;;  %v5546_v23 = vmul.f32 %v15546_v21, %v17836_v26  ;;  %v5732_v8 = vmax.f32 %v5604_v49, %v5668_v16  ;;  %v15903_v37 = vld [vmem:[%s17557_s3 + $0x8] ss:$0 sps:$4 sm:$0x11]  }
 0xa31   :  { %v5731_v47 = vmax.f32 %v5603_v44, %v5667_v59  ;;  %v5547_v28 = vmul.f32 %v15546_v21, %v17837_v33  ;;  %v5733_v7 = vmax.f32 %v5605_v52, %v5669_v63  ;;  %v5671_v36 = vmul.f32 0.2, %v5607_v4 }
 0xa32   :  { %v5793_v45 = vpack.c.bf16 %v5730_v51, %v5729_v20  ;;  %v5672_v40 = vmul.f32 0.2, %v5608_v14  ;;  %v5673_v38 = vmul.f32 0.2, %v5609_v43  ;;  %v5674_v44 = vmul.f32 0.2, %v5610_v3 }
 0xa33   :  { %v5611_v59 = vadd.f32 %v15840_v22, %v15741_v60  ;;  %v5794_v24 = vpack.c.bf16 %v5732_v8, %v5731_v47  ;;  %v5734_v26 = vmax.f32 %v5606_v27, %v5670_v46  ;;  %v5612_v33 = vadd.f32 %v15840_v22, %v15745_v35  ;;  %v17838_v20 = vld [vmem:[#allocation43_spill] sm:$0xff] }
 0xa34   :  { %11413 = vmatprep.subr.bf16.mxu1 %v5793_v45  ;;  %v5613_v51 = vadd.f32 %v15840_v22, %v5543_v56  ;;  %v5548_v16 = vmul.f32 %v15546_v21, %v17838_v20  ;;  %v5614_v60 = vadd.f32 %v15840_v22, %v5544_v17  ;;  %v5615_v52 = vadd.f32 %v15840_v22, %v5545_v19  ;;  %v17839_v19 = vld [vmem:[#allocation30_spill] sm:$0xff] }
 0xa35   :  { %11414 = vmatpush3.bf16.msra.mxu1 %v5793_v45  ;;  %v5675_v49 = vmul.f32 0.2, %v5611_v59  ;;  %v5735_v13 = vmax.f32 %v5607_v4, %v5671_v36  ;;  %v5676_v63 = vmul.f32 0.2, %v5612_v33  ;;  %v5616_v46 = vadd.f32 %v15840_v22, %v5546_v23  ;;  %v17840_v23 = vld [vmem:[#allocation45_spill] sm:$0xff] }
 0xa36   :  { %11419 = vmatprep.subr.bf16.mxu1 %v5794_v24  ;;  %v5677_v47 = vmul.f32 0.2, %v5613_v51  ;;  %v5736_v27 = vmax.f32 %v5608_v14, %v5672_v40  ;;  %v5737_v15 = vmax.f32 %v5609_v43, %v5673_v38  ;;  %v5738_v35 = vmax.f32 %v5610_v3, %v5674_v44  ;;  %v17841_v40 = vld [vmem:[#allocation42_spill] sm:$0xff] }
 0xa37   :  { %v5678_v8 = vmul.f32 0.2, %v5614_v60  ;;  %v5795_v56 = vpack.c.bf16 %v5734_v26, %v5733_v7  ;;  %v5679_v45 = vmul.f32 0.2, %v5615_v52  ;;  %v5680_v20 = vmul.f32 0.2, %v5616_v46 }
 0xa38   :  { %11416 = vmatmul.mubr.msk.bf16.vlgmr.msra.gmra.mrb[120].mxu1 %vm5836_vm7, %v15903_v37  ;;  %v15916_v17 = vadd.f32 %v15840_v22, %v5547_v28  ;;  %v5739_v4 = vmax.f32 %v5611_v59, %v5675_v49  ;;  %v5740_v36 = vmax.f32 %v5612_v33, %v5676_v63  ;;  %v15922_v14 = vmul.f32 %v15546_v21, %v17840_v23 }
 0xa39   :  { %11420 = vmatpush3.bf16.msra.mxu1 %v5794_v24  ;;  %11421 = vmatprep.mubr.msk.bf16.mxu1 %vm5836_vm7, %v17839_v19  ;;  %v5741_v43 = vmax.f32 %v5613_v51, %v5677_v47  ;;  %v5742_v3 = vmax.f32 %v5614_v60, %v5678_v8  ;;  %v15925_v7 = vadd.f32 %v15840_v22, %v5548_v16 }
 0xa3a   :  { %11425 = vmatprep.subr.bf16.mxu1 %v5795_v56  ;;  %v15929_v28 = vmul.f32 %v15546_v21, %v17841_v40  ;;  %v5796_v38 = vpack.c.bf16 %v5736_v27, %v5735_v13  ;;  %v15931_v44 = vpack.c.bf16 %v5738_v35, %v5737_v15  ;;  %v5621_v59 = vadd.f32 %v15840_v22, %v15748_v29 }
 0xa3b   :  { %v5743_v24 = vmax.f32 %v5615_v52, %v5679_v45  ;;  %v5744_v26 = vmax.f32 %v5616_v46, %v5680_v20  ;;  %v15936_v33 = vmul.f32 0.2, %v15916_v17  ;;  %v5622_v51 = vadd.f32 %v15840_v22, %v15751_v39 }
 0xa3c   :  { %v15940_v16 = vpack.c.bf16 %v5740_v36, %v5739_v4  ;;  %v5685_v49 = vmul.f32 0.2, %v5621_v59  ;;  %v5623_v21 = vadd.f32 %v15840_v22, %v15754_v54  ;;  %v5624_v60 = vadd.f32 %v15840_v22, %v15757_v62 }
 0xa3d   :  { %v15946_v13 = vpack.c.bf16 %v5742_v3, %v5741_v43  ;;  %v15949_v29 = vmul.f32 0.2, %v15925_v7  ;;  %v5686_v52 = vmul.f32 0.2, %v5622_v51  ;;  %v5625_v63 = vadd.f32 %v15840_v22, %v15760_v55 }
 0xa3e   :  { %v5749_v47 = vmax.f32 %v5621_v59, %v5685_v49  ;;  %v5687_v39 = vmul.f32 0.2, %v5623_v21  ;;  %v5688_v46 = vmul.f32 0.2, %v5624_v60  ;;  %v5626_v27 = vadd.f32 %v15840_v22, %v15763_v53 }
 0xa3f   :  { %v15957_v54 = vpack.c.bf16 %v5744_v26, %v5743_v24  ;;  %v5750_v62 = vmax.f32 %v5622_v51, %v5686_v52  ;;  %v5689_v15 = vmul.f32 0.2, %v5625_v63  ;;  %v5627_v35 = vadd.f32 %v15840_v22, %v15766_v34 }
 0xa40   :  { %11422 = vmatmul.mubr.msk.bf16.vlgmr.msra.gmra.mrb[124].mxu1 %vm5836_vm7, %v15903_v37  ;;  %v5751_v55 = vmax.f32 %v5623_v21, %v5687_v39  ;;  %v5752_v8 = vmax.f32 %v5624_v60, %v5688_v46  ;;  %v5690_v45 = vmul.f32 0.2, %v5626_v27  ;;  %v5628_v53 = vadd.f32 %v15840_v22, %v15769_v41 }
 0xa41   :  { %11426 = vmatpush3.bf16.msra.mxu1 %v5795_v56  ;;  %11427 = vmatprep.mubr.msk.bf16.mxu1 %vm5836_vm7, %v17839_v19  ;;  %v15965_v20 = vpack.c.bf16 %v5750_v62, %v5749_v47  ;;  %v5753_v4 = vmax.f32 %v5625_v63, %v5689_v15  ;;  %v5691_v36 = vmul.f32 0.2, %v5627_v35  ;;  %v5629_v23 = vadd.f32 %v15840_v22, %v15772_v31 }
 0xa42   :  { %11431 = vmatprep.subr.bf16.mxu1 %v5796_v38  ;;  %v15969_v43 = vpack.c.bf16 %v5752_v8, %v5751_v55  ;;  %v5754_v34 = vmax.f32 %v5626_v27, %v5690_v45  ;;  %v5692_v56 = vmul.f32 0.2, %v5628_v53  ;;  %v5630_v3 = vadd.f32 %v15840_v22, %v15775_v1 }
 0xa43   :  { %v5755_v40 = vmax.f32 %v5627_v35, %v5691_v36  ;;  %v5693_v59 = vmul.f32 0.2, %v5629_v23  ;;  %v5631_v41 = vadd.f32 %v15840_v22, %v15778_v9  ;;  %v5632_v24 = vadd.f32 %v15840_v22, %v15781_v0 }
 0xa44   :  { %v15977_v26 = vpack.c.bf16 %v5754_v34, %v5753_v4  ;;  %v5756_v51 = vmax.f32 %v5628_v53, %v5692_v56  ;;  %v5694_v49 = vmul.f32 0.2, %v5630_v3  ;;  %v5633_v31 = vadd.f32 %v15840_v22, %v15784_v61 }
 0xa45   :  { %v5757_v21 = vmax.f32 %v5629_v23, %v5693_v59  ;;  %v5695_v60 = vmul.f32 0.2, %v5631_v41  ;;  %v5696_v52 = vmul.f32 0.2, %v5632_v24  ;;  %v5634_v1 = vadd.f32 %v15840_v22, %v15787_v25 }
 0xa46   :  { %v15983_v63 = vpack.c.bf16 %v5756_v51, %v5755_v40  ;;  %v5758_v47 = vmax.f32 %v5630_v3, %v5694_v49  ;;  %v5697_v9 = vmul.f32 0.2, %v5633_v31  ;;  %v5635_v0 = vadd.f32 %v15840_v22, %v15790_v11 }
 0xa47   :  { %v5759_v39 = vmax.f32 %v5631_v41, %v5695_v60  ;;  %v5760_v46 = vmax.f32 %v5632_v24, %v5696_v52  ;;  %v5698_v27 = vmul.f32 0.2, %v5634_v1  ;;  %v5636_v61 = vadd.f32 %v15840_v22, %v15793_v30 }
 0xa48   :  { %11428 = vmatmul.mubr.msk.bf16.vlgmr.msra.gmra.mrb[128].mxu1 %vm5836_vm7, %v15903_v37  ;;  %v15993_v25 = vpack.c.bf16 %v5758_v47, %v5757_v21  ;;  %v5761_v62 = vmax.f32 %v5633_v31, %v5697_v9  ;;  %v5699_v15 = vmul.f32 0.2, %v5635_v0  ;;  %v5637_v11 = vadd.f32 %v15840_v22, %v15796_v32 }
 0xa49   :  { %11432 = vmatpush3.bf16.msra.mxu1 %v5796_v38  ;;  %11433 = vmatprep.mubr.msk.bf16.mxu1 %vm5836_vm7, %v17839_v19  ;;  %v15998_v35 = vpack.c.bf16 %v5760_v46, %v5759_v39  ;;  %v5762_v55 = vmax.f32 %v5634_v1, %v5698_v27  ;;  %v5700_v8 = vmul.f32 0.2, %v5636_v61  ;;  %v5638_v30 = vadd.f32 %v15840_v22, %v15799_v12  ;;  %v17842_v27 = vld [vmem:[#allocation44_spill] sm:$0xff] }
 0xa4a   :  { %11437 = vmatprep.subr.bf16.mxu1 %v15931_v44  ;;  %v5763_v38 = vmax.f32 %v5635_v0, %v5699_v15  ;;  %v5701_v45 = vmul.f32 0.2, %v5637_v11  ;;  %v5639_v53 = vadd.f32 %v15840_v22, %v15802_v50  ;;  %v5640_v4 = vadd.f32 %v15840_v22, %v15805_v10 }
 0xa4b   :  { %v16006_v36 = vpack.c.bf16 %v5762_v55, %v5761_v62  ;;  %v5764_v32 = vmax.f32 %v5636_v61, %v5700_v8  ;;  %v5702_v23 = vmul.f32 0.2, %v5638_v30  ;;  %v5641_v34 = vadd.f32 %v15840_v22, %v15808_v58 }
 0xa4c   :  { %v5765_v56 = vmax.f32 %v5637_v11, %v5701_v45  ;;  %v5703_v3 = vmul.f32 0.2, %v5639_v53  ;;  %v5704_v40 = vmul.f32 0.2, %v5640_v4  ;;  %v5642_v12 = vadd.f32 %v15840_v22, %v15811_v57  ;;  %v17843_v11 = vld [vmem:[#allocation46_spill] sm:$0xff] }
 0xa4d   :  { %v16012_v59 = vpack.c.bf16 %v5764_v32, %v5763_v38  ;;  %v5766_v41 = vmax.f32 %v5638_v30, %v5702_v23  ;;  %v5705_v50 = vmul.f32 0.2, %v5641_v34  ;;  %v5643_v10 = vadd.f32 %v15840_v22, %v15814_v6  ;;  %v17844_v38 = vld [vmem:[#allocation20_spill] sm:$0xff]  ;;  %v17845_v32 = vld [vmem:[#allocation23_spill] sm:$0xff] }
 0xa4e   :  { %v5767_v24 = vmax.f32 %v5639_v53, %v5703_v3  ;;  %v5768_v51 = vmax.f32 %v5640_v4, %v5704_v40  ;;  %v5706_v49 = vmul.f32 0.2, %v5642_v12  ;;  %v5644_v31 = vadd.f32 %v15840_v22, %v15817_v2  ;;  %v17846_v40 = vld [vmem:[#allocation25_spill] sm:$0xff] }
 0xa4f   :  { %v16020_v58 = vpack.c.bf16 %v5766_v41, %v5765_v56  ;;  %v5769_v21 = vmax.f32 %v5641_v34, %v5705_v50  ;;  %v5707_v57 = vmul.f32 0.2, %v5643_v10  ;;  %v5645_v60 = vadd.f32 %v15840_v22, %v15820_v42 }
 0xa50   :  { %11434 = vmatmul.mubr.msk.bf16.vlgmr.msra.gmra.mrb[132].mxu1 %vm5836_vm7, %v15903_v37  ;;  %v16027_v6 = vpack.c.bf16 %v5768_v51, %v5767_v24  ;;  %v5770_v52 = vmax.f32 %v5642_v12, %v5706_v49  ;;  %v5708_v1 = vmul.f32 0.2, %v5644_v31  ;;  %v5646_v2 = vadd.f32 %v15840_v22, %v15823_v48  ;;  %v17847_v24 = vld [vmem:[#allocation24_spill] sm:$0xff] }
 0xa51   :  { %11438 = vmatpush3.bf16.msra.mxu1 %v15931_v44  ;;  %11439 = vmatprep.mubr.msk.bf16.mxu1 %vm5836_vm7, %v17839_v19  ;;  %v5771_v47 = vmax.f32 %v5643_v10, %v5707_v57  ;;  %v5709_v9 = vmul.f32 0.2, %v5645_v60  ;;  %v5647_v0 = vadd.f32 %v15840_v22, %v15826_v18  ;;  %v5648_v42 = vadd.f32 %v15840_v22, %v15829_v5 }
 0xa52   :  { %11443 = vmatprep.subr.bf16.mxu1 %v15940_v16  ;;  %v16036_v44 = vpack.c.bf16 %v5770_v52, %v5769_v21  ;;  %v5772_v39 = vmax.f32 %v5644_v31, %v5708_v1  ;;  %v5710_v46 = vmul.f32 0.2, %v5646_v2  ;;  %v5649_v61 = vadd.f32 %v15840_v22, %v17842_v27  ;;  %v17848_v21 = vld [vmem:[#allocation27_spill] sm:$0xff] }
 0xa53   :  { %v5773_v62 = vmax.f32 %v5645_v60, %v5709_v9  ;;  %v5711_v15 = vmul.f32 0.2, %v5647_v0  ;;  %v5712_v48 = vmul.f32 0.2, %v5648_v42  ;;  %v5650_v55 = vadd.f32 %v15840_v22, %v17843_v11  ;;  %v17849_v60 = vld [vmem:[#allocation26_spill] sm:$0xff]  ;;  %v17850_v9 = vld [vmem:[#allocation28_spill] sm:$0xff] }
 0xa54   :  { %v16042_v8 = vpack.c.bf16 %v5772_v39, %v5771_v47  ;;  %v5774_v30 = vmax.f32 %v5646_v2, %v5710_v46  ;;  %v5713_v18 = vmul.f32 0.2, %v5649_v61  ;;  %v5651_v5 = vadd.f32 %v15840_v22, %v17844_v38  ;;  %v17851_v46 = vld [vmem:[#allocation29_spill] sm:$0xff] }
 0xa55   :  { %v5775_v45 = vmax.f32 %v5647_v0, %v5711_v15  ;;  %v5776_v53 = vmax.f32 %v5648_v42, %v5712_v48  ;;  %v5714_v4 = vmul.f32 0.2, %v5650_v55  ;;  %v5652_v23 = vadd.f32 %v15840_v22, %v17845_v32  ;;  %v17852_v48 = vld [vmem:[#allocation31_spill] sm:$0xff]  ;;  %v17853_v38 = vld [vmem:[#allocation33_spill] sm:$0xff]  ;;  %v17854_v32 = vld [vmem:[#allocation32_spill] sm:$0xff] }
 0xa56   :  { %v16048_v34 = vpack.c.bf16 %v5774_v30, %v5773_v62  ;;  %v5777_v56 = vmax.f32 %v5649_v61, %v5713_v18  ;;  %v5715_v3 = vmul.f32 0.2, %v5651_v5  ;;  %v5653_v12 = vadd.f32 %v15840_v22, %v17846_v40 }
 0xa57   :  { %v16054_v41 = vpack.c.bf16 %v5776_v53, %v5775_v45  ;;  %v5778_v50 = vmax.f32 %v5650_v55, %v5714_v4  ;;  %v5716_v10 = vmul.f32 0.2, %v5652_v23  ;;  %v5654_v51 = vadd.f32 %v15840_v22, %v17847_v24 }
 0xa58   :  { %11440 = vmatmul.mubr.msk.bf16.vlgmr.msra.gmra.mrb[136].mxu1 %vm5836_vm7, %v15903_v37  ;;  %v5779_v49 = vmax.f32 %v5651_v5, %v5715_v3  ;;  %v5717_v31 = vmul.f32 0.2, %v5653_v12  ;;  %v5655_v57 = vadd.f32 %v15840_v22, %v17848_v21  ;;  %v5656_v52 = vadd.f32 %v15840_v22, %v17849_v60 }
 0xa59   :  { %11444 = vmatpush3.bf16.msra.mxu1 %v15940_v16  ;;  %11445 = vmatprep.mubr.msk.bf16.mxu1 %vm5836_vm7, %v17839_v19  ;;  %v16066_v1 = vpack.c.bf16 %v5778_v50, %v5777_v56  ;;  %v5780_v2 = vmax.f32 %v5652_v23, %v5716_v10  ;;  %v5718_v47 = vmul.f32 0.2, %v5654_v51  ;;  %v5657_v16 = vadd.f32 %v15840_v22, %v17850_v9 }
 0xa5a   :  { %11449 = vmatprep.subr.bf16.mxu1 %v15946_v13  ;;  %v5781_v0 = vmax.f32 %v5653_v12, %v5717_v31  ;;  %v5719_v42 = vmul.f32 0.2, %v5655_v57  ;;  %v5720_v39 = vmul.f32 0.2, %v5656_v52  ;;  %v5658_v27 = vadd.f32 %v15840_v22, %v17851_v46  ;;  %v17855_v12 = vld [vmem:[#allocation34_spill] sm:$0xff]  ;;  %v17857_v31 = vld [vmem:[#allocation37_spill] sm:$0xff] }
 0xa5b   :  { %v16072_v61 = vpack.c.bf16 %v5780_v2, %v5779_v49  ;;  %v5782_v62 = vmax.f32 %v5654_v51, %v5718_v47  ;;  %v5721_v15 = vmul.f32 0.2, %v5657_v16  ;;  %v5659_v11 = vadd.f32 %v15840_v22, %v17852_v48  ;;  %v17856_v51 = vld [vmem:[#allocation35_spill] sm:$0xff] }
 0xa5c   :  { %v5783_v55 = vmax.f32 %v5655_v57, %v5719_v42  ;;  %v5784_v30 = vmax.f32 %v5656_v52, %v5720_v39  ;;  %v5722_v18 = vmul.f32 0.2, %v5658_v27  ;;  %v5660_v5 = vadd.f32 %v15840_v22, %v17853_v38 }
 0xa5d   :  { %v16078_v45 = vpack.c.bf16 %v5782_v62, %v5781_v0  ;;  %v5785_v53 = vmax.f32 %v5657_v16, %v5721_v15  ;;  %v5723_v4 = vmul.f32 0.2, %v5659_v11  ;;  %v5661_v23 = vadd.f32 %v15840_v22, %v17854_v32 }
 0xa5e   :  { %v16082_v56 = vpack.c.bf16 %v5784_v30, %v5783_v55  ;;  %v5786_v3 = vmax.f32 %v5658_v27, %v5722_v18  ;;  %v5724_v40 = vmul.f32 0.2, %v5660_v5  ;;  %v5662_v50 = vadd.f32 %v15840_v22, %v17855_v12 }
 0xa5f   :  { %v5787_v10 = vmax.f32 %v5659_v11, %v5723_v4  ;;  %v5725_v24 = vmul.f32 0.2, %v5661_v23  ;;  %v5663_v49 = vadd.f32 %v15840_v22, %v17856_v51  ;;  %v5664_v21 = vadd.f32 %v15840_v22, %v17857_v31 }
 0xa60   :  { %11446 = vmatmul.mubr.msk.bf16.vlgmr.msra.gmra.mrb[140].mxu1 %vm5836_vm7, %v15903_v37  ;;  %v16095_v57 = vpack.c.bf16 %v5786_v3, %v5785_v53  ;;  %v5788_v60 = vmax.f32 %v5660_v5, %v5724_v40  ;;  %v5726_v52 = vmul.f32 0.2, %v5662_v50  ;;  %v5619_v16 = vadd.f32 %v15840_v22, %v15922_v14 }
 0xa61   :  { %11450 = vmatpush3.bf16.msra.mxu1 %v15946_v13  ;;  %11451 = vmatprep.mubr.msk.bf16.mxu1 %vm5836_vm7, %v17839_v19  ;;  %v5789_v2 = vmax.f32 %v5661_v23, %v5725_v24  ;;  %v5727_v47 = vmul.f32 0.2, %v5663_v49  ;;  %v5728_v9 = vmul.f32 0.2, %v5664_v21  ;;  %v5620_v0 = vadd.f32 %v15840_v22, %v15929_v28 }
 0xa62   :  { %11455 = vmatprep.subr.bf16.mxu1 %v15957_v54  ;;  %v16102_v42 = vpack.c.bf16 %v5788_v60, %v5787_v10  ;;  %v5790_v13 = vmax.f32 %v5662_v50, %v5726_v52  ;;  %v5745_v39 = vmax.f32 %v15916_v17, %v15936_v33  ;;  %v5746_v46 = vmax.f32 %v15925_v7, %v15949_v29  ;;  %v12696_v29 = vld [vmem:[#allocation9 + $0x200] sm:$0xff]  }
 0xa63   :  { %v5791_v27 = vmax.f32 %v5663_v49, %v5727_v47  ;;  %v5792_v62 = vmax.f32 %v5664_v21, %v5728_v9  ;;  %v5683_v22 = vmul.f32 0.2, %v5619_v16  ;;  %v5684_v28 = vmul.f32 0.2, %v5620_v0  ;;  %11605 = vmatprep.subr.bf16.mxu0 %v12696_v29 }
 0xa64   :  { %v16108_v15 = vpack.c.bf16 %v5790_v13, %v5789_v2  ;;  %v5801_v14 = vpack.c.bf16 %v5746_v46, %v5745_v39  ;;  %11606 = vmatpush3.bf16.msra.mxu0 %v12696_v29  ;;  %v17858_v21 = vmov 0   ;;  %v12693_v2 = vld [vmem:[#allocation9] sm:$0xff]  }
 0xa65   :  { %v16110_v48 = vpack.c.bf16 %v5792_v62, %v5791_v27  ;;  %v5747_v17 = vmax.f32 %v5619_v16, %v5683_v22  ;;  %v5748_v7 = vmax.f32 %v5620_v0, %v5684_v28  ;;  %v17859_v46 = vld [vmem:[#allocation16_spill] sm:$0xff] }
 0xa67   :  { %v5802_v33 = vpack.c.bf16 %v5748_v7, %v5747_v17  ;;  %v12697_v17 = vld [vmem:[#allocation9 + $0x18] sm:$0xff]  }
 0xa68   :  { %11452 = vmatmul.mubr.msk.bf16.vlgmr.msra.gmra.mrb[144].mxu1 %vm5836_vm7, %v15903_v37 }
 0xa69   :  { %11456 = vmatpush3.bf16.msra.mxu1 %v15957_v54  ;;  %11457 = vmatprep.mubr.msk.bf16.mxu1 %vm5836_vm7, %v17839_v19  ;;  %v12698_v54 = vld [vmem:[#allocation9 + $0x208] sm:$0xff]  }
 0xa6a   :  { %11461 = vmatprep.subr.bf16.mxu1 %v5801_v14  ;;  %11607 = vmatprep.subr.bf16.mxu0 %v12698_v54 }
 0xa6b   :  { %11608 = vmatpush3.bf16.msra.mxu0 %v12698_v54 }
 0xa70   :  { %11458 = vmatmul.mubr.msk.bf16.vlgmr.msra.gmra.mrb[148].mxu1 %vm5836_vm7, %v15903_v37 }
 0xa71   :  { %11462 = vmatpush3.bf16.msra.mxu1 %v5801_v14  ;;  %11463 = vmatprep.mubr.msk.bf16.mxu1 %vm5836_vm7, %v17839_v19 }
 0xa72   :  { %11467 = vmatprep.subr.bf16.mxu1 %v5802_v33 }
 0xa78   :  { %11464 = vmatmul.mubr.msk.bf16.vlgmr.msra.gmra.mrb[152].mxu1 %vm5836_vm7, %v15903_v37 }
 0xa79   :  { %11468 = vmatpush3.bf16.msra.mxu1 %v5802_v33  ;;  %11469 = vmatprep.mubr.msk.bf16.mxu1 %vm5836_vm7, %v17839_v19 }
 0xa7a   :  { %11473 = vmatprep.subr.bf16.mxu1 %v15965_v20 }
 0xa80   :  { %11470 = vmatmul.mubr.msk.bf16.vlgmr.msra.gmra.mrb[156].mxu1 %vm5836_vm7, %v15903_v37 }
 0xa81   :  { %11474 = vmatpush3.bf16.msra.mxu1 %v15965_v20  ;;  %11475 = vmatprep.mubr.msk.bf16.mxu1 %vm5836_vm7, %v17839_v19  ;;  %v12700_v20 = vld [vmem:[#allocation9 + $0x210] sm:$0xff]  }
 0xa82   :  { %11479 = vmatprep.subr.bf16.mxu1 %v15969_v43  ;;  %11609 = vmatprep.subr.bf16.mxu0 %v12700_v20 }
 0xa83   :  { %11610 = vmatpush3.bf16.msra.mxu0 %v12700_v20 }
 0xa88   :  { %11476 = vmatmul.mubr.msk.bf16.vlgmr.msra.gmra.mrb[160].mxu1 %vm5836_vm7, %v15903_v37 }
 0xa89   :  { %11480 = vmatpush3.bf16.msra.mxu1 %v15969_v43  ;;  %11481 = vmatprep.mubr.msk.bf16.mxu1 %vm5836_vm7, %v17839_v19  ;;  %v16180_v43 = vld [vmem:[%s17557_s3] sm:$0xff]  }
 0xa8a   :  { %11485 = vmatprep.subr.bf16.mxu1 %v15977_v26 }
 0xa90   :  { %11482 = vmatmul.mubr.msk.bf16.vlgmr.msra.gmra.mrb[164].mxu1 %vm5836_vm7, %v15903_v37 }
 0xa91   :  { %11486 = vmatpush3.bf16.msra.mxu1 %v15977_v26  ;;  %11487 = vmatprep.mubr.msk.bf16.mxu1 %vm5836_vm7, %v17839_v19  ;;  %v12704_v26 = vld [vmem:[#allocation9 + $0x220] sm:$0xff]  }
 0xa92   :  { %11491 = vmatprep.subr.bf16.mxu1 %v15983_v63 }
 0xa98   :  { %11488 = vmatmul.mubr.msk.bf16.vlgmr.msra.gmra.mrb[168].mxu1 %vm5836_vm7, %v15903_v37 }
 0xa99   :  { %11492 = vmatpush3.bf16.msra.mxu1 %v15983_v63  ;;  %11493 = vmatprep.mubr.msk.bf16.mxu1 %vm5836_vm7, %v17839_v19  ;;  %v12706_v63 = vld [vmem:[#allocation9 + $0x228] sm:$0xff]  }
 0xa9a   :  { %11497 = vmatprep.subr.bf16.mxu1 %v15993_v25 }
 0xaa0   :  { %11494 = vmatmul.mubr.msk.bf16.vlgmr.msra.gmra.mrb[172].mxu1 %vm5836_vm7, %v15903_v37 }
 0xaa1   :  { %11498 = vmatpush3.bf16.msra.mxu1 %v15993_v25  ;;  %11499 = vmatprep.mubr.msk.bf16.mxu1 %vm5836_vm7, %v17839_v19  ;;  %v12708_v25 = vld [vmem:[#allocation9 + $0x230] sm:$0xff]  }
 0xaa2   :  { %11503 = vmatprep.subr.bf16.mxu1 %v15998_v35 }
 0xaa8   :  { %11500 = vmatmul.mubr.msk.bf16.vlgmr.msra.gmra.mrb[176].mxu1 %vm5836_vm7, %v15903_v37 }
 0xaa9   :  { %11504 = vmatpush3.bf16.msra.mxu1 %v15998_v35  ;;  %11505 = vmatprep.mubr.msk.bf16.mxu1 %vm5836_vm7, %v17839_v19  ;;  %v12710_v35 = vld [vmem:[#allocation9 + $0x238] sm:$0xff]  }
 0xaaa   :  { %11509 = vmatprep.subr.bf16.mxu1 %v16006_v36 }
 0xab0   :  { %11506 = vmatmul.mubr.msk.bf16.vlgmr.msra.gmra.mrb[180].mxu1 %vm5836_vm7, %v15903_v37 }
 0xab1   :  { %11510 = vmatpush3.bf16.msra.mxu1 %v16006_v36  ;;  %11511 = vmatprep.mubr.msk.bf16.mxu1 %vm5836_vm7, %v17839_v19 }
 0xab2   :  { %11515 = vmatprep.subr.bf16.mxu1 %v16012_v59 }
 0xab8   :  { %11512 = vmatmul.mubr.msk.bf16.vlgmr.msra.gmra.mrb[184].mxu1 %vm5836_vm7, %v15903_v37 }
 0xab9   :  { %11516 = vmatpush3.bf16.msra.mxu1 %v16012_v59  ;;  %11517 = vmatprep.mubr.msk.bf16.mxu1 %vm5836_vm7, %v17839_v19  ;;  %v12702_v19 = vld [vmem:[#allocation9 + $0x218] sm:$0xff]  }
 0xaba   :  { %11521 = vmatprep.subr.bf16.mxu1 %v16020_v58  ;;  %11611 = vmatprep.subr.bf16.mxu0 %v12702_v19 }
 0xabb   :  { %11612 = vmatpush3.bf16.msra.mxu0 %v12702_v19 }
 0xabc   :  { %11613 = vmatprep.subr.bf16.mxu0 %v12704_v26 }
 0xabf   :  { %11614 = vmatpush3.bf16.msra.mxu0 %v12704_v26 }
 0xac0   :  { %11518 = vmatmul.mubr.msk.bf16.vlgmr.msra.gmra.mrb[188].mxu1 %vm5836_vm7, %v15903_v37  ;;  %11615 = vmatprep.subr.bf16.mxu0 %v12706_v63 }
 0xac1   :  { %11522 = vmatpush3.bf16.msra.mxu1 %v16020_v58  ;;  %11523 = vmatprep.mubr.msk.bf16.mxu1 %vm5836_vm7, %v16180_v43 }
 0xac2   :  { %11527 = vmatprep.subr.bf16.mxu1 %v16027_v6 }
 0xac3   :  { %11616 = vmatpush3.bf16.msra.mxu0 %v12706_v63 }
 0xac4   :  { %11617 = vmatprep.subr.bf16.mxu0 %v12708_v25 }
 0xac7   :  { %11618 = vmatpush3.bf16.msra.mxu0 %v12708_v25 }
 0xac8   :  { %11524 = vmatmul.mubr.msk.bf16.vlgmr.msra.gmra.mrb[192].mxu1 %vm5836_vm7, %v15903_v37  ;;  %11619 = vmatprep.subr.bf16.mxu0 %v12710_v35 }
 0xac9   :  { %11528 = vmatpush3.bf16.msra.mxu1 %v16027_v6  ;;  %11529 = vmatprep.mubr.msk.bf16.mxu1 %vm5836_vm7, %v16180_v43 }
 0xaca   :  { %11533 = vmatprep.subr.bf16.mxu1 %v16036_v44 }
 0xacb   :  { %11620 = vmatpush3.bf16.msra.mxu0 %v12710_v35  ;;  %v12701_v35 = vld [vmem:[#allocation9 + $0x28] sm:$0xff]  }
 0xad0   :  { %11530 = vmatmul.mubr.msk.bf16.vlgmr.msra.gmra.mrb[196].mxu1 %vm5836_vm7, %v15903_v37 }
 0xad1   :  { %11534 = vmatpush3.bf16.msra.mxu1 %v16036_v44  ;;  %11535 = vmatprep.mubr.msk.bf16.mxu1 %vm5836_vm7, %v16180_v43 }
 0xad2   :  { %11539 = vmatprep.subr.bf16.mxu1 %v16042_v8 }
 0xad8   :  { %11536 = vmatmul.mubr.msk.bf16.vlgmr.msra.gmra.mrb[200].mxu1 %vm5836_vm7, %v15903_v37 }
 0xad9   :  { %11540 = vmatpush3.bf16.msra.mxu1 %v16042_v8  ;;  %11541 = vmatprep.mubr.msk.bf16.mxu1 %vm5836_vm7, %v16180_v43 }
 0xada   :  { %11545 = vmatprep.subr.bf16.mxu1 %v16048_v34 }
 0xae0   :  { %11542 = vmatmul.mubr.msk.bf16.vlgmr.msra.gmra.mrb[204].mxu1 %vm5836_vm7, %v15903_v37 }
 0xae1   :  { %11546 = vmatpush3.bf16.msra.mxu1 %v16048_v34  ;;  %11547 = vmatprep.mubr.msk.bf16.mxu1 %vm5836_vm7, %v16180_v43 }
 0xae2   :  { %11551 = vmatprep.subr.bf16.mxu1 %v16054_v41 }
 0xae8   :  { %11548 = vmatmul.mubr.msk.bf16.vlgmr.msra.gmra.mrb[208].mxu1 %vm5836_vm7, %v15903_v37 }
 0xae9   :  { %11552 = vmatpush3.bf16.msra.mxu1 %v16054_v41  ;;  %11553 = vmatprep.mubr.msk.bf16.mxu1 %vm5836_vm7, %v16180_v43 }
 0xaea   :  { %11557 = vmatprep.subr.bf16.mxu1 %v16066_v1 }
 0xaf0   :  { %11554 = vmatmul.mubr.msk.bf16.vlgmr.msra.gmra.mrb[212].mxu1 %vm5836_vm7, %v15903_v37 }
 0xaf1   :  { %11558 = vmatpush3.bf16.msra.mxu1 %v16066_v1  ;;  %11559 = vmatprep.mubr.msk.bf16.mxu1 %vm5836_vm7, %v16180_v43 }
 0xaf2   :  { %11563 = vmatprep.subr.bf16.mxu1 %v16072_v61 }
 0xaf8   :  { %11560 = vmatmul.mubr.msk.bf16.vlgmr.msra.gmra.mrb[216].mxu1 %vm5836_vm7, %v15903_v37 }
 0xaf9   :  { %11564 = vmatpush3.bf16.msra.mxu1 %v16072_v61  ;;  %11565 = vmatprep.mubr.msk.bf16.mxu1 %vm5836_vm7, %v16180_v43 }
 0xafa   :  { %11569 = vmatprep.subr.bf16.mxu1 %v16078_v45 }
 0xb00   :  { %11566 = vmatmul.mubr.msk.bf16.vlgmr.msra.gmra.mrb[220].mxu1 %vm5836_vm7, %v15903_v37 }
 0xb01   :  { %11570 = vmatpush3.bf16.msra.mxu1 %v16078_v45  ;;  %11571 = vmatprep.mubr.msk.bf16.mxu1 %vm5836_vm7, %v16180_v43 }
 0xb02   :  { %11575 = vmatprep.subr.bf16.mxu1 %v16082_v56 }
 0xb08   :  { %11572 = vmatmul.mubr.msk.bf16.vlgmr.msra.gmra.mrb[224].mxu1 %vm5836_vm7, %v15903_v37 }
 0xb09   :  { %11576 = vmatpush3.bf16.msra.mxu1 %v16082_v56  ;;  %11577 = vmatprep.mubr.msk.bf16.mxu1 %vm5836_vm7, %v16180_v43 }
 0xb0a   :  { %11581 = vmatprep.subr.bf16.mxu1 %v16095_v57 }
 0xb0b   :  { %v16239_v36 = vpop.f32.mrb[120].mxu1 }
 0xb0c   :  { %v5877_v59 = vpop.f32.mrb[121].mxu1 }
 0xb0d   :  { %v11418_v58 = vpop.f32.mrb[122].mxu1 }
 0xb0e   :  { %v5880_v6 = vpop.f32.mrb[123].mxu1 }
 0xb0f   :  { %v16241_v44 = vpack.c.bf16 %v5880_v6, %v5877_v59 }
 0xb10   :  { %11578 = vmatmul.mubr.msk.bf16.vlgmr.msra.gmra.mrb[228].mxu1 %vm5836_vm7, %v15903_v37 }
 0xb11   :  { %11582 = vmatpush3.bf16.msra.mxu1 %v16095_v57  ;;  %11583 = vmatprep.mubr.msk.bf16.mxu1 %vm5836_vm7, %v16180_v43 }
 0xb12   :  { %11587 = vmatprep.subr.bf16.mxu1 %v16102_v42 }
 0xb13   :  { %v11423_v8 = vpop.f32.mrb[124].mxu1 }
 0xb14   :  { %v5925_v34 = vpop.f32.mrb[125].mxu1  ;;  %v16249_v41 = vpack.c.bf16 %v11423_v8, %v11423_v8 }
 0xb15   :  { %v11424_v1 = vpop.f32.mrb[126].mxu1 }
 0xb16   :  { %v5928_v61 = vpop.f32.mrb[127].mxu1  ;;  %v7927_v55 = vrot.slane %v16249_v41, 1  ;;  %v12703_v1 = vld [vmem:[#allocation9 + $0x30] sm:$0xff]  }
 0xb17   :  { %v16251_v11 = vpack.c.bf16 %v5928_v61, %v5925_v34 }
 0xb18   :  { %11584 = vmatmul.mubr.msk.bf16.vlgmr.msra.gmra.mrb[232].mxu1 %vm5836_vm7, %v15903_v37 }
 0xb19   :  { %11588 = vmatpush3.bf16.msra.mxu1 %v16102_v42  ;;  %11589 = vmatprep.mubr.msk.bf16.mxu1 %vm5836_vm7, %v16180_v43  ;;  %v7926_v30 = vrot.slane %v16251_v11, 1  ;;  %v12694_v42 = vld [vmem:[#allocation9 + $0x8] sm:$0xff]  }
 0xb1a   :  { %11593 = vmatprep.subr.bf16.mxu1 %v16108_v15 }
 0xb1b   :  { %v11429_v18 = vpop.f32.mrb[128].mxu1  ;;  %v16262_v38 = vsel %vm3101_vm6, %v7926_v30, %v7927_v55 }
 0xb1c   :  { %v5973_v5 = vpop.f32.mrb[129].mxu1  ;;  %11621 = vmatprep.mubr.bf16.mxu0 %v16262_v38  ;;  %v16265_v45 = vpack.c.bf16 %v11429_v18, %v11429_v18 }
 0xb1d   :  { %v11430_v53 = vpop.f32.mrb[130].mxu1 }
 0xb1e   :  { %v5976_v4 = vpop.f32.mrb[131].mxu1  ;;  %v7930_v23 = vrot.slane %v16265_v45, 1 }
 0xb1f   :  { %v16267_v32 = vpack.c.bf16 %v5976_v4, %v5973_v5  ;;  %v12705_v5 = vld [vmem:[#allocation9 + $0x38] sm:$0xff]  }
 0xb20   :  { %11590 = vmatmul.mubr.msk.bf16.vlgmr.msra.gmra.mrb[236].mxu1 %vm5836_vm7, %v15903_v37 }
 0xb21   :  { %11594 = vmatpush3.bf16.msra.mxu1 %v16108_v15  ;;  %11595 = vmatprep.mubr.msk.bf16.mxu1 %vm5836_vm7, %v16180_v43  ;;  %v7929_v56 = vrot.slane %v16267_v32, 1 }
 0xb22   :  { %11599 = vmatprep.subr.bf16.mxu1 %v16110_v48 }
 0xb23   :  { %v11435_v3 = vpop.f32.mrb[132].mxu1  ;;  %v16278_v40 = vsel %vm3101_vm6, %v7929_v56, %v7930_v23 }
 0xb24   :  { %11622 = vmatmul.mubr.bf16.vlgmr.msra.gmra.mrb[56].mxu0 %v16278_v40  ;;  %v6021_v12 = vpop.f32.mrb[133].mxu1  ;;  %v16281_v50 = vpack.c.bf16 %v11435_v3, %v11435_v3 }
 0xb25   :  { %v11436_v10 = vpop.f32.mrb[134].mxu1 }
 0xb26   :  { %v6024_v24 = vpop.f32.mrb[135].mxu1  ;;  %v7933_v49 = vrot.slane %v16281_v50, 1 }
 0xb27   :  { %v16283_v51 = vpack.c.bf16 %v6024_v24, %v6021_v12  ;;  %v12707_v12 = vld [vmem:[#allocation9 + $0x40] sm:$0xff]  }
 0xb28   :  { %11596 = vmatmul.mubr.msk.bf16.vlgmr.msra.gmra.mrb[240].mxu1 %vm5836_vm7, %v15903_v37 }
 0xb29   :  { %11600 = vmatpush3.bf16.msra.mxu1 %v16110_v48  ;;  %11601 = vmatprep.mubr.msk.bf16.mxu1 %vm5836_vm7, %v16180_v43  ;;  %v7932_v31 = vrot.slane %v16283_v51, 1  ;;  %v12695_v48 = vld [vmem:[#allocation9 + $0x10] sm:$0xff]   ;;  %v12699_v43 = vld [vmem:[#allocation9 + $0x20] sm:$0xff]  }
 0xb2a   :  { %8634 = vmatprep.subr.bf16.mxu1 %v17858_v21 }
 0xb2b   :  { %v11441_v57 = vpop.f32.mrb[136].mxu1  ;;  %v16294_v60 = vsel %vm3101_vm6, %v7932_v31, %v7933_v49 }
 0xb2c   :  { %v6069_v52 = vpop.f32.mrb[137].mxu1  ;;  %11625 = vmatprep.mubr.bf16.mxu0 %v16294_v60  ;;  %v16297_v47 = vpack.c.bf16 %v11441_v57, %v11441_v57  ;;  %v12709_v57 = vld [vmem:[#allocation9 + $0x48] sm:$0xff]  }
 0xb2d   :  { %v11442_v9 = vpop.f32.mrb[138].mxu1 }
 0xb2e   :  { %v6072_v16 = vpop.f32.mrb[139].mxu1  ;;  %v7936_v13 = vrot.slane %v16297_v47, 1 }
 0xb2f   :  { %v16299_v0 = vpack.c.bf16 %v6072_v16, %v6069_v52 }
 0xb30   :  { %11602 = vmatmul.mubr.msk.bf16.vlgmr.msra.gmra.mrb[244].mxu1 %vm5836_vm7, %v15903_v37 }
 0xb31   :  { %8635 = vmatpush1.bf16.msra.mxu1 %v12693_v2  ;;  %v7935_v39 = vrot.slane %v16299_v0, 1  ;;  %8666 = vmatprep.mubr.bf16.mxu1 %v17859_v46 }
 0xb32   :  { %8636 = vmatprep.subr.bf16.mxu1 %v17858_v21 }
 0xb33   :  { %v11447_v27 = vpop.f32.mrb[140].mxu1  ;;  %v16308_v62 = vsel %vm3101_vm6, %v7935_v39, %v7936_v13  ;;  %v12711_v13 = vld [vmem:[#allocation9 + $0x50] sm:$0xff]  }
 0xb34   :  { %11626 = vmatmul.mubr.bf16.gmra.mrb[60].mxu0 %v16308_v62  ;;  %v6117_v15 = vpop.f32.mrb[141].mxu1  ;;  %v16311_v37 = vpack.c.bf16 %v11447_v27, %v11447_v27 }
 0xb35   :  { %8637 = vmatpush1.bf16.msra.mxu1 %v12694_v42  ;;  %v11448_v14 = vpop.f32.mrb[142].mxu1 }
 0xb36   :  { %8638 = vmatprep.subr.bf16.mxu1 %v17858_v21  ;;  %v6120_v22 = vpop.f32.mrb[143].mxu1  ;;  %v7939_v7 = vrot.slane %v16311_v37, 1  ;;  %v12712_v14 = vld [vmem:[#allocation9 + $0x58] sm:$0xff]  }
 0xb37   :  { %v16314_v28 = vpack.c.bf16 %v6120_v22, %v6117_v15 }
 0xb39   :  { %8639 = vmatpush1.bf16.msra.mxu1 %v12695_v48  ;;  %v7938_v33 = vrot.slane %v16314_v28, 1 }
 0xb3a   :  { %8640 = vmatprep.subr.bf16.mxu1 %v17858_v21 }
 0xb3b   :  { %v11453_v29 = vpop.f32.mrb[144].mxu1  ;;  %v16320_v54 = vsel %vm3101_vm6, %v7938_v33, %v7939_v7 }
 0xb3c   :  { %v6165_v20 = vpop.f32.mrb[145].mxu1  ;;  %11629 = vmatprep.mubr.bf16.mxu0 %v16320_v54  ;;  %v16323_v19 = vpack.c.bf16 %v11453_v29, %v11453_v29 }
 0xb3d   :  { %8641 = vmatpush1.bf16.msra.mxu1 %v12697_v17  ;;  %v11454_v26 = vpop.f32.mrb[146].mxu1 }
 0xb3e   :  { %8642 = vmatprep.subr.bf16.mxu1 %v17858_v21  ;;  %v6168_v63 = vpop.f32.mrb[147].mxu1  ;;  %v7942_v59 = vrot.slane %v16323_v19, 1 }
 0xb3f   :  { %v16326_v25 = vpack.c.bf16 %v6168_v63, %v6165_v20  ;;  %v12713_v20 = vld [vmem:[#allocation9 + $0x60] sm:$0xff]  }
 0xb41   :  { %8643 = vmatpush1.bf16.msra.mxu1 %v12699_v43  ;;  %v7941_v58 = vrot.slane %v16326_v25, 1 }
 0xb42   :  { %8644 = vmatprep.subr.bf16.mxu1 %v17858_v21 }
 0xb43   :  { %v11459_v6 = vpop.f32.mrb[148].mxu1  ;;  %v16332_v8 = vsel %vm3101_vm6, %v7941_v58, %v7942_v59  ;;  %v12714_v59 = vld [vmem:[#allocation9 + $0x68] sm:$0xff]  }
 0xb44   :  { %11630 = vmatmul.mubr.bf16.gmra.mrb[64].mxu0 %v16332_v8  ;;  %v6213_v34 = vpop.f32.mrb[149].mxu1  ;;  %v16335_v61 = vpack.c.bf16 %v11459_v6, %v11459_v6 }
 0xb45   :  { %8645 = vmatpush1.bf16.msra.mxu1 %v12701_v35  ;;  %v11460_v55 = vpop.f32.mrb[150].mxu1 }
 0xb46   :  { %8646 = vmatprep.subr.bf16.mxu1 %v17858_v21  ;;  %v6216_v30 = vpop.f32.mrb[151].mxu1  ;;  %v7945_v53 = vrot.slane %v16335_v61, 1  ;;  %v7446_v55 = vshll.u32 %v16241_v44, 16 }
 0xb47   :  { %v16338_v18 = vpack.c.bf16 %v6216_v30, %v6213_v34 }
 0xb49   :  { %8647 = vmatpush1.bf16.msra.mxu1 %v12703_v1  ;;  %v7944_v4 = vrot.slane %v16338_v18, 1 }
 0xb4a   :  { %8648 = vmatprep.subr.bf16.mxu1 %v17858_v21 }
 0xb4b   :  { %v11465_v23 = vpop.f32.mrb[152].mxu1  ;;  %v16344_v56 = vsel %vm3101_vm6, %v7944_v4, %v7945_v53 }
 0xb4c   :  { %v6261_v3 = vpop.f32.mrb[153].mxu1  ;;  %11633 = vmatprep.mubr.bf16.mxu0 %v16344_v56  ;;  %v16347_v10 = vpack.c.bf16 %v11465_v23, %v11465_v23  ;;  %v16388_v23 = vpack.c.bf16 %v16239_v36, %v16239_v36 }
 0xb4d   :  { %8649 = vmatpush1.bf16.msra.mxu1 %v12705_v5  ;;  %v11466_v24 = vpop.f32.mrb[154].mxu1  ;;  %v12715_v5 = vld [vmem:[#allocation9 + $0x70] sm:$0xff]  }
 0xb4e   :  { %8650 = vmatprep.subr.bf16.mxu1 %v17858_v21  ;;  %v6264_v49 = vpop.f32.mrb[155].mxu1  ;;  %v7948_v52 = vrot.slane %v16347_v10, 1  ;;  %v7448_v24 = vrot.slane %v7446_v55, 1  ;;  %v7456_v55 = vshrl.u32 %v16251_v11, 16 }
 0xb4f   :  { %v16350_v31 = vpack.c.bf16 %v6264_v49, %v6261_v3  ;;  %v12716_v49 = vld [vmem:[#allocation9 + $0x78] sm:$0xff]  }
 0xb51   :  { %8651 = vmatpush1.bf16.msra.mxu1 %v12707_v12  ;;  %v7947_v2 = vrot.slane %v16350_v31, 1 }
 0xb52   :  { %8652 = vmatprep.subr.bf16.mxu1 %v17858_v21 }
 0xb53   :  { %v11471_v9 = vpop.f32.mrb[156].mxu1  ;;  %v16356_v16 = vsel %vm3101_vm6, %v7947_v2, %v7948_v52  ;;  %v7451_v2 = vshll.u32 %v16388_v23, 16 }
 0xb54   :  { %11634 = vmatmul.mubr.bf16.gmra.mrb[68].mxu0 %v16356_v16  ;;  %v6309_v42 = vpop.f32.mrb[157].mxu1  ;;  %v16359_v39 = vpack.c.bf16 %v11471_v9, %v11471_v9  ;;  %v7444_v9 = vshrl.u32 %v16241_v44, 16 }
 0xb55   :  { %8653 = vmatpush1.bf16.msra.mxu1 %v12709_v57  ;;  %v11472_v27 = vpop.f32.mrb[158].mxu1 }
 0xb56   :  { %8654 = vmatprep.subr.bf16.mxu1 %v17858_v21  ;;  %v6312_v15 = vpop.f32.mrb[159].mxu1  ;;  %v7951_v22 = vrot.slane %v16359_v39, 1  ;;  %v7458_v27 = vshll.u32 %v16251_v11, 16 }
 0xb57   :  { %v16362_v48 = vpack.c.bf16 %v6312_v15, %v6309_v42 }
 0xb59   :  { %8655 = vmatpush1.bf16.msra.mxu1 %v12711_v13  ;;  %v7950_v17 = vrot.slane %v16362_v48, 1  ;;  %v7449_v13 = vor.u32 %v7448_v24, %v7444_v9 }
 0xb5a   :  { %8656 = vmatprep.subr.bf16.mxu1 %v17858_v21 }
 0xb5b   :  { %v11477_v7 = vpop.f32.mrb[160].mxu1  ;;  %v16368_v33 = vsel %vm3101_vm6, %v7950_v17, %v7951_v22  ;;  %v12717_v17 = vld [vmem:[#allocation9 + $0x80] sm:$0xff]  }
 0xb5c   :  { %v6357_v29 = vpop.f32.mrb[161].mxu1  ;;  %11637 = vmatprep.mubr.bf16.mxu0 %v16368_v33  ;;  %v16371_v43 = vpack.c.bf16 %v11477_v7, %v11477_v7  ;;  %v7453_v7 = vrot.slane %v7451_v2, 1 }
 0xb5d   :  { %8657 = vmatpush1.bf16.msra.mxu1 %v12712_v14  ;;  %v11478_v26 = vpop.f32.mrb[162].mxu1 }
 0xb5e   :  { %8658 = vmatprep.subr.bf16.mxu1 %v17858_v21  ;;  %v6360_v63 = vpop.f32.mrb[163].mxu1  ;;  %v7954_v58 = vrot.slane %v16371_v43, 1  ;;  %v16410_v26 = vsel %vm2858_vm5, %v7449_v13, %v7453_v7  ;;  %v7468_v7 = vshrl.u32 %v16267_v32, 16 }
 0xb5f   :  { %v16374_v35 = vpack.c.bf16 %v6360_v63, %v6357_v29  ;;  %17864 = vst [vmem:[#allocation22_spill] sm:$0xff] %v16410_v26  ;;  %v7460_v63 = vrot.slane %v7458_v27, 1 }
 0xb61   :  { %8659 = vmatpush1.bf16.msra.mxu1 %v12713_v20  ;;  %v7953_v6 = vrot.slane %v16374_v35, 1 }
 0xb62   :  { %8660 = vmatprep.subr.bf16.mxu1 %v17858_v21 }
 0xb63   :  { %v11483_v34 = vpop.f32.mrb[164].mxu1  ;;  %v16380_v1 = vsel %vm3101_vm6, %v7953_v6, %v7954_v58  ;;  %v12718_v6 = vld [vmem:[#allocation9 + $0x88] sm:$0xff]  }
 0xb64   :  { %17860 = vst [vmem:[#allocation18_spill] sm:$0xff] %v16380_v1  ;;  %11638 = vmatmul.mubr.bf16.gmra.mrb[72].mxu0 %v16380_v1  ;;  %v6405_v30 = vpop.f32.mrb[165].mxu1  ;;  %v16384_v53 = vpack.c.bf16 %v11483_v34, %v11483_v34  ;;  %v7463_v34 = vshll.u32 %v16249_v41, 16 }
 0xb65   :  { %8661 = vmatpush1.bf16.msra.mxu1 %v12714_v59  ;;  %v11484_v4 = vpop.f32.mrb[166].mxu1 }
 0xb66   :  { %8662 = vmatprep.subr.bf16.mxu1 %v17858_v21  ;;  %v6408_v3 = vpop.f32.mrb[167].mxu1  ;;  %v7957_v57 = vrot.slane %v16384_v53, 1  ;;  %v7461_v4 = vor.u32 %v7460_v63, %v7456_v55  ;;  %v7465_v41 = vrot.slane %v7463_v34, 1 }
 0xb67   :  { %v16391_v12 = vpack.c.bf16 %v6408_v3, %v6405_v30  ;;  %v7470_v3 = vshll.u32 %v16267_v32, 16 }
 0xb69   :  { %17861 = vst [vmem:[#allocation17_spill] sm:$0xff] %v16391_v12  ;;  %8663 = vmatpush1.bf16.msra.mxu1 %v12715_v5  ;;  %v7956_v52 = vrot.slane %v16391_v12, 1  ;;  %v7472_v13 = vrot.slane %v7470_v3, 1 }
 0xb6a   :  { %8664 = vmatprep.subr.bf16.mxu1 %v17858_v21 }
 0xb6b   :  { %v11489_v36 = vpop.f32.mrb[168].mxu1  ;;  %v16399_v42 = vsel %vm3101_vm6, %v7956_v52, %v7957_v57  ;;  %v12719_v52 = vld [vmem:[#allocation9 + $0x90] sm:$0xff]  }
 0xb6c   :  { %17862 = vst [vmem:[#allocation21_spill] sm:$0xff] %v16399_v42  ;;  %v6453_v15 = vpop.f32.mrb[169].mxu1  ;;  %11641 = vmatprep.mubr.bf16.mxu0 %v16399_v42  ;;  %v16403_v14 = vpack.c.bf16 %v11489_v36, %v11489_v36  ;;  %v16430_v36 = vsel %vm2858_vm5, %v7461_v4, %v7465_v41 }
 0xb6d   :  { %8665 = vmatpush1.bf16.msra.mxu1 %v12716_v49  ;;  %v11490_v22 = vpop.f32.mrb[170].mxu1  ;;  %17867 = vst [vmem:[#allocation41_spill] sm:$0xff] %v16430_v36 }
 0xb6e   :  { %v6456_v29 = vpop.f32.mrb[171].mxu1  ;;  %8923 = vmatprep.subr.bf16.mxu1 %v17858_v21  ;;  %v7960_v59 = vrot.slane %v16403_v14, 1  ;;  %v12720_v22 = vld [vmem:[#allocation9 + $0x98] sm:$0xff]  }
 0xb6f   :  { %v16406_v20 = vpack.c.bf16 %v6456_v29, %v6453_v15 }
 0xb70   :  { %8667 = vmatmul.mubr.bf16.vlgmr.msra.gmra.mrb[248].mxu1 %v17858_v21 }
 0xb71   :  { %17863 = vst [vmem:[#allocation19_spill] sm:$0xff] %v16406_v20  ;;  %8674 = vmatprep.mubr.bf16.mxu1 %v16410_v26  ;;  %v7959_v58 = vrot.slane %v16406_v20, 1  ;;  %8924 = vmatpush1.bf16.msra.mxu1 %v12717_v17  ;;  %v7475_v17 = vshll.u32 %v16265_v45, 16 }
 0xb72   :  { %8925 = vmatprep.subr.bf16.mxu1 %v17858_v21 }
 0xb73   :  { %v11495_v30 = vpop.f32.mrb[172].mxu1  ;;  %v16419_v5 = vsel %vm3101_vm6, %v7959_v58, %v7960_v59  ;;  %v7473_v59 = vor.u32 %v7472_v13, %v7468_v7  ;;  %v7482_v58 = vshll.u32 %v16283_v51, 16  ;;  %v7477_v45 = vrot.slane %v7475_v17, 1 }
 0xb74   :  { %17865 = vst [vmem:[#allocation36_spill] sm:$0xff] %v16419_v5  ;;  %11642 = vmatmul.mubr.bf16.gmra.mrb[76].mxu0 %v16419_v5  ;;  %v6501_v24 = vpop.f32.mrb[173].mxu1  ;;  %v16423_v49 = vpack.c.bf16 %v11495_v30, %v11495_v30  ;;  %v12721_v30 = vld [vmem:[#allocation9 + $0xa0] sm:$0xff]   ;;  %v7487_v13 = vshll.u32 %v16281_v50, 16  ;;  %v7494_v7 = vshll.u32 %v16299_v0, 16 }
 0xb75   :  { %v11496_v57 = vpop.f32.mrb[174].mxu1  ;;  %8926 = vmatpush1.bf16.msra.mxu1 %v12718_v6 }
 0xb76   :  { %v6504_v2 = vpop.f32.mrb[175].mxu1  ;;  %8927 = vmatprep.subr.bf16.mxu1 %v17858_v21  ;;  %v7963_v27 = vrot.slane %v16423_v49, 1  ;;  %v7484_v57 = vrot.slane %v7482_v58, 1 }
 0xb77   :  { %v16426_v9 = vpack.c.bf16 %v6504_v2, %v6501_v24  ;;  %v16450_v24 = vsel %vm2858_vm5, %v7473_v59, %v7477_v45  ;;  %v12722_v2 = vld [vmem:[#allocation9 + $0xa8] sm:$0xff]   ;;  %v7496_v45 = vrot.slane %v7494_v7, 1 }
 0xb78   :  { %8675 = vmatmul.mubr.bf16.gmra.mrb[252].mxu1 %v16241_v44  ;;  %17870 = vst [vmem:[#allocation43_spill] sm:$0xff] %v16450_v24 }
 0xb79   :  { %17866 = vst [vmem:[#allocation39_spill] sm:$0xff] %v16426_v9  ;;  %8682 = vmatprep.mubr.bf16.mxu1 %v16430_v36  ;;  %v7962_v15 = vrot.slane %v16426_v9, 1  ;;  %8928 = vmatpush1.bf16.msra.mxu1 %v12719_v52 }
 0xb7a   :  { %8929 = vmatprep.subr.bf16.mxu1 %v17858_v21 }
 0xb7b   :  { %v11501_v29 = vpop.f32.mrb[176].mxu1  ;;  %v16439_v63 = vsel %vm3101_vm6, %v7962_v15, %v7963_v27  ;;  %v7480_v27 = vshrl.u32 %v16283_v51, 16 }
 0xb7c   :  { %17868 = vst [vmem:[#allocation38_spill] sm:$0xff] %v16439_v63  ;;  %v6549_v6 = vpop.f32.mrb[177].mxu1  ;;  %11645 = vmatprep.mubr.bf16.mxu0 %v16439_v63  ;;  %v16443_v34 = vpack.c.bf16 %v11501_v29, %v11501_v29 }
 0xb7d   :  { %v11502_v55 = vpop.f32.mrb[178].mxu1  ;;  %8930 = vmatpush1.bf16.msra.mxu1 %v12720_v22  ;;  %v7485_v17 = vor.u32 %v7484_v57, %v7480_v27 }
 0xb7e   :  { %v6552_v4 = vpop.f32.mrb[179].mxu1  ;;  %8931 = vmatprep.subr.bf16.mxu1 %v17858_v21  ;;  %v7966_v52 = vrot.slane %v16443_v34, 1 }
 0xb7f   :  { %v16446_v3 = vpack.c.bf16 %v6552_v4, %v6549_v6  ;;  %v7489_v6 = vrot.slane %v7487_v13, 1 }
 0xb80   :  { %8683 = vmatmul.mubr.bf16.gmra.mrb[0].mxu1 %v16251_v11 }
 0xb81   :  { %17869 = vst [vmem:[#allocation40_spill] sm:$0xff] %v16446_v3  ;;  %8690 = vmatprep.mubr.bf16.mxu1 %v16450_v24  ;;  %v7965_v41 = vrot.slane %v16446_v3, 1  ;;  %8932 = vmatpush1.bf16.msra.mxu1 %v12721_v30  ;;  %v16470_v30 = vsel %vm2858_vm5, %v7485_v17, %v7489_v6  ;;  %v7506_v17 = vshll.u32 %v16314_v28, 16 }
 0xb82   :  { %8933 = vmatprep.subr.bf16.mxu1 %v17858_v21  ;;  %17874 = vst [vmem:[#allocation44_spill] sm:$0xff] %v16470_v30 }
 0xb83   :  { %v11507_v15 = vpop.f32.mrb[180].mxu1  ;;  %v16459_v22 = vsel %vm3101_vm6, %v7965_v41, %v7966_v52  ;;  %v12723_v52 = vld [vmem:[#allocation9 + $0xb0] sm:$0xff]   ;;  %v7499_v41 = vshll.u32 %v16297_v47, 16 }
 0xb84   :  { %17871 = vst [vmem:[#allocation30_spill] sm:$0xff] %v16459_v22  ;;  %11646 = vmatmul.mubr.bf16.gmra.mrb[80].mxu0 %v16459_v22  ;;  %v6597_v29 = vpop.f32.mrb[181].mxu1  ;;  %v16463_v59 = vpack.c.bf16 %v11507_v15, %v11507_v15 }
 0xb85   :  { %v11508_v58 = vpop.f32.mrb[182].mxu1  ;;  %8934 = vmatpush1.bf16.msra.mxu1 %v12722_v2  ;;  %v7492_v2 = vshrl.u32 %v16299_v0, 16  ;;  %v7501_v47 = vrot.slane %v7499_v41, 1 }
 0xb86   :  { %17872 = vst [vmem:[#allocation45_spill] sm:$0xff] %v16463_v59  ;;  %v6600_v50 = vpop.f32.mrb[183].mxu1  ;;  %8935 = vmatprep.subr.bf16.mxu1 %v17858_v21  ;;  %v7969_v4 = vrot.slane %v16463_v59, 1 }
 0xb87   :  { %v16466_v55 = vpack.c.bf16 %v6600_v50, %v6597_v29  ;;  %v7497_v15 = vor.u32 %v7496_v45, %v7492_v2  ;;  %v7508_v45 = vrot.slane %v7506_v17, 1 }
 0xb88   :  { %8691 = vmatmul.mubr.bf16.gmra.mrb[4].mxu1 %v16267_v32 }
 0xb89   :  { %17873 = vst [vmem:[#allocation42_spill] sm:$0xff] %v16466_v55  ;;  %8698 = vmatprep.mubr.bf16.mxu1 %v16470_v30  ;;  %v7968_v57 = vrot.slane %v16466_v55, 1  ;;  %8936 = vmatpush1.bf16.msra.mxu1 %v12723_v52  ;;  %v16490_v50 = vsel %vm2858_vm5, %v7497_v15, %v7501_v47 }
 0xb8a   :  { %8937 = vmatprep.subr.bf16.mxu1 %v17858_v21  ;;  %17877 = vst [vmem:[#allocation23_spill] sm:$0xff] %v16490_v50 }
 0xb8b   :  { %v16477_v13 = vpop.f32.mrb[184].mxu1  ;;  %v16480_v27 = vsel %vm3101_vm6, %v7968_v57, %v7969_v4  ;;  %v7511_v4 = vshll.u32 %v16311_v37, 16  ;;  %v7504_v57 = vshrl.u32 %v16314_v28, 16 }
 0xb8c   :  { %17875 = vst [vmem:[#allocation46_spill] sm:$0xff] %v16480_v27  ;;  %v6645_v7 = vpop.f32.mrb[185].mxu1  ;;  %11649 = vmatprep.mubr.bf16.mxu0 %v16480_v27 }
 0xb8d   :  { %v11514_v29 = vpop.f32.mrb[186].mxu1  ;;  %11650 = vmatmul.mubr.bf16.gmra.mrb[84].mxu0 %v17859_v46  ;;  %v7509_v2 = vor.u32 %v7508_v45, %v7504_v57  ;;  %v12724_v45 = vld [vmem:[#allocation9 + $0xb8] sm:$0xff]   ;;  %v7523_v57 = vshll.u32 %v16323_v19, 16 }
 0xb8e   :  { %v6648_v58 = vpop.f32.mrb[187].mxu1  ;;  %v7518_v29 = vshll.u32 %v16326_v25, 16  ;;  %8938 = vmatpush1.bf16.msra.mxu1 %v12724_v45 }
 0xb8f   :  { %v16486_v6 = vpack.c.bf16 %v6648_v58, %v6645_v7  ;;  %v7513_v58 = vrot.slane %v7511_v4, 1  ;;  %v7516_v4 = vshrl.u32 %v16326_v25, 16  ;;  %8939 = vmatprep.subr.bf16.mxu1 %v17858_v21 }
 0xb90   :  { %8699 = vmatmul.mubr.bf16.gmra.mrb[8].mxu1 %v16283_v51  ;;  %v7520_v37 = vrot.slane %v7518_v29, 1 }
 0xb91   :  { %17876 = vst [vmem:[#allocation20_spill] sm:$0xff] %v16486_v6  ;;  %8706 = vmatprep.mubr.bf16.mxu1 %v16490_v50  ;;  %v16502_v15 = vsel %vm2858_vm5, %v7509_v2, %v7513_v58  ;;  %v7530_v2 = vshll.u32 %v16338_v18, 16 }
 0xb92   :  { %17879 = vst [vmem:[#allocation24_spill] sm:$0xff] %v16502_v15 }
 0xb93   :  { %v11519_v52 = vpop.f32.mrb[188].mxu1 }
 0xb94   :  { %v6693_v41 = vpop.f32.mrb[189].mxu1  ;;  %v16496_v27 = vpack.c.bf16 %v11519_v52, %v11519_v52 }
 0xb95   :  { %v11520_v7 = vpop.f32.mrb[190].mxu1 }
 0xb96   :  { %v6696_v59 = vpop.f32.mrb[191].mxu1  ;;  %v7975_v17 = vrot.slane %v16496_v27, 1 }
 0xb97   :  { %v16498_v30 = vpack.c.bf16 %v6696_v59, %v6693_v41  ;;  %v7521_v41 = vor.u32 %v7520_v37, %v7516_v4  ;;  %v7532_v37 = vrot.slane %v7530_v2, 1  ;;  %v7535_v4 = vshll.u32 %v16335_v61, 16 }
 0xb98   :  { %8707 = vmatmul.mubr.bf16.gmra.mrb[12].mxu1 %v16299_v0 }
 0xb99   :  { %17878 = vst [vmem:[#allocation25_spill] sm:$0xff] %v16498_v30  ;;  %8714 = vmatprep.mubr.bf16.mxu1 %v16502_v15  ;;  %v7974_v47 = vrot.slane %v16498_v30, 1  ;;  %v7525_v15 = vrot.slane %v7523_v57, 1 }
 0xb9b   :  { %v11525_v52 = vpop.f32.mrb[192].mxu1  ;;  %v16510_v59 = vsel %vm3101_vm6, %v7974_v47, %v7975_v17  ;;  %v16521_v17 = vsel %vm2858_vm5, %v7521_v41, %v7525_v15 }
 0xb9c   :  { %17880 = vst [vmem:[#allocation27_spill] sm:$0xff] %v16510_v59  ;;  %v6741_v29 = vpop.f32.mrb[193].mxu1  ;;  %11653 = vmatprep.mubr.bf16.mxu0 %v16510_v59  ;;  %v16515_v7 = vpack.c.bf16 %v11525_v52, %v11525_v52  ;;  %17882 = vst [vmem:[#allocation28_spill] sm:$0xff] %v16521_v17  ;;  %v7528_v52 = vshrl.u32 %v16338_v18, 16 }
 0xb9d   :  { %v11526_v58 = vpop.f32.mrb[194].mxu1 }
 0xb9e   :  { %v6744_v19 = vpop.f32.mrb[195].mxu1  ;;  %v7978_v47 = vrot.slane %v16515_v7, 1  ;;  %v7533_v58 = vor.u32 %v7532_v37, %v7528_v52  ;;  %v12725_v52 = vld [vmem:[#allocation9 + $0xc0] sm:$0xff]  }
 0xb9f   :  { %v16517_v50 = vpack.c.bf16 %v6744_v19, %v6741_v29  ;;  %v7542_v19 = vshll.u32 %v16350_v31, 16  ;;  %8940 = vmatpush1.bf16.msra.mxu1 %v12725_v52 }
 0xba0   :  { %8715 = vmatmul.mubr.bf16.gmra.mrb[16].mxu1 %v16314_v28  ;;  %8941 = vmatprep.subr.bf16.mxu1 %v17858_v21 }
 0xba1   :  { %17881 = vst [vmem:[#allocation26_spill] sm:$0xff] %v16517_v50  ;;  %8722 = vmatprep.mubr.bf16.mxu1 %v16521_v17  ;;  %v7977_v45 = vrot.slane %v16517_v50, 1  ;;  %v7537_v17 = vrot.slane %v7535_v4, 1  ;;  %v7540_v4 = vshrl.u32 %v16350_v31, 16 }
 0xba3   :  { %v11531_v57 = vpop.f32.mrb[196].mxu1  ;;  %v16529_v29 = vsel %vm3101_vm6, %v7977_v45, %v7978_v47  ;;  %v16539_v61 = vsel %vm2858_vm5, %v7533_v58, %v7537_v17  ;;  %v7544_v47 = vrot.slane %v7542_v19, 1  ;;  %v7554_v17 = vshll.u32 %v16362_v48, 16 }
 0xba4   :  { %17883 = vst [vmem:[#allocation29_spill] sm:$0xff] %v16529_v29  ;;  %11654 = vmatmul.mubr.bf16.gmra.mrb[88].mxu0 %v16529_v29  ;;  %v6789_v15 = vpop.f32.mrb[197].mxu1  ;;  %v16533_v41 = vpack.c.bf16 %v11531_v57, %v11531_v57  ;;  %17885 = vst [vmem:[#allocation33_spill] sm:$0xff] %v16539_v61  ;;  %v7547_v57 = vshll.u32 %v16347_v10, 16 }
 0xba5   :  { %v11532_v2 = vpop.f32.mrb[198].mxu1 }
 0xba6   :  { %v6792_v24 = vpop.f32.mrb[199].mxu1  ;;  %v7981_v37 = vrot.slane %v16533_v41, 1  ;;  %v7549_v26 = vrot.slane %v7547_v57, 1 }
 0xba7   :  { %v16535_v36 = vpack.c.bf16 %v6792_v24, %v6789_v15  ;;  %v7545_v15 = vor.u32 %v7544_v47, %v7540_v4  ;;  %v7556_v47 = vrot.slane %v7554_v17, 1  ;;  %v7559_v4 = vshll.u32 %v16359_v39, 16 }
 0xba8   :  { %8723 = vmatmul.mubr.bf16.gmra.mrb[20].mxu1 %v16326_v25 }
 0xba9   :  { %17884 = vst [vmem:[#allocation31_spill] sm:$0xff] %v16535_v36  ;;  %8730 = vmatprep.mubr.bf16.mxu1 %v16539_v61  ;;  %v7980_v45 = vrot.slane %v16535_v36, 1 }
 0xbab   :  { %v11537_v2 = vpop.f32.mrb[200].mxu1  ;;  %v16547_v24 = vsel %vm3101_vm6, %v7980_v45, %v7981_v37  ;;  %v16558_v37 = vsel %vm2858_vm5, %v7545_v15, %v7549_v26 }
 0xbac   :  { %17886 = vst [vmem:[#allocation32_spill] sm:$0xff] %v16547_v24  ;;  %v6837_v58 = vpop.f32.mrb[201].mxu1  ;;  %11657 = vmatprep.mubr.bf16.mxu0 %v16547_v24  ;;  %v16552_v19 = vpack.c.bf16 %v11537_v2, %v11537_v2  ;;  %17888 = vst [vmem:[#allocation35_spill] sm:$0xff] %v16558_v37 }
 0xbad   :  { %v11538_v61 = vpop.f32.mrb[202].mxu1 }
 0xbae   :  { %v6840_v10 = vpop.f32.mrb[203].mxu1  ;;  %v7984_v45 = vrot.slane %v16552_v19, 1  ;;  %v7552_v61 = vshrl.u32 %v16362_v48, 16 }
 0xbaf   :  { %v16554_v29 = vpack.c.bf16 %v6840_v10, %v6837_v58  ;;  %v7566_v10 = vshll.u32 %v16374_v35, 16 }
 0xbb0   :  { %8731 = vmatmul.mubr.bf16.gmra.mrb[24].mxu1 %v16338_v18  ;;  %v7557_v58 = vor.u32 %v7556_v47, %v7552_v61  ;;  %v12726_v61 = vld [vmem:[#allocation9 + $0xc8] sm:$0xff]  }
 0xbb1   :  { %17887 = vst [vmem:[#allocation34_spill] sm:$0xff] %v16554_v29  ;;  %8738 = vmatprep.mubr.bf16.mxu1 %v16558_v37  ;;  %v7983_v52 = vrot.slane %v16554_v29, 1  ;;  %v7561_v37 = vrot.slane %v7559_v4, 1  ;;  %v7564_v4 = vshrl.u32 %v16374_v35, 16  ;;  %8942 = vmatpush1.bf16.msra.mxu1 %v12726_v61 }
 0xbb2   :  { %8943 = vmatprep.subr.bf16.mxu1 %v17858_v21 }
 0xbb3   :  { %v11543_v57 = vpop.f32.mrb[204].mxu1  ;;  %v16566_v2 = vsel %vm3101_vm6, %v7983_v52, %v7984_v45  ;;  %v16576_v39 = vsel %vm2858_vm5, %v7557_v58, %v7561_v37  ;;  %v7568_v45 = vrot.slane %v7566_v10, 1  ;;  %v7578_v37 = vshll.u32 %v16391_v12, 16 }
 0xbb4   :  { %17889 = vst [vmem:[#allocation37_spill] sm:$0xff] %v16566_v2  ;;  %11658 = vmatmul.mubr.bf16.gmra.mrb[92].mxu0 %v16566_v2  ;;  %v6885_v26 = vpop.f32.mrb[205].mxu1  ;;  %v16570_v15 = vpack.c.bf16 %v11543_v57, %v11543_v57  ;;  %17891 = vst [vmem:[#allocation48_spill] sm:$0xff] %v16576_v39  ;;  %v7571_v57 = vshll.u32 %v16371_v43, 16 }
 0xbb5   :  { %v11544_v17 = vpop.f32.mrb[206].mxu1 }
 0xbb6   :  { %v6888_v24 = vpop.f32.mrb[207].mxu1  ;;  %v7987_v47 = vrot.slane %v16570_v15, 1  ;;  %v7573_v2 = vrot.slane %v7571_v57, 1 }
 0xbb7   :  { %v16572_v59 = vpack.c.bf16 %v6888_v24, %v6885_v26  ;;  %v7569_v26 = vor.u32 %v7568_v45, %v7564_v4  ;;  %v7580_v45 = vrot.slane %v7578_v37, 1  ;;  %v7583_v4 = vshll.u32 %v16384_v53, 16 }
 0xbb8   :  { %8739 = vmatmul.mubr.bf16.gmra.mrb[28].mxu1 %v16350_v31 }
 0xbb9   :  { %17890 = vst [vmem:[#allocation47_spill] sm:$0xff] %v16572_v59  ;;  %8746 = vmatprep.mubr.bf16.mxu1 %v16576_v39  ;;  %v7986_v52 = vrot.slane %v16572_v59, 1 }
 0xbbb   :  { %v11549_v17 = vpop.f32.mrb[208].mxu1  ;;  %v16584_v24 = vsel %vm3101_vm6, %v7986_v52, %v7987_v47  ;;  %v16595_v47 = vsel %vm2858_vm5, %v7569_v26, %v7573_v2 }
 0xbbc   :  { %17892 = vst [vmem:[#allocation49_spill] sm:$0xff] %v16584_v24  ;;  %v6933_v58 = vpop.f32.mrb[209].mxu1  ;;  %11661 = vmatprep.mubr.bf16.mxu0 %v16584_v24  ;;  %v16589_v10 = vpack.c.bf16 %v11549_v17, %v11549_v17  ;;  %17894 = vst [vmem:[#allocation51_spill] sm:$0xff] %v16595_v47 }
 0xbbd   :  { %v11550_v39 = vpop.f32.mrb[210].mxu1 }
 0xbbe   :  { %v6936_v43 = vpop.f32.mrb[211].mxu1  ;;  %v7990_v52 = vrot.slane %v16589_v10, 1  ;;  %v7576_v39 = vshrl.u32 %v16391_v12, 16 }
 0xbbf   :  { %v16591_v22 = vpack.c.bf16 %v6936_v43, %v6933_v58  ;;  %v7590_v43 = vshll.u32 %v16406_v20, 16 }
 0xbc0   :  { %8747 = vmatmul.mubr.bf16.gmra.mrb[32].mxu1 %v16362_v48  ;;  %v7581_v58 = vor.u32 %v7580_v45, %v7576_v39  ;;  %v12727_v39 = vld [vmem:[#allocation9 + $0xd0] sm:$0xff]  }
 0xbc1   :  { %17893 = vst [vmem:[#allocation50_spill] sm:$0xff] %v16591_v22  ;;  %8754 = vmatprep.mubr.bf16.mxu1 %v16595_v47  ;;  %v7989_v61 = vrot.slane %v16591_v22, 1  ;;  %v7585_v47 = vrot.slane %v7583_v4, 1  ;;  %v7588_v4 = vshrl.u32 %v16406_v20, 16  ;;  %8944 = vmatpush1.bf16.msra.mxu1 %v12727_v39 }
 0xbc2   :  { %8945 = vmatprep.subr.bf16.mxu1 %v17858_v21 }
 0xbc3   :  { %v11555_v57 = vpop.f32.mrb[212].mxu1  ;;  %v16603_v17 = vsel %vm3101_vm6, %v7989_v61, %v7990_v52  ;;  %v16613_v53 = vsel %vm2858_vm5, %v7581_v58, %v7585_v47  ;;  %v7592_v52 = vrot.slane %v7590_v43, 1  ;;  %v7602_v47 = vshll.u32 %v16426_v9, 16 }
 0xbc4   :  { %17895 = vst [vmem:[#allocation52_spill] sm:$0xff] %v16603_v17  ;;  %11662 = vmatmul.mubr.bf16.gmra.mrb[96].mxu0 %v16603_v17  ;;  %v6981_v2 = vpop.f32.mrb[213].mxu1  ;;  %v16607_v26 = vpack.c.bf16 %v11555_v57, %v11555_v57  ;;  %17897 = vst [vmem:[#allocation54_spill] sm:$0xff] %v16613_v53  ;;  %v7595_v57 = vshll.u32 %v16403_v14, 16 }
 0xbc5   :  { %v11556_v37 = vpop.f32.mrb[214].mxu1 }
 0xbc6   :  { %v6984_v24 = vpop.f32.mrb[215].mxu1  ;;  %v7993_v45 = vrot.slane %v16607_v26, 1  ;;  %v7597_v17 = vrot.slane %v7595_v57, 1 }
 0xbc7   :  { %v16609_v55 = vpack.c.bf16 %v6984_v24, %v6981_v2  ;;  %v7593_v2 = vor.u32 %v7592_v52, %v7588_v4  ;;  %v7604_v52 = vrot.slane %v7602_v47, 1  ;;  %v7607_v4 = vshll.u32 %v16423_v49, 16 }
 0xbc8   :  { %8755 = vmatmul.mubr.bf16.gmra.mrb[36].mxu1 %v16374_v35 }
 0xbc9   :  { %17896 = vst [vmem:[#allocation53_spill] sm:$0xff] %v16609_v55  ;;  %8762 = vmatprep.mubr.bf16.mxu1 %v16613_v53  ;;  %v7992_v61 = vrot.slane %v16609_v55, 1 }
 0xbcb   :  { %v11561_v37 = vpop.f32.mrb[216].mxu1  ;;  %v16621_v24 = vsel %vm3101_vm6, %v7992_v61, %v7993_v45  ;;  %v16632_v45 = vsel %vm2858_vm5, %v7593_v2, %v7597_v17 }
 0xbcc   :  { %17898 = vst [vmem:[#allocation55_spill] sm:$0xff] %v16621_v24  ;;  %v7029_v58 = vpop.f32.mrb[217].mxu1  ;;  %11665 = vmatprep.mubr.bf16.mxu0 %v16621_v24  ;;  %v16626_v43 = vpack.c.bf16 %v11561_v37, %v11561_v37  ;;  %17900 = vst [vmem:[#allocation57_spill] sm:$0xff] %v16632_v45 }
 0xbcd   :  { %v11562_v53 = vpop.f32.mrb[218].mxu1 }
 0xbce   :  { %v7032_v14 = vpop.f32.mrb[219].mxu1  ;;  %v7996_v61 = vrot.slane %v16626_v43, 1  ;;  %v7600_v53 = vshrl.u32 %v16426_v9, 16 }
 0xbcf   :  { %v16628_v63 = vpack.c.bf16 %v7032_v14, %v7029_v58  ;;  %v7614_v14 = vshll.u32 %v16446_v3, 16 }
 0xbd0   :  { %8763 = vmatmul.mubr.bf16.gmra.mrb[40].mxu1 %v16391_v12  ;;  %v7605_v58 = vor.u32 %v7604_v52, %v7600_v53  ;;  %v12728_v53 = vld [vmem:[#allocation9 + $0xd8] sm:$0xff]  }
 0xbd1   :  { %17899 = vst [vmem:[#allocation56_spill] sm:$0xff] %v16628_v63  ;;  %8770 = vmatprep.mubr.bf16.mxu1 %v16632_v45  ;;  %v7995_v39 = vrot.slane %v16628_v63, 1  ;;  %v7609_v45 = vrot.slane %v7607_v4, 1  ;;  %v7612_v4 = vshrl.u32 %v16446_v3, 16  ;;  %8946 = vmatpush1.bf16.msra.mxu1 %v12728_v53 }
 0xbd2   :  { %8947 = vmatprep.subr.bf16.mxu1 %v17858_v21 }
 0xbd3   :  { %v11567_v57 = vpop.f32.mrb[220].mxu1  ;;  %v16640_v37 = vsel %vm3101_vm6, %v7995_v39, %v7996_v61  ;;  %v16650_v49 = vsel %vm2858_vm5, %v7605_v58, %v7609_v45  ;;  %v7616_v61 = vrot.slane %v7614_v14, 1 }
 0xbd4   :  { %17901 = vst [vmem:[#allocation58_spill] sm:$0xff] %v16640_v37  ;;  %11666 = vmatmul.mubr.bf16.gmra.mrb[100].mxu0 %v16640_v37  ;;  %v7077_v17 = vpop.f32.mrb[221].mxu1  ;;  %v16644_v2 = vpack.c.bf16 %v11567_v57, %v11567_v57  ;;  %17903 = vst [vmem:[#allocation60_spill] sm:$0xff] %v16650_v49  ;;  %v7619_v57 = vshll.u32 %v16443_v34, 16 }
 0xbd5   :  { %v11568_v47 = vpop.f32.mrb[222].mxu1 }
 0xbd6   :  { %v7080_v24 = vpop.f32.mrb[223].mxu1  ;;  %v7999_v52 = vrot.slane %v16644_v2, 1 }
 0xbd7   :  { %v16646_v5 = vpack.c.bf16 %v7080_v24, %v7077_v17  ;;  %v7617_v17 = vor.u32 %v7616_v61, %v7612_v4 }
 0xbd8   :  { %8771 = vmatmul.mubr.bf16.gmra.mrb[44].mxu1 %v16406_v20 }
 0xbd9   :  { %17902 = vst [vmem:[#allocation59_spill] sm:$0xff] %v16646_v5  ;;  %8778 = vmatprep.mubr.bf16.mxu1 %v16650_v49  ;;  %v7998_v39 = vrot.slane %v16646_v5, 1  ;;  %v7621_v49 = vrot.slane %v7619_v57, 1  ;;  %v12730_v57 = vld [vmem:[#allocation9 + $0xe8] sm:$0xff]  }
 0xbdb   :  { %v11573_v47 = vpop.f32.mrb[224].mxu1  ;;  %v16658_v24 = vsel %vm3101_vm6, %v7998_v39, %v7999_v52  ;;  %v16668_v34 = vsel %vm2858_vm5, %v7617_v17, %v7621_v49  ;;  %v12729_v39 = vld [vmem:[#allocation9 + $0xe0] sm:$0xff]  }
 0xbdc   :  { %17904 = vst [vmem:[#allocation61_spill] sm:$0xff] %v16658_v24  ;;  %v7125_v45 = vpop.f32.mrb[225].mxu1  ;;  %11669 = vmatprep.mubr.bf16.mxu0 %v16658_v24  ;;  %v16662_v58 = vpack.c.bf16 %v11573_v47, %v11573_v47  ;;  %17906 = vst [vmem:[#allocation63_spill] sm:$0xff] %v16668_v34  ;;  %8948 = vmatpush1.bf16.msra.mxu1 %v12729_v39 }
 0xbdd   :  { %v11574_v14 = vpop.f32.mrb[226].mxu1  ;;  %8949 = vmatprep.subr.bf16.mxu1 %v17858_v21 }
 0xbde   :  { %v7128_v37 = vpop.f32.mrb[227].mxu1  ;;  %v8002_v61 = vrot.slane %v16662_v58, 1 }
 0xbdf   :  { %v16664_v42 = vpack.c.bf16 %v7128_v37, %v7125_v45  ;;  %v7638_v37 = vshll.u32 %v16486_v6, 16  ;;  %v16683_v45 = vpack.c.bf16 %v16477_v13, %v16477_v13  ;;  %v7636_v13 = vshrl.u32 %v16486_v6, 16 }
 0xbe0   :  { %8779 = vmatmul.mubr.bf16.gmra.mrb[48].mxu1 %v16426_v9 }
 0xbe1   :  { %17905 = vst [vmem:[#allocation62_spill] sm:$0xff] %v16664_v42  ;;  %8786 = vmatprep.mubr.bf16.mxu1 %v16668_v34  ;;  %v8001_v52 = vrot.slane %v16664_v42, 1  ;;  %17908 = vst [vmem:[#allocation65_spill] sm:$0xff] %v16683_v45  ;;  %8950 = vmatpush1.bf16.msra.mxu1 %v12730_v57  ;;  %v12732_v57 = vld [vmem:[#allocation9 + $0xf8] sm:$0xff]  }
 0xbe2   :  { %8951 = vmatprep.subr.bf16.mxu1 %v17858_v21 }
 0xbe3   :  { %v11579_v53 = vpop.f32.mrb[228].mxu1  ;;  %v16674_v4 = vsel %vm3101_vm6, %v8001_v52, %v8002_v61  ;;  %v7640_v61 = vrot.slane %v7638_v37, 1  ;;  %v12731_v52 = vld [vmem:[#allocation9 + $0xf0] sm:$0xff]  }
 0xbe4   :  { %17907 = vst [vmem:[#allocation64_spill] sm:$0xff] %v16674_v4  ;;  %11670 = vmatmul.mubr.bf16.gmra.mrb[104].mxu0 %v16674_v4  ;;  %v7173_v47 = vpop.f32.mrb[229].mxu1  ;;  %v16679_v49 = vpack.c.bf16 %v11579_v53, %v11579_v53 }
 0xbe5   :  { %v11580_v17 = vpop.f32.mrb[230].mxu1  ;;  %8952 = vmatpush1.bf16.msra.mxu1 %v12731_v52  ;;  %v7641_v37 = vor.u32 %v7640_v61, %v7636_v13 }
 0xbe6   :  { %v7176_v14 = vpop.f32.mrb[231].mxu1  ;;  %v8005_v39 = vrot.slane %v16679_v49, 1  ;;  %v7643_v17 = vshll.u32 %v16683_v45, 16  ;;  %8953 = vmatprep.subr.bf16.mxu1 %v17858_v21 }
 0xbe7   :  { %v16685_v34 = vpack.c.bf16 %v7176_v14, %v7173_v47  ;;  %v7650_v14 = vshll.u32 %v16498_v30, 16 }
 0xbe8   :  { %8787 = vmatmul.mubr.bf16.gmra.mrb[52].mxu1 %v16446_v3  ;;  %v7645_v45 = vrot.slane %v7643_v17, 1 }
 0xbe9   :  { %17909 = vst [vmem:[#allocation66_spill] sm:$0xff] %v16685_v34  ;;  %8794 = vmatprep.mubr.bf16.mxu1 %v17859_v46  ;;  %v8004_v53 = vrot.slane %v16685_v34, 1  ;;  %8954 = vmatpush1.bf16.msra.mxu1 %v12732_v57  ;;  %v7652_v61 = vrot.slane %v7650_v14, 1 }
 0xbea   :  { %v16706_v52 = vsel %vm2858_vm5, %v7641_v37, %v7645_v45  ;;  %9212 = vmatprep.subr.bf16.mxu1 %v17858_v21  ;;  %v7662_v45 = vshll.u32 %v16517_v50, 16 }
 0xbeb   :  { %v11585_v4 = vpop.f32.mrb[232].mxu1  ;;  %v16695_v47 = vsel %vm3101_vm6, %v8004_v53, %v8005_v39  ;;  %17912 = vst [vmem:[#allocation69_spill] sm:$0xff] %v16706_v52 }
 0xbec   :  { %17910 = vst [vmem:[#allocation67_spill] sm:$0xff] %v16695_v47  ;;  %v7221_v24 = vpop.f32.mrb[233].mxu1  ;;  %11673 = vmatprep.mubr.bf16.mxu0 %v16695_v47  ;;  %v16700_v3 = vpack.c.bf16 %v11585_v4, %v11585_v4 }
 0xbed   :  { %v11586_v9 = vpop.f32.mrb[234].mxu1 }
 0xbee   :  { %v7224_v20 = vpop.f32.mrb[235].mxu1  ;;  %v8008_v39 = vrot.slane %v16700_v3, 1  ;;  %v7655_v9 = vshll.u32 %v16496_v27, 16 }
 0xbef   :  { %v16702_v1 = vpack.c.bf16 %v7224_v20, %v7221_v24  ;;  %v7648_v20 = vshrl.u32 %v16498_v30, 16 }
 0xbf0   :  { %8795 = vmatmul.mubr.bf16.gmra.mrb[56].mxu1 %v17858_v21  ;;  %v7657_v14 = vrot.slane %v7655_v9, 1 }
 0xbf1   :  { %17911 = vst [vmem:[#allocation68_spill] sm:$0xff] %v16702_v1  ;;  %8802 = vmatprep.mubr.bf16.mxu1 %v16706_v52  ;;  %v8007_v4 = vrot.slane %v16702_v1, 1  ;;  %v7653_v17 = vor.u32 %v7652_v61, %v7648_v20  ;;  %v7664_v61 = vrot.slane %v7662_v45, 1 }
 0xbf3   :  { %v11591_v24 = vpop.f32.mrb[236].mxu1  ;;  %v16715_v53 = vsel %vm3101_vm6, %v8007_v4, %v8008_v39  ;;  %v16727_v39 = vsel %vm2858_vm5, %v7653_v17, %v7657_v14  ;;  %v7674_v14 = vshll.u32 %v16535_v36, 16 }
 0xbf4   :  { %17913 = vst [vmem:[#allocation70_spill] sm:$0xff] %v16715_v53  ;;  %11674 = vmatmul.mubr.bf16.gmra.mrb[108].mxu0 %v16715_v53  ;;  %v7269_v13 = vpop.f32.mrb[237].mxu1  ;;  %v16719_v57 = vpack.c.bf16 %v11591_v24, %v11591_v24  ;;  %17916 = vst [vmem:[#allocation73_spill] sm:$0xff] %v16727_v39 }
 0xbf5   :  { %v11592_v37 = vpop.f32.mrb[238].mxu1 }
 0xbf6   :  { %v7272_v52 = vpop.f32.mrb[239].mxu1  ;;  %v8011_v20 = vrot.slane %v16719_v57, 1 }
 0xbf7   :  { %v16721_v47 = vpack.c.bf16 %v7272_v52, %v7269_v13  ;;  %v16723_v27 = vpop.f32.mrb[56].mxu0  ;;  %v7667_v52 = vshll.u32 %v16515_v7, 16  ;;  %v7660_v13 = vshrl.u32 %v16517_v50, 16 }
 0xbf8   :  { %17915 = vst [vmem:[#allocation72_spill] sm:$0xff] %v16723_v27  ;;  %8803 = vmatmul.mubr.bf16.gmra.mrb[60].mxu1 %v16486_v6  ;;  %v16729_v4 = vpop.f32.mrb[57].mxu0 }
 0xbf9   :  { %17914 = vst [vmem:[#allocation71_spill] sm:$0xff] %v16721_v47  ;;  %17917 = vst [vmem:[#allocation74_spill] sm:$0xff] %v16729_v4  ;;  %8810 = vmatprep.mubr.bf16.mxu1 %v16727_v39  ;;  %v16733_v24 = vpop.f32.mrb[58].mxu0  ;;  %v8010_v9 = vrot.slane %v16721_v47, 1  ;;  %v7665_v45 = vor.u32 %v7664_v61, %v7660_v13  ;;  %v7669_v53 = vrot.slane %v7667_v52, 1  ;;  %v7686_v13 = vshll.u32 %v16554_v29, 16 }
 0xbfa   :  { %17918 = vst [vmem:[#allocation75_spill] sm:$0xff] %v16733_v24  ;;  %v16738_v37 = vpop.f32.mrb[59].mxu0 }
 0xbfb   :  { %17919 = vst [vmem:[#allocation76_spill] sm:$0xff] %v16738_v37  ;;  %v11597_v27 = vpop.f32.mrb[240].mxu1  ;;  %v16741_v17 = vsel %vm3101_vm6, %v8010_v9, %v8011_v20  ;;  %v16751_v37 = vsel %vm2858_vm5, %v7665_v45, %v7669_v53  ;;  %v7676_v20 = vrot.slane %v7674_v14, 1 }
 0xbfc   :  { %17920 = vst [vmem:[#allocation77_spill] sm:$0xff] %v16741_v17  ;;  %v7317_v4 = vpop.f32.mrb[241].mxu1  ;;  %11677 = vmatprep.mubr.bf16.mxu0 %v16741_v17  ;;  %v16745_v39 = vpack.c.bf16 %v11597_v27, %v11597_v27  ;;  %17922 = vst [vmem:[#allocation79_spill] sm:$0xff] %v16751_v37  ;;  %v7679_v27 = vshll.u32 %v16533_v41, 16 }
 0xbfd   :  { %v11598_v24 = vpop.f32.mrb[242].mxu1 }
 0xbfe   :  { %v7320_v6 = vpop.f32.mrb[243].mxu1  ;;  %v8014_v61 = vrot.slane %v16745_v39, 1  ;;  %v7672_v24 = vshrl.u32 %v16535_v36, 16 }
 0xbff   :  { %v16747_v7 = vpack.c.bf16 %v7320_v6, %v7317_v4 }
 0xc00   :  { %8811 = vmatmul.mubr.bf16.gmra.mrb[64].mxu1 %v16498_v30  ;;  %v7677_v4 = vor.u32 %v7676_v20, %v7672_v24  ;;  %v7688_v20 = vrot.slane %v7686_v13, 1  ;;  %v7698_v13 = vshll.u32 %v16572_v59, 16 }
 0xc01   :  { %17921 = vst [vmem:[#allocation78_spill] sm:$0xff] %v16747_v7  ;;  %8818 = vmatprep.mubr.bf16.mxu1 %v16751_v37  ;;  %v8013_v9 = vrot.slane %v16747_v7, 1  ;;  %v7681_v37 = vrot.slane %v7679_v27, 1 }
 0xc03   :  { %v11603_v52 = vpop.f32.mrb[244].mxu1  ;;  %v16759_v6 = vsel %vm3101_vm6, %v8013_v9, %v8014_v61  ;;  %v16771_v61 = vsel %vm2858_vm5, %v7677_v4, %v7681_v37 }
 0xc04   :  { %11678 = vmatmul.mubr.bf16.gmra.mrb[112].mxu0 %v16759_v6  ;;  %v7365_v53 = vpop.f32.mrb[245].mxu1  ;;  %v16763_v45 = vpack.c.bf16 %v11603_v52, %v11603_v52 }
 0xc05   :  { %v11604_v14 = vpop.f32.mrb[246].mxu1 }
 0xc06   :  { %v7368_v17 = vpop.f32.mrb[247].mxu1  ;;  %v8017_v24 = vrot.slane %v16763_v45, 1 }
 0xc07   :  { %v16765_v30 = vpack.c.bf16 %v7368_v17, %v7365_v53  ;;  %v16767_v41 = vpop.f32.mrb[60].mxu0  ;;  %v7691_v17 = vshll.u32 %v16552_v19, 16  ;;  %v7684_v53 = vshrl.u32 %v16554_v29, 16  ;;  %v7700_v19 = vrot.slane %v7698_v13, 1 }
 0xc08   :  { %17923 = vst [vmem:[#allocation80_spill] sm:$0xff] %v16767_v41  ;;  %8819 = vmatmul.mubr.bf16.gmra.mrb[68].mxu1 %v16517_v50  ;;  %v16773_v9 = vpop.f32.mrb[61].mxu0 }
 0xc09   :  { %17924 = vst [vmem:[#allocation81_spill] sm:$0xff] %v16773_v9  ;;  %8826 = vmatprep.mubr.bf16.mxu1 %v16771_v61  ;;  %v16777_v52 = vpop.f32.mrb[62].mxu0  ;;  %v8016_v27 = vrot.slane %v16765_v30, 1  ;;  %v7689_v4 = vor.u32 %v7688_v20, %v7684_v53  ;;  %v7693_v41 = vrot.slane %v7691_v17, 1 }
 0xc0a   :  { %17925 = vst [vmem:[#allocation82_spill] sm:$0xff] %v16777_v52  ;;  %v16782_v14 = vpop.f32.mrb[63].mxu0 }
 0xc0b   :  { %17926 = vst [vmem:[#allocation83_spill] sm:$0xff] %v16782_v14  ;;  %v16785_v37 = vsel %vm3101_vm6, %v8016_v27, %v8017_v24  ;;  %v16792_v52 = vsel %vm2858_vm5, %v7689_v4, %v7693_v41  ;;  %v7703_v14 = vshll.u32 %v16570_v15, 16  ;;  %v7696_v24 = vshrl.u32 %v16572_v59, 16 }
 0xc0c   :  { %17927 = vst [vmem:[#allocation84_spill] sm:$0xff] %v16785_v37  ;;  %11681 = vmatprep.mubr.bf16.mxu0 %v16785_v37  ;;  %v7710_v27 = vshll.u32 %v16591_v22, 16  ;;  %v7715_v15 = vshll.u32 %v16589_v10, 16  ;;  %v7720_v10 = vshrl.u32 %v16609_v55, 16 }
 0xc0d   :  { %11682 = vmatmul.mubr.bf16.gmra.mrb[116].mxu0 %v17859_v46  ;;  %v7701_v20 = vor.u32 %v7700_v19, %v7696_v24  ;;  %v7705_v53 = vrot.slane %v7703_v14, 1  ;;  %v7708_v19 = vshrl.u32 %v16591_v22, 16 }
 0xc0e   :  { %v7712_v41 = vrot.slane %v7710_v27, 1  ;;  %v7717_v37 = vrot.slane %v7715_v15, 1 }
 0xc0f   :  { %v16802_v17 = vsel %vm2858_vm5, %v7701_v20, %v7705_v53  ;;  %v7727_v53 = vshll.u32 %v16607_v26, 16  ;;  %v7739_v26 = vshll.u32 %v16626_v43, 16  ;;  %v7744_v43 = vshrl.u32 %v16646_v5, 16 }
 0xc10   :  { %8827 = vmatmul.mubr.bf16.gmra.mrb[72].mxu1 %v16535_v36  ;;  %v7713_v14 = vor.u32 %v7712_v41, %v7708_v19 }
 0xc11   :  { %8834 = vmatprep.mubr.bf16.mxu1 %v16792_v52 }
 0xc12   :  { %v16816_v20 = vsel %vm2858_vm5, %v7713_v14, %v7717_v37  ;;  %v7732_v14 = vshrl.u32 %v16628_v63, 16 }
 0xc17   :  { %v16798_v9 = vpop.f32.mrb[64].mxu0 }
 0xc18   :  { %17928 = vst [vmem:[#allocation85_spill] sm:$0xff] %v16798_v9  ;;  %8835 = vmatmul.mubr.bf16.gmra.mrb[76].mxu1 %v16554_v29  ;;  %v16804_v4 = vpop.f32.mrb[65].mxu0  ;;  %v7722_v9 = vshll.u32 %v16609_v55, 16 }
 0xc19   :  { %17929 = vst [vmem:[#allocation86_spill] sm:$0xff] %v16804_v4  ;;  %8842 = vmatprep.mubr.bf16.mxu1 %v16802_v17  ;;  %v16807_v13 = vpop.f32.mrb[66].mxu0  ;;  %v7734_v4 = vshll.u32 %v16628_v63, 16 }
 0xc1a   :  { %17930 = vst [vmem:[#allocation87_spill] sm:$0xff] %v16807_v13  ;;  %v16811_v24 = vpop.f32.mrb[67].mxu0  ;;  %v7724_v27 = vrot.slane %v7722_v9, 1 }
 0xc1b   :  { %17931 = vst [vmem:[#allocation88_spill] sm:$0xff] %v16811_v24  ;;  %v7729_v24 = vrot.slane %v7727_v53, 1  ;;  %v7736_v37 = vrot.slane %v7734_v4, 1 }
 0xc1c   :  { %v7725_v13 = vor.u32 %v7724_v27, %v7720_v10  ;;  %v7746_v10 = vshll.u32 %v16646_v5, 16 }
 0xc1d   :  { %v7737_v53 = vor.u32 %v7736_v37, %v7732_v14 }
 0xc1e   :  { %v16826_v15 = vsel %vm2858_vm5, %v7725_v13, %v7729_v24  ;;  %v7748_v13 = vrot.slane %v7746_v10, 1  ;;  %v7751_v24 = vshll.u32 %v16644_v2, 16  ;;  %v7763_v2 = vshll.u32 %v16662_v58, 16 }
 0xc1f   :  { %v7756_v10 = vshrl.u32 %v16664_v42, 16  ;;  %v7768_v58 = vshrl.u32 %v16685_v34, 16 }
 0xc20   :  { %8843 = vmatmul.mubr.bf16.gmra.mrb[80].mxu1 %v16572_v59 }
 0xc21   :  { %8850 = vmatprep.mubr.bf16.mxu1 %v16816_v20 }
 0xc27   :  { %v16822_v41 = vpop.f32.mrb[68].mxu0 }
 0xc28   :  { %17932 = vst [vmem:[#allocation89_spill] sm:$0xff] %v16822_v41  ;;  %8851 = vmatmul.mubr.bf16.gmra.mrb[84].mxu1 %v16591_v22  ;;  %v16828_v19 = vpop.f32.mrb[69].mxu0  ;;  %v7741_v41 = vrot.slane %v7739_v26, 1 }
 0xc29   :  { %17933 = vst [vmem:[#allocation90_spill] sm:$0xff] %v16828_v19  ;;  %8858 = vmatprep.mubr.bf16.mxu1 %v16826_v15  ;;  %v16831_v9 = vpop.f32.mrb[70].mxu0  ;;  %v7758_v19 = vshll.u32 %v16664_v42, 16 }
 0xc2a   :  { %17934 = vst [vmem:[#allocation91_spill] sm:$0xff] %v16831_v9  ;;  %v16835_v27 = vpop.f32.mrb[71].mxu0  ;;  %v16840_v4 = vsel %vm2858_vm5, %v7737_v53, %v7741_v41  ;;  %v7749_v9 = vor.u32 %v7748_v13, %v7744_v43  ;;  %v7770_v43 = vshll.u32 %v16685_v34, 16 }
 0xc2b   :  { %17935 = vst [vmem:[#allocation92_spill] sm:$0xff] %v16835_v27  ;;  %v7753_v27 = vrot.slane %v7751_v24, 1  ;;  %v7760_v41 = vrot.slane %v7758_v19, 1 }
 0xc2d   :  { %v16850_v26 = vsel %vm2858_vm5, %v7749_v9, %v7753_v27  ;;  %v7761_v24 = vor.u32 %v7760_v41, %v7756_v10  ;;  %v7772_v9 = vrot.slane %v7770_v43, 1  ;;  %v7775_v27 = vshll.u32 %v16679_v49, 16 }
 0xc2e   :  { %v7787_v49 = vshll.u32 %v16700_v3, 16  ;;  %v7780_v43 = vshrl.u32 %v16702_v1, 16  ;;  %v7792_v3 = vshrl.u32 %v16721_v47, 16 }
 0xc30   :  { %8859 = vmatmul.mubr.bf16.gmra.mrb[88].mxu1 %v16609_v55 }
 0xc31   :  { %8866 = vmatprep.mubr.bf16.mxu1 %v16840_v4 }
 0xc37   :  { %v16846_v37 = vpop.f32.mrb[72].mxu0 }
 0xc38   :  { %17936 = vst [vmem:[#allocation93_spill] sm:$0xff] %v16846_v37  ;;  %8867 = vmatmul.mubr.bf16.gmra.mrb[92].mxu1 %v16628_v63  ;;  %v16852_v14 = vpop.f32.mrb[73].mxu0  ;;  %v7765_v37 = vrot.slane %v7763_v2, 1 }
 0xc39   :  { %17937 = vst [vmem:[#allocation94_spill] sm:$0xff] %v16852_v14  ;;  %8874 = vmatprep.mubr.bf16.mxu1 %v16850_v26  ;;  %v16855_v53 = vpop.f32.mrb[74].mxu0  ;;  %v7782_v14 = vshll.u32 %v16702_v1, 16 }
 0xc3a   :  { %17938 = vst [vmem:[#allocation95_spill] sm:$0xff] %v16855_v53  ;;  %v16859_v13 = vpop.f32.mrb[75].mxu0  ;;  %v16864_v19 = vsel %vm2858_vm5, %v7761_v24, %v7765_v37  ;;  %v7773_v53 = vor.u32 %v7772_v9, %v7768_v58  ;;  %v7794_v58 = vshll.u32 %v16721_v47, 16 }
 0xc3b   :  { %17939 = vst [vmem:[#allocation96_spill] sm:$0xff] %v16859_v13  ;;  %v7777_v13 = vrot.slane %v7775_v27, 1  ;;  %v7784_v37 = vrot.slane %v7782_v14, 1 }
 0xc3d   :  { %v16874_v2 = vsel %vm2858_vm5, %v7773_v53, %v7777_v13  ;;  %v7785_v27 = vor.u32 %v7784_v37, %v7780_v43  ;;  %v7796_v53 = vrot.slane %v7794_v58, 1  ;;  %v7799_v13 = vshll.u32 %v16719_v57, 16 }
 0xc3e   :  { %v7811_v57 = vshll.u32 %v16745_v39, 16  ;;  %v7804_v58 = vshrl.u32 %v16747_v7, 16 }
 0xc40   :  { %8875 = vmatmul.mubr.bf16.gmra.mrb[96].mxu1 %v16646_v5 }
 0xc41   :  { %8882 = vmatprep.mubr.bf16.mxu1 %v16864_v19 }
 0xc47   :  { %v16870_v41 = vpop.f32.mrb[76].mxu0 }
 0xc48   :  { %17940 = vst [vmem:[#allocation97_spill] sm:$0xff] %v16870_v41  ;;  %8883 = vmatmul.mubr.bf16.gmra.mrb[100].mxu1 %v16664_v42  ;;  %v16876_v10 = vpop.f32.mrb[77].mxu0  ;;  %v7789_v41 = vrot.slane %v7787_v49, 1 }
 0xc49   :  { %17941 = vst [vmem:[#allocation98_spill] sm:$0xff] %v16876_v10  ;;  %8890 = vmatprep.mubr.bf16.mxu1 %v16874_v2  ;;  %v16879_v24 = vpop.f32.mrb[78].mxu0  ;;  %v7806_v10 = vshll.u32 %v16747_v7, 16 }
 0xc4a   :  { %17942 = vst [vmem:[#allocation99_spill] sm:$0xff] %v16879_v24  ;;  %v16883_v9 = vpop.f32.mrb[79].mxu0  ;;  %v16888_v14 = vsel %vm2858_vm5, %v7785_v27, %v7789_v41  ;;  %v7797_v24 = vor.u32 %v7796_v53, %v7792_v3  ;;  %v7813_v3 = vrot.slane %v7811_v57, 1  ;;  %v12734_v57 = vld [vmem:[#allocation9 + $0x108] sm:$0xff]  }
 0xc4b   :  { %17943 = vst [vmem:[#allocation100_spill] sm:$0xff] %v16883_v9  ;;  %v7801_v9 = vrot.slane %v7799_v13, 1  ;;  %v7808_v41 = vrot.slane %v7806_v10, 1 }
 0xc4d   :  { %v16898_v49 = vsel %vm2858_vm5, %v7797_v24, %v7801_v9  ;;  %v7809_v13 = vor.u32 %v7808_v41, %v7804_v58  ;;  %v12733_v41 = vld [vmem:[#allocation9 + $0x100] sm:$0xff]   ;;  %v7923_v58 = vrot.slane %v16241_v44, 1 }
 0xc4f   :  { %v16911_v24 = vsel %vm2858_vm5, %v7809_v13, %v7813_v3  ;;  %v7924_v13 = vrot.slane %v16388_v23, 1  ;;  %v12735_v3 = vld [vmem:[#allocation9 + $0x110] sm:$0xff]  }
 0xc50   :  { %8891 = vmatmul.mubr.bf16.gmra.mrb[104].mxu1 %v16685_v34 }
 0xc51   :  { %8898 = vmatprep.mubr.bf16.mxu1 %v16888_v14 }
 0xc57   :  { %v16894_v37 = vpop.f32.mrb[80].mxu0 }
 0xc58   :  { %17944 = vst [vmem:[#allocation101_spill] sm:$0xff] %v16894_v37  ;;  %8899 = vmatmul.mubr.bf16.gmra.mrb[108].mxu1 %v16702_v1  ;;  %v16900_v43 = vpop.f32.mrb[81].mxu0 }
 0xc59   :  { %17945 = vst [vmem:[#allocation102_spill] sm:$0xff] %v16900_v43  ;;  %8906 = vmatprep.mubr.bf16.mxu1 %v16898_v49  ;;  %v16903_v27 = vpop.f32.mrb[82].mxu0 }
 0xc5a   :  { %17946 = vst [vmem:[#allocation103_spill] sm:$0xff] %v16903_v27  ;;  %v16907_v53 = vpop.f32.mrb[83].mxu0 }
 0xc5b   :  { %17947 = vst [vmem:[#allocation104_spill] sm:$0xff] %v16907_v53 }
 0xc60   :  { %8907 = vmatmul.mubr.bf16.gmra.mrb[112].mxu1 %v16721_v47  ;;  %v16913_v10 = vpop.f32.mrb[84].mxu0 }
 0xc61   :  { %17948 = vst [vmem:[#allocation105_spill] sm:$0xff] %v16913_v10  ;;  %8914 = vmatprep.mubr.bf16.mxu1 %v16911_v24  ;;  %v16916_v9 = vpop.f32.mrb[85].mxu0 }
 0xc62   :  { %17949 = vst [vmem:[#allocation106_spill] sm:$0xff] %v16916_v9  ;;  %v16918_v27 = vpop.f32.mrb[86].mxu0 }
 0xc63   :  { %17950 = vst [vmem:[#allocation107_spill] sm:$0xff] %v16918_v27  ;;  %v16920_v39 = vpop.f32.mrb[87].mxu0  ;;  %v16931_v27 = vsel %vm3101_vm6, %v7923_v58, %v7924_v13  ;;  %v12738_v58 = vld [vmem:[#allocation9 + $0x128] sm:$0xff]  }
 0xc64   :  { %17951 = vst [vmem:[#allocation108_spill] sm:$0xff] %v16920_v39 }
 0xc68   :  { %8915 = vmatmul.mubr.bf16.gmra.mrb[116].mxu1 %v16747_v7 }
 0xc69   :  { %8955 = vmatprep.mubr.bf16.mxu1 %v16241_v44  ;;  %v12736_v44 = vld [vmem:[#allocation9 + $0x118] sm:$0xff]  }
 0xc70   :  { %8956 = vmatmul.mubr.bf16.vlgmr.msra.gmra.mrb[248].mxu1 %v17859_v46 }
 0xc71   :  { %8963 = vmatprep.mubr.bf16.mxu1 %v16251_v11  ;;  %9213 = vmatpush1.bf16.msra.mxu1 %v12733_v41 }
 0xc72   :  { %9214 = vmatprep.subr.bf16.mxu1 %v17858_v21 }
 0xc75   :  { %9215 = vmatpush1.bf16.msra.mxu1 %v12734_v57  ;;  %v12737_v57 = vld [vmem:[#allocation9 + $0x120] sm:$0xff]  }
 0xc76   :  { %9216 = vmatprep.subr.bf16.mxu1 %v17858_v21 }
 0xc77   :  { %v16933_v10 = vpop.f32.mrb[88].mxu0 }
 0xc78   :  { %17952 = vst [vmem:[#allocation109_spill] sm:$0xff] %v16933_v10  ;;  %8964 = vmatmul.mubr.bf16.gmra.mrb[252].mxu1 %v16931_v27  ;;  %v16936_v39 = vpop.f32.mrb[89].mxu0 }
 0xc79   :  { %17953 = vst [vmem:[#allocation110_spill] sm:$0xff] %v16936_v39  ;;  %8971 = vmatprep.mubr.bf16.mxu1 %v16267_v32  ;;  %v16939_v41 = vpop.f32.mrb[90].mxu0  ;;  %9217 = vmatpush1.bf16.msra.mxu1 %v12735_v3 }
 0xc7a   :  { %17954 = vst [vmem:[#allocation111_spill] sm:$0xff] %v16939_v41  ;;  %v16941_v23 = vpop.f32.mrb[91].mxu0  ;;  %9218 = vmatprep.subr.bf16.mxu1 %v17858_v21  ;;  %v12739_v41 = vld [vmem:[#allocation9 + $0x130] sm:$0xff]  }
 0xc7b   :  { %17955 = vst [vmem:[#allocation112_spill] sm:$0xff] %v16941_v23 }
 0xc7d   :  { %9219 = vmatpush1.bf16.msra.mxu1 %v12736_v44 }
 0xc7e   :  { %9220 = vmatprep.subr.bf16.mxu1 %v17858_v21 }
 0xc80   :  { %8972 = vmatmul.mubr.bf16.gmra.mrb[0].mxu1 %v16262_v38 }
 0xc81   :  { %8979 = vmatprep.mubr.bf16.mxu1 %v16283_v51  ;;  %9221 = vmatpush1.bf16.msra.mxu1 %v12737_v57 }
 0xc82   :  { %9222 = vmatprep.subr.bf16.mxu1 %v17858_v21 }
 0xc85   :  { %9223 = vmatpush1.bf16.msra.mxu1 %v12738_v58 }
 0xc86   :  { %9224 = vmatprep.subr.bf16.mxu1 %v17858_v21 }
 0xc87   :  { %v16949_v13 = vpop.f32.mrb[92].mxu0 }
 0xc88   :  { %17956 = vst [vmem:[#allocation113_spill] sm:$0xff] %v16949_v13  ;;  %8980 = vmatmul.mubr.bf16.gmra.mrb[4].mxu1 %v16278_v40  ;;  %v16952_v3 = vpop.f32.mrb[93].mxu0 }
 0xc89   :  { %17957 = vst [vmem:[#allocation114_spill] sm:$0xff] %v16952_v3  ;;  %8987 = vmatprep.mubr.bf16.mxu1 %v16299_v0  ;;  %v16955_v44 = vpop.f32.mrb[94].mxu0  ;;  %9225 = vmatpush1.bf16.msra.mxu1 %v12739_v41 }
 0xc8a   :  { %17958 = vst [vmem:[#allocation115_spill] sm:$0xff] %v16955_v44  ;;  %v16957_v10 = vpop.f32.mrb[95].mxu0  ;;  %9226 = vmatprep.subr.bf16.mxu1 %v17858_v21  ;;  %v12740_v44 = vld [vmem:[#allocation9 + $0x138] sm:$0xff]  }
 0xc8b   :  { %17959 = vst [vmem:[#allocation116_spill] sm:$0xff] %v16957_v10 }
 0xc8d   :  { %9227 = vmatpush1.bf16.msra.mxu1 %v12740_v44 }
 0xc8e   :  { %9228 = vmatprep.subr.bf16.mxu1 %v17858_v21 }
 0xc90   :  { %8988 = vmatmul.mubr.bf16.gmra.mrb[8].mxu1 %v16294_v60 }
 0xc91   :  { %8995 = vmatprep.mubr.bf16.mxu1 %v16314_v28 }
 0xc97   :  { %v16962_v57 = vpop.f32.mrb[96].mxu0 }
 0xc98   :  { %17960 = vst [vmem:[#allocation117_spill] sm:$0xff] %v16962_v57  ;;  %8996 = vmatmul.mubr.bf16.gmra.mrb[12].mxu1 %v16308_v62  ;;  %v16965_v58 = vpop.f32.mrb[97].mxu0 }
 0xc99   :  { %17961 = vst [vmem:[#allocation118_spill] sm:$0xff] %v16965_v58  ;;  %9003 = vmatprep.mubr.bf16.mxu1 %v16326_v25  ;;  %v16968_v13 = vpop.f32.mrb[98].mxu0 }
 0xc9a   :  { %17962 = vst [vmem:[#allocation119_spill] sm:$0xff] %v16968_v13  ;;  %v16970_v3 = vpop.f32.mrb[99].mxu0  ;;  %v12741_v13 = vld [vmem:[#allocation9 + $0x140] sm:$0xff]  }
 0xc9b   :  { %17963 = vst [vmem:[#allocation120_spill] sm:$0xff] %v16970_v3  ;;  %9229 = vmatpush1.bf16.msra.mxu1 %v12741_v13 }
 0xc9c   :  { %9230 = vmatprep.subr.bf16.mxu1 %v17858_v21 }
 0xca0   :  { %9004 = vmatmul.mubr.bf16.gmra.mrb[16].mxu1 %v16320_v54 }
 0xca1   :  { %9011 = vmatprep.mubr.bf16.mxu1 %v16338_v18 }
 0xca7   :  { %v16975_v41 = vpop.f32.mrb[100].mxu0 }
 0xca8   :  { %17964 = vst [vmem:[#allocation121_spill] sm:$0xff] %v16975_v41  ;;  %9012 = vmatmul.mubr.bf16.gmra.mrb[20].mxu1 %v16332_v8  ;;  %v16978_v57 = vpop.f32.mrb[101].mxu0 }
 0xca9   :  { %17965 = vst [vmem:[#allocation122_spill] sm:$0xff] %v16978_v57  ;;  %9019 = vmatprep.mubr.bf16.mxu1 %v16350_v31  ;;  %v16981_v58 = vpop.f32.mrb[102].mxu0 }
 0xcaa   :  { %17966 = vst [vmem:[#allocation123_spill] sm:$0xff] %v16981_v58  ;;  %v16983_v10 = vpop.f32.mrb[103].mxu0  ;;  %v12742_v58 = vld [vmem:[#allocation9 + $0x148] sm:$0xff]  }
 0xcab   :  { %17967 = vst [vmem:[#allocation124_spill] sm:$0xff] %v16983_v10  ;;  %9231 = vmatpush1.bf16.msra.mxu1 %v12742_v58  ;;  %v17978_v58 = vld [vmem:[#allocation21_spill] sm:$0xff] }
 0xcac   :  { %9232 = vmatprep.subr.bf16.mxu1 %v17858_v21 }
 0xcb0   :  { %9020 = vmatmul.mubr.bf16.gmra.mrb[24].mxu1 %v16344_v56 }
 0xcb1   :  { %9027 = vmatprep.mubr.bf16.mxu1 %v16362_v48 }
 0xcb7   :  { %v16988_v44 = vpop.f32.mrb[104].mxu0 }
 0xcb8   :  { %17968 = vst [vmem:[#allocation125_spill] sm:$0xff] %v16988_v44  ;;  %9028 = vmatmul.mubr.bf16.gmra.mrb[28].mxu1 %v16356_v16  ;;  %v16991_v41 = vpop.f32.mrb[105].mxu0  ;;  %v17973_v44 = vld [vmem:[#allocation18_spill] sm:$0xff] }
 0xcb9   :  { %17969 = vst [vmem:[#allocation126_spill] sm:$0xff] %v16991_v41  ;;  %9035 = vmatprep.mubr.bf16.mxu1 %v16374_v35  ;;  %v16994_v57 = vpop.f32.mrb[106].mxu0  ;;  %v17975_v41 = vld [vmem:[#allocation19_spill] sm:$0xff] }
 0xcba   :  { %17970 = vst [vmem:[#allocation127_spill] sm:$0xff] %v16994_v57  ;;  %v16996_v3 = vpop.f32.mrb[107].mxu0  ;;  %v12743_v57 = vld [vmem:[#allocation9 + $0x150] sm:$0xff]  }
 0xcbb   :  { %17971 = vst [vmem:[#allocation128_spill] sm:$0xff] %v16996_v3  ;;  %9233 = vmatpush1.bf16.msra.mxu1 %v12743_v57  ;;  %v17979_v3 = vld [vmem:[#allocation39_spill] sm:$0xff]  ;;  %v17986_v57 = vld [vmem:[#allocation38_spill] sm:$0xff] }
 0xcbc   :  { %9234 = vmatprep.subr.bf16.mxu1 %v17858_v21 }
 0xcc0   :  { %9036 = vmatmul.mubr.bf16.gmra.mrb[32].mxu1 %v16368_v33 }
 0xcc1   :  { %9043 = vmatprep.mubr.bf16.mxu1 %v16391_v12 }
 0xcc7   :  { %v17001_v13 = vpop.f32.mrb[108].mxu0 }
 0xcc8   :  { %17972 = vst [vmem:[#allocation129_spill] sm:$0xff] %v17001_v13  ;;  %9044 = vmatmul.mubr.bf16.gmra.mrb[36].mxu1 %v17973_v44  ;;  %v17004_v10 = vpop.f32.mrb[109].mxu0  ;;  %v17981_v13 = vld [vmem:[#allocation36_spill] sm:$0xff] }
 0xcc9   :  { %17974 = vst [vmem:[#allocation18_spill] sm:$0xff] %v17004_v10  ;;  %9051 = vmatprep.mubr.bf16.mxu1 %v17975_v41  ;;  %v17007_v23 = vpop.f32.mrb[110].mxu0  ;;  %v17983_v10 = vld [vmem:[#allocation40_spill] sm:$0xff] }
 0xcca   :  { %17976 = vst [vmem:[#allocation130_spill] sm:$0xff] %v17007_v23  ;;  %v17009_v39 = vpop.f32.mrb[111].mxu0  ;;  %v12744_v23 = vld [vmem:[#allocation9 + $0x158] sm:$0xff]  }
 0xccb   :  { %17977 = vst [vmem:[#allocation131_spill] sm:$0xff] %v17009_v39  ;;  %9235 = vmatpush1.bf16.msra.mxu1 %v12744_v23  ;;  %v17987_v39 = vld [vmem:[#allocation42_spill] sm:$0xff] }
 0xccc   :  { %9236 = vmatprep.subr.bf16.mxu1 %v17858_v21  ;;  %v12748_v23 = vld [vmem:[#allocation9 + $0x178] sm:$0xff]  }
 0xcd0   :  { %9052 = vmatmul.mubr.bf16.gmra.mrb[40].mxu1 %v17978_v58 }
 0xcd1   :  { %9059 = vmatprep.mubr.bf16.mxu1 %v17979_v3  ;;  %v12745_v3 = vld [vmem:[#allocation9 + $0x160] sm:$0xff]  }
 0xcd2   :  { %9237 = vmatpush1.bf16.msra.mxu1 %v12745_v3  ;;  %v17990_v3 = vld [vmem:[#allocation25_spill] sm:$0xff] }
 0xcd3   :  { %9238 = vmatprep.subr.bf16.mxu1 %v17858_v21 }
 0xcd7   :  { %v17014_v9 = vpop.f32.mrb[112].mxu0 }
 0xcd8   :  { %17980 = vst [vmem:[#allocation21_spill] sm:$0xff] %v17014_v9  ;;  %9060 = vmatmul.mubr.bf16.gmra.mrb[44].mxu1 %v17981_v13  ;;  %v17017_v37 = vpop.f32.mrb[113].mxu0  ;;  %v12746_v9 = vld [vmem:[#allocation9 + $0x168] sm:$0xff]  }
 0xcd9   :  { %17982 = vst [vmem:[#allocation36_spill] sm:$0xff] %v17017_v37  ;;  %9067 = vmatprep.mubr.bf16.mxu1 %v17983_v10  ;;  %v17020_v53 = vpop.f32.mrb[114].mxu0  ;;  %9239 = vmatpush1.bf16.msra.mxu1 %v12746_v9  ;;  %v17988_v37 = vld [vmem:[#allocation30_spill] sm:$0xff]  ;;  %v17989_v10 = vld [vmem:[#allocation20_spill] sm:$0xff] }
 0xcda   :  { %17984 = vst [vmem:[#allocation132_spill] sm:$0xff] %v17020_v53  ;;  %v17022_v43 = vpop.f32.mrb[115].mxu0  ;;  %9240 = vmatprep.subr.bf16.mxu1 %v17858_v21  ;;  %v12747_v53 = vld [vmem:[#allocation9 + $0x170] sm:$0xff]   ;;  %v7971_v9 = vrot.slane %v17989_v10, 1 }
 0xcdb   :  { %17985 = vst [vmem:[#allocation133_spill] sm:$0xff] %v17022_v43  ;;  %v17991_v43 = vld [vmem:[#allocation65_spill] sm:$0xff] }
 0xcdc   :  { %v7972_v41 = vrot.slane %v17991_v43, 1  ;;  %v17995_v43 = vld [vmem:[#allocation37_spill] sm:$0xff] }
 0xcdd   :  { %9241 = vmatpush1.bf16.msra.mxu1 %v12747_v53  ;;  %v17992_v53 = vld [vmem:[#allocation27_spill] sm:$0xff] }
 0xcde   :  { %9242 = vmatprep.subr.bf16.mxu1 %v17858_v21  ;;  %v17038_v12 = vsel %vm3101_vm6, %v7971_v9, %v7972_v41  ;;  %v17997_v41 = vld [vmem:[#allocation52_spill] sm:$0xff]  ;;  %v17998_v9 = vld [vmem:[#allocation55_spill] sm:$0xff] }
 0xce0   :  { %9068 = vmatmul.mubr.bf16.gmra.mrb[48].mxu1 %v17986_v57 }
 0xce1   :  { %9075 = vmatprep.mubr.bf16.mxu1 %v17987_v39  ;;  %9243 = vmatpush1.bf16.msra.mxu1 %v12748_v23  ;;  %v17993_v23 = vld [vmem:[#allocation29_spill] sm:$0xff] }
 0xce2   :  { %9501 = vmatprep.subr.bf16.mxu1 %v17858_v21 }
 0xce8   :  { %9076 = vmatmul.mubr.bf16.gmra.mrb[52].mxu1 %v17988_v37 }
 0xce9   :  { %9083 = vmatprep.mubr.bf16.mxu1 %v17989_v10  ;;  %v17996_v10 = vld [vmem:[#allocation49_spill] sm:$0xff] }
 0xcf0   :  { %9084 = vmatmul.mubr.bf16.gmra.mrb[56].mxu1 %v17859_v46  ;;  %v18021_v46 = vld [vmem:[#allocation46_spill] sm:$0xff] }
 0xcf1   :  { %9091 = vmatprep.mubr.bf16.mxu1 %v17990_v3  ;;  %v17994_v3 = vld [vmem:[#allocation32_spill] sm:$0xff] }
 0xcf8   :  { %9092 = vmatmul.mubr.bf16.gmra.mrb[60].mxu1 %v17038_v12 }
 0xcf9   :  { %9099 = vmatprep.mubr.bf16.mxu1 %v16517_v50  ;;  %v7624_v50 = vshrl.u32 %v17987_v39, 16 }
 0xd00   :  { %9100 = vmatmul.mubr.bf16.gmra.mrb[64].mxu1 %v17992_v53 }
 0xd01   :  { %9107 = vmatprep.mubr.bf16.mxu1 %v16535_v36  ;;  %v12752_v36 = vld [vmem:[#allocation9 + $0x198] sm:$0xff]  }
 0xd08   :  { %9108 = vmatmul.mubr.bf16.gmra.mrb[68].mxu1 %v17993_v23 }
 0xd09   :  { %9115 = vmatprep.mubr.bf16.mxu1 %v16554_v29  ;;  %v17999_v29 = vld [vmem:[#allocation58_spill] sm:$0xff] }
 0xd10   :  { %9116 = vmatmul.mubr.bf16.gmra.mrb[72].mxu1 %v17994_v3 }
 0xd11   :  { %9123 = vmatprep.mubr.bf16.mxu1 %v16572_v59  ;;  %v18000_v59 = vld [vmem:[#allocation61_spill] sm:$0xff] }
 0xd18   :  { %9124 = vmatmul.mubr.bf16.gmra.mrb[76].mxu1 %v17995_v43 }
 0xd19   :  { %9131 = vmatprep.mubr.bf16.mxu1 %v16591_v22  ;;  %v18001_v22 = vld [vmem:[#allocation64_spill] sm:$0xff] }
 0xd20   :  { %9132 = vmatmul.mubr.bf16.gmra.mrb[80].mxu1 %v17996_v10 }
 0xd21   :  { %9139 = vmatprep.mubr.bf16.mxu1 %v16609_v55  ;;  %v18002_v55 = vld [vmem:[#allocation67_spill] sm:$0xff] }
 0xd28   :  { %9140 = vmatmul.mubr.bf16.gmra.mrb[84].mxu1 %v17997_v41 }
 0xd29   :  { %9147 = vmatprep.mubr.bf16.mxu1 %v16628_v63  ;;  %v18003_v63 = vld [vmem:[#allocation70_spill] sm:$0xff] }
 0xd30   :  { %9148 = vmatmul.mubr.bf16.gmra.mrb[88].mxu1 %v17998_v9 }
 0xd31   :  { %9155 = vmatprep.mubr.bf16.mxu1 %v16646_v5  ;;  %v18004_v5 = vld [vmem:[#allocation77_spill] sm:$0xff] }
 0xd38   :  { %9156 = vmatmul.mubr.bf16.gmra.mrb[92].mxu1 %v17999_v29 }
 0xd39   :  { %9163 = vmatprep.mubr.bf16.mxu1 %v16664_v42  ;;  %v18005_v42 = vld [vmem:[#allocation22_spill] sm:$0xff] }
 0xd40   :  { %9164 = vmatmul.mubr.bf16.gmra.mrb[96].mxu1 %v18000_v59 }
 0xd41   :  { %9171 = vmatprep.mubr.bf16.mxu1 %v16685_v34  ;;  %v12749_v34 = vld [vmem:[#allocation9 + $0x180] sm:$0xff]  }
 0xd48   :  { %9172 = vmatmul.mubr.bf16.gmra.mrb[100].mxu1 %v18001_v22 }
 0xd49   :  { %9179 = vmatprep.mubr.bf16.mxu1 %v16702_v1  ;;  %v12750_v1 = vld [vmem:[#allocation9 + $0x188] sm:$0xff]  }
 0xd50   :  { %9180 = vmatmul.mubr.bf16.gmra.mrb[104].mxu1 %v18002_v55 }
 0xd51   :  { %9187 = vmatprep.mubr.bf16.mxu1 %v16721_v47  ;;  %v12751_v47 = vld [vmem:[#allocation9 + $0x190] sm:$0xff]  }
 0xd58   :  { %9188 = vmatmul.mubr.bf16.gmra.mrb[108].mxu1 %v18003_v63 }
 0xd59   :  { %9195 = vmatprep.mubr.bf16.mxu1 %v16747_v7  ;;  %v18006_v7 = vld [vmem:[#allocation41_spill] sm:$0xff] }
 0xd60   :  { %9196 = vmatmul.mubr.bf16.gmra.mrb[112].mxu1 %v18004_v5 }
 0xd61   :  { %9203 = vmatprep.mubr.bf16.mxu1 %v16765_v30 }
 0xd68   :  { %9204 = vmatmul.mubr.bf16.gmra.mrb[116].mxu1 %v16759_v6 }
 0xd69   :  { %9244 = vmatprep.mubr.bf16.mxu1 %v16931_v27  ;;  %v18011_v27 = vld [vmem:[#allocation28_spill] sm:$0xff] }
 0xd70   :  { %9245 = vmatmul.mubr.bf16.vlgmr.msra.gmra.mrb[248].mxu1 %v18005_v42  ;;  %v12753_v42 = vld [vmem:[#allocation9 + $0x1a0] sm:$0xff]  }
 0xd71   :  { %9252 = vmatprep.mubr.bf16.mxu1 %v16262_v38  ;;  %9502 = vmatpush1.bf16.msra.mxu1 %v12749_v34  ;;  %v18007_v38 = vld [vmem:[#allocation43_spill] sm:$0xff]  ;;  %v12755_v34 = vld [vmem:[#allocation9 + $0x1b0] sm:$0xff]  }
 0xd72   :  { %9503 = vmatprep.subr.bf16.mxu1 %v17858_v21 }
 0xd75   :  { %9504 = vmatpush1.bf16.msra.mxu1 %v12750_v1  ;;  %v12754_v1 = vld [vmem:[#allocation9 + $0x1a8] sm:$0xff]  }
 0xd76   :  { %9505 = vmatprep.subr.bf16.mxu1 %v17858_v21 }
 0xd78   :  { %9253 = vmatmul.mubr.bf16.gmra.mrb[252].mxu1 %v18006_v7 }
 0xd79   :  { %9260 = vmatprep.mubr.bf16.mxu1 %v16278_v40  ;;  %9506 = vmatpush1.bf16.msra.mxu1 %v12751_v47  ;;  %v18008_v40 = vld [vmem:[#allocation44_spill] sm:$0xff]  ;;  %v12756_v47 = vld [vmem:[#allocation9 + $0x1b8] sm:$0xff]  }
 0xd7a   :  { %9507 = vmatprep.subr.bf16.mxu1 %v17858_v21 }
 0xd7d   :  { %9508 = vmatpush1.bf16.msra.mxu1 %v12752_v36  ;;  %v18009_v36 = vld [vmem:[#allocation23_spill] sm:$0xff] }
 0xd7e   :  { %9509 = vmatprep.subr.bf16.mxu1 %v17858_v21 }
 0xd80   :  { %9261 = vmatmul.mubr.bf16.gmra.mrb[0].mxu1 %v18007_v38 }
 0xd81   :  { %9268 = vmatprep.mubr.bf16.mxu1 %v16294_v60  ;;  %9510 = vmatpush1.bf16.msra.mxu1 %v12753_v42  ;;  %v18010_v60 = vld [vmem:[#allocation24_spill] sm:$0xff] }
 0xd82   :  { %9511 = vmatprep.subr.bf16.mxu1 %v17858_v21  ;;  %v12757_v42 = vld [vmem:[#allocation9 + $0x1c0] sm:$0xff]  }
 0xd85   :  { %9512 = vmatpush1.bf16.msra.mxu1 %v12754_v1  ;;  %v12758_v1 = vld [vmem:[#allocation9 + $0x1c8] sm:$0xff]  }
 0xd86   :  { %9513 = vmatprep.subr.bf16.mxu1 %v17858_v21 }
 0xd88   :  { %9269 = vmatmul.mubr.bf16.gmra.mrb[4].mxu1 %v18008_v40 }
 0xd89   :  { %9276 = vmatprep.mubr.bf16.mxu1 %v16308_v62  ;;  %9514 = vmatpush1.bf16.msra.mxu1 %v12755_v34  ;;  %v18012_v62 = vld [vmem:[#allocation33_spill] sm:$0xff] }
 0xd8a   :  { %9515 = vmatprep.subr.bf16.mxu1 %v17858_v21  ;;  %v12759_v34 = vld [vmem:[#allocation9 + $0x1d0] sm:$0xff]  }
 0xd8d   :  { %9516 = vmatpush1.bf16.msra.mxu1 %v12756_v47  ;;  %v12760_v47 = vld [vmem:[#allocation9 + $0x1d8] sm:$0xff]  }
 0xd8e   :  { %9517 = vmatprep.subr.bf16.mxu1 %v17858_v21 }
 0xd90   :  { %9277 = vmatmul.mubr.bf16.gmra.mrb[8].mxu1 %v18009_v36 }
 0xd91   :  { %9284 = vmatprep.mubr.bf16.mxu1 %v16320_v54  ;;  %9518 = vmatpush1.bf16.msra.mxu1 %v12757_v42  ;;  %v18013_v54 = vld [vmem:[#allocation35_spill] sm:$0xff]  ;;  %v7626_v42 = vshll.u32 %v17987_v39, 16 }
 0xd92   :  { %9519 = vmatprep.subr.bf16.mxu1 %v17858_v21 }
 0xd95   :  { %9520 = vmatpush1.bf16.msra.mxu1 %v12758_v1  ;;  %v18020_v1 = vld [vmem:[#allocation45_spill] sm:$0xff] }
 0xd96   :  { %9521 = vmatprep.subr.bf16.mxu1 %v17858_v21 }
 0xd98   :  { %9285 = vmatmul.mubr.bf16.gmra.mrb[12].mxu1 %v18010_v60 }
 0xd99   :  { %9292 = vmatprep.mubr.bf16.mxu1 %v16332_v8  ;;  %v18014_v8 = vld [vmem:[#allocation48_spill] sm:$0xff]  ;;  %9522 = vmatpush1.bf16.msra.mxu1 %v12759_v34  ;;  %v7631_v34 = vshll.u32 %v18020_v1, 16 }
 0xd9a   :  { %9523 = vmatprep.subr.bf16.mxu1 %v17858_v21 }
 0xd9d   :  { %9524 = vmatpush1.bf16.msra.mxu1 %v12760_v47 }
 0xd9e   :  { %9525 = vmatprep.subr.bf16.mxu1 %v17858_v21 }
 0xda0   :  { %9293 = vmatmul.mubr.bf16.gmra.mrb[16].mxu1 %v18011_v27 }
 0xda1   :  { %9300 = vmatprep.mubr.bf16.mxu1 %v16344_v56  ;;  %v18015_v56 = vld [vmem:[#allocation51_spill] sm:$0xff] }
 0xda8   :  { %9301 = vmatmul.mubr.bf16.gmra.mrb[20].mxu1 %v18012_v62 }
 0xda9   :  { %9308 = vmatprep.mubr.bf16.mxu1 %v16356_v16  ;;  %v18016_v16 = vld [vmem:[#allocation54_spill] sm:$0xff] }
 0xdb0   :  { %9309 = vmatmul.mubr.bf16.gmra.mrb[24].mxu1 %v18013_v54 }
 0xdb1   :  { %9316 = vmatprep.mubr.bf16.mxu1 %v16368_v33  ;;  %v18017_v33 = vld [vmem:[#allocation57_spill] sm:$0xff] }
 0xdb8   :  { %9317 = vmatmul.mubr.bf16.gmra.mrb[28].mxu1 %v18014_v8 }
 0xdb9   :  { %9324 = vmatprep.mubr.bf16.mxu1 %v17973_v44  ;;  %v18018_v44 = vld [vmem:[#allocation60_spill] sm:$0xff] }
 0xdc0   :  { %9325 = vmatmul.mubr.bf16.gmra.mrb[32].mxu1 %v18015_v56 }
 0xdc1   :  { %9332 = vmatprep.mubr.bf16.mxu1 %v17978_v58  ;;  %v7628_v58 = vrot.slane %v7626_v42, 1  ;;  %v12763_v42 = vld [vmem:[#allocation9 + $0x1f0] sm:$0xff]  }
 0xdc8   :  { %9333 = vmatmul.mubr.bf16.gmra.mrb[36].mxu1 %v18016_v16 }
 0xdc9   :  { %9340 = vmatprep.mubr.bf16.mxu1 %v17981_v13  ;;  %v18019_v13 = vld [vmem:[#allocation63_spill] sm:$0xff] }
 0xdd0   :  { %9341 = vmatmul.mubr.bf16.gmra.mrb[40].mxu1 %v18017_v33  ;;  %v7629_v33 = vor.u32 %v7628_v58, %v7624_v50  ;;  %v18022_v50 = vld [vmem:[#allocation69_spill] sm:$0xff] }
 0xdd1   :  { %9348 = vmatprep.mubr.bf16.mxu1 %v17986_v57  ;;  %v12761_v57 = vld [vmem:[#allocation9 + $0x1e0] sm:$0xff]   ;;  %v18023_v58 = vld [vmem:[#allocation73_spill] sm:$0xff] }
 0xdd2   :  { %9526 = vmatpush1.bf16.msra.mxu1 %v12761_v57 }
 0xdd3   :  { %9527 = vmatprep.subr.bf16.mxu1 %v17858_v21 }
 0xdd8   :  { %9349 = vmatmul.mubr.bf16.gmra.mrb[44].mxu1 %v18018_v44  ;;  %v12762_v44 = vld [vmem:[#allocation9 + $0x1e8] sm:$0xff]  }
 0xdd9   :  { %9356 = vmatprep.mubr.bf16.mxu1 %v17988_v37  ;;  %v7633_v37 = vrot.slane %v7631_v34, 1  ;;  %9528 = vmatpush1.bf16.msra.mxu1 %v12762_v44  ;;  %v18049_v44 = vld [vmem:[#allocation71_spill] sm:$0xff] }
 0xdda   :  { %9529 = vmatprep.subr.bf16.mxu1 %v17858_v21 }
 0xddb   :  { %v17117_v47 = vsel %vm2858_vm5, %v7629_v33, %v7633_v37  ;;  %v18024_v33 = vld [vmem:[#allocation79_spill] sm:$0xff] }
 0xddd   :  { %9530 = vmatpush1.bf16.msra.mxu1 %v12763_v42 }
 0xdde   :  { %9531 = vmatprep.subr.bf16.mxu1 %v17858_v21 }
 0xde0   :  { %9357 = vmatmul.mubr.bf16.gmra.mrb[48].mxu1 %v18019_v13 }
 0xde1   :  { %9364 = vmatprep.mubr.bf16.mxu1 %v18021_v46  ;;  %v12764_v46 = vld [vmem:[#allocation9 + $0x1f8] sm:$0xff]  }
 0xde2   :  { %9532 = vmatpush1.bf16.msra.mxu1 %v12764_v46 }
 0xde8   :  { %9365 = vmatmul.mubr.bf16.gmra.mrb[52].mxu1 %v17117_v47 }
 0xde9   :  { %9372 = vmatprep.mubr.bf16.mxu1 %v17038_v12  ;;  %v7818_v12 = vshll.u32 %v16765_v30, 16 }
 0xdf0   :  { %9373 = vmatmul.mubr.bf16.gmra.mrb[56].mxu1 %v18022_v50  ;;  %v18051_v50 = vld [vmem:[#allocation83_spill] sm:$0xff] }
 0xdf1   :  { %9380 = vmatprep.mubr.bf16.mxu1 %v17992_v53 }
 0xdf8   :  { %9381 = vmatmul.mubr.bf16.gmra.mrb[60].mxu1 %v18023_v58 }
 0xdf9   :  { %9388 = vmatprep.mubr.bf16.mxu1 %v17993_v23 }
 0xe00   :  { %9389 = vmatmul.mubr.bf16.gmra.mrb[64].mxu1 %v18024_v33 }
 0xe01   :  { %9396 = vmatprep.mubr.bf16.mxu1 %v17994_v3 }
 0xe08   :  { %9397 = vmatmul.mubr.bf16.gmra.mrb[68].mxu1 %v16771_v61 }
 0xe09   :  { %9404 = vmatprep.mubr.bf16.mxu1 %v17995_v43 }
 0xe10   :  { %9405 = vmatmul.mubr.bf16.gmra.mrb[72].mxu1 %v16792_v52 }
 0xe11   :  { %9412 = vmatprep.mubr.bf16.mxu1 %v17996_v10 }
 0xe18   :  { %9413 = vmatmul.mubr.bf16.gmra.mrb[76].mxu1 %v16802_v17 }
 0xe19   :  { %9420 = vmatprep.mubr.bf16.mxu1 %v17997_v41 }
 0xe20   :  { %9421 = vmatmul.mubr.bf16.gmra.mrb[80].mxu1 %v16816_v20 }
 0xe21   :  { %9428 = vmatprep.mubr.bf16.mxu1 %v17998_v9  ;;  %v18045_v9 = vld [vmem:[#allocation76_spill] sm:$0xff] }
 0xe28   :  { %9429 = vmatmul.mubr.bf16.gmra.mrb[84].mxu1 %v16826_v15 }
 0xe29   :  { %9436 = vmatprep.mubr.bf16.mxu1 %v17999_v29  ;;  %v18025_v29 = vld [vmem:[#allocation84_spill] sm:$0xff] }
 0xe30   :  { %9437 = vmatmul.mubr.bf16.gmra.mrb[88].mxu1 %v16840_v4 }
 0xe31   :  { %9444 = vmatprep.mubr.bf16.mxu1 %v18000_v59  ;;  %v7820_v59 = vrot.slane %v7818_v12, 1 }
 0xe38   :  { %9445 = vmatmul.mubr.bf16.gmra.mrb[92].mxu1 %v16850_v26 }
 0xe39   :  { %9452 = vmatprep.mubr.bf16.mxu1 %v18001_v22  ;;  %v7823_v22 = vshll.u32 %v16763_v45, 16  ;;  %v18039_v45 = vld [vmem:[#allocation53_spill] sm:$0xff] }
 0xe3b   :  { %v7825_v3 = vrot.slane %v7823_v22, 1 }
 0xe40   :  { %9453 = vmatmul.mubr.bf16.gmra.mrb[96].mxu1 %v16864_v19 }
 0xe41   :  { %9460 = vmatprep.mubr.bf16.mxu1 %v18002_v55  ;;  %v7816_v55 = vshrl.u32 %v16765_v30, 16 }
 0xe48   :  { %9461 = vmatmul.mubr.bf16.gmra.mrb[100].mxu1 %v16874_v2 }
 0xe49   :  { %9468 = vmatprep.mubr.bf16.mxu1 %v18003_v63  ;;  %v7821_v63 = vor.u32 %v7820_v59, %v7816_v55 }
 0xe4b   :  { %v17157_v53 = vsel %vm2858_vm5, %v7821_v63, %v7825_v3  ;;  %v18053_v3 = vld [vmem:[#allocation80_spill] sm:$0xff] }
 0xe50   :  { %9469 = vmatmul.mubr.bf16.gmra.mrb[104].mxu1 %v16888_v14 }
 0xe51   :  { %9476 = vmatprep.mubr.bf16.mxu1 %v18004_v5  ;;  %v18036_v5 = vld [vmem:[#allocation34_spill] sm:$0xff] }
 0xe58   :  { %9477 = vmatmul.mubr.bf16.gmra.mrb[108].mxu1 %v16898_v49 }
 0xe59   :  { %9484 = vmatprep.mubr.bf16.mxu1 %v16759_v6  ;;  %v18038_v6 = vld [vmem:[#allocation50_spill] sm:$0xff] }
 0xe60   :  { %9485 = vmatmul.mubr.bf16.gmra.mrb[112].mxu1 %v16911_v24 }
 0xe61   :  { %9492 = vmatprep.mubr.bf16.mxu1 %v18025_v29 }
 0xe68   :  { %9493 = vmatmul.mubr.bf16.gmra.mrb[116].mxu1 %v17157_v53 }
 0xe69   :  { %9533 = vmatprep.mubr.bf16.mxu1 %v18006_v7  ;;  %v18037_v7 = vld [vmem:[#allocation47_spill] sm:$0xff] }
 0xe70   :  { %9534 = vmatmul.mubr.bf16.vlgmr.msra.gmra.mrb[248].mxu1 %v16251_v11  ;;  %v18026_v11 = vld [vmem:[#allocation17_spill] sm:$0xff] }
 0xe71   :  { %9541 = vmatprep.mubr.bf16.mxu1 %v18007_v38 }
 0xe78   :  { %9542 = vmatmul.mubr.bf16.gmra.mrb[252].mxu1 %v16267_v32  ;;  %v18027_v32 = vld [vmem:[#allocation57_spill] sm:$0xff] }
 0xe79   :  { %9549 = vmatprep.mubr.bf16.mxu1 %v18008_v40 }
 0xe80   :  { %9550 = vmatmul.mubr.bf16.gmra.mrb[0].mxu1 %v16283_v51  ;;  %v18028_v51 = vld [vmem:[#allocation19_spill] sm:$0xff] }
 0xe81   :  { %9557 = vmatprep.mubr.bf16.mxu1 %v18009_v36 }
 0xe88   :  { %9558 = vmatmul.mubr.bf16.gmra.mrb[4].mxu1 %v16299_v0  ;;  %v18029_v0 = vld [vmem:[#allocation60_spill] sm:$0xff] }
 0xe89   :  { %9565 = vmatprep.mubr.bf16.mxu1 %v18010_v60 }
 0xe90   :  { %9566 = vmatmul.mubr.bf16.gmra.mrb[8].mxu1 %v16314_v28  ;;  %v18030_v28 = vld [vmem:[#allocation39_spill] sm:$0xff] }
 0xe91   :  { %9573 = vmatprep.mubr.bf16.mxu1 %v18011_v27  ;;  %v18047_v27 = vld [vmem:[#allocation72_spill] sm:$0xff] }
 0xe98   :  { %9574 = vmatmul.mubr.bf16.gmra.mrb[12].mxu1 %v16326_v25  ;;  %v18031_v25 = vld [vmem:[#allocation40_spill] sm:$0xff] }
 0xe99   :  { %9581 = vmatprep.mubr.bf16.mxu1 %v18012_v62 }
 0xea0   :  { %9582 = vmatmul.mubr.bf16.gmra.mrb[16].mxu1 %v16338_v18  ;;  %v18032_v18 = vld [vmem:[#allocation16_spill] sm:$0xff] }
 0xea1   :  { %9589 = vmatprep.mubr.bf16.mxu1 %v18013_v54 }
 0xea8   :  { %9590 = vmatmul.mubr.bf16.gmra.mrb[20].mxu1 %v16350_v31  ;;  %v18033_v31 = vld [vmem:[#allocation25_spill] sm:$0xff] }
 0xea9   :  { %9597 = vmatprep.mubr.bf16.mxu1 %v18014_v8 }
 0xeb0   :  { %9598 = vmatmul.mubr.bf16.gmra.mrb[24].mxu1 %v16362_v48  ;;  %v18034_v48 = vld [vmem:[#allocation26_spill] sm:$0xff] }
 0xeb1   :  { %9605 = vmatprep.mubr.bf16.mxu1 %v18015_v56  ;;  %v18048_v56 = vld [vmem:[#allocation75_spill] sm:$0xff] }
 0xeb8   :  { %9606 = vmatmul.mubr.bf16.gmra.mrb[28].mxu1 %v16374_v35  ;;  %v18035_v35 = vld [vmem:[#allocation31_spill] sm:$0xff] }
 0xeb9   :  { %9613 = vmatprep.mubr.bf16.mxu1 %v18016_v16 }
 0xec0   :  { %9614 = vmatmul.mubr.bf16.gmra.mrb[32].mxu1 %v18026_v11 }
 0xec1   :  { %9621 = vmatprep.mubr.bf16.mxu1 %v18027_v32 }
 0xec8   :  { %9622 = vmatmul.mubr.bf16.gmra.mrb[36].mxu1 %v18028_v51  ;;  %v18054_v51 = vld [vmem:[#allocation82_spill] sm:$0xff] }
 0xec9   :  { %9629 = vmatprep.mubr.bf16.mxu1 %v18029_v0 }
 0xed0   :  { %9630 = vmatmul.mubr.bf16.gmra.mrb[40].mxu1 %v18030_v28 }
 0xed1   :  { %9637 = vmatprep.mubr.bf16.mxu1 %v18019_v13 }
 0xed8   :  { %9638 = vmatmul.mubr.bf16.gmra.mrb[44].mxu1 %v18031_v25 }
 0xed9   :  { %9645 = vmatprep.mubr.bf16.mxu1 %v17117_v47  ;;  %v18050_v47 = vld [vmem:[#allocation81_spill] sm:$0xff] }
 0xee0   :  { %9646 = vmatmul.mubr.bf16.gmra.mrb[48].mxu1 %v17987_v39 }
 0xee1   :  { %9653 = vmatprep.mubr.bf16.mxu1 %v18032_v18 }
 0xee8   :  { %9654 = vmatmul.mubr.bf16.gmra.mrb[52].mxu1 %v17858_v21 }
 0xee9   :  { %9661 = vmatprep.mubr.bf16.mxu1 %v18023_v58 }
 0xef0   :  { %9662 = vmatmul.mubr.bf16.gmra.mrb[56].mxu1 %v18033_v31 }
 0xef1   :  { %9669 = vmatprep.mubr.bf16.mxu1 %v18024_v33  ;;  %v18052_v33 = vld [vmem:[#allocation78_spill] sm:$0xff] }
 0xef8   :  { %9670 = vmatmul.mubr.bf16.gmra.mrb[60].mxu1 %v18034_v48 }
 0xef9   :  { %9677 = vmatprep.mubr.bf16.mxu1 %v16771_v61  ;;  %v18040_v61 = vld [vmem:[#allocation56_spill] sm:$0xff] }
 0xf00   :  { %9678 = vmatmul.mubr.bf16.gmra.mrb[64].mxu1 %v18035_v35 }
 0xf01   :  { %9685 = vmatprep.mubr.bf16.mxu1 %v16792_v52  ;;  %v18041_v52 = vld [vmem:[#allocation59_spill] sm:$0xff] }
 0xf08   :  { %9686 = vmatmul.mubr.bf16.gmra.mrb[68].mxu1 %v18036_v5 }
 0xf09   :  { %9693 = vmatprep.mubr.bf16.mxu1 %v16802_v17  ;;  %v18042_v17 = vld [vmem:[#allocation62_spill] sm:$0xff] }
 0xf10   :  { %9694 = vmatmul.mubr.bf16.gmra.mrb[72].mxu1 %v18037_v7  ;;  %v18055_v7 = vld [vmem:[#allocation86_spill] sm:$0xff] }
 0xf11   :  { %9701 = vmatprep.mubr.bf16.mxu1 %v16816_v20  ;;  %v18043_v20 = vld [vmem:[#allocation66_spill] sm:$0xff] }
 0xf18   :  { %9702 = vmatmul.mubr.bf16.gmra.mrb[76].mxu1 %v18038_v6 }
 0xf19   :  { %9709 = vmatprep.mubr.bf16.mxu1 %v16826_v15  ;;  %v17215_v15 = vld [vmem:[#allocation10] ss:$0 sm:$0xff] }
 0xf20   :  { %9710 = vmatmul.mubr.bf16.gmra.mrb[80].mxu1 %v18039_v45  ;;  %v18056_v45 = vld [vmem:[#allocation88_spill] sm:$0xff] }
 0xf21   :  { %9717 = vmatprep.mubr.bf16.mxu1 %v16840_v4 }
 0xf28   :  { %9718 = vmatmul.mubr.bf16.gmra.mrb[84].mxu1 %v18040_v61 }
 0xf29   :  { %9725 = vmatprep.mubr.bf16.mxu1 %v16850_v26  ;;  %v18044_v26 = vld [vmem:[#allocation74_spill] sm:$0xff] }
 0xf30   :  { %9726 = vmatmul.mubr.bf16.gmra.mrb[88].mxu1 %v18041_v52 }
 0xf31   :  { %9733 = vmatprep.mubr.bf16.mxu1 %v16864_v19 }
 0xf38   :  { %9734 = vmatmul.mubr.bf16.gmra.mrb[92].mxu1 %v18042_v17 }
 0xf39   :  { %9741 = vmatprep.mubr.bf16.mxu1 %v16874_v2  ;;  %v18046_v2 = vld [vmem:[#allocation68_spill] sm:$0xff] }
 0xf40   :  { %9742 = vmatmul.mubr.bf16.gmra.mrb[96].mxu1 %v18043_v20 }
 0xf41   :  { %9749 = vmatprep.mubr.bf16.mxu1 %v16888_v14 }
 0xf43   :  { %v9535_v39 = vpop.f32.mrb[248].mxu1 }
 0xf44   :  { %v11685_v4 = vadd.f32 %v17215_v15, %v9535_v39  ;;  %v9537_v23 = vpop.f32.mrb[249].mxu1 }
 0xf45   :  { %v9538_v43 = vpop.f32.mrb[250].mxu1 }
 0xf46   :  { %v9825_v10 = vadd.f32 %v11685_v4, %v18044_v26  ;;  %v11686_v41 = vadd.f32 %v17215_v15, %v9538_v43  ;;  %v9540_v19 = vpop.f32.mrb[251].mxu1  ;;  %v18057_v43 = vld [vmem:[#allocation85_spill] sm:$0xff] }
 0xf48   :  { %12769 = vtanh.f32 %v9825_v10  ;;  %v9828_v38 = vadd.f32 %v11686_v41, %v18045_v9  ;;  %9750 = vmatmul.mubr.bf16.gmra.mrb[100].mxu1 %v18046_v2  ;;  %v18058_v41 = vld [vmem:[#allocation87_spill] sm:$0xff] }
 0xf49   :  { %9757 = vmatprep.mubr.bf16.mxu1 %v16898_v49 }
 0xf4a   :  { %12771 = vtanh.f32 %v9828_v38 }
 0xf4b   :  { %v9543_v14 = vpop.f32.mrb[252].mxu1 }
 0xf4c   :  { %v11687_v40 = vadd.f32 %v17215_v15, %v9543_v14  ;;  %v9545_v36 = vpop.f32.mrb[253].mxu1 }
 0xf4d   :  { %v9546_v60 = vpop.f32.mrb[254].mxu1 }
 0xf4e   :  { %v9833_v62 = vadd.f32 %v11687_v40, %v18047_v27  ;;  %v11688_v54 = vadd.f32 %v17215_v15, %v9546_v60  ;;  %v9548_v8 = vpop.f32.mrb[255].mxu1  ;;  %v18059_v60 = vld [vmem:[#allocation90_spill] sm:$0xff] }
 0xf4f   :  { %v18060_v8 = vld [vmem:[#allocation92_spill] sm:$0xff] }
 0xf50   :  { %12773 = vtanh.f32 %v9833_v62  ;;  %v9836_v16 = vadd.f32 %v11688_v54, %v18048_v56  ;;  %9758 = vmatmul.mubr.bf16.gmra.mrb[104].mxu1 %v18049_v44 }
 0xf51   :  { %9765 = vmatprep.mubr.bf16.mxu1 %v16911_v24 }
 0xf52   :  { %v12770_v13 = vpop.eup %12769  ;;  %12775 = vtanh.f32 %v9836_v16 }
 0xf53   :  { %10143 = vst [vmem:[%s17566_s12] sm:$0xff] %v12770_v13  ;;  %v9551_v49 = vpop.f32.mrb[0].mxu1 }
 0xf54   :  { %v12772_v1 = vpop.eup %12771  ;;  %v11689_v34 = vadd.f32 %v17215_v15, %v9551_v49  ;;  %v9553_v57 = vpop.f32.mrb[1].mxu1 }
 0xf55   :  { %10144 = vst [vmem:[%s17566_s12 + $0x8] sm:$0xff] %v12772_v1  ;;  %v9554_v37 = vpop.f32.mrb[2].mxu1  ;;  %v18061_v57 = vld [vmem:[#allocation89_spill] sm:$0xff] }
 0xf56   :  { %v9841_v42 = vadd.f32 %v11689_v34, %v18050_v47  ;;  %v11690_v24 = vadd.f32 %v17215_v15, %v9554_v37  ;;  %v9556_v46 = vpop.f32.mrb[3].mxu1 }
 0xf58   :  { %12777 = vtanh.f32 %v9841_v42  ;;  %v9844_v58 = vadd.f32 %v11690_v24, %v18051_v50  ;;  %9766 = vmatmul.mubr.bf16.gmra.mrb[108].mxu1 %v18052_v33  ;;  %v18062_v24 = vld [vmem:[#allocation91_spill] sm:$0xff] }
 0xf59   :  { %9773 = vmatprep.mubr.bf16.mxu1 %v17157_v53 }
 0xf5a   :  { %v12774_v12 = vpop.eup %12773  ;;  %12779 = vtanh.f32 %v9844_v58 }
 0xf5b   :  { %10145 = vst [vmem:[%s17566_s12 + $0x10] sm:$0xff] %v12774_v12  ;;  %v9559_v59 = vpop.f32.mrb[4].mxu1 }
 0xf5c   :  { %v12776_v22 = vpop.eup %12775  ;;  %v11691_v55 = vadd.f32 %v17215_v15, %v9559_v59  ;;  %v9561_v29 = vpop.f32.mrb[5].mxu1 }
 0xf5d   :  { %10146 = vst [vmem:[%s17566_s12 + $0x18] sm:$0xff] %v12776_v22  ;;  %v9562_v63 = vpop.f32.mrb[6].mxu1 }
 0xf5e   :  { %v9849_v11 = vadd.f32 %v11691_v55, %v18053_v3  ;;  %v11692_v53 = vadd.f32 %v17215_v15, %v9562_v63  ;;  %v9564_v32 = vpop.f32.mrb[7].mxu1  ;;  %v18063_v55 = vld [vmem:[#allocation94_spill] sm:$0xff] }
 0xf60   :  { %12781 = vtanh.f32 %v9849_v11  ;;  %v9852_v0 = vadd.f32 %v11692_v53, %v18054_v51  ;;  %9774 = vmatmul.mubr.bf16.gmra.mrb[112].mxu1 %v16765_v30  ;;  %v18064_v11 = vld [vmem:[#allocation96_spill] sm:$0xff] }
 0xf61   :  { %9781 = vmatprep.mubr.bf16.mxu1 %v18032_v18 }
 0xf62   :  { %v12778_v28 = vpop.eup %12777  ;;  %12783 = vtanh.f32 %v9852_v0 }
 0xf63   :  { %10147 = vst [vmem:[%s17566_s12 + $0x20] sm:$0xff] %v12778_v28  ;;  %v9567_v25 = vpop.f32.mrb[8].mxu1 }
 0xf64   :  { %v12780_v31 = vpop.eup %12779  ;;  %v11693_v48 = vadd.f32 %v17215_v15, %v9567_v25  ;;  %v9569_v35 = vpop.f32.mrb[9].mxu1 }
 0xf65   :  { %10148 = vst [vmem:[%s17566_s12 + $0x28] sm:$0xff] %v12780_v31  ;;  %v9570_v5 = vpop.f32.mrb[10].mxu1 }
 0xf66   :  { %v9857_v30 = vadd.f32 %v11693_v48, %v18055_v7  ;;  %v11694_v18 = vadd.f32 %v17215_v15, %v9570_v5  ;;  %v9572_v6 = vpop.f32.mrb[11].mxu1  ;;  %v18065_v48 = vld [vmem:[#allocation93_spill] sm:$0xff] }
 0xf68   :  { %12785 = vtanh.f32 %v9857_v30  ;;  %v9860_v61 = vadd.f32 %v11694_v18, %v18056_v45  ;;  %9782 = vmatmul.mubr.bf16.gmra.mrb[116].mxu1 %v17858_v21  ;;  %v18066_v30 = vld [vmem:[#allocation95_spill] sm:$0xff] }
 0xf6a   :  { %v12782_v52 = vpop.eup %12781  ;;  %12787 = vtanh.f32 %v9860_v61 }
 0xf6b   :  { %10149 = vst [vmem:[%s17566_s12 + $0x30] sm:$0xff] %v12782_v52  ;;  %v9575_v17 = vpop.f32.mrb[12].mxu1 }
 0xf6c   :  { %v12784_v20 = vpop.eup %12783  ;;  %v11695_v39 = vadd.f32 %v17215_v15, %v9575_v17  ;;  %v9577_v4 = vpop.f32.mrb[13].mxu1 }
 0xf6d   :  { %10150 = vst [vmem:[%s17566_s12 + $0x38] sm:$0xff] %v12784_v20  ;;  %v9578_v23 = vpop.f32.mrb[14].mxu1 }
 0xf6e   :  { %v9865_v26 = vadd.f32 %v11695_v39, %v18057_v43  ;;  %v11696_v21 = vadd.f32 %v17215_v15, %v9578_v23  ;;  %v9580_v10 = vpop.f32.mrb[15].mxu1  ;;  %v18067_v39 = vld [vmem:[#allocation98_spill] sm:$0xff] }
 0xf70   :  { %12789 = vtanh.f32 %v9865_v26  ;;  %v9868_v19 = vadd.f32 %v11696_v21, %v18058_v41  ;;  %v18068_v26 = vld [vmem:[#allocation100_spill] sm:$0xff] }
 0xf72   :  { %v12786_v9 = vpop.eup %12785  ;;  %12791 = vtanh.f32 %v9868_v19 }
 0xf73   :  { %10151 = vst [vmem:[%s17566_s12 + $0x40] sm:$0xff] %v12786_v9  ;;  %v9583_v38 = vpop.f32.mrb[16].mxu1 }
 0xf74   :  { %v12788_v2 = vpop.eup %12787  ;;  %v11697_v14 = vadd.f32 %v17215_v15, %v9583_v38  ;;  %v9585_v40 = vpop.f32.mrb[17].mxu1 }
 0xf75   :  { %10152 = vst [vmem:[%s17566_s12 + $0x48] sm:$0xff] %v12788_v2  ;;  %v9586_v36 = vpop.f32.mrb[18].mxu1 }
 0xf76   :  { %v9873_v27 = vadd.f32 %v11697_v14, %v18059_v60  ;;  %v11698_v62 = vadd.f32 %v17215_v15, %v9586_v36  ;;  %v9588_v54 = vpop.f32.mrb[19].mxu1  ;;  %v18069_v14 = vld [vmem:[#allocation97_spill] sm:$0xff] }
 0xf78   :  { %12793 = vtanh.f32 %v9873_v27  ;;  %v9876_v56 = vadd.f32 %v11698_v62, %v18060_v8  ;;  %v18070_v27 = vld [vmem:[#allocation99_spill] sm:$0xff] }
 0xf7a   :  { %v12790_v16 = vpop.eup %12789  ;;  %12795 = vtanh.f32 %v9876_v56 }
 0xf7b   :  { %10153 = vst [vmem:[%s17566_s12 + $0x50] sm:$0xff] %v12790_v16  ;;  %v9591_v44 = vpop.f32.mrb[20].mxu1 }
 0xf7c   :  { %v12792_v13 = vpop.eup %12791  ;;  %v11699_v49 = vadd.f32 %v17215_v15, %v9591_v44  ;;  %v9593_v1 = vpop.f32.mrb[21].mxu1 }
 0xf7d   :  { %10154 = vst [vmem:[%s17566_s12 + $0x58] sm:$0xff] %v12792_v13  ;;  %v9594_v34 = vpop.f32.mrb[22].mxu1 }
 0xf7e   :  { %v9881_v37 = vadd.f32 %v11699_v49, %v18061_v57  ;;  %v11700_v47 = vadd.f32 %v17215_v15, %v9594_v34  ;;  %v9596_v42 = vpop.f32.mrb[23].mxu1  ;;  %v18071_v49 = vld [vmem:[#allocation102_spill] sm:$0xff] }
 0xf80   :  { %12797 = vtanh.f32 %v9881_v37  ;;  %v9884_v46 = vadd.f32 %v11700_v47, %v18062_v24  ;;  %v18072_v37 = vld [vmem:[#allocation104_spill] sm:$0xff] }
 0xf82   :  { %v12794_v50 = vpop.eup %12793  ;;  %12799 = vtanh.f32 %v9884_v46 }
 0xf83   :  { %10155 = vst [vmem:[%s17566_s12 + $0x60] sm:$0xff] %v12794_v50  ;;  %v9599_v58 = vpop.f32.mrb[24].mxu1 }
 0xf84   :  { %v12796_v33 = vpop.eup %12795  ;;  %v11701_v12 = vadd.f32 %v17215_v15, %v9599_v58  ;;  %v9601_v59 = vpop.f32.mrb[25].mxu1 }
 0xf85   :  { %10156 = vst [vmem:[%s17566_s12 + $0x68] sm:$0xff] %v12796_v33  ;;  %v9602_v22 = vpop.f32.mrb[26].mxu1 }
 0xf86   :  { %v9889_v29 = vadd.f32 %v11701_v12, %v18063_v55  ;;  %v11702_v63 = vadd.f32 %v17215_v15, %v9602_v22  ;;  %v9604_v3 = vpop.f32.mrb[27].mxu1  ;;  %v18073_v12 = vld [vmem:[#allocation101_spill] sm:$0xff] }
 0xf88   :  { %12801 = vtanh.f32 %v9889_v29  ;;  %v9892_v53 = vadd.f32 %v11702_v63, %v18064_v11  ;;  %v18074_v29 = vld [vmem:[#allocation103_spill] sm:$0xff] }
 0xf8a   :  { %v12798_v32 = vpop.eup %12797  ;;  %12803 = vtanh.f32 %v9892_v53 }
 0xf8b   :  { %10157 = vst [vmem:[%s17566_s12 + $0x70] sm:$0xff] %v12798_v32  ;;  %v9607_v51 = vpop.f32.mrb[28].mxu1 }
 0xf8c   :  { %v12800_v0 = vpop.eup %12799  ;;  %v11703_v28 = vadd.f32 %v17215_v15, %v9607_v51  ;;  %v9609_v25 = vpop.f32.mrb[29].mxu1 }
 0xf8d   :  { %10158 = vst [vmem:[%s17566_s12 + $0x78] sm:$0xff] %v12800_v0  ;;  %v9610_v31 = vpop.f32.mrb[30].mxu1 }
 0xf8e   :  { %v9897_v35 = vadd.f32 %v11703_v28, %v18065_v48  ;;  %v11704_v5 = vadd.f32 %v17215_v15, %v9610_v31  ;;  %v9612_v7 = vpop.f32.mrb[31].mxu1  ;;  %v18075_v28 = vld [vmem:[#allocation106_spill] sm:$0xff] }
 0xf90   :  { %12805 = vtanh.f32 %v9897_v35  ;;  %v9900_v18 = vadd.f32 %v11704_v5, %v18066_v30  ;;  %v18076_v35 = vld [vmem:[#allocation108_spill] sm:$0xff] }
 0xf92   :  { %v12802_v6 = vpop.eup %12801  ;;  %12807 = vtanh.f32 %v9900_v18 }
 0xf93   :  { %10159 = vst [vmem:[%s17566_s12 + $0x80] sm:$0xff] %v12802_v6  ;;  %v9615_v45 = vpop.f32.mrb[32].mxu1 }
 0xf94   :  { %v12804_v61 = vpop.eup %12803  ;;  %v11705_v52 = vadd.f32 %v17215_v15, %v9615_v45  ;;  %v9617_v17 = vpop.f32.mrb[33].mxu1 }
 0xf95   :  { %10160 = vst [vmem:[%s17566_s12 + $0x88] sm:$0xff] %v12804_v61  ;;  %v9618_v20 = vpop.f32.mrb[34].mxu1  ;;  %v18077_v17 = vld [vmem:[#allocation105_spill] sm:$0xff] }
 0xf96   :  { %v9905_v4 = vadd.f32 %v11705_v52, %v18067_v39  ;;  %v11706_v23 = vadd.f32 %v17215_v15, %v9618_v20  ;;  %v9620_v43 = vpop.f32.mrb[35].mxu1  ;;  %v17371_v52 = vpop.f32.mrb[116].mxu0 }
 0xf97   :  { %v18078_v43 = vld [vmem:[#allocation107_spill] sm:$0xff] }
 0xf98   :  { %12809 = vtanh.f32 %v9905_v4  ;;  %v9908_v21 = vadd.f32 %v11706_v23, %v18068_v26  ;;  %v17375_v23 = vpop.f32.mrb[117].mxu0 }
 0xf9a   :  { %v12806_v10 = vpop.eup %12805  ;;  %12811 = vtanh.f32 %v9908_v21 }
 0xf9b   :  { %10161 = vst [vmem:[%s17566_s12 + $0x90] sm:$0xff] %v12806_v10  ;;  %v9623_v41 = vpop.f32.mrb[36].mxu1 }
 0xf9c   :  { %v12808_v19 = vpop.eup %12807  ;;  %v11707_v9 = vadd.f32 %v17215_v15, %v9623_v41  ;;  %v9625_v38 = vpop.f32.mrb[37].mxu1 }
 0xf9d   :  { %10162 = vst [vmem:[%s17566_s12 + $0x98] sm:$0xff] %v12808_v19  ;;  %v9626_v2 = vpop.f32.mrb[38].mxu1  ;;  %v17381_v41 = vpop.f32.mrb[118].mxu0 }
 0xf9e   :  { %v9913_v40 = vadd.f32 %v11707_v9, %v18069_v14  ;;  %v11708_v36 = vadd.f32 %v17215_v15, %v9626_v2  ;;  %v9628_v60 = vpop.f32.mrb[39].mxu1  ;;  %v17384_v2 = vpop.f32.mrb[119].mxu0 }
 0xfa0   :  { %12813 = vtanh.f32 %v9913_v40  ;;  %v9916_v62 = vadd.f32 %v11708_v36, %v18070_v27  ;;  %v18079_v40 = vld [vmem:[#allocation110_spill] sm:$0xff] }
 0xfa2   :  { %v12810_v54 = vpop.eup %12809  ;;  %12815 = vtanh.f32 %v9916_v62  ;;  %v18080_v62 = vld [vmem:[#allocation112_spill] sm:$0xff] }
 0xfa3   :  { %10163 = vst [vmem:[%s17566_s12 + $0xa0] sm:$0xff] %v12810_v54  ;;  %v9631_v8 = vpop.f32.mrb[40].mxu1 }
 0xfa4   :  { %v12812_v56 = vpop.eup %12811  ;;  %v11709_v16 = vadd.f32 %v17215_v15, %v9631_v8  ;;  %v9633_v44 = vpop.f32.mrb[41].mxu1 }
 0xfa5   :  { %10164 = vst [vmem:[%s17566_s12 + $0xa8] sm:$0xff] %v12812_v56  ;;  %v9634_v13 = vpop.f32.mrb[42].mxu1 }
 0xfa6   :  { %v9921_v1 = vadd.f32 %v11709_v16, %v18071_v49  ;;  %v11710_v34 = vadd.f32 %v17215_v15, %v9634_v13  ;;  %v9636_v57 = vpop.f32.mrb[43].mxu1 }
 0xfa8   :  { %12817 = vtanh.f32 %v9921_v1  ;;  %v9924_v47 = vadd.f32 %v11710_v34, %v18072_v37  ;;  %v18081_v1 = vld [vmem:[#allocation109_spill] sm:$0xff] }
 0xfaa   :  { %v12814_v42 = vpop.eup %12813  ;;  %12819 = vtanh.f32 %v9924_v47  ;;  %v18082_v47 = vld [vmem:[#allocation111_spill] sm:$0xff] }
 0xfab   :  { %10165 = vst [vmem:[%s17566_s12 + $0xb0] sm:$0xff] %v12814_v42  ;;  %v9639_v24 = vpop.f32.mrb[44].mxu1 }
 0xfac   :  { %v12816_v46 = vpop.eup %12815  ;;  %v11711_v50 = vadd.f32 %v17215_v15, %v9639_v24  ;;  %v9641_v58 = vpop.f32.mrb[45].mxu1 }
 0xfad   :  { %10166 = vst [vmem:[%s17566_s12 + $0xb8] sm:$0xff] %v12816_v46  ;;  %v9642_v33 = vpop.f32.mrb[46].mxu1 }
 0xfae   :  { %v9929_v59 = vadd.f32 %v11711_v50, %v18073_v12  ;;  %v11712_v22 = vadd.f32 %v17215_v15, %v9642_v33  ;;  %v9644_v55 = vpop.f32.mrb[47].mxu1 }
 0xfb0   :  { %12821 = vtanh.f32 %v9929_v59  ;;  %v9932_v63 = vadd.f32 %v11712_v22, %v18074_v29  ;;  %v18083_v59 = vld [vmem:[#allocation114_spill] sm:$0xff] }
 0xfb2   :  { %v12818_v3 = vpop.eup %12817  ;;  %12823 = vtanh.f32 %v9932_v63  ;;  %v18084_v63 = vld [vmem:[#allocation116_spill] sm:$0xff] }
 0xfb3   :  { %10167 = vst [vmem:[%s17566_s12 + $0xc0] sm:$0xff] %v12818_v3  ;;  %v9647_v11 = vpop.f32.mrb[48].mxu1 }
 0xfb4   :  { %v12820_v53 = vpop.eup %12819  ;;  %v11713_v32 = vadd.f32 %v17215_v15, %v9647_v11  ;;  %v9649_v51 = vpop.f32.mrb[49].mxu1 }
 0xfb5   :  { %10168 = vst [vmem:[%s17566_s12 + $0xc8] sm:$0xff] %v12820_v53  ;;  %v9650_v0 = vpop.f32.mrb[50].mxu1 }
 0xfb6   :  { %v9937_v25 = vadd.f32 %v11713_v32, %v18075_v28  ;;  %v11714_v31 = vadd.f32 %v17215_v15, %v9650_v0  ;;  %v9652_v48 = vpop.f32.mrb[51].mxu1 }
 0xfb8   :  { %12825 = vtanh.f32 %v9937_v25  ;;  %v9940_v5 = vadd.f32 %v11714_v31, %v18076_v35  ;;  %v18085_v25 = vld [vmem:[#allocation113_spill] sm:$0xff] }
 0xfba   :  { %v12822_v7 = vpop.eup %12821  ;;  %12827 = vtanh.f32 %v9940_v5  ;;  %v18086_v5 = vld [vmem:[#allocation115_spill] sm:$0xff] }
 0xfbb   :  { %10169 = vst [vmem:[%s17566_s12 + $0xd0] sm:$0xff] %v12822_v7  ;;  %v9655_v30 = vpop.f32.mrb[52].mxu1 }
 0xfbc   :  { %v12824_v18 = vpop.eup %12823  ;;  %v11715_v6 = vadd.f32 %v17215_v15, %v9655_v30  ;;  %v9657_v45 = vpop.f32.mrb[53].mxu1 }
 0xfbd   :  { %10170 = vst [vmem:[%s17566_s12 + $0xd8] sm:$0xff] %v12824_v18  ;;  %v9658_v61 = vpop.f32.mrb[54].mxu1 }
 0xfbe   :  { %v9945_v20 = vadd.f32 %v11715_v6, %v18077_v17  ;;  %v11716_v39 = vadd.f32 %v17215_v15, %v9658_v61  ;;  %v9660_v4 = vpop.f32.mrb[55].mxu1 }
 0xfc0   :  { %12829 = vtanh.f32 %v9945_v20  ;;  %v9948_v26 = vadd.f32 %v11716_v39, %v18078_v43  ;;  %v18087_v20 = vld [vmem:[#allocation118_spill] sm:$0xff] }
 0xfc2   :  { %v12826_v21 = vpop.eup %12825  ;;  %12831 = vtanh.f32 %v9948_v26  ;;  %v18088_v26 = vld [vmem:[#allocation120_spill] sm:$0xff] }
 0xfc3   :  { %10171 = vst [vmem:[%s17566_s12 + $0xe0] sm:$0xff] %v12826_v21  ;;  %v9663_v10 = vpop.f32.mrb[56].mxu1 }
 0xfc4   :  { %v12828_v19 = vpop.eup %12827  ;;  %v11717_v9 = vadd.f32 %v17215_v15, %v9663_v10  ;;  %v9665_v38 = vpop.f32.mrb[57].mxu1 }
 0xfc5   :  { %10172 = vst [vmem:[%s17566_s12 + $0xe8] sm:$0xff] %v12828_v19  ;;  %v9666_v14 = vpop.f32.mrb[58].mxu1 }
 0xfc6   :  { %v9953_v36 = vadd.f32 %v11717_v9, %v18079_v40  ;;  %v11718_v60 = vadd.f32 %v17215_v15, %v9666_v14  ;;  %v9668_v27 = vpop.f32.mrb[59].mxu1 }
 0xfc8   :  { %12833 = vtanh.f32 %v9953_v36  ;;  %v9956_v54 = vadd.f32 %v11718_v60, %v18080_v62  ;;  %v18089_v36 = vld [vmem:[#allocation117_spill] sm:$0xff] }
 0xfca   :  { %v12830_v8 = vpop.eup %12829  ;;  %12835 = vtanh.f32 %v9956_v54  ;;  %v18090_v54 = vld [vmem:[#allocation119_spill] sm:$0xff] }
 0xfcb   :  { %10173 = vst [vmem:[%s17566_s12 + $0xf0] sm:$0xff] %v12830_v8  ;;  %v9671_v56 = vpop.f32.mrb[60].mxu1 }
 0xfcc   :  { %v12832_v16 = vpop.eup %12831  ;;  %v11719_v44 = vadd.f32 %v17215_v15, %v9671_v56  ;;  %v9673_v13 = vpop.f32.mrb[61].mxu1 }
 0xfcd   :  { %10174 = vst [vmem:[%s17566_s12 + $0xf8] sm:$0xff] %v12832_v16  ;;  %v9674_v49 = vpop.f32.mrb[62].mxu1 }
 0xfce   :  { %v9961_v34 = vadd.f32 %v11719_v44, %v18081_v1  ;;  %v11720_v57 = vadd.f32 %v17215_v15, %v9674_v49  ;;  %v9676_v37 = vpop.f32.mrb[63].mxu1 }
 0xfd0   :  { %12837 = vtanh.f32 %v9961_v34  ;;  %v9964_v42 = vadd.f32 %v11720_v57, %v18082_v47  ;;  %v18091_v34 = vld [vmem:[#allocation122_spill] sm:$0xff] }
 0xfd2   :  { %v12834_v24 = vpop.eup %12833  ;;  %12839 = vtanh.f32 %v9964_v42  ;;  %v18092_v42 = vld [vmem:[#allocation124_spill] sm:$0xff] }
 0xfd3   :  { %10175 = vst [vmem:[%s17566_s12 + $0x100] sm:$0xff] %v12834_v24  ;;  %v9679_v46 = vpop.f32.mrb[64].mxu1 }
 0xfd4   :  { %v12836_v50 = vpop.eup %12835  ;;  %v11721_v58 = vadd.f32 %v17215_v15, %v9679_v46  ;;  %v9681_v33 = vpop.f32.mrb[65].mxu1 }
 0xfd5   :  { %10176 = vst [vmem:[%s17566_s12 + $0x108] sm:$0xff] %v12836_v50  ;;  %v9682_v12 = vpop.f32.mrb[66].mxu1 }
 0xfd6   :  { %v9969_v22 = vadd.f32 %v11721_v58, %v18083_v59  ;;  %v11722_v55 = vadd.f32 %v17215_v15, %v9682_v12  ;;  %v9684_v29 = vpop.f32.mrb[67].mxu1 }
 0xfd8   :  { %12841 = vtanh.f32 %v9969_v22  ;;  %v9972_v3 = vadd.f32 %v11722_v55, %v18084_v63  ;;  %v18093_v22 = vld [vmem:[#allocation121_spill] sm:$0xff] }
 0xfda   :  { %v12838_v11 = vpop.eup %12837  ;;  %12843 = vtanh.f32 %v9972_v3  ;;  %v18094_v3 = vld [vmem:[#allocation123_spill] sm:$0xff] }
 0xfdb   :  { %10177 = vst [vmem:[%s17566_s12 + $0x110] sm:$0xff] %v12838_v11  ;;  %v9687_v53 = vpop.f32.mrb[68].mxu1 }
 0xfdc   :  { %v12840_v32 = vpop.eup %12839  ;;  %v11723_v51 = vadd.f32 %v17215_v15, %v9687_v53  ;;  %v9689_v0 = vpop.f32.mrb[69].mxu1 }
 0xfdd   :  { %10178 = vst [vmem:[%s17566_s12 + $0x118] sm:$0xff] %v12840_v32  ;;  %v9690_v28 = vpop.f32.mrb[70].mxu1 }
 0xfde   :  { %v9977_v31 = vadd.f32 %v11723_v51, %v18085_v25  ;;  %v11724_v48 = vadd.f32 %v17215_v15, %v9690_v28  ;;  %v9692_v35 = vpop.f32.mrb[71].mxu1 }
 0xfe0   :  { %12845 = vtanh.f32 %v9977_v31  ;;  %v9980_v7 = vadd.f32 %v11724_v48, %v18086_v5  ;;  %v18095_v31 = vld [vmem:[#allocation126_spill] sm:$0xff] }
 0xfe2   :  { %v12842_v30 = vpop.eup %12841  ;;  %12847 = vtanh.f32 %v9980_v7  ;;  %v18096_v7 = vld [vmem:[#allocation128_spill] sm:$0xff] }
 0xfe3   :  { %10179 = vst [vmem:[%s17566_s12 + $0x120] sm:$0xff] %v12842_v30  ;;  %v9695_v18 = vpop.f32.mrb[72].mxu1 }
 0xfe4   :  { %v12844_v6 = vpop.eup %12843  ;;  %v11725_v45 = vadd.f32 %v17215_v15, %v9695_v18  ;;  %v9697_v61 = vpop.f32.mrb[73].mxu1 }
 0xfe5   :  { %10180 = vst [vmem:[%s17566_s12 + $0x128] sm:$0xff] %v12844_v6  ;;  %v9698_v17 = vpop.f32.mrb[74].mxu1 }
 0xfe6   :  { %v9985_v39 = vadd.f32 %v11725_v45, %v18087_v20  ;;  %v11726_v4 = vadd.f32 %v17215_v15, %v9698_v17  ;;  %v9700_v43 = vpop.f32.mrb[75].mxu1 }
 0xfe8   :  { %12849 = vtanh.f32 %v9985_v39  ;;  %v9988_v21 = vadd.f32 %v11726_v4, %v18088_v26  ;;  %v18097_v39 = vld [vmem:[#allocation125_spill] sm:$0xff] }
 0xfea   :  { %v12846_v10 = vpop.eup %12845  ;;  %12851 = vtanh.f32 %v9988_v21  ;;  %v18098_v21 = vld [vmem:[#allocation127_spill] sm:$0xff] }
 0xfeb   :  { %10181 = vst [vmem:[%s17566_s12 + $0x130] sm:$0xff] %v12846_v10  ;;  %v9703_v19 = vpop.f32.mrb[76].mxu1 }
 0xfec   :  { %v12848_v9 = vpop.eup %12847  ;;  %v11727_v38 = vadd.f32 %v17215_v15, %v9703_v19  ;;  %v9705_v14 = vpop.f32.mrb[77].mxu1 }
 0xfed   :  { %10182 = vst [vmem:[%s17566_s12 + $0x138] sm:$0xff] %v12848_v9  ;;  %v9706_v40 = vpop.f32.mrb[78].mxu1 }
 0xfee   :  { %v9993_v60 = vadd.f32 %v11727_v38, %v18089_v36  ;;  %v11728_v27 = vadd.f32 %v17215_v15, %v9706_v40  ;;  %v9708_v62 = vpop.f32.mrb[79].mxu1 }
 0xff0   :  { %12853 = vtanh.f32 %v9993_v60  ;;  %v9996_v8 = vadd.f32 %v11728_v27, %v18090_v54  ;;  %v18099_v60 = vld [vmem:[#allocation18_spill] sm:$0xff] }
 0xff2   :  { %v12850_v56 = vpop.eup %12849  ;;  %12855 = vtanh.f32 %v9996_v8  ;;  %v18100_v8 = vld [vmem:[#allocation131_spill] sm:$0xff] }
 0xff3   :  { %10183 = vst [vmem:[%s17566_s12 + $0x140] sm:$0xff] %v12850_v56  ;;  %v9711_v16 = vpop.f32.mrb[80].mxu1 }
 0xff4   :  { %v12852_v44 = vpop.eup %12851  ;;  %v11729_v13 = vadd.f32 %v17215_v15, %v9711_v16  ;;  %v9713_v49 = vpop.f32.mrb[81].mxu1 }
 0xff5   :  { %10184 = vst [vmem:[%s17566_s12 + $0x148] sm:$0xff] %v12852_v44  ;;  %v9714_v1 = vpop.f32.mrb[82].mxu1 }
 0xff6   :  { %v10001_v57 = vadd.f32 %v11729_v13, %v18091_v34  ;;  %v11730_v37 = vadd.f32 %v17215_v15, %v9714_v1  ;;  %v9716_v47 = vpop.f32.mrb[83].mxu1 }
 0xff8   :  { %12857 = vtanh.f32 %v10001_v57  ;;  %v10004_v24 = vadd.f32 %v11730_v37, %v18092_v42  ;;  %v18101_v57 = vld [vmem:[#allocation129_spill] sm:$0xff] }
 0xffa   :  { %v12854_v46 = vpop.eup %12853  ;;  %12859 = vtanh.f32 %v10004_v24  ;;  %v18102_v24 = vld [vmem:[#allocation130_spill] sm:$0xff] }
 0xffb   :  { %10185 = vst [vmem:[%s17566_s12 + $0x150] sm:$0xff] %v12854_v46  ;;  %v9719_v50 = vpop.f32.mrb[84].mxu1 }
 0xffc   :  { %v12856_v58 = vpop.eup %12855  ;;  %v11731_v33 = vadd.f32 %v17215_v15, %v9719_v50  ;;  %v9721_v12 = vpop.f32.mrb[85].mxu1 }
 0xffd   :  { %10186 = vst [vmem:[%s17566_s12 + $0x158] sm:$0xff] %v12856_v58  ;;  %v9722_v59 = vpop.f32.mrb[86].mxu1 }
 0xffe   :  { %v10009_v55 = vadd.f32 %v11731_v33, %v18093_v22  ;;  %v11732_v29 = vadd.f32 %v17215_v15, %v9722_v59  ;;  %v9724_v63 = vpop.f32.mrb[87].mxu1 }
0x1000   :  { %12861 = vtanh.f32 %v10009_v55  ;;  %v10012_v11 = vadd.f32 %v11732_v29, %v18094_v3  ;;  %v18103_v55 = vld [vmem:[#allocation36_spill] sm:$0xff] }
0x1002   :  { %v12858_v53 = vpop.eup %12857  ;;  %12863 = vtanh.f32 %v10012_v11  ;;  %v18104_v11 = vld [vmem:[#allocation133_spill] sm:$0xff] }
0x1003   :  { %10187 = vst [vmem:[%s17566_s12 + $0x160] sm:$0xff] %v12858_v53  ;;  %v9727_v32 = vpop.f32.mrb[88].mxu1 }
0x1004   :  { %v12860_v51 = vpop.eup %12859  ;;  %v11733_v0 = vadd.f32 %v17215_v15, %v9727_v32  ;;  %v9729_v28 = vpop.f32.mrb[89].mxu1 }
0x1005   :  { %10188 = vst [vmem:[%s17566_s12 + $0x168] sm:$0xff] %v12860_v51  ;;  %v9730_v25 = vpop.f32.mrb[90].mxu1 }
0x1006   :  { %v10017_v48 = vadd.f32 %v11733_v0, %v18095_v31  ;;  %v11734_v35 = vadd.f32 %v17215_v15, %v9730_v25  ;;  %v9732_v5 = vpop.f32.mrb[91].mxu1 }
0x1008   :  { %12865 = vtanh.f32 %v10017_v48  ;;  %v10020_v30 = vadd.f32 %v11734_v35, %v18096_v7  ;;  %v18105_v48 = vld [vmem:[#allocation21_spill] sm:$0xff] }
0x100a   :  { %v12862_v18 = vpop.eup %12861  ;;  %12867 = vtanh.f32 %v10020_v30  ;;  %v18106_v30 = vld [vmem:[#allocation132_spill] sm:$0xff] }
0x100b   :  { %10189 = vst [vmem:[%s17566_s12 + $0x170] sm:$0xff] %v12862_v18  ;;  %v9735_v6 = vpop.f32.mrb[92].mxu1 }
0x100c   :  { %v12864_v45 = vpop.eup %12863  ;;  %v11735_v61 = vadd.f32 %v17215_v15, %v9735_v6  ;;  %v9737_v17 = vpop.f32.mrb[93].mxu1 }
0x100d   :  { %10190 = vst [vmem:[%s17566_s12 + $0x178] sm:$0xff] %v12864_v45  ;;  %v9738_v20 = vpop.f32.mrb[94].mxu1 }
0x100e   :  { %v10025_v4 = vadd.f32 %v11735_v61, %v18097_v39  ;;  %v11736_v43 = vadd.f32 %v17215_v15, %v9738_v20  ;;  %v9740_v26 = vpop.f32.mrb[95].mxu1 }
0x1010   :  { %12869 = vtanh.f32 %v10025_v4  ;;  %v10028_v10 = vadd.f32 %v11736_v43, %v18098_v21 }
0x1012   :  { %v12866_v19 = vpop.eup %12865  ;;  %12871 = vtanh.f32 %v10028_v10 }
0x1013   :  { %10191 = vst [vmem:[%s17566_s12 + $0x180] sm:$0xff] %v12866_v19  ;;  %v9743_v9 = vpop.f32.mrb[96].mxu1 }
0x1014   :  { %v12868_v38 = vpop.eup %12867  ;;  %v11737_v14 = vadd.f32 %v17215_v15, %v9743_v9  ;;  %v9745_v40 = vpop.f32.mrb[97].mxu1 }
0x1015   :  { %10192 = vst [vmem:[%s17566_s12 + $0x188] sm:$0xff] %v12868_v38  ;;  %v9746_v36 = vpop.f32.mrb[98].mxu1 }
0x1016   :  { %v10033_v27 = vadd.f32 %v11737_v14, %v18099_v60  ;;  %v11738_v62 = vadd.f32 %v17215_v15, %v9746_v36  ;;  %v9748_v54 = vpop.f32.mrb[99].mxu1 }
0x1018   :  { %12873 = vtanh.f32 %v10033_v27  ;;  %v10036_v56 = vadd.f32 %v11738_v62, %v18100_v8 }
0x101a   :  { %v12870_v16 = vpop.eup %12869  ;;  %12875 = vtanh.f32 %v10036_v56 }
0x101b   :  { %10193 = vst [vmem:[%s17566_s12 + $0x190] sm:$0xff] %v12870_v16  ;;  %v9751_v44 = vpop.f32.mrb[100].mxu1 }
0x101c   :  { %v12872_v13 = vpop.eup %12871  ;;  %v11739_v49 = vadd.f32 %v17215_v15, %v9751_v44  ;;  %v9753_v1 = vpop.f32.mrb[101].mxu1 }
0x101d   :  { %10194 = vst [vmem:[%s17566_s12 + $0x198] sm:$0xff] %v12872_v13  ;;  %v9754_v34 = vpop.f32.mrb[102].mxu1 }
0x101e   :  { %v10041_v37 = vadd.f32 %v11739_v49, %v18101_v57  ;;  %v11740_v47 = vadd.f32 %v17215_v15, %v9754_v34  ;;  %v9756_v42 = vpop.f32.mrb[103].mxu1 }
0x1020   :  { %12877 = vtanh.f32 %v10041_v37  ;;  %v10044_v46 = vadd.f32 %v11740_v47, %v18102_v24 }
0x1022   :  { %v12874_v50 = vpop.eup %12873  ;;  %12879 = vtanh.f32 %v10044_v46 }
0x1023   :  { %10195 = vst [vmem:[%s17566_s12 + $0x1a0] sm:$0xff] %v12874_v50  ;;  %v9759_v58 = vpop.f32.mrb[104].mxu1 }
0x1024   :  { %v12876_v33 = vpop.eup %12875  ;;  %v11741_v12 = vadd.f32 %v17215_v15, %v9759_v58  ;;  %v9761_v59 = vpop.f32.mrb[105].mxu1 }
0x1025   :  { %10196 = vst [vmem:[%s17566_s12 + $0x1a8] sm:$0xff] %v12876_v33  ;;  %v9762_v22 = vpop.f32.mrb[106].mxu1 }
0x1026   :  { %v10049_v29 = vadd.f32 %v11741_v12, %v18103_v55  ;;  %v11742_v63 = vadd.f32 %v17215_v15, %v9762_v22  ;;  %v9764_v3 = vpop.f32.mrb[107].mxu1 }
0x1028   :  { %12881 = vtanh.f32 %v10049_v29  ;;  %v10052_v53 = vadd.f32 %v11742_v63, %v18104_v11 }
0x102a   :  { %v12878_v32 = vpop.eup %12877  ;;  %12883 = vtanh.f32 %v10052_v53 }
0x102b   :  { %10197 = vst [vmem:[%s17566_s12 + $0x1b0] sm:$0xff] %v12878_v32  ;;  %v9767_v51 = vpop.f32.mrb[108].mxu1 }
0x102c   :  { %v12880_v0 = vpop.eup %12879  ;;  %v11743_v28 = vadd.f32 %v17215_v15, %v9767_v51  ;;  %v9769_v25 = vpop.f32.mrb[109].mxu1 }
0x102d   :  { %10198 = vst [vmem:[%s17566_s12 + $0x1b8] sm:$0xff] %v12880_v0  ;;  %v9770_v31 = vpop.f32.mrb[110].mxu1 }
0x102e   :  { %v10057_v35 = vadd.f32 %v11743_v28, %v18105_v48  ;;  %v11744_v5 = vadd.f32 %v17215_v15, %v9770_v31  ;;  %v9772_v7 = vpop.f32.mrb[111].mxu1 }
0x1030   :  { %12885 = vtanh.f32 %v10057_v35  ;;  %v10060_v18 = vadd.f32 %v11744_v5, %v18106_v30 }
0x1032   :  { %v12882_v6 = vpop.eup %12881  ;;  %12887 = vtanh.f32 %v10060_v18 }
0x1033   :  { %10199 = vst [vmem:[%s17566_s12 + $0x1c0] sm:$0xff] %v12882_v6  ;;  %v9775_v45 = vpop.f32.mrb[112].mxu1 }
0x1034   :  { %v12884_v61 = vpop.eup %12883  ;;  %v11745_v17 = vadd.f32 %v17215_v15, %v9775_v45  ;;  %v9777_v20 = vpop.f32.mrb[113].mxu1 }
0x1035   :  { %10200 = vst [vmem:[%s17566_s12 + $0x1c8] sm:$0xff] %v12884_v61  ;;  %v9778_v39 = vpop.f32.mrb[114].mxu1 }
0x1036   :  { %v11746_v4 = vadd.f32 %v17215_v15, %v9778_v39  ;;  %v10065_v43 = vadd.f32 %v11745_v17, %v17375_v23  ;;  %v9780_v26 = vpop.f32.mrb[115].mxu1 }
0x1038   :  { %12889 = vtanh.f32 %v10065_v43  ;;  %v10068_v21 = vadd.f32 %v11746_v4, %v17384_v2 }
0x103a   :  { %v12886_v10 = vpop.eup %12885  ;;  %12891 = vtanh.f32 %v10068_v21 }
0x103b   :  { %10201 = vst [vmem:[%s17566_s12 + $0x1d0] sm:$0xff] %v12886_v10  ;;  %v9783_v19 = vpop.f32.mrb[116].mxu1 }
0x103c   :  { %v12888_v9 = vpop.eup %12887  ;;  %v11747_v38 = vadd.f32 %v17215_v15, %v9783_v19  ;;  %v9785_v14 = vpop.f32.mrb[117].mxu1 }
0x103d   :  { %10202 = vst [vmem:[%s17566_s12 + $0x1d8] sm:$0xff] %v12888_v9  ;;  %v9786_v23 = vpop.f32.mrb[118].mxu1 }
0x103e   :  { %v10073_v40 = vadd.f32 %v11747_v38, %v17371_v52  ;;  %v11748_v2 = vadd.f32 %v17215_v15, %v9786_v23  ;;  %v9788_v36 = vpop.f32.mrb[119].mxu1 }
0x1040   :  { %12893 = vtanh.f32 %v10073_v40  ;;  %v10076_v60 = vadd.f32 %v11748_v2, %v17381_v41 }
0x1042   :  { %v12890_v27 = vpop.eup %12889  ;;  %12895 = vtanh.f32 %v10076_v60 }
0x1043   :  { %10203 = vst [vmem:[%s17566_s12 + $0x1e0] sm:$0xff] %v12890_v27 }
0x1044   :  { %v12892_v62 = vpop.eup %12891 }
0x1045   :  { %10204 = vst [vmem:[%s17566_s12 + $0x1e8] sm:$0xff] %v12892_v62 }
0x104a   :  { %v12894_v54 = vpop.eup %12893 }
0x104b   :  { %10205 = vst [vmem:[%s17566_s12 + $0x1f0] sm:$0xff] %v12894_v54 }
0x104c   :  { %v12896_v15 = vpop.eup %12895 }
0x104d   :  { %10206 = vst [vmem:[%s17566_s12 + $0x1f8] sm:$0xff] %v12896_v15 }
0x104e   :  { %10211 = vsyncpa [#allocation3], 1 }
0x104f   :  { %10212 = vsyncpa [#allocation5], 1 }
0x1050   :  { %10213 = vsyncpa [#allocation8], 1 }
0x1051   :  { %10214 = vsyncpa [#allocation11], 1 }

</bundles_post_ra>
